<compile_context>
chip_gen: v7x
topology: tpu7x:2x2x1
jax: 0.10.0
libtpu: 0.0.40
codegen_flags: <defaults>
</compile_context>

<pallas_src>
import functools
import numpy as np
import jax
import jax.numpy as jnp
from jax.experimental import pallas as pl
from jax.experimental.pallas import tpu as pltpu


# ----------------------------------------------------------------------------
# Pallas kernel: a batch of Wb windows per grid step.
# ----------------------------------------------------------------------------
def _swin_window_attn_kernel(x_ref, wqkv_ref, bqkv_ref, wp_ref, bp_ref,
                             bias_ref, o_ref, *, num_heads):
    # x_ref:    (Wb, N, C)      tokens of Wb windows
    # wqkv_ref: (C, 3C)         fused qkv projection (scale folded into q cols)
    # bqkv_ref: (1, 3C)
    # wp_ref:   (C, C)          output projection
    # bp_ref:   (1, C)
    # bias_ref: (nh, Wb, N, N)  relative-position bias + shift mask (resident)
    # o_ref:    (Wb, N, C)
    Wb, N, C = x_ref.shape
    hd = C // num_heads
    M = Wb * N

    x2 = x_ref[...].reshape(M, C)                       # trivial leading-dim merge

    # One fused MXU matmul for Q, K, V of all heads (lane width 3C).
    qkv = jnp.dot(x2, wqkv_ref[...],
                  preferred_element_type=jnp.float32) + bqkv_ref[...]

    heads = []
    for h in range(num_heads):                          # static, small head count
        q = qkv[:, h * hd:(h + 1) * hd].reshape(Wb, N, hd)
        k = qkv[:, C + h * hd:C + (h + 1) * hd].reshape(Wb, N, hd)
        v = qkv[:, 2 * C + h * hd:2 * C + (h + 1) * hd].reshape(Wb, N, hd)

        s = jnp.einsum('wqd,wkd->wqk', q, k,
                       preferred_element_type=jnp.float32)       # (Wb, N, N)
        s = s + bias_ref[h]                                      # bias + shift mask
        s = s - jnp.max(s, axis=-1, keepdims=True)
        p = jnp.exp(s)
        p = p * pl.reciprocal(jnp.sum(p, axis=-1, keepdims=True), approx=True)

        oh = jnp.einsum('wqk,wkd->wqd', p, v,
                        preferred_element_type=jnp.float32)      # (Wb, N, hd)
        heads.append(oh.reshape(M, hd))

    o = jnp.concatenate(heads, axis=-1)                 # (M, C)
    y = jnp.dot(o, wp_ref[...],
                preferred_element_type=jnp.float32) + bp_ref[...]
    o_ref[...] = y.reshape(Wb, N, C).astype(o_ref.dtype)
    # TODO(synk): attention_dropout / dropout are 0.0 in this config; stateful
    # dropout (pltpu.prng_*) is not emitted here.


# ----------------------------------------------------------------------------
# Pure-JAX reference of the windowed attention (numerical check only).
# ----------------------------------------------------------------------------
def _attn_ref(xw, qkv_wT, qkv_b, proj_wT, proj_b, combined, num_heads):
    BW, N, C = xw.shape
    hd = C // num_heads
    qkv = xw @ qkv_wT + qkv_b[0]
    qkv = qkv.reshape(BW, N, 3, num_heads, hd).transpose(2, 0, 3, 1, 4)
    q, k, v = qkv[0], qkv[1], qkv[2]
    q = q * hd ** -0.5
    attn = q @ jnp.swapaxes(k, -2, -1) + combined
    attn = jax.nn.softmax(attn, axis=-1)
    out = (attn @ v).transpose(0, 2, 1, 3).reshape(BW, N, C)
    return out @ proj_wT + proj_b[0]


def _relative_position_index(wh, ww):
    coords = np.stack(np.meshgrid(np.arange(wh), np.arange(ww), indexing='ij'))
    cf = coords.reshape(2, -1)
    rel = cf[:, :, None] - cf[:, None, :]
    rel = rel.transpose(1, 2, 0).copy()
    rel[:, :, 0] += wh - 1
    rel[:, :, 1] += ww - 1
    rel[:, :, 0] *= 2 * ww - 1
    return rel.sum(-1).reshape(-1)


def _unpartition(out_w, B, nWh, nWw, wh, ww, C, pH, pW, shift, H, W):
    out = (out_w.reshape(B, nWh, nWw, wh, ww, C)
                .transpose(0, 1, 3, 2, 4, 5)
                .reshape(B, pH, pW, C))
    if sum(shift) > 0:
        out = jnp.roll(out, shift=(shift[0], shift[1]), axis=(1, 2))
    return out[:, :H, :W, :]


# ----------------------------------------------------------------------------
# Wrapper: padding, cyclic shift, window partition, bias/mask prep, pallas_call.
# ----------------------------------------------------------------------------
def shifted_window_attention_pallas(x, qkv_weight, qkv_bias, proj_weight, proj_bias,
                                    rel_pos_bias_table, window_size, shift_size,
                                    num_heads, use_pallas=True):
    B, H, W, C = x.shape
    wh, ww = window_size
    nh = num_heads
    hd = C // nh

    pad_r = (ww - W % ww) % ww
    pad_b = (wh - H % wh) % wh
    x = jnp.pad(x, ((0, 0), (0, pad_b), (0, pad_r), (0, 0)))
    _, pH, pW, _ = x.shape

    shift = list(shift_size)
    if wh >= pH:
        shift[0] = 0
    if ww >= pW:
        shift[1] = 0
    if sum(shift) > 0:
        x = jnp.roll(x, shift=(-shift[0], -shift[1]), axis=(1, 2))

    nWh, nWw = pH // wh, pW // ww
    nW = nWh * nWw
    N = wh * ww
    # TODO(synk): window sizes with N not a multiple of 8 (e.g. Swin's 7x7)
    # should be padded up in the wrapper to keep (8,128)-friendly kernel tiles.
    xw = (x.reshape(B, nWh, wh, nWw, ww, C)
           .transpose(0, 1, 3, 2, 4, 5)
           .reshape(B * nW, N, C))

    # relative position bias: (nh, N, N)
    rpi = _relative_position_index(wh, ww)
    bias = rel_pos_bias_table[rpi].reshape(N, N, nh).transpose(2, 0, 1)

    # shift attention mask: (nW, N, N)
    if sum(shift) > 0:
        mask = np.zeros((pH, pW), dtype=np.float32)
        h_slices = ((0, -wh), (-wh, -shift[0]), (-shift[0], None))
        w_slices = ((0, -ww), (-ww, -shift[1]), (-shift[1], None))
        cnt = 0
        for hs in h_slices:
            for ws in w_slices:
                mask[hs[0]:hs[1], ws[0]:ws[1]] = cnt
                cnt += 1
        mask = mask.reshape(nWh, wh, nWw, ww).transpose(0, 2, 1, 3).reshape(nW, N)
        diff = mask[:, None, :] - mask[:, :, None]
        attn_mask = np.where(diff != 0, -100.0, 0.0).astype(np.float32)
    else:
        attn_mask = np.zeros((nW, N, N), dtype=np.float32)
    attn_mask = jnp.asarray(attn_mask)

    BW = B * nW

    if not use_pallas:
        combined = (bias[None, :, :, :]
                    + jnp.tile(attn_mask, (B, 1, 1))[:, None, :, :])   # (BW,nh,N,N)
        out_w = _attn_ref(xw, qkv_weight.T, qkv_bias.reshape(1, 3 * C),
                          proj_weight.T, proj_bias.reshape(1, C), combined, nh)
        return _unpartition(out_w, B, nWh, nWw, wh, ww, C, pH, pW, shift, H, W)

    # Fused weight prep (done once; attention scale folded into the q columns).
    scale = float(hd) ** -0.5
    col_scale = jnp.concatenate([jnp.full((C,), scale, jnp.float32),
                                 jnp.ones((2 * C,), jnp.float32)])
    wqkv = qkv_weight.T * col_scale[None, :]          # (C, 3C)
    bqkv = (qkv_bias * col_scale).reshape(1, 3 * C)   # (1, 3C)
    wp = proj_weight.T                                # (C, C)
    bp = proj_bias.reshape(1, C)

    # Choose how many whole batch elements each grid step covers.  Covering
    # whole batch elements makes the bias+mask block identical every step, so
    # it stays resident in VMEM and is never tiled B times in HBM.
    target_windows = 32                       # ~2048 MXU rows per step
    b_step = 1
    for cand in range(1, B + 1):
        if B % cand:
            continue
        if cand * nW > target_windows:
            break
        if B >= 2 and B // cand < 2:          # keep >=2 grid steps (megacore / v7x)
            break
        b_step = cand
    Wb = b_step * nW
    M_step = Wb * N
    grid = (B // b_step,)

    # bias + shift mask for one grid step: (nh, Wb, N, N), identical every step.
    combined = (bias[:, None, :, :]
                + jnp.tile(attn_mask, (b_step, 1, 1))[None, :, :, :])

    est_vmem = (4 * M_step * C * 4            # x + out tiles, double buffered
                + 2 * nh * Wb * N * N * 4     # resident bias+mask block (+slack)
                + (M_step * 3 * C + 2 * Wb * N * N + 2 * M_step * C) * 4  # live temps
                + 2 * (3 * C * C + C * C + 4 * C) * 4)                    # weights
    kernel = functools.partial(_swin_window_attn_kernel, num_heads=nh)
    out_w = pl.pallas_call(
        kernel,
        out_shape=jax.ShapeDtypeStruct((BW, N, C), x.dtype),
        grid=grid,
        in_specs=[
            pl.BlockSpec((Wb, N, C), lambda i: (i, 0, 0)),
            pl.BlockSpec((C, 3 * C), lambda i: (0, 0)),
            pl.BlockSpec((1, 3 * C), lambda i: (0, 0)),
            pl.BlockSpec((C, C), lambda i: (0, 0)),
            pl.BlockSpec((1, C), lambda i: (0, 0)),
            pl.BlockSpec((nh, Wb, N, N), lambda i: (0, 0, 0, 0)),
        ],
        out_specs=pl.BlockSpec((Wb, N, C), lambda i: (i, 0, 0)),
        compiler_params=pltpu.CompilerParams(
            dimension_semantics=("parallel",),
            vmem_limit_bytes=int(min(128 << 20, max(16 << 20, 2 * est_vmem)))),
    )(xw, wqkv, bqkv, wp, bp, combined)

    return _unpartition(out_w, B, nWh, nWw, wh, ww, C, pH, pW, shift, H, W)


if __name__ == "__main__":
    B, H, W, dim = 2, 16, 16, 32
    window_size = [8, 8]
    shift_size = [4, 4]
    num_heads = 4

    key = jax.random.PRNGKey(0)
    kx, k1, k2, k3, k4, k5 = jax.random.split(key, 6)
    x = jax.random.normal(kx, (B, H, W, dim), jnp.float32)

    # deterministic synthetic parameters (shapes per nn.Module __init__)
    qkv_w = jax.random.normal(k1, (3 * dim, dim), jnp.float32) * 0.05
    qkv_b = jax.random.normal(k2, (3 * dim,), jnp.float32) * 0.05
    proj_w = jax.random.normal(k3, (dim, dim), jnp.float32) * 0.05
    proj_b = jax.random.normal(k4, (dim,), jnp.float32) * 0.05
    table = jax.random.truncated_normal(
        k5, -2.0, 2.0,
        ((2 * window_size[0] - 1) * (2 * window_size[1] - 1), num_heads),
        jnp.float32) * 0.02

    out = shifted_window_attention_pallas(
        x, qkv_w, qkv_b, proj_w, proj_b, table,
        window_size, shift_size, num_heads, use_pallas=True)
    out = jax.block_until_ready(out)
    assert out.shape == (B, H, W, dim)

    ref = shifted_window_attention_pallas(
        x, qkv_w, qkv_b, proj_w, proj_b, table,
        window_size, shift_size, num_heads, use_pallas=False)
    # tolerance accounts for the approx-reciprocal softmax denominator
    np.testing.assert_allclose(np.asarray(out), np.asarray(ref),
                               rtol=2e-3, atol=2e-3)
    print("KERNEL_OK")
</pallas_src>

<mosaic_0001>
module attributes {stable_mosaic.version = 11 : i64} {
  func.func @_swin_window_attn_kernel(%arg0: i32, %arg1: memref<4x64x32xf32, #tpu.memory_space<vmem>>, %arg2: memref<32x96xf32, #tpu.memory_space<vmem>>, %arg3: memref<1x96xf32, #tpu.memory_space<vmem>>, %arg4: memref<32x32xf32, #tpu.memory_space<vmem>>, %arg5: memref<1x32xf32, #tpu.memory_space<vmem>>, %arg6: memref<4x4x64x64xf32, #tpu.memory_space<vmem>>, %arg7: memref<4x64x32xf32, #tpu.memory_space<vmem>>) attributes {dimension_semantics = [#tpu.dimension_semantics<parallel>], iteration_bounds = array<i64: 2>, scalar_prefetch = 0 : i64, scratch_operands = 0 : i64, tpu.core_type = #tpu.core_type<tc>, window_params = [{transform_indices = @transform_0, window_bounds = array<i64: 4, 64, 32>}, {pipeline_mode = #tpu.pipeline_mode<synchronous>, transform_indices = @transform_1, window_bounds = array<i64: 32, 96>}, {pipeline_mode = #tpu.pipeline_mode<synchronous>, transform_indices = @transform_2, window_bounds = array<i64: 1, 96>}, {pipeline_mode = #tpu.pipeline_mode<synchronous>, transform_indices = @transform_3, window_bounds = array<i64: 32, 32>}, {pipeline_mode = #tpu.pipeline_mode<synchronous>, transform_indices = @transform_4, window_bounds = array<i64: 1, 32>}, {pipeline_mode = #tpu.pipeline_mode<synchronous>, transform_indices = @transform_5, window_bounds = array<i64: 4, 4, 64, 64>}, {transform_indices = @transform_6, window_bounds = array<i64: 4, 64, 32>}]} {
    %c0 = arith.constant 0 : index
    %c0_0 = arith.constant 0 : index
    %c0_1 = arith.constant 0 : index
    %0 = vector.load %arg1[%c0, %c0_0, %c0_1] : memref<4x64x32xf32, #tpu.memory_space<vmem>>, vector<4x64x32xf32>
    %1 = vector.shape_cast %0 : vector<4x64x32xf32> to vector<256x32xf32>
    %c0_2 = arith.constant 0 : index
    %c0_3 = arith.constant 0 : index
    %2 = vector.load %arg2[%c0_2, %c0_3] : memref<32x96xf32, #tpu.memory_space<vmem>>, vector<32x96xf32>
    %cst = arith.constant dense<0.000000e+00> : vector<256x96xf32>
    %3 = tpu.matmul %1, %2, %cst {dimension_numbers = #tpu.dot_dimension_numbers<[1], [0], [0], [1], [0, 0, 1, 1], [], []>} : vector<256x32xf32>, vector<32x96xf32>, vector<256x96xf32> -> vector<256x96xf32>
    %c0_4 = arith.constant 0 : index
    %c0_5 = arith.constant 0 : index
    %4 = vector.load %arg3[%c0_4, %c0_5] : memref<1x96xf32, #tpu.memory_space<vmem>>, vector<1x96xf32>
    %5 = vector.broadcast %4 : vector<1x96xf32> to vector<256x96xf32>
    %6 = arith.addf %3, %5 : vector<256x96xf32>
    %7 = vector.extract_strided_slice %6 {offsets = [0, 0], sizes = [256, 8], strides = [1, 1]} : vector<256x96xf32> to vector<256x8xf32>
    %8 = vector.shape_cast %7 : vector<256x8xf32> to vector<4x64x8xf32>
    %9 = vector.extract_strided_slice %6 {offsets = [0, 32], sizes = [256, 8], strides = [1, 1]} : vector<256x96xf32> to vector<256x8xf32>
    %10 = vector.shape_cast %9 : vector<256x8xf32> to vector<4x64x8xf32>
    %11 = vector.extract_strided_slice %6 {offsets = [0, 64], sizes = [256, 8], strides = [1, 1]} : vector<256x96xf32> to vector<256x8xf32>
    %12 = vector.shape_cast %11 : vector<256x8xf32> to vector<4x64x8xf32>
    "tpu.trace_start"() <{level = 10 : i32, message = "wqd,wkd->wqk"}> : () -> ()
    %cst_6 = arith.constant dense<0.000000e+00> : vector<4x64x64xf32>
    %13 = tpu.matmul %8, %10, %cst_6 {dimension_numbers = #tpu.dot_dimension_numbers<[2], [2], [1], [1], [0, 0, 0, 1, 1, 1], [0], [0]>} : vector<4x64x8xf32>, vector<4x64x8xf32>, vector<4x64x64xf32> -> vector<4x64x64xf32>
    "tpu.trace_stop"() : () -> ()
    %c0_7 = arith.constant 0 : index
    %c0_8 = arith.constant 0 : index
    %c0_9 = arith.constant 0 : index
    %c0_10 = arith.constant 0 : index
    %14 = vector.load %arg6[%c0_7, %c0_8, %c0_9, %c0_10] : memref<4x4x64x64xf32, #tpu.memory_space<vmem>>, vector<1x4x64x64xf32>
    %15 = vector.shape_cast %14 : vector<1x4x64x64xf32> to vector<4x64x64xf32>
    %16 = arith.addf %13, %15 : vector<4x64x64xf32>
    %cst_11 = arith.constant dense<0xFF800000> : vector<4x64xf32>
    %17 = vector.multi_reduction <maximumf>, %16, %cst_11 [2] : vector<4x64x64xf32> to vector<4x64xf32>
    %18 = vector.shape_cast %17 : vector<4x64xf32> to vector<4x64x1xf32>
    %19 = vector.broadcast %18 : vector<4x64x1xf32> to vector<4x64x64xf32>
    %20 = arith.subf %16, %19 : vector<4x64x64xf32>
    %21 = math.exp %20 : vector<4x64x64xf32>
    %cst_12 = arith.constant dense<0.000000e+00> : vector<4x64xf32>
    %22 = vector.multi_reduction <add>, %21, %cst_12 [2] : vector<4x64x64xf32> to vector<4x64xf32>
    %23 = vector.shape_cast %22 : vector<4x64xf32> to vector<4x64x1xf32>
    %24 = tpu.reciprocal %23 {approx = true} : vector<4x64x1xf32> -> vector<4x64x1xf32>
    %25 = vector.broadcast %24 : vector<4x64x1xf32> to vector<4x64x64xf32>
    %26 = arith.mulf %21, %25 : vector<4x64x64xf32>
    "tpu.trace_start"() <{level = 10 : i32, message = "wqk,wkd->wqd"}> : () -> ()
    %cst_13 = arith.constant dense<0.000000e+00> : vector<4x64x8xf32>
    %27 = tpu.matmul %26, %12, %cst_13 {dimension_numbers = #tpu.dot_dimension_numbers<[2], [1], [1], [2], [0, 0, 0, 1, 1, 2], [0], [0]>} : vector<4x64x64xf32>, vector<4x64x8xf32>, vector<4x64x8xf32> -> vector<4x64x8xf32>
    "tpu.trace_stop"() : () -> ()
    %28 = vector.shape_cast %27 : vector<4x64x8xf32> to vector<256x8xf32>
    %29 = vector.extract_strided_slice %6 {offsets = [0, 8], sizes = [256, 8], strides = [1, 1]} : vector<256x96xf32> to vector<256x8xf32>
    %30 = vector.shape_cast %29 : vector<256x8xf32> to vector<4x64x8xf32>
    %31 = vector.extract_strided_slice %6 {offsets = [0, 40], sizes = [256, 8], strides = [1, 1]} : vector<256x96xf32> to vector<256x8xf32>
    %32 = vector.shape_cast %31 : vector<256x8xf32> to vector<4x64x8xf32>
    %33 = vector.extract_strided_slice %6 {offsets = [0, 72], sizes = [256, 8], strides = [1, 1]} : vector<256x96xf32> to vector<256x8xf32>
    %34 = vector.shape_cast %33 : vector<256x8xf32> to vector<4x64x8xf32>
    "tpu.trace_start"() <{level = 10 : i32, message = "wqd,wkd->wqk"}> : () -> ()
    %cst_14 = arith.constant dense<0.000000e+00> : vector<4x64x64xf32>
    %35 = tpu.matmul %30, %32, %cst_14 {dimension_numbers = #tpu.dot_dimension_numbers<[2], [2], [1], [1], [0, 0, 0, 1, 1, 1], [0], [0]>} : vector<4x64x8xf32>, vector<4x64x8xf32>, vector<4x64x64xf32> -> vector<4x64x64xf32>
    "tpu.trace_stop"() : () -> ()
    %c1 = arith.constant 1 : index
    %c0_15 = arith.constant 0 : index
    %c0_16 = arith.constant 0 : index
    %c0_17 = arith.constant 0 : index
    %36 = vector.load %arg6[%c1, %c0_15, %c0_16, %c0_17] : memref<4x4x64x64xf32, #tpu.memory_space<vmem>>, vector<1x4x64x64xf32>
    %37 = vector.shape_cast %36 : vector<1x4x64x64xf32> to vector<4x64x64xf32>
    %38 = arith.addf %35, %37 : vector<4x64x64xf32>
    %cst_18 = arith.constant dense<0xFF800000> : vector<4x64xf32>
    %39 = vector.multi_reduction <maximumf>, %38, %cst_18 [2] : vector<4x64x64xf32> to vector<4x64xf32>
    %40 = vector.shape_cast %39 : vector<4x64xf32> to vector<4x64x1xf32>
    %41 = vector.broadcast %40 : vector<4x64x1xf32> to vector<4x64x64xf32>
    %42 = arith.subf %38, %41 : vector<4x64x64xf32>
    %43 = math.exp %42 : vector<4x64x64xf32>
    %cst_19 = arith.constant dense<0.000000e+00> : vector<4x64xf32>
    %44 = vector.multi_reduction <add>, %43, %cst_19 [2] : vector<4x64x64xf32> to vector<4x64xf32>
    %45 = vector.shape_cast %44 : vector<4x64xf32> to vector<4x64x1xf32>
    %46 = tpu.reciprocal %45 {approx = true} : vector<4x64x1xf32> -> vector<4x64x1xf32>
    %47 = vector.broadcast %46 : vector<4x64x1xf32> to vector<4x64x64xf32>
    %48 = arith.mulf %43, %47 : vector<4x64x64xf32>
    "tpu.trace_start"() <{level = 10 : i32, message = "wqk,wkd->wqd"}> : () -> ()
    %cst_20 = arith.constant dense<0.000000e+00> : vector<4x64x8xf32>
    %49 = tpu.matmul %48, %34, %cst_20 {dimension_numbers = #tpu.dot_dimension_numbers<[2], [1], [1], [2], [0, 0, 0, 1, 1, 2], [0], [0]>} : vector<4x64x64xf32>, vector<4x64x8xf32>, vector<4x64x8xf32> -> vector<4x64x8xf32>
    "tpu.trace_stop"() : () -> ()
    %50 = vector.shape_cast %49 : vector<4x64x8xf32> to vector<256x8xf32>
    %51 = vector.extract_strided_slice %6 {offsets = [0, 16], sizes = [256, 8], strides = [1, 1]} : vector<256x96xf32> to vector<256x8xf32>
    %52 = vector.shape_cast %51 : vector<256x8xf32> to vector<4x64x8xf32>
    %53 = vector.extract_strided_slice %6 {offsets = [0, 48], sizes = [256, 8], strides = [1, 1]} : vector<256x96xf32> to vector<256x8xf32>
    %54 = vector.shape_cast %53 : vector<256x8xf32> to vector<4x64x8xf32>
    %55 = vector.extract_strided_slice %6 {offsets = [0, 80], sizes = [256, 8], strides = [1, 1]} : vector<256x96xf32> to vector<256x8xf32>
    %56 = vector.shape_cast %55 : vector<256x8xf32> to vector<4x64x8xf32>
    "tpu.trace_start"() <{level = 10 : i32, message = "wqd,wkd->wqk"}> : () -> ()
    %cst_21 = arith.constant dense<0.000000e+00> : vector<4x64x64xf32>
    %57 = tpu.matmul %52, %54, %cst_21 {dimension_numbers = #tpu.dot_dimension_numbers<[2], [2], [1], [1], [0, 0, 0, 1, 1, 1], [0], [0]>} : vector<4x64x8xf32>, vector<4x64x8xf32>, vector<4x64x64xf32> -> vector<4x64x64xf32>
    "tpu.trace_stop"() : () -> ()
    %c2 = arith.constant 2 : index
    %c0_22 = arith.constant 0 : index
    %c0_23 = arith.constant 0 : index
    %c0_24 = arith.constant 0 : index
    %58 = vector.load %arg6[%c2, %c0_22, %c0_23, %c0_24] : memref<4x4x64x64xf32, #tpu.memory_space<vmem>>, vector<1x4x64x64xf32>
    %59 = vector.shape_cast %58 : vector<1x4x64x64xf32> to vector<4x64x64xf32>
    %60 = arith.addf %57, %59 : vector<4x64x64xf32>
    %cst_25 = arith.constant dense<0xFF800000> : vector<4x64xf32>
    %61 = vector.multi_reduction <maximumf>, %60, %cst_25 [2] : vector<4x64x64xf32> to vector<4x64xf32>
    %62 = vector.shape_cast %61 : vector<4x64xf32> to vector<4x64x1xf32>
    %63 = vector.broadcast %62 : vector<4x64x1xf32> to vector<4x64x64xf32>
    %64 = arith.subf %60, %63 : vector<4x64x64xf32>
    %65 = math.exp %64 : vector<4x64x64xf32>
    %cst_26 = arith.constant dense<0.000000e+00> : vector<4x64xf32>
    %66 = vector.multi_reduction <add>, %65, %cst_26 [2] : vector<4x64x64xf32> to vector<4x64xf32>
    %67 = vector.shape_cast %66 : vector<4x64xf32> to vector<4x64x1xf32>
    %68 = tpu.reciprocal %67 {approx = true} : vector<4x64x1xf32> -> vector<4x64x1xf32>
    %69 = vector.broadcast %68 : vector<4x64x1xf32> to vector<4x64x64xf32>
    %70 = arith.mulf %65, %69 : vector<4x64x64xf32>
    "tpu.trace_start"() <{level = 10 : i32, message = "wqk,wkd->wqd"}> : () -> ()
    %cst_27 = arith.constant dense<0.000000e+00> : vector<4x64x8xf32>
    %71 = tpu.matmul %70, %56, %cst_27 {dimension_numbers = #tpu.dot_dimension_numbers<[2], [1], [1], [2], [0, 0, 0, 1, 1, 2], [0], [0]>} : vector<4x64x64xf32>, vector<4x64x8xf32>, vector<4x64x8xf32> -> vector<4x64x8xf32>
    "tpu.trace_stop"() : () -> ()
    %72 = vector.shape_cast %71 : vector<4x64x8xf32> to vector<256x8xf32>
    %73 = vector.extract_strided_slice %6 {offsets = [0, 24], sizes = [256, 8], strides = [1, 1]} : vector<256x96xf32> to vector<256x8xf32>
    %74 = vector.shape_cast %73 : vector<256x8xf32> to vector<4x64x8xf32>
    %75 = vector.extract_strided_slice %6 {offsets = [0, 56], sizes = [256, 8], strides = [1, 1]} : vector<256x96xf32> to vector<256x8xf32>
    %76 = vector.shape_cast %75 : vector<256x8xf32> to vector<4x64x8xf32>
    %77 = vector.extract_strided_slice %6 {offsets = [0, 88], sizes = [256, 8], strides = [1, 1]} : vector<256x96xf32> to vector<256x8xf32>
    %78 = vector.shape_cast %77 : vector<256x8xf32> to vector<4x64x8xf32>
    "tpu.trace_start"() <{level = 10 : i32, message = "wqd,wkd->wqk"}> : () -> ()
    %cst_28 = arith.constant dense<0.000000e+00> : vector<4x64x64xf32>
    %79 = tpu.matmul %74, %76, %cst_28 {dimension_numbers = #tpu.dot_dimension_numbers<[2], [2], [1], [1], [0, 0, 0, 1, 1, 1], [0], [0]>} : vector<4x64x8xf32>, vector<4x64x8xf32>, vector<4x64x64xf32> -> vector<4x64x64xf32>
    "tpu.trace_stop"() : () -> ()
    %c3 = arith.constant 3 : index
    %c0_29 = arith.constant 0 : index
    %c0_30 = arith.constant 0 : index
    %c0_31 = arith.constant 0 : index
    %80 = vector.load %arg6[%c3, %c0_29, %c0_30, %c0_31] : memref<4x4x64x64xf32, #tpu.memory_space<vmem>>, vector<1x4x64x64xf32>
    %81 = vector.shape_cast %80 : vector<1x4x64x64xf32> to vector<4x64x64xf32>
    %82 = arith.addf %79, %81 : vector<4x64x64xf32>
    %cst_32 = arith.constant dense<0xFF800000> : vector<4x64xf32>
    %83 = vector.multi_reduction <maximumf>, %82, %cst_32 [2] : vector<4x64x64xf32> to vector<4x64xf32>
    %84 = vector.shape_cast %83 : vector<4x64xf32> to vector<4x64x1xf32>
    %85 = vector.broadcast %84 : vector<4x64x1xf32> to vector<4x64x64xf32>
    %86 = arith.subf %82, %85 : vector<4x64x64xf32>
    %87 = math.exp %86 : vector<4x64x64xf32>
    %cst_33 = arith.constant dense<0.000000e+00> : vector<4x64xf32>
    %88 = vector.multi_reduction <add>, %87, %cst_33 [2] : vector<4x64x64xf32> to vector<4x64xf32>
    %89 = vector.shape_cast %88 : vector<4x64xf32> to vector<4x64x1xf32>
    %90 = tpu.reciprocal %89 {approx = true} : vector<4x64x1xf32> -> vector<4x64x1xf32>
    %91 = vector.broadcast %90 : vector<4x64x1xf32> to vector<4x64x64xf32>
    %92 = arith.mulf %87, %91 : vector<4x64x64xf32>
    "tpu.trace_start"() <{level = 10 : i32, message = "wqk,wkd->wqd"}> : () -> ()
    %cst_34 = arith.constant dense<0.000000e+00> : vector<4x64x8xf32>
    %93 = tpu.matmul %92, %78, %cst_34 {dimension_numbers = #tpu.dot_dimension_numbers<[2], [1], [1], [2], [0, 0, 0, 1, 1, 2], [0], [0]>} : vector<4x64x64xf32>, vector<4x64x8xf32>, vector<4x64x8xf32> -> vector<4x64x8xf32>
    "tpu.trace_stop"() : () -> ()
    %94 = vector.shape_cast %93 : vector<4x64x8xf32> to vector<256x8xf32>
    %95 = tpu.concatenate %28, %50, %72, %94 in 1 : vector<256x8xf32>, vector<256x8xf32>, vector<256x8xf32>, vector<256x8xf32> -> vector<256x32xf32>
    %c0_35 = arith.constant 0 : index
    %c0_36 = arith.constant 0 : index
    %96 = vector.load %arg4[%c0_35, %c0_36] : memref<32x32xf32, #tpu.memory_space<vmem>>, vector<32x32xf32>
    %cst_37 = arith.constant dense<0.000000e+00> : vector<256x32xf32>
    %97 = tpu.matmul %95, %96, %cst_37 {dimension_numbers = #tpu.dot_dimension_numbers<[1], [0], [0], [1], [0, 0, 1, 1], [], []>} : vector<256x32xf32>, vector<32x32xf32>, vector<256x32xf32> -> vector<256x32xf32>
    %c0_38 = arith.constant 0 : index
    %c0_39 = arith.constant 0 : index
    %98 = vector.load %arg5[%c0_38, %c0_39] : memref<1x32xf32, #tpu.memory_space<vmem>>, vector<1x32xf32>
    %99 = vector.broadcast %98 : vector<1x32xf32> to vector<256x32xf32>
    %100 = arith.addf %97, %99 : vector<256x32xf32>
    %101 = vector.shape_cast %100 : vector<256x32xf32> to vector<4x64x32xf32>
    %c0_40 = arith.constant 0 : index
    %c0_41 = arith.constant 0 : index
    %c0_42 = arith.constant 0 : index
    %102 = vector.load %arg7[%c0_40, %c0_41, %c0_42] : memref<4x64x32xf32, #tpu.memory_space<vmem>>, vector<4x64x32xf32>
    tpu.vector_store %arg7[%c0_40, %c0_41, %c0_42], %101 {strides = array<i32>} : memref<4x64x32xf32, #tpu.memory_space<vmem>>, vector<4x64x32xf32>,
    return
  }
  func.func @transform_0(%arg0: i32) -> (i32, i32, i32) {
    %c0_i32 = arith.constant 0 : i32
    %c0_i32_0 = arith.constant 0 : i32
    %c0_i32_1 = arith.constant 0 : i32
    return %arg0, %c0_i32, %c0_i32_0 : i32, i32, i32
  }
  func.func @transform_1(%arg0: i32) -> (i32, i32) {
    %c0_i32 = arith.constant 0 : i32
    %c0_i32_0 = arith.constant 0 : i32
    %c0_i32_1 = arith.constant 0 : i32
    return %c0_i32, %c0_i32_0 : i32, i32
  }
  func.func @transform_2(%arg0: i32) -> (i32, i32) {
    %c0_i32 = arith.constant 0 : i32
    %c0_i32_0 = arith.constant 0 : i32
    %c0_i32_1 = arith.constant 0 : i32
    return %c0_i32, %c0_i32_0 : i32, i32
  }
  func.func @transform_3(%arg0: i32) -> (i32, i32) {
    %c0_i32 = arith.constant 0 : i32
    %c0_i32_0 = arith.constant 0 : i32
    %c0_i32_1 = arith.constant 0 : i32
    return %c0_i32, %c0_i32_0 : i32, i32
  }
  func.func @transform_4(%arg0: i32) -> (i32, i32) {
    %c0_i32 = arith.constant 0 : i32
    %c0_i32_0 = arith.constant 0 : i32
    %c0_i32_1 = arith.constant 0 : i32
    return %c0_i32, %c0_i32_0 : i32, i32
  }
  func.func @transform_5(%arg0: i32) -> (i32, i32, i32, i32) {
    %c0_i32 = arith.constant 0 : i32
    %c0_i32_0 = arith.constant 0 : i32
    %c0_i32_1 = arith.constant 0 : i32
    %c0_i32_2 = arith.constant 0 : i32
    %c0_i32_3 = arith.constant 0 : i32
    return %c0_i32, %c0_i32_0, %c0_i32_1, %c0_i32_2 : i32, i32, i32, i32
  }
  func.func @transform_6(%arg0: i32) -> (i32, i32, i32) {
    %c0_i32 = arith.constant 0 : i32
    %c0_i32_0 = arith.constant 0 : i32
    %c0_i32_1 = arith.constant 0 : i32
    return %arg0, %c0_i32, %c0_i32_0 : i32, i32, i32
  }
}

</mosaic_0001>

<bundles_post_ra>
// kernel: tpu_custom_call.1
= control target key start
LH: loop header
LB: loop body
LE: loop exit
PB: predicated region body
PF: predicated region fallthrough
CT: control target
= control target key end

     0   :  { %11 = vsyncpa [#allocation3], 0  ;;  %s12215_s21 = smov 0   ;;  %s15808_s0 = inlined_call_operand.vmem [shape: f32[8,64,32], index: 0, kind: input, shape index: {}]   ;;  %s15809_s1 = inlined_call_operand.vmem [shape: f32[32,96], index: 1, kind: input, shape index: {}]   ;;  %s15810_s2 = inlined_call_operand.vmem [shape: f32[1,96], index: 2, kind: input, shape index: {}]   ;;  %s15811_s3 = inlined_call_operand.vmem [shape: f32[32,32], index: 3, kind: input, shape index: {}]   ;;  %s15812_s4 = inlined_call_operand.vmem [shape: f32[1,32], index: 4, kind: input, shape index: {}]   ;;  %s15813_s5 = inlined_call_operand.hbm [shape: f32[4,4,64,64], index: 5, kind: input, shape index: {}]   ;;  %s15814_s6 = inlined_call_operand.vmem [shape: f32[8,64,32], index: 6, kind: output, shape index: {}]  }
   0x1 LB: > { %s8217_s22 = sadd.s32 4294967295, %s12161_s21   ;;  %p8219_p0 = scmp.ge.s32.totalorder %s12161_s21, 1  ;;  %s12161_s21 = sphi %s12215_s21, %s17_s21  }
   0x2   : > { %p179_p1 = scmp.lt.s32.totalorder %s12161_s21, 3  ;;  %s12163_s23 = smov [#allocation2]  }
   0x3   : > { %s203_s24 = sshll.u32 %s12163_s23, 4  ;;  %p12229_p3 = scmp.eq.s32.totalorder %s8217_s22, 0  ;;  %s204_s24 = int_to_ptr.vmem [resolvable:$true] %s203_s24 }
   0x4   : > { %p12223_p2 = pnand %p8219_p0, %p179_p1  ;;  %s12123_s30 = scalar_lea.hbm %s15813_s5, 16384 }
   0x5   : > { %s15964_s26 = scalar_select %p12229_p3, 1, 0 }
   0x6   : > { %s15963_s25 = scalar_select %p12223_p2, 1, 0 }
   0x7   : > { %p10940_p4 = pneg %p12223_p2  ;;  %p12124_p6 = scmp.ne.s32.totalorder %s15813_s5, %s12123_s30 }
   0x8   : > { %p12130_p10 = scmp.lt.u32.totalorder %s12123_s30, %s15813_s5 }
   0x9   : > { %p12237_p5 = pnand %p12229_p3, %p10940_p4 }
   0xb   : > { %p12125_p7 = pneg %p12237_p5 }
   0xd   : > { %p12126_p8 = pnand %p12125_p7, %p12124_p6 }
   0xf   : > { %p12127_p9 = pneg %p12126_p8 }
  0x11   : > { %p12132_p11 = pnand %p12130_p10, %p12127_p9 }
  0x13   : > { %12135 = shalt.err (!%p12132_p11)
}
  0x14   : > { %s12136_s11 = scalar_lea.vmem %s204_s24, 16384  ;;  %p12144_p1 = scmp.lt.s32.totalorder %s204_s24, %s204_s24 }
  0x15   : > { %p12137_p12 = scmp.ne.s32.totalorder %s204_s24, %s12136_s11  ;;  %p12145_p4 = scmp.lt.s32.totalorder %s12136_s11, %s12136_s11 }
  0x17   : > { %p12139_p13 = pnand %p12137_p12, %p12125_p7  ;;  %p12146_p3 = por %p12145_p4, %p12144_p1 }
  0x19   : > { %p12140_p0 = pneg %p12139_p13 }
  0x1b   : > { %p12147_p2 = pnand %p12146_p3, %p12140_p0 }
  0x1d   : > { %12150 = shalt.err (!%p12147_p2)
}
  0x1e   : > { %s12164_s12 = smov 128   ;;  %s12165_s13 = smov 8  }
  0x1f   : > { %10943 = dma.hbm_to_vmem [thread:$0]  (!%p12237_p5), %s15813_s5, 16384, %s204_s24, [#allocation3], %s12164_s12, %s12164_s12, %s12165_s13  }
  0x20   : > { %p15966_p6 = scmp.ne.s32.totalorder %s15963_s25, 0 }
  0x22   : > { %229 = sbr.rel (%p15966_p6) target bundleno = 3651 (0xe43), region = 44 }
  0x29   : > { %p15967_p8 = scmp.ne.s32.totalorder %s15964_s26, 0 }
  0x2b   : > { %12156 = dma.done.wait (%p15967_p8), [#allocation3], 16384  }
  0x2c   : > { %12158 = vsyncadd (%p15967_p8), [#allocation3], 4294950912  ;;  %s8224_s16 = sshll.u32 %s8217_s22, 2  ;;  %vm318_vm0 = vcmask 261120   ;;  %v307_v0 = vld [vmem:[%s15809_s1] sm:$0xff]  ;;  %v308_v1 = vld [vmem:[%s15809_s1 + $0x8] sm:$0xff] }
  0x2d   : > { %p262_p2 = scmp.lt.s32.totalorder %s8224_s16, 7  ;;  %v309_v2 = vld [vmem:[%s15809_s1 + $0x10] sm:$0xff]  ;;  %v10276_v3 = vpack.c.bf16 %v308_v1, %v307_v0  ;;  %v310_v4 = vld [vmem:[%s15809_s1 + $0x18] sm:$0xff]  ;;  %v12354_v38 = vld [vmem:[%s15810_s2] ss:$0 sm:$0xff]  ;;  %vm696_vm1 = vcmask 64512  }
  0x2e   : > { %v10280_v6 = vpack.c.bf16 %v310_v4, %v309_v2  ;;  %s12166_s8 = smov 96   ;;  %s12167_s9 = smov 64   ;;  %vm12606_vm2 = vmpackc.low %vm696_vm1, %vm696_vm1  ;;  %vm1317_vm3 = vcmask 523264   ;;  %vm7717_vm4 = vcmask 130048   ;;  %vm7750_vm5 = vcmask 195584  }
  0x2f   : > { %s16388_s16 = smov (!%p262_p2, %s8224_s16), 7  ;;  %10277 = vmatprep.subr.bf16.mxu0 %v10276_v3  ;;  %s12168_s10 = smov 88  }
  0x30   : > { %s8682_s17 = sshll.u32 %s16388_s16, 6  ;;  %10279 = vmatpush3.bf16.msra.mxu0 %v10276_v3  ;;  %s12169_s11 = smov 120  }
  0x31   : > { %s12273_s20 = scalar_lea.vmem %s15808_s0, %s8682_s17  ;;  %10281 = vmatprep.subr.bf16.mxu0 %v10280_v6  ;;  %s12170_s12 = smov 56  }
  0x32   : > { %v275_v5 = vld [vmem:[%s12273_s20] sm:$0xff]  ;;  %v276_v7 = vld [vmem:[%s12273_s20 + $0x8] sm:$0xff]  ;;  %v277_v8 = vld [vmem:[%s12273_s20 + $0x10] sm:$0xff]  ;;  %s12171_s13 = smov 80   ;;  %s12172_s14 = smov 112  }
  0x33   : > { %9276 = vmatprep.mubr.msk.f32.mxu0 %vm318_vm0, %v275_v5  ;;  %v278_v9 = vld [vmem:[%s12273_s20 + $0x18] sm:$0xff]  ;;  %v279_v10 = vld [vmem:[%s12273_s20 + $0x20] sm:$0xff]  ;;  %v280_v11 = vld [vmem:[%s12273_s20 + $0x28] sm:$0xff]  ;;  %s12173_s15 = smov 48   ;;  %s12174_s18 = smov 72  }
  0x34   : > { %10283 = vmatpush3.bf16.msra.mxu0 %v10280_v6  ;;  %v281_v12 = vld [vmem:[%s12273_s20 + $0x30] sm:$0xff]  ;;  %v282_v13 = vld [vmem:[%s12273_s20 + $0x38] sm:$0xff]  ;;  %v283_v14 = vld [vmem:[%s12273_s20 + $0x40] sm:$0xff]  ;;  %s12175_s19 = smov 104   ;;  %s12177_s23 = smov 8  }
  0x35   : > { %v284_v15 = vld [vmem:[%s12273_s20 + $0x48] sm:$0xff]  ;;  %v285_v16 = vld [vmem:[%s12273_s20 + $0x50] sm:$0xff]  ;;  %v286_v17 = vld [vmem:[%s12273_s20 + $0x58] sm:$0xff]  ;;  %s12178_s24 = smov 16  }
  0x36   : > { %v287_v18 = vld [vmem:[%s12273_s20 + $0x60] sm:$0xff]  ;;  %v288_v19 = vld [vmem:[%s12273_s20 + $0x68] sm:$0xff]  ;;  %v289_v20 = vld [vmem:[%s12273_s20 + $0x70] sm:$0xff] }
  0x37   : > { %9277 = vmatmul.mubr.msk.f32.vlgmr.msra.gmra.mrb[0].mxu0 %vm318_vm0, %v276_v7  ;;  %v290_v21 = vld [vmem:[%s12273_s20 + $0x78] sm:$0xff]  ;;  %v291_v22 = vld [vmem:[%s12273_s20 + $0x80] sm:$0xff]  ;;  %v292_v23 = vld [vmem:[%s12273_s20 + $0x88] sm:$0xff] }
  0x38   : > { %9279 = vmatprep.mubr.msk.f32.mxu0 %vm318_vm0, %v277_v8  ;;  %v293_v24 = vld [vmem:[%s12273_s20 + $0x90] sm:$0xff]  ;;  %v294_v25 = vld [vmem:[%s12273_s20 + $0x98] sm:$0xff]  ;;  %v295_v26 = vld [vmem:[%s12273_s20 + $0xa0] sm:$0xff] }
  0x39   : > { %v296_v27 = vld [vmem:[%s12273_s20 + $0xa8] sm:$0xff]  ;;  %v297_v28 = vld [vmem:[%s12273_s20 + $0xb0] sm:$0xff]  ;;  %v298_v29 = vld [vmem:[%s12273_s20 + $0xb8] sm:$0xff] }
  0x3a   : > { %v299_v30 = vld [vmem:[%s12273_s20 + $0xc0] sm:$0xff]  ;;  %v300_v31 = vld [vmem:[%s12273_s20 + $0xc8] sm:$0xff]  ;;  %v301_v32 = vld [vmem:[%s12273_s20 + $0xd0] sm:$0xff] }
  0x3b   : > { %9280 = vmatmul.mubr.msk.f32.gmra.mrb[2].mxu0 %vm318_vm0, %v278_v9  ;;  %v302_v33 = vld [vmem:[%s12273_s20 + $0xd8] sm:$0xff]  ;;  %v303_v34 = vld [vmem:[%s12273_s20 + $0xe0] sm:$0xff]  ;;  %v304_v35 = vld [vmem:[%s12273_s20 + $0xe8] sm:$0xff] }
  0x3c   : > { %9282 = vmatprep.mubr.msk.f32.mxu0 %vm318_vm0, %v279_v10  ;;  %v305_v36 = vld [vmem:[%s12273_s20 + $0xf0] sm:$0xff]  ;;  %v306_v37 = vld [vmem:[%s12273_s20 + $0xf8] sm:$0xff]  ;;  %s12176_s20 = smov 40  }
  0x3f   : > { %9283 = vmatmul.mubr.msk.f32.gmra.mrb[4].mxu0 %vm318_vm0, %v280_v11 }
  0x40   : > { %9285 = vmatprep.mubr.msk.f32.mxu0 %vm318_vm0, %v281_v12 }
  0x43   : > { %9286 = vmatmul.mubr.msk.f32.gmra.mrb[6].mxu0 %vm318_vm0, %v282_v13 }
  0x44   : > { %9288 = vmatprep.mubr.msk.f32.mxu0 %vm318_vm0, %v283_v14 }
  0x47   : > { %9289 = vmatmul.mubr.msk.f32.gmra.mrb[8].mxu0 %vm318_vm0, %v284_v15 }
  0x48   : > { %9291 = vmatprep.mubr.msk.f32.mxu0 %vm318_vm0, %v285_v16 }
  0x4b   : > { %9292 = vmatmul.mubr.msk.f32.gmra.mrb[10].mxu0 %vm318_vm0, %v286_v17 }
  0x4c   : > { %9294 = vmatprep.mubr.msk.f32.mxu0 %vm318_vm0, %v287_v18 }
  0x4f   : > { %9295 = vmatmul.mubr.msk.f32.gmra.mrb[12].mxu0 %vm318_vm0, %v288_v19 }
  0x50   : > { %9297 = vmatprep.mubr.msk.f32.mxu0 %vm318_vm0, %v289_v20 }
  0x53   : > { %9298 = vmatmul.mubr.msk.f32.gmra.mrb[14].mxu0 %vm318_vm0, %v290_v21 }
  0x54   : > { %9300 = vmatprep.mubr.msk.f32.mxu0 %vm318_vm0, %v291_v22 }
  0x57   : > { %9301 = vmatmul.mubr.msk.f32.gmra.mrb[16].mxu0 %vm318_vm0, %v292_v23 }
  0x58   : > { %9303 = vmatprep.mubr.msk.f32.mxu0 %vm318_vm0, %v293_v24 }
  0x5b   : > { %9304 = vmatmul.mubr.msk.f32.gmra.mrb[18].mxu0 %vm318_vm0, %v294_v25 }
  0x5c   : > { %9306 = vmatprep.mubr.msk.f32.mxu0 %vm318_vm0, %v295_v26 }
  0x5f   : > { %9307 = vmatmul.mubr.msk.f32.gmra.mrb[20].mxu0 %vm318_vm0, %v296_v27 }
  0x60   : > { %9309 = vmatprep.mubr.msk.f32.mxu0 %vm318_vm0, %v297_v28 }
  0x63   : > { %9310 = vmatmul.mubr.msk.f32.gmra.mrb[22].mxu0 %vm318_vm0, %v298_v29 }
  0x64   : > { %9312 = vmatprep.mubr.msk.f32.mxu0 %vm318_vm0, %v299_v30 }
  0x67   : > { %9313 = vmatmul.mubr.msk.f32.gmra.mrb[24].mxu0 %vm318_vm0, %v300_v31 }
  0x68   : > { %9315 = vmatprep.mubr.msk.f32.mxu0 %vm318_vm0, %v301_v32 }
  0x6b   : > { %9316 = vmatmul.mubr.msk.f32.gmra.mrb[26].mxu0 %vm318_vm0, %v302_v33 }
  0x6c   : > { %9318 = vmatprep.mubr.msk.f32.mxu0 %vm318_vm0, %v303_v34 }
  0x6f   : > { %9319 = vmatmul.mubr.msk.f32.gmra.mrb[28].mxu0 %vm318_vm0, %v304_v35 }
  0x70   : > { %9321 = vmatprep.mubr.msk.f32.mxu0 %vm318_vm0, %v305_v36 }
  0x73   : > { %9322 = vmatmul.mubr.msk.f32.gmra.mrb[30].mxu0 %vm318_vm0, %v306_v37 }
 0x10a   : > { %v9278_v39 = vpop.f32.mrb[0].mxu0 }
 0x10b   : > { %v12357_v40 = vadd.f32 %v9278_v39, %v12354_v38  ;;  %v481_v41 = vpop.f32.mrb[1].mxu0 }
 0x10c   : > { %v12360_v42 = vadd.f32 %v12354_v38, %v481_v41 }
 0x10d   : > { %15968 = vst [vmem:[#allocation5_spill] sm:$0xff] %v12357_v40 }
 0x10e   : > { %15969 = vst [vmem:[#allocation6_spill] sm:$0xff] %v12360_v42  ;;  %v9281_v43 = vpop.f32.mrb[2].mxu0  ;;  %9340 = vmatprep.mubr.msk.f32.mxu1 %vm696_vm1, %v12360_v42  ;;  %v12366_v44 = vpack.i.bf16 %v12357_v40, %v12360_v42 }
 0x10f   : > { %v12369_v45 = vadd.f32 %v9281_v43, %v12354_v38  ;;  %v491_v46 = vpop.f32.mrb[3].mxu0 }
 0x110   : > { %15970 = vst [vmem:[#allocation7_spill] sm:$0xff] %v12366_v44  ;;  %v12372_v47 = vadd.f32 %v12354_v38, %v491_v46  ;;  %10972 = vrot.lane.b32.xlu0 %v12366_v44, %s12166_s8 }
 0x111   : > { %15971 = vst [vmem:[#allocation8_spill] sm:$0xff] %v12369_v45 }
 0x112   : > { %15972 = vst [vmem:[#allocation9_spill] sm:$0xff] %v12372_v47  ;;  %v9284_v48 = vpop.f32.mrb[4].mxu0  ;;  %v12378_v49 = vpack.i.bf16 %v12369_v45, %v12372_v47 }
 0x113   : > { %v12381_v50 = vadd.f32 %v9284_v48, %v12354_v38  ;;  %v501_v51 = vpop.f32.mrb[5].mxu0 }
 0x114   : > { %15973 = vst [vmem:[#allocation10_spill] sm:$0xff] %v12378_v49  ;;  %v12384_v52 = vadd.f32 %v12354_v38, %v501_v51  ;;  %10977 = vrot.lane.b32.xlu0 %v12378_v49, %s12166_s8 }
 0x115   : > { %15974 = vst [vmem:[#allocation11_spill] sm:$0xff] %v12381_v50 }
 0x116   : > { %15975 = vst [vmem:[#allocation12_spill] sm:$0xff] %v12384_v52  ;;  %v9287_v53 = vpop.f32.mrb[6].mxu0  ;;  %v12390_v54 = vpack.i.bf16 %v12381_v50, %v12384_v52 }
 0x117   : > { %v12393_v55 = vadd.f32 %v9287_v53, %v12354_v38  ;;  %v511_v56 = vpop.f32.mrb[7].mxu0 }
 0x118   : > { %15976 = vst [vmem:[#allocation13_spill] sm:$0xff] %v12390_v54  ;;  %v12396_v57 = vadd.f32 %v12354_v38, %v511_v56  ;;  %10982 = vrot.lane.b32.xlu1 %v12390_v54, %s12166_s8 }
 0x119   : > { %15977 = vst [vmem:[#allocation14_spill] sm:$0xff] %v12393_v55 }
 0x11a   : > { %15978 = vst [vmem:[#allocation15_spill] sm:$0xff] %v12396_v57  ;;  %v9290_v58 = vpop.f32.mrb[8].mxu0  ;;  %v12402_v59 = vpack.i.bf16 %v12393_v55, %v12396_v57 }
 0x11b   : > { %v12405_v60 = vadd.f32 %v9290_v58, %v12354_v38  ;;  %v521_v61 = vpop.f32.mrb[9].mxu0 }
 0x11c   : > { %15979 = vst [vmem:[#allocation16_spill] sm:$0xff] %v12402_v59  ;;  %v12408_v62 = vadd.f32 %v12354_v38, %v521_v61  ;;  %10987 = vrot.lane.b32.xlu1 %v12402_v59, %s12166_s8 }
 0x11d   : > { %15980 = vst [vmem:[#allocation17_spill] sm:$0xff] %v12405_v60 }
 0x11e   : > { %15981 = vst [vmem:[#allocation18_spill] sm:$0xff] %v12408_v62  ;;  %v9293_v63 = vpop.f32.mrb[10].mxu0  ;;  %v12414_v0 = vpack.i.bf16 %v12405_v60, %v12408_v62 }
 0x11f   : > { %v12417_v1 = vadd.f32 %v9293_v63, %v12354_v38  ;;  %v531_v2 = vpop.f32.mrb[11].mxu0 }
 0x120   : > { %15982 = vst [vmem:[#allocation19_spill] sm:$0xff] %v12414_v0  ;;  %v12420_v3 = vadd.f32 %v12354_v38, %v531_v2  ;;  %10992 = vrot.lane.b32.xlu0 %v12414_v0, %s12166_s8 }
 0x121   : > { %15983 = vst [vmem:[#allocation20_spill] sm:$0xff] %v12417_v1 }
 0x122   : > { %15984 = vst [vmem:[#allocation21_spill] sm:$0xff] %v12420_v3  ;;  %v9296_v4 = vpop.f32.mrb[12].mxu0  ;;  %v12426_v5 = vpack.i.bf16 %v12417_v1, %v12420_v3 }
 0x123   : > { %v12429_v6 = vadd.f32 %v9296_v4, %v12354_v38  ;;  %v541_v7 = vpop.f32.mrb[13].mxu0 }
 0x124   : > { %15985 = vst [vmem:[#allocation22_spill] sm:$0xff] %v12426_v5  ;;  %v12432_v8 = vadd.f32 %v12354_v38, %v541_v7  ;;  %10997 = vrot.lane.b32.xlu1 %v12426_v5, %s12166_s8 }
 0x125   : > { %15986 = vst [vmem:[#allocation23_spill] sm:$0xff] %v12429_v6 }
 0x126   : > { %15987 = vst [vmem:[#allocation24_spill] sm:$0xff] %v12432_v8  ;;  %v9299_v9 = vpop.f32.mrb[14].mxu0  ;;  %v12438_v10 = vpack.i.bf16 %v12429_v6, %v12432_v8 }
 0x127   : > { %v12441_v11 = vadd.f32 %v9299_v9, %v12354_v38  ;;  %v551_v12 = vpop.f32.mrb[15].mxu0 }
 0x128   : > { %15988 = vst [vmem:[#allocation25_spill] sm:$0xff] %v12438_v10  ;;  %v12444_v13 = vadd.f32 %v12354_v38, %v551_v12  ;;  %11002 = vrot.lane.b32.xlu0 %v12438_v10, %s12166_s8 }
 0x129   : > { %15989 = vst [vmem:[#allocation26_spill] sm:$0xff] %v12441_v11 }
 0x12a   : > { %15990 = vst [vmem:[#allocation27_spill] sm:$0xff] %v12444_v13  ;;  %v9302_v14 = vpop.f32.mrb[16].mxu0  ;;  %v12450_v15 = vpack.i.bf16 %v12441_v11, %v12444_v13 }
 0x12b   : > { %v12453_v16 = vadd.f32 %v9302_v14, %v12354_v38  ;;  %v561_v17 = vpop.f32.mrb[17].mxu0 }
 0x12c   : > { %15991 = vst [vmem:[#allocation28_spill] sm:$0xff] %v12450_v15  ;;  %v12456_v18 = vadd.f32 %v12354_v38, %v561_v17  ;;  %11012 = vrot.lane.b32.xlu0 %v12450_v15, %s12166_s8 }
 0x12d   : > { %15992 = vst [vmem:[#allocation29_spill] sm:$0xff] %v12453_v16 }
 0x12e   : > { %15993 = vst [vmem:[#allocation30_spill] sm:$0xff] %v12456_v18  ;;  %9396 = vmatprep.mubr.msk.f32.mxu0 %vm696_vm1, %v12456_v18  ;;  %v12464_v19 = vpack.i.bf16 %v12453_v16, %v12456_v18  ;;  %v9305_v20 = vpop.f32.mrb[18].mxu0 }
 0x12f   : > { %v12467_v21 = vadd.f32 %v9305_v20, %v12354_v38  ;;  %v571_v22 = vpop.f32.mrb[19].mxu0 }
 0x130   : > { %15994 = vst [vmem:[#allocation31_spill] sm:$0xff] %v12464_v19  ;;  %11007 = vrot.lane.b32.xlu1 %v12464_v19, %s12166_s8  ;;  %v12472_v23 = vadd.f32 %v12354_v38, %v571_v22  ;;  %v16016_v22 = vmov 0 }
 0x131   : > { %15995 = vst [vmem:[#allocation32_spill] sm:$0xff] %v12467_v21  ;;  %v16017_v22 = vsel %vm12606_vm2, 4294967295, %v16016_v22 }
 0x132   : > { %15996 = vst [vmem:[#allocation33_spill] sm:$0xff] %v12472_v23  ;;  %v12476_v24 = vpack.i.bf16 %v12467_v21, %v12472_v23  ;;  %v9308_v25 = vpop.f32.mrb[20].mxu0  ;;  %16018 = vst [vmem:[#allocation53_spill] sm:$0xff] %v16017_v22 }
 0x133   : > { %v12479_v26 = vadd.f32 %v9308_v25, %v12354_v38  ;;  %v581_v27 = vpop.f32.mrb[21].mxu0 }
 0x134   : > { %15997 = vst [vmem:[#allocation34_spill] sm:$0xff] %v12476_v24  ;;  %11017 = vrot.lane.b32.xlu1 %v12476_v24, %s12166_s8  ;;  %v12484_v28 = vadd.f32 %v12354_v38, %v581_v27 }
 0x135   : > { %15998 = vst [vmem:[#allocation35_spill] sm:$0xff] %v12479_v26 }
 0x136   : > { %15999 = vst [vmem:[#allocation36_spill] sm:$0xff] %v12484_v28  ;;  %v9311_v29 = vpop.f32.mrb[22].mxu0  ;;  %v12488_v30 = vpack.i.bf16 %v12479_v26, %v12484_v28 }
 0x137   : > { %v12491_v31 = vadd.f32 %v9311_v29, %v12354_v38  ;;  %v591_v32 = vpop.f32.mrb[23].mxu0 }
 0x138   : > { %16000 = vst [vmem:[#allocation37_spill] sm:$0xff] %v12488_v30  ;;  %v12494_v33 = vadd.f32 %v12354_v38, %v591_v32  ;;  %11022 = vrot.lane.b32.xlu0 %v12488_v30, %s12166_s8 }
 0x139   : > { %16001 = vst [vmem:[#allocation38_spill] sm:$0xff] %v12491_v31 }
 0x13a   : > { %16002 = vst [vmem:[#allocation39_spill] sm:$0xff] %v12494_v33  ;;  %v9314_v34 = vpop.f32.mrb[24].mxu0  ;;  %v12500_v35 = vpack.i.bf16 %v12491_v31, %v12494_v33 }
 0x13b   : > { %v12503_v36 = vadd.f32 %v9314_v34, %v12354_v38  ;;  %v601_v37 = vpop.f32.mrb[25].mxu0 }
 0x13c   : > { %16003 = vst [vmem:[#allocation40_spill] sm:$0xff] %v12500_v35  ;;  %v12506_v39 = vadd.f32 %v12354_v38, %v601_v37  ;;  %11032 = vrot.lane.b32.xlu0 %v12500_v35, %s12166_s8 }
 0x13d   : > { %16004 = vst [vmem:[#allocation41_spill] sm:$0xff] %v12503_v36 }
 0x13e   : > { %16005 = vst [vmem:[#allocation42_spill] sm:$0xff] %v12506_v39  ;;  %v9317_v41 = vpop.f32.mrb[26].mxu0  ;;  %v12512_v43 = vpack.i.bf16 %v12503_v36, %v12506_v39 }
 0x13f   : > { %v12515_v46 = vadd.f32 %v9317_v41, %v12354_v38  ;;  %v611_v48 = vpop.f32.mrb[27].mxu0 }
 0x140   : > { %16006 = vst [vmem:[#allocation43_spill] sm:$0xff] %v12512_v43  ;;  %v12518_v51 = vadd.f32 %v12354_v38, %v611_v48  ;;  %11027 = vrot.lane.b32.xlu1 %v12512_v43, %s12166_s8 }
 0x141   : > { %16007 = vst [vmem:[#allocation44_spill] sm:$0xff] %v12515_v46 }
 0x142   : > { %16008 = vst [vmem:[#allocation45_spill] sm:$0xff] %v12518_v51  ;;  %v9320_v53 = vpop.f32.mrb[28].mxu0  ;;  %v12524_v56 = vpack.i.bf16 %v12515_v46, %v12518_v51 }
 0x143   : > { %v12527_v58 = vadd.f32 %v9320_v53, %v12354_v38  ;;  %v621_v61 = vpop.f32.mrb[29].mxu0 }
 0x144   : > { %16009 = vst [vmem:[#allocation46_spill] sm:$0xff] %v12524_v56  ;;  %v12530_v63 = vadd.f32 %v12354_v38, %v621_v61  ;;  %11037 = vrot.lane.b32.xlu1 %v12524_v56, %s12166_s8 }
 0x145   : > { %16010 = vst [vmem:[#allocation47_spill] sm:$0xff] %v12527_v58 }
 0x146   : > { %16011 = vst [vmem:[#allocation48_spill] sm:$0xff] %v12530_v63  ;;  %v9323_v2 = vpop.f32.mrb[30].mxu0  ;;  %v12536_v4 = vpack.i.bf16 %v12527_v58, %v12530_v63 }
 0x147   : > { %v12539_v7 = vadd.f32 %v9323_v2, %v12354_v38  ;;  %v631_v9 = vpop.f32.mrb[31].mxu0 }
 0x148   : > { %16012 = vst [vmem:[#allocation49_spill] sm:$0xff] %v12536_v4  ;;  %v12542_v12 = vadd.f32 %v12354_v38, %v631_v9  ;;  %11042 = vrot.lane.b32.xlu0 %v12536_v4, %s12166_s8 }
 0x149   : > { %16013 = vst [vmem:[#allocation50_spill] sm:$0xff] %v12539_v7 }
 0x14a   : > { %16014 = vst [vmem:[#allocation51_spill] sm:$0xff] %v12542_v12  ;;  %v12548_v14 = vpack.i.bf16 %v12539_v7, %v12542_v12 }
 0x14c   : > { %16015 = vst [vmem:[#allocation52_spill] sm:$0xff] %v12548_v14  ;;  %11047 = vrot.lane.b32.xlu1 %v12548_v14, %s12166_s8  ;;  %11057 = vrot.lane.b32.xlu0 %v12378_v49, %s12167_s9  ;;  %s12179_s8 = smov 24  }
 0x150   : > { %11052 = vrot.lane.b32.xlu1 %v12366_v44, %s12167_s9  ;;  %11067 = vrot.lane.b32.xlu0 %v12402_v59, %s12167_s9 }
 0x154   : > { %11062 = vrot.lane.b32.xlu1 %v12390_v54, %s12167_s9  ;;  %11077 = vrot.lane.b32.xlu0 %v12464_v19, %s12167_s9 }
 0x158   : > { %11072 = vrot.lane.b32.xlu1 %v12414_v0, %s12167_s9  ;;  %11087 = vrot.lane.b32.xlu0 %v12476_v24, %s12167_s9 }
 0x15c   : > { %11082 = vrot.lane.b32.xlu1 %v12426_v5, %s12167_s9  ;;  %11097 = vrot.lane.b32.xlu0 %v12488_v30, %s12167_s9 }
 0x160   : > { %11092 = vrot.lane.b32.xlu1 %v12438_v10, %s12167_s9  ;;  %11107 = vrot.lane.b32.xlu0 %v12500_v35, %s12167_s9 }
 0x164   : > { %11102 = vrot.lane.b32.xlu1 %v12450_v15, %s12167_s9  ;;  %11117 = vrot.lane.b32.xlu0 %v12524_v56, %s12167_s9 }
 0x168   : > { %11112 = vrot.lane.b32.xlu1 %v12512_v43, %s12167_s9  ;;  %11127 = vrot.lane.b32.xlu0 %v12536_v4, %s12167_s9 }
 0x16c   : > { %11122 = vrot.lane.b32.xlu1 %v12366_v44, %s12168_s10  ;;  %11137 = vrot.lane.b32.xlu0 %v12390_v54, %s12168_s10 }
 0x170   : > { %11132 = vrot.lane.b32.xlu1 %v12378_v49, %s12168_s10  ;;  %11142 = vrot.lane.b32.xlu0 %v12414_v0, %s12168_s10  ;;  %v647_v0 = vld [vmem:[#allocation2 + $0x38] sm:$0xff] }
 0x174   : > { %11147 = vrot.lane.b32.xlu1 %v12402_v59, %s12168_s10  ;;  %2315 = vrot.lane.b32.xlu0 %v12360_v42, %s12169_s11 }
 0x178   : > { %11152 = vrot.lane.b32.xlu1 %v12426_v5, %s12168_s10  ;;  %2484 = vrot.lane.b32.xlu0 %v12408_v62, %s12169_s11 }
 0x17c   : > { %11157 = vrot.lane.b32.xlu1 %v12438_v10, %s12168_s10  ;;  %v646_v10 = vld [vmem:[#allocation2 + $0x30] sm:$0xff] }
 0x180   : > { %11162 = vrot.lane.b32.xlu1 %v12464_v19, %s12168_s10  ;;  %v650_v19 = vld [vmem:[#allocation2 + $0x50] sm:$0xff] }
 0x182   : > { %v10973_v38 = vpop.permute.xlu0 %10972 }
 0x183   : > { %v10975_v17 = vunpack.i.h.bf16 %v10973_v38  ;;  %v10974_v20 = vunpack.i.l.bf16 %v10973_v38 }
 0x184   : > { %2317 = vrot.lane.b32.xlu1 %v12357_v40, %s12169_s11 }
 0x185   : > { %v10284_v25 = vpack.c.bf16 %v10975_v17, %v10974_v20 }
 0x186   : > { %v10978_v27 = vpop.permute.xlu0 %10977 }
 0x187   : > { %v10980_v29 = vunpack.i.h.bf16 %v10978_v27  ;;  %v10979_v32 = vunpack.i.l.bf16 %v10978_v27  ;;  %10286 = vmatprep.subr.msk.bf16.mxu1 %vm12606_vm2, %v10284_v25 }
 0x188   : > { %11167 = vrot.lane.b32.xlu1 %v12450_v15, %s12168_s10  ;;  %10289 = vmatpush3.bf16.xpose.msk.msra.mxu1 %vm12606_vm2, %v10284_v25 }
 0x189   : > { %v10290_v34 = vpack.c.bf16 %v10980_v29, %v10979_v32 }
 0x18a   : > { %v10983_v37 = vpop.permute.xlu1 %10982 }
 0x18b   : > { %v10985_v41 = vunpack.i.h.bf16 %v10983_v37  ;;  %v10984_v48 = vunpack.i.l.bf16 %v10983_v37  ;;  %10292 = vmatprep.subr.msk.bf16.mxu1 %vm12606_vm2, %v10290_v34 }
 0x18c   : > { %11172 = vrot.lane.b32.xlu1 %v12476_v24, %s12168_s10 }
 0x18d   : > { %v10296_v53 = vpack.c.bf16 %v10985_v41, %v10984_v48 }
 0x18e   : > { %v10988_v61 = vpop.permute.xlu1 %10987 }
 0x18f   : > { %v10990_v2 = vunpack.i.h.bf16 %v10988_v61  ;;  %v10989_v9 = vunpack.i.l.bf16 %v10988_v61 }
 0x190   : > { %11177 = vrot.lane.b32.xlu1 %v12488_v30, %s12168_s10  ;;  %10295 = vmatpush3.bf16.xpose.msk.msra.mxu1 %vm12606_vm2, %v10290_v34 }
 0x191   : > { %10298 = vmatprep.subr.msk.bf16.mxu1 %vm12606_vm2, %v10296_v53  ;;  %v10302_v38 = vpack.c.bf16 %v10990_v2, %v10989_v9 }
 0x192   : > { %v10993_v17 = vpop.permute.xlu0 %10992 }
 0x193   : > { %v10995_v20 = vunpack.i.h.bf16 %v10993_v17  ;;  %v10994_v25 = vunpack.i.l.bf16 %v10993_v17 }
 0x194   : > { %11182 = vrot.lane.b32.xlu1 %v12512_v43, %s12168_s10  ;;  %v644_v43 = vld [vmem:[#allocation2 + $0x20] sm:$0xff] }
 0x195   : > { %v10308_v29 = vpack.c.bf16 %v10995_v20, %v10994_v25 }
 0x196   : > { %v10998_v27 = vpop.permute.xlu1 %10997 }
 0x197   : > { %v11000_v37 = vunpack.i.h.bf16 %v10998_v27  ;;  %v10999_v41 = vunpack.i.l.bf16 %v10998_v27 }
 0x198   : > { %2486 = vrot.lane.b32.xlu1 %v12405_v60, %s12169_s11  ;;  %10301 = vmatpush3.bf16.xpose.msk.msra.mxu1 %vm12606_vm2, %v10296_v53 }
 0x199   : > { %10304 = vmatprep.subr.msk.bf16.mxu1 %vm12606_vm2, %v10302_v38  ;;  %v10314_v17 = vpack.c.bf16 %v11000_v37, %v10999_v41 }
 0x19a   : > { %v11003_v32 = vpop.permute.xlu0 %11002 }
 0x19b   : > { %v11004_v37 = vunpack.i.l.bf16 %v11003_v32 }
 0x19c   : > { %11187 = vrot.lane.b32.xlu1 %v12548_v14, %s12167_s9 }
 0x19e   : > { %v11013_v2 = vpop.permute.xlu0 %11012 }
 0x1a0   : > { %10307 = vmatpush3.bf16.xpose.msk.msra.mxu1 %vm12606_vm2, %v10302_v38 }
 0x1a1   : > { %10310 = vmatprep.subr.msk.bf16.mxu1 %vm12606_vm2, %v10308_v29 }
 0x1a2   : > { %v11008_v34 = vpop.permute.xlu1 %11007 }
 0x1a3   : > { %v11010_v48 = vunpack.i.h.bf16 %v11008_v34  ;;  %v11009_v53 = vunpack.i.l.bf16 %v11008_v34  ;;  %v11005_v34 = vunpack.i.h.bf16 %v11003_v32 }
 0x1a5   : > { %v10332_v61 = vpack.c.bf16 %v11010_v48, %v11009_v53  ;;  %v10320_v53 = vpack.c.bf16 %v11005_v34, %v11004_v37 }
 0x1a6   : > { %v11018_v9 = vpop.permute.xlu1 %11017 }
 0x1a7   : > { %9341 = vmatmul.mubr.msk.f32.vlgmr.msra.gmra.mrb[0].mxu1 %vm696_vm1, %v12357_v40  ;;  %10334 = vmatprep.subr.msk.bf16.mxu0 %vm12606_vm2, %v10332_v61  ;;  %v11020_v20 = vunpack.i.h.bf16 %v11018_v9  ;;  %v11019_v38 = vunpack.i.l.bf16 %v11018_v9  ;;  %v642_v40 = vld [vmem:[#allocation2 + $0x10] sm:$0xff] }
 0x1a8   : > { %9343 = vmatprep.mubr.msk.f32.mxu1 %vm696_vm1, %v12372_v47  ;;  %10313 = vmatpush3.bf16.xpose.msk.msra.mxu1 %vm12606_vm2, %v10308_v29 }
 0x1a9   : > { %10337 = vmatpush3.bf16.xpose.msk.msra.mxu0 %vm12606_vm2, %v10332_v61  ;;  %10316 = vmatprep.subr.msk.bf16.mxu1 %vm12606_vm2, %v10314_v17  ;;  %v10338_v25 = vpack.c.bf16 %v11020_v20, %v11019_v38  ;;  %v11015_v38 = vunpack.i.h.bf16 %v11013_v2 }
 0x1aa   : > { %v11023_v27 = vpop.permute.xlu0 %11022 }
 0x1ab   : > { %9344 = vmatmul.mubr.msk.f32.gmra.mrb[2].mxu1 %vm696_vm1, %v12369_v45  ;;  %10340 = vmatprep.subr.msk.bf16.mxu0 %vm12606_vm2, %v10338_v25  ;;  %v11025_v41 = vunpack.i.h.bf16 %v11023_v27  ;;  %v11024_v48 = vunpack.i.l.bf16 %v11023_v27  ;;  %v11014_v27 = vunpack.i.l.bf16 %v11013_v2 }
 0x1ac   : > { %9346 = vmatprep.mubr.msk.f32.mxu1 %vm696_vm1, %v12384_v52 }
 0x1ad   : > { %v10344_v29 = vpack.c.bf16 %v11025_v41, %v11024_v48 }
 0x1ae   : > { %v11033_v32 = vpop.permute.xlu0 %11032 }
 0x1af   : > { %9347 = vmatmul.mubr.msk.f32.gmra.mrb[4].mxu1 %vm696_vm1, %v12381_v50  ;;  %v11035_v9 = vunpack.i.h.bf16 %v11033_v32  ;;  %v11034_v20 = vunpack.i.l.bf16 %v11033_v32 }
 0x1b0   : > { %9349 = vmatprep.mubr.msk.f32.mxu1 %vm696_vm1, %v12396_v57  ;;  %10319 = vmatpush3.bf16.xpose.msk.msra.mxu1 %vm12606_vm2, %v10314_v17 }
 0x1b1   : > { %10343 = vmatpush3.bf16.xpose.msk.msra.mxu0 %vm12606_vm2, %v10338_v25  ;;  %10322 = vmatprep.subr.msk.bf16.mxu1 %vm12606_vm2, %v10320_v53  ;;  %v10350_v17 = vpack.c.bf16 %v11035_v9, %v11034_v20  ;;  %v10326_v25 = vpack.c.bf16 %v11015_v38, %v11014_v27 }
 0x1b2   : > { %v11028_v61 = vpop.permute.xlu1 %11027  ;;  %10346 = vmatprep.subr.msk.bf16.mxu0 %vm12606_vm2, %v10344_v29 }
 0x1b3   : > { %9350 = vmatmul.mubr.msk.f32.gmra.mrb[6].mxu1 %vm696_vm1, %v12393_v55  ;;  %v11030_v37 = vunpack.i.h.bf16 %v11028_v61  ;;  %v11029_v41 = vunpack.i.l.bf16 %v11028_v61 }
 0x1b4   : > { %9368 = vmatprep.mubr.msk.f32.mxu1 %vm696_vm1, %v12408_v62 }
 0x1b5   : > { %v10356_v48 = vpack.c.bf16 %v11030_v37, %v11029_v41 }
 0x1b6   : > { %v11038_v34 = vpop.permute.xlu1 %11037 }
 0x1b8   : > { %10325 = vmatpush3.bf16.xpose.msk.msra.mxu1 %vm12606_vm2, %v10320_v53  ;;  %v11040_v53 = vunpack.i.h.bf16 %v11038_v34 }
 0x1b9   : > { %10349 = vmatpush3.bf16.xpose.msk.msra.mxu0 %vm12606_vm2, %v10344_v29  ;;  %10328 = vmatprep.subr.msk.bf16.mxu1 %vm12606_vm2, %v10326_v25  ;;  %v11039_v29 = vunpack.i.l.bf16 %v11038_v34 }
 0x1ba   : > { %10352 = vmatprep.subr.msk.bf16.mxu0 %vm12606_vm2, %v10350_v17  ;;  %v11043_v2 = vpop.permute.xlu0 %11042 }
 0x1bb   : > { %v10362_v37 = vpack.c.bf16 %v11040_v53, %v11039_v29  ;;  %v11045_v53 = vunpack.i.h.bf16 %v11043_v2  ;;  %v11044_v29 = vunpack.i.l.bf16 %v11043_v2 }
 0x1be   : > { %v11048_v32 = vpop.permute.xlu1 %11047  ;;  %v11058_v61 = vpop.permute.xlu0 %11057 }
 0x1bf   : > { %v11060_v27 = vunpack.i.h.bf16 %v11058_v61  ;;  %v11059_v62 = vunpack.i.l.bf16 %v11058_v61 }
 0x1c0   : > { %10331 = vmatpush3.bf16.xpose.msk.msra.mxu1 %vm12606_vm2, %v10326_v25 }
 0x1c1   : > { %10355 = vmatpush3.bf16.xpose.msk.msra.mxu0 %vm12606_vm2, %v10350_v17  ;;  %10358 = vmatprep.subr.msk.bf16.mxu1 %vm12606_vm2, %v10356_v48  ;;  %v10384_v34 = vpack.c.bf16 %v11060_v27, %v11059_v62 }
 0x1c2   : > { %v11053_v9 = vpop.permute.xlu1 %11052  ;;  %v11068_v61 = vpop.permute.xlu0 %11067 }
 0x1c3   : > { %v11055_v20 = vunpack.i.h.bf16 %v11053_v9  ;;  %v11054_v38 = vunpack.i.l.bf16 %v11053_v9  ;;  %v11070_v9 = vunpack.i.h.bf16 %v11068_v61 }
 0x1c5   : > { %v10380_v42 = vpack.c.bf16 %v11055_v20, %v11054_v38 }
 0x1c6   : > { %v11063_v41 = vpop.permute.xlu1 %11062 }
 0x1c7   : > { %9369 = vmatmul.mubr.msk.f32.vlgmr.msra.gmra.mrb[8].mxu1 %vm696_vm1, %v12405_v60  ;;  %10381 = vmatprep.subr.bf16.mxu0 %v10380_v42  ;;  %v11065_v17 = vunpack.i.h.bf16 %v11063_v41  ;;  %v11064_v25 = vunpack.i.l.bf16 %v11063_v41  ;;  %v11050_v41 = vunpack.i.h.bf16 %v11048_v32 }
 0x1c8   : > { %9397 = vmatmul.mubr.msk.f32.vlgmr.msra.gmra.mrb[32].mxu0 %vm696_vm1, %v12453_v16  ;;  %9371 = vmatprep.mubr.msk.f32.mxu1 %vm696_vm1, %v12420_v3 }
 0x1c9   : > { %9399 = vmatprep.mubr.msk.f32.mxu0 %vm696_vm1, %v12472_v23  ;;  %10361 = vmatpush3.bf16.xpose.msk.msra.mxu1 %vm12606_vm2, %v10356_v48  ;;  %v11069_v48 = vunpack.i.l.bf16 %v11068_v61  ;;  %v10388_v62 = vpack.c.bf16 %v11065_v17, %v11064_v25  ;;  %v11049_v17 = vunpack.i.l.bf16 %v11048_v32  ;;  %v11078_v32 = vpop.permute.xlu0 %11077 }
 0x1ca   : > { %10383 = vmatpush3.bf16.msra.mxu0 %v10380_v42  ;;  %10364 = vmatprep.subr.msk.bf16.mxu1 %vm12606_vm2, %v10362_v37  ;;  %v10368_v42 = vpack.c.bf16 %v11045_v53, %v11044_v29  ;;  %v11073_v2 = vpop.permute.xlu1 %11072  ;;  %v11080_v29 = vunpack.i.h.bf16 %v11078_v32  ;;  %v11079_v61 = vunpack.i.l.bf16 %v11078_v32 }
 0x1cb   : > { %10385 = vmatprep.subr.bf16.mxu0 %v10384_v34  ;;  %9372 = vmatmul.mubr.msk.f32.gmra.mrb[10].mxu1 %vm696_vm1, %v12417_v1  ;;  %v11075_v20 = vunpack.i.h.bf16 %v11073_v2  ;;  %v11074_v38 = vunpack.i.l.bf16 %v11073_v2  ;;  %v10392_v27 = vpack.c.bf16 %v11070_v9, %v11069_v48 }
 0x1cc   : > { %9400 = vmatmul.mubr.msk.f32.gmra.mrb[34].mxu0 %vm696_vm1, %v12467_v21  ;;  %9374 = vmatprep.mubr.msk.f32.mxu1 %vm696_vm1, %v12432_v8  ;;  %v10412_v48 = vpack.c.bf16 %v11080_v29, %v11079_v61 }
 0x1cd   : > { %9402 = vmatprep.mubr.msk.f32.mxu0 %vm696_vm1, %v12484_v28  ;;  %v11088_v9 = vpop.permute.xlu0 %11087  ;;  %v653_v28 = vld [vmem:[#allocation2 + $0x68] sm:$0xff] }
 0x1ce   : > { %10387 = vmatpush3.bf16.msra.mxu0 %v10384_v34  ;;  %v12726_v25 = vpop.permute.xlu1 %11082  ;;  %v10374_v34 = vpack.c.bf16 %v11050_v41, %v11049_v17 }
 0x1cf   : > { %10389 = vmatprep.subr.bf16.mxu0 %v10388_v62  ;;  %9375 = vmatmul.mubr.msk.f32.gmra.mrb[12].mxu1 %vm696_vm1, %v12429_v6 }
 0x1d0   : > { %9403 = vmatmul.mubr.msk.f32.gmra.mrb[36].mxu0 %vm696_vm1, %v12479_v26  ;;  %9377 = vmatprep.mubr.msk.f32.mxu1 %vm696_vm1, %v12444_v13 }
 0x1d1   : > { %9405 = vmatprep.mubr.msk.f32.mxu0 %vm696_vm1, %v12494_v33  ;;  %10367 = vmatpush3.bf16.xpose.msk.msra.mxu1 %vm12606_vm2, %v10362_v37  ;;  %v12728_v37 = vpack.c.bf16 %v11075_v20, %v11074_v38  ;;  %v11098_v2 = vpop.permute.xlu0 %11097  ;;  %v11090_v20 = vunpack.i.h.bf16 %v11088_v9  ;;  %v11089_v38 = vunpack.i.l.bf16 %v11088_v9 }
 0x1d2   : > { %10391 = vmatpush3.bf16.msra.mxu0 %v10388_v62  ;;  %10370 = vmatprep.subr.msk.bf16.mxu1 %vm12606_vm2, %v10368_v42  ;;  %v12735_v53 = vpop.permute.xlu1 %11092  ;;  %v11099_v41 = vunpack.i.l.bf16 %v11098_v2 }
 0x1d3   : > { %10393 = vmatprep.subr.bf16.mxu0 %v10392_v27  ;;  %9378 = vmatmul.mubr.msk.f32.gmra.mrb[14].mxu1 %vm696_vm1, %v12441_v11  ;;  %v10416_v17 = vpack.c.bf16 %v11090_v20, %v11089_v38 }
 0x1d4   : > { %9406 = vmatmul.mubr.msk.f32.gmra.mrb[38].mxu0 %vm696_vm1, %v12491_v31  ;;  %9424 = vmatprep.mubr.msk.f32.mxu1 %vm696_vm1, %v12506_v39 }
 0x1d5   : > { %v11108_v32 = vpop.permute.xlu0 %11107 }
 0x1d6   : > { %10395 = vmatpush3.bf16.msra.mxu0 %v10392_v27  ;;  %v12737_v62 = vpop.permute.xlu1 %11102  ;;  %v11110_v29 = vunpack.i.h.bf16 %v11108_v32 }
 0x1d7   : > { %10397 = vmatprep.subr.bf16.mxu0 %v12728_v37 }
 0x1d9   : > { %10373 = vmatpush3.bf16.xpose.msk.msra.mxu1 %vm12606_vm2, %v10368_v42  ;;  %v11100_v42 = vunpack.i.h.bf16 %v11098_v2 }
 0x1da   : > { %10376 = vmatprep.subr.msk.bf16.mxu1 %vm12606_vm2, %v10374_v34  ;;  %v12741_v27 = vpop.permute.xlu1 %11112 }
 0x1db   : > { %v10420_v61 = vpack.c.bf16 %v11100_v42, %v11099_v41  ;;  %v641_v42 = vld [vmem:[#allocation2 + $0x8] sm:$0xff]  ;;  %v640_v41 = vld [vmem:[#allocation2] sm:$0xff] }
 0x1de   : > { %v11123_v9 = vpop.permute.xlu1 %11122 }
 0x1df   : > { %v11125_v2 = vunpack.i.h.bf16 %v11123_v9  ;;  %v11124_v20 = vunpack.i.l.bf16 %v11123_v9 }
 0x1e1   : > { %10379 = vmatpush3.bf16.xpose.msk.msra.mxu1 %vm12606_vm2, %v10374_v34  ;;  %v11109_v34 = vunpack.i.l.bf16 %v11108_v32 }
 0x1e2   : > { %10413 = vmatprep.subr.bf16.mxu1 %v10412_v48 }
 0x1e3   : > { %v10424_v38 = vpack.c.bf16 %v11110_v29, %v11109_v34 }
 0x1e8   : > { %9425 = vmatmul.mubr.msk.f32.vlgmr.msra.gmra.mrb[16].mxu1 %vm696_vm1, %v12503_v36 }
 0x1e9   : > { %9427 = vmatprep.mubr.msk.f32.mxu1 %vm696_vm1, %v12518_v51  ;;  %10415 = vmatpush3.bf16.msra.mxu1 %v10412_v48  ;;  %v12755_v48 = vpack.c.bf16 %v11125_v2, %v11124_v20 }
 0x1ea   : > { %10417 = vmatprep.subr.bf16.mxu1 %v10416_v17 }
 0x1eb   : > { %16019 = vst [vmem:[#allocation54_spill] sm:$0xff] %v12755_v48 }
 0x1ec   : > { %9428 = vmatmul.mubr.msk.f32.gmra.mrb[18].mxu1 %vm696_vm1, %v12515_v46 }
 0x1ed   : > { %9430 = vmatprep.mubr.msk.f32.mxu1 %vm696_vm1, %v12530_v63  ;;  %10419 = vmatpush3.bf16.msra.mxu1 %v10416_v17 }
 0x1ee   : > { %10421 = vmatprep.subr.bf16.mxu1 %v10420_v61 }
 0x1f0   : > { %9431 = vmatmul.mubr.msk.f32.gmra.mrb[20].mxu1 %vm696_vm1, %v12527_v58 }
 0x1f1   : > { %9433 = vmatprep.mubr.msk.f32.mxu1 %vm696_vm1, %v12542_v12  ;;  %10423 = vmatpush3.bf16.msra.mxu1 %v10420_v61  ;;  %v643_v61 = vld [vmem:[#allocation2 + $0x18] sm:$0xff] }
 0x1f2   : > { %10425 = vmatprep.subr.bf16.mxu1 %v10424_v38 }
 0x1f4   : > { %9434 = vmatmul.mubr.msk.f32.gmra.mrb[22].mxu1 %vm696_vm1, %v12539_v7 }
 0x1f5   : > { %10427 = vmatpush3.bf16.msra.mxu1 %v10424_v38 }
 0x1f6   : > { %10446 = vmatprep.subr.msk.bf16.mxu1 %vm12606_vm2, %v12755_v48 }
 0x27a   : > { %v9342_v17 = vpop.f32.mrb[0].mxu1 }
 0x27b   : > { %v12762_v32 = vadd.f32 %v9342_v17, %v641_v42  ;;  %v795_v29 = vpop.f32.mrb[1].mxu1 }
 0x27c   : > { %v12764_v34 = vadd.f32 %v795_v29, %v640_v41  ;;  %v645_v29 = vld [vmem:[#allocation2 + $0x28] sm:$0xff] }
 0x27d   : > { %v1321_v9 = vsel %vm1317_vm3, %v12762_v32, -inf }
 0x27e   : > { %1322 = vmax.xlane.f32.xlu1 %v1321_v9  ;;  %v9345_v2 = vpop.f32.mrb[2].mxu1  ;;  %v1318_v20 = vsel %vm1317_vm3, %v12764_v34, -inf }
 0x27f   : > { %v12770_v38 = vadd.f32 %v9345_v2, %v643_v61  ;;  %v805_v60 = vpop.f32.mrb[3].mxu1  ;;  %1319 = vmax.xlane.f32.xlu0 %v1318_v20 }
 0x280   : > { %v12774_v41 = vadd.f32 %v805_v60, %v642_v40 }
 0x281   : > { %v1327_v42 = vsel %vm1317_vm3, %v12770_v38, -inf }
 0x282   : > { %v9348_v17 = vpop.f32.mrb[4].mxu1  ;;  %v1324_v20 = vsel %vm1317_vm3, %v12774_v41, -inf }
 0x283   : > { %v815_v15 = vpop.f32.mrb[5].mxu1  ;;  %1328 = vmax.xlane.f32.xlu0 %v1327_v42  ;;  %v12778_v5 = vadd.f32 %v9348_v17, %v645_v29  ;;  %v649_v17 = vld [vmem:[#allocation2 + $0x48] sm:$0xff]  ;;  %v648_v29 = vld [vmem:[#allocation2 + $0x40] sm:$0xff] }
 0x284   : > { %v12776_v9 = vadd.f32 %v815_v15, %v644_v43 }
 0x285   : > { %v1333_v43 = vsel %vm1317_vm3, %v12778_v5, -inf }
 0x286   : > { %v9351_v61 = vpop.f32.mrb[6].mxu1  ;;  %v1330_v2 = vsel %vm1317_vm3, %v12776_v9, -inf }
 0x287   : > { %v825_v54 = vpop.f32.mrb[7].mxu1  ;;  %1331 = vmax.xlane.f32.xlu1 %v1330_v2  ;;  %1325 = vmax.xlane.f32.xlu0 %v1324_v20  ;;  %v12786_v60 = vadd.f32 %v9351_v61, %v647_v0  ;;  %v657_v20 = vld [vmem:[#allocation2 + $0x88] sm:$0xff]  ;;  %v656_v61 = vld [vmem:[#allocation2 + $0x80] sm:$0xff] }
 0x288   : > { %v12784_v40 = vadd.f32 %v825_v54, %v646_v10 }
 0x289   : > { %v1339_v42 = vsel %vm1317_vm3, %v12786_v60, -inf }
 0x28a   : > { %v1336_v15 = vsel %vm1317_vm3, %v12784_v40, -inf }
 0x28b   : > { %1337 = vmax.xlane.f32.xlu1 %v1336_v15  ;;  %1334 = vmax.xlane.f32.xlu0 %v1333_v43 }
 0x28f   : > { %1340 = vmax.xlane.f32.xlu0 %v1339_v42  ;;  %v651_v42 = vld [vmem:[#allocation2 + $0x58] sm:$0xff] }
 0x29a   : > { %v9370_v2 = vpop.f32.mrb[8].mxu1 }
 0x29b   : > { %v12794_v54 = vadd.f32 %v9370_v2, %v649_v17  ;;  %v9398_v0 = vpop.f32.mrb[32].mxu0  ;;  %v956_v10 = vpop.f32.mrb[9].mxu1 }
 0x29c   : > { %v12796_v44 = vadd.f32 %v956_v10, %v648_v29  ;;  %v1117_v30 = vpop.f32.mrb[33].mxu0  ;;  %v12798_v12 = vadd.f32 %v9398_v0, %v657_v20  ;;  %v659_v0 = vld [vmem:[#allocation2 + $0x98] sm:$0xff] }
 0x29d   : > { %v1345_v15 = vsel %vm1317_vm3, %v12794_v54, -inf  ;;  %v12802_v43 = vadd.f32 %v1117_v30, %v656_v61 }
 0x29e   : > { %v9373_v24 = vpop.f32.mrb[10].mxu1  ;;  %1346 = vmax.xlane.f32.xlu0 %v1345_v15  ;;  %v1342_v17 = vsel %vm1317_vm3, %v12796_v44, -inf  ;;  %v1369_v20 = vsel %vm1317_vm3, %v12798_v12, -inf  ;;  %v658_v15 = vld [vmem:[#allocation2 + $0x90] sm:$0xff] }
 0x29f   : > { %v9401_v2 = vpop.f32.mrb[34].mxu0  ;;  %v966_v63 = vpop.f32.mrb[11].mxu1  ;;  %1343 = vmax.xlane.f32.xlu1 %v1342_v17  ;;  %v12806_v10 = vadd.f32 %v9373_v24, %v651_v42  ;;  %v1366_v61 = vsel %vm1317_vm3, %v12802_v43, -inf }
 0x2a0   : > { %v1127_v29 = vpop.f32.mrb[35].mxu0  ;;  %v12810_v51 = vadd.f32 %v966_v63, %v650_v19  ;;  %v12814_v17 = vadd.f32 %v9401_v2, %v659_v0  ;;  %v661_v0 = vld [vmem:[#allocation2 + $0xa8] sm:$0xff] }
 0x2a1   : > { %v1351_v24 = vsel %vm1317_vm3, %v12806_v10, -inf  ;;  %v12818_v42 = vadd.f32 %v1127_v29, %v658_v15  ;;  %v660_v15 = vld [vmem:[#allocation2 + $0xa0] sm:$0xff] }
 0x2a2   : > { %v9376_v30 = vpop.f32.mrb[12].mxu1  ;;  %1370 = vmax.xlane.f32.xlu0 %v1369_v20  ;;  %v1348_v63 = vsel %vm1317_vm3, %v12810_v51, -inf  ;;  %v652_v20 = vld [vmem:[#allocation2 + $0x60] sm:$0xff]  ;;  %v1375_v2 = vsel %vm1317_vm3, %v12814_v17, -inf }
 0x2a3   : > { %v9404_v59 = vpop.f32.mrb[36].mxu0  ;;  %v976_v33 = vpop.f32.mrb[13].mxu1  ;;  %1367 = vmax.xlane.f32.xlu1 %v1366_v61  ;;  %v12822_v61 = vadd.f32 %v9376_v30, %v653_v28  ;;  %v1372_v29 = vsel %vm1317_vm3, %v12818_v42, -inf  ;;  %v655_v28 = vld [vmem:[#allocation2 + $0x78] sm:$0xff] }
 0x2a4   : > { %v1137_v49 = vpop.f32.mrb[37].mxu0  ;;  %v12826_v48 = vadd.f32 %v976_v33, %v652_v20  ;;  %v654_v33 = vld [vmem:[#allocation2 + $0x70] sm:$0xff] }
 0x2a5   : > { %v12834_v58 = vadd.f32 %v1137_v49, %v660_v15 }
 0x2a6   : > { %v9379_v19 = vpop.f32.mrb[14].mxu1  ;;  %1352 = vmax.xlane.f32.xlu0 %v1351_v24  ;;  %v12830_v24 = vadd.f32 %v9404_v59, %v661_v0  ;;  %v1354_v30 = vsel %vm1317_vm3, %v12826_v48, -inf  ;;  %v662_v0 = vld [vmem:[#allocation2 + $0xb0] sm:$0xff] }
 0x2a7   : > { %v9407_v7 = vpop.f32.mrb[38].mxu0  ;;  %v986_v23 = vpop.f32.mrb[15].mxu1  ;;  %1349 = vmax.xlane.f32.xlu1 %v1348_v63  ;;  %v1357_v63 = vsel %vm1317_vm3, %v12822_v61, -inf  ;;  %v12838_v20 = vadd.f32 %v9379_v19, %v655_v28  ;;  %v1378_v49 = vsel %vm1317_vm3, %v12834_v58, -inf }
 0x2a8   : > { %v1147_v22 = vpop.f32.mrb[39].mxu0  ;;  %v12842_v59 = vadd.f32 %v986_v23, %v654_v33  ;;  %v665_v23 = vld [vmem:[#allocation2 + $0xc8] sm:$0xff]  ;;  %v664_v33 = vld [vmem:[#allocation2 + $0xc0] sm:$0xff] }
 0x2aa   : > { %1376 = vmax.xlane.f32.xlu0 %v1375_v2  ;;  %v1381_v2 = vsel %vm1317_vm3, %v12830_v24, -inf  ;;  %v1360_v19 = vsel %vm1317_vm3, %v12842_v59, -inf }
 0x2ab   : > { %1373 = vmax.xlane.f32.xlu1 %v1372_v29  ;;  %v663_v29 = vld [vmem:[#allocation2 + $0xb8] sm:$0xff] }
 0x2ac   : > { %v12846_v15 = vadd.f32 %v9407_v7, %v663_v29 }
 0x2ae   : > { %1358 = vmax.xlane.f32.xlu0 %v1357_v63  ;;  %v1363_v63 = vsel %vm1317_vm3, %v12838_v20, -inf  ;;  %v1387_v28 = vsel %vm1317_vm3, %v12846_v15, -inf }
 0x2af   : > { %1355 = vmax.xlane.f32.xlu1 %v1354_v30  ;;  %v12850_v30 = vadd.f32 %v1147_v22, %v662_v0  ;;  %v667_v0 = vld [vmem:[#allocation2 + $0xd8] sm:$0xff] }
 0x2b1   : > { %v1384_v7 = vsel %vm1317_vm3, %v12850_v30, -inf }
 0x2b2   : > { %1382 = vmax.xlane.f32.xlu0 %v1381_v2 }
 0x2b3   : > { %1379 = vmax.xlane.f32.xlu1 %v1378_v49 }
 0x2b6   : > { %1364 = vmax.xlane.f32.xlu0 %v1363_v63 }
 0x2b7   : > { %1361 = vmax.xlane.f32.xlu1 %v1360_v19  ;;  %v666_v19 = vld [vmem:[#allocation2 + $0xd0] sm:$0xff] }
 0x2ba   : > { %1388 = vmax.xlane.f32.xlu0 %v1387_v28 }
 0x2bb   : > { %v9426_v2 = vpop.f32.mrb[16].mxu1  ;;  %1385 = vmax.xlane.f32.xlu1 %v1384_v7 }
 0x2bc   : > { %v12858_v29 = vadd.f32 %v9426_v2, %v665_v23  ;;  %v1278_v22 = vpop.f32.mrb[17].mxu1  ;;  %v669_v23 = vld [vmem:[#allocation2 + $0xe8] sm:$0xff]  ;;  %v668_v2 = vld [vmem:[#allocation2 + $0xe0] sm:$0xff] }
 0x2bd   : > { %v12860_v49 = vadd.f32 %v1278_v22, %v664_v33 }
 0x2be   : > { %v1393_v63 = vsel %vm1317_vm3, %v12858_v29, -inf }
 0x2bf   : > { %v9429_v39 = vpop.f32.mrb[18].mxu1  ;;  %1394 = vmax.xlane.f32.xlu0 %v1393_v63  ;;  %v1390_v28 = vsel %vm1317_vm3, %v12860_v49, -inf }
 0x2c0   : > { %v12866_v46 = vadd.f32 %v9429_v39, %v667_v0  ;;  %v1288_v13 = vpop.f32.mrb[19].mxu1  ;;  %1391 = vmax.xlane.f32.xlu1 %v1390_v28  ;;  %v12876_v39 = vpop.permute.xlu1 %11132  ;;  %v670_v28 = vld [vmem:[#allocation2 + $0xf0] sm:$0xff] }
 0x2c1   : > { %v12868_v7 = vadd.f32 %v1288_v13, %v666_v19  ;;  %16020 = vst [vmem:[#allocation55_spill] sm:$0xff] %v12876_v39  ;;  %v671_v13 = vld [vmem:[#allocation2 + $0xf8] sm:$0xff] }
 0x2c2   : > { %v1399_v33 = vsel %vm1317_vm3, %v12866_v46, -inf }
 0x2c3   : > { %v9432_v22 = vpop.f32.mrb[20].mxu1  ;;  %1400 = vmax.xlane.f32.xlu0 %v1399_v33  ;;  %v1396_v31 = vsel %vm1317_vm3, %v12868_v7, -inf }
 0x2c4   : > { %v12874_v63 = vadd.f32 %v9432_v22, %v669_v23  ;;  %v1298_v8 = vpop.f32.mrb[21].mxu1  ;;  %1397 = vmax.xlane.f32.xlu1 %v1396_v31  ;;  %v12890_v31 = vpop.permute.xlu1 %11147 }
 0x2c5   : > { %v12878_v0 = vadd.f32 %v1298_v8, %v668_v2  ;;  %16021 = vst [vmem:[#allocation56_spill] sm:$0xff] %v12890_v31 }
 0x2c6   : > { %v1405_v19 = vsel %vm1317_vm3, %v12874_v63, -inf }
 0x2c7   : > { %v9435_v26 = vpop.f32.mrb[22].mxu1  ;;  %1406 = vmax.xlane.f32.xlu0 %v1405_v19  ;;  %v1402_v33 = vsel %vm1317_vm3, %v12878_v0, -inf }
 0x2c8   : > { %v12884_v1 = vadd.f32 %v9435_v26, %v671_v13  ;;  %v1308_v23 = vpop.f32.mrb[23].mxu1  ;;  %1403 = vmax.xlane.f32.xlu1 %v1402_v33  ;;  %v12894_v19 = vpop.permute.xlu1 %11152 }
 0x2c9   : > { %v12886_v22 = vadd.f32 %v1308_v23, %v670_v28  ;;  %16022 = vst [vmem:[#allocation57_spill] sm:$0xff] %v12894_v19  ;;  %v12904_v33 = vpop.permute.xlu0 %11117 }
 0x2ca   : > { %v1411_v8 = vsel %vm1317_vm3, %v12884_v1, -inf  ;;  %16027 = vst [vmem:[#allocation62_spill] sm:$0xff] %v12904_v33 }
 0x2cb   : > { %1412 = vmax.xlane.f32.xlu0 %v1411_v8  ;;  %v1408_v2 = vsel %vm1317_vm3, %v12886_v22, -inf }
 0x2cc   : > { %1409 = vmax.xlane.f32.xlu1 %v1408_v2  ;;  %v12896_v39 = vpop.permute.xlu1 %11157 }
 0x2cd   : > { %16023 = vst [vmem:[#allocation58_spill] sm:$0xff] %v12896_v39  ;;  %v12908_v31 = vpop.permute.xlu0 %11127 }
 0x2ce   : > { %16029 = vst [vmem:[#allocation64_spill] sm:$0xff] %v12908_v31 }
 0x2d0   : > { %v12898_v26 = vpop.permute.xlu1 %11162 }
 0x2d1   : > { %16024 = vst [vmem:[#allocation59_spill] sm:$0xff] %v12898_v26  ;;  %v12912_v21 = vpop.permute.xlu0 %11137 }
 0x2d2   : > { %16031 = vst [vmem:[#allocation66_spill] sm:$0xff] %v12912_v21 }
 0x2d4   : > { %v12900_v13 = vpop.permute.xlu1 %2317 }
 0x2d5   : > { %16025 = vst [vmem:[#allocation60_spill] sm:$0xff] %v12900_v13  ;;  %v12916_v19 = vpop.permute.xlu0 %11142 }
 0x2d6   : > { %16033 = vst [vmem:[#allocation68_spill] sm:$0xff] %v12916_v19 }
 0x2d8   : > { %v12902_v28 = vpop.permute.xlu1 %11167 }
 0x2d9   : > { %16026 = vst [vmem:[#allocation61_spill] sm:$0xff] %v12902_v28  ;;  %v12920_v26 = vpop.permute.xlu0 %2315 }
 0x2da   : > { %16035 = vst [vmem:[#allocation70_spill] sm:$0xff] %v12920_v26 }
 0x2dc   : > { %v12906_v23 = vpop.permute.xlu1 %11172 }
 0x2dd   : > { %16028 = vst [vmem:[#allocation63_spill] sm:$0xff] %v12906_v23  ;;  %v12924_v28 = vpop.permute.xlu0 %2484 }
 0x2de   : > { %16037 = vst [vmem:[#allocation72_spill] sm:$0xff] %v12924_v28 }
 0x2e0   : > { %v12910_v8 = vpop.permute.xlu1 %11177 }
 0x2e1   : > { %16030 = vst [vmem:[#allocation65_spill] sm:$0xff] %v12910_v8 }
 0x2e4   : > { %v12914_v2 = vpop.permute.xlu1 %11182 }
 0x2e5   : > { %16032 = vst [vmem:[#allocation67_spill] sm:$0xff] %v12914_v2 }
 0x2e8   : > { %v12918_v39 = vpop.permute.xlu1 %2486 }
 0x2e9   : > { %16034 = vst [vmem:[#allocation69_spill] sm:$0xff] %v12918_v39 }
 0x2ec   : > { %v12922_v13 = vpop.permute.xlu1 %11187 }
 0x2ed   : > { %16036 = vst [vmem:[#allocation71_spill] sm:$0xff] %v12922_v13 }
 0x30b   : > { %v1323_v33 = vpop.xlane.xlu1 %1322 }
 0x30c   : > { %v1415_v23 = vsub.f32 %v12762_v32, %v1323_v33  ;;  %v1320_v31 = vpop.xlane.xlu0 %1319 }
 0x30d   : > { %v1414_v8 = vsub.f32 %v12764_v34, %v1320_v31 }
 0x30e   : > { %v1448_v16 = vmul.f32 1.442695, %v1415_v23 }
 0x30f   : > { %v1446_v21 = vmul.f32 1.442695, %v1414_v8 }
 0x310   : > { %11611 = vpow2.f32 %v1448_v16  ;;  %v1329_v2 = vpop.xlane.xlu0 %1328 }
 0x311   : > { %11613 = vpow2.f32 %v1446_v21  ;;  %v1417_v19 = vsub.f32 %v12770_v38, %v1329_v2 }
 0x313   : > { %v1452_v39 = vmul.f32 1.442695, %v1417_v19 }
 0x314   : > { %v1332_v36 = vpop.xlane.xlu1 %1331  ;;  %v1326_v26 = vpop.xlane.xlu0 %1325 }
 0x315   : > { %11615 = vpow2.f32 %v1452_v39  ;;  %v1418_v13 = vsub.f32 %v12776_v9, %v1332_v36  ;;  %v1416_v28 = vsub.f32 %v12774_v41, %v1326_v26 }
 0x317   : > { %v1450_v4 = vmul.f32 1.442695, %v1416_v28  ;;  %v1454_v32 = vmul.f32 1.442695, %v1418_v13 }
 0x318   : > { %v1335_v33 = vpop.xlane.xlu0 %1334  ;;  %v1338_v11 = vpop.xlane.xlu1 %1337 }
 0x319   : > { %v1419_v34 = vsub.f32 %v12778_v5, %v1335_v33  ;;  %11617 = vpow2.f32 %v1450_v4  ;;  %v1420_v36 = vsub.f32 %v12784_v40, %v1338_v11 }
 0x31a   : > { %v12932_v31 = vpop.eup %11611  ;;  %11619 = vpow2.f32 %v1454_v32 }
 0x31b   : > { %v12934_v16 = vpop.eup %11613  ;;  %v1456_v21 = vmul.f32 1.442695, %v1419_v34  ;;  %v1513_v38 = vsel %vm1317_vm3, %v12932_v31, 0.0  ;;  %v1458_v19 = vmul.f32 1.442695, %v1420_v36 }
 0x31c   : > { %1514 = vadd.xlane.f32.xlu0 %v1513_v38  ;;  %v1341_v41 = vpop.xlane.xlu0 %1340  ;;  %v1510_v9 = vsel %vm1317_vm3, %v12934_v16, 0.0 }
 0x31d   : > { %v1421_v39 = vsub.f32 %v12786_v60, %v1341_v41  ;;  %1511 = vadd.xlane.f32.xlu1 %v1510_v9  ;;  %11621 = vpow2.f32 %v1456_v21 }
 0x31f   : > { %v12942_v5 = vpop.eup %11615  ;;  %v1460_v4 = vmul.f32 1.442695, %v1421_v39 }
 0x320   : > { %v1519_v26 = vsel %vm1317_vm3, %v12942_v5, 0.0 }
 0x321   : > { %11623 = vpow2.f32 %v1460_v4  ;;  %1520 = vadd.xlane.f32.xlu0 %v1519_v26 }
 0x322   : > { %11625 = vpow2.f32 %v1458_v19 }
 0x323   : > { %v12946_v13 = vpop.eup %11617 }
 0x324   : > { %v1516_v11 = vsel %vm1317_vm3, %v12946_v13, 0.0  ;;  %v12950_v40 = vpop.eup %11619 }
 0x325   : > { %1517 = vadd.xlane.f32.xlu1 %v1516_v11  ;;  %v1522_v28 = vsel %vm1317_vm3, %v12950_v40, 0.0 }
 0x327   : > { %v12952_v60 = vpop.eup %11621 }
 0x328   : > { %v1525_v23 = vsel %vm1317_vm3, %v12952_v60, 0.0 }
 0x329   : > { %1523 = vadd.xlane.f32.xlu1 %v1522_v28  ;;  %1526 = vadd.xlane.f32.xlu0 %v1525_v23 }
 0x32b   : > { %v12958_v8 = vpop.eup %11623  ;;  %v1347_v2 = vpop.xlane.xlu0 %1346 }
 0x32c   : > { %v1423_v32 = vsub.f32 %v12794_v54, %v1347_v2  ;;  %v1344_v33 = vpop.xlane.xlu1 %1343  ;;  %v1531_v34 = vsel %vm1317_vm3, %v12958_v8, 0.0  ;;  %v12963_v21 = vpop.eup %11625 }
 0x32d   : > { %v1422_v36 = vsub.f32 %v12796_v44, %v1344_v33  ;;  %1532 = vadd.xlane.f32.xlu0 %v1531_v34  ;;  %v1528_v54 = vsel %vm1317_vm3, %v12963_v21, 0.0 }
 0x32e   : > { %v1464_v38 = vmul.f32 1.442695, %v1423_v32 }
 0x32f   : > { %v1371_v41 = vpop.xlane.xlu0 %1370  ;;  %v1462_v19 = vmul.f32 1.442695, %v1422_v36 }
 0x330   : > { %11627 = vpow2.f32 %v1464_v38  ;;  %v1431_v9 = vsub.f32 %v12798_v12, %v1371_v41  ;;  %v1368_v39 = vpop.xlane.xlu1 %1367 }
 0x331   : > { %v1430_v4 = vsub.f32 %v12802_v43, %v1368_v39  ;;  %1529 = vadd.xlane.f32.xlu0 %v1528_v54 }
 0x332   : > { %v1480_v26 = vmul.f32 1.442695, %v1431_v9 }
 0x333   : > { %v1478_v11 = vmul.f32 1.442695, %v1430_v4  ;;  %v1353_v28 = vpop.xlane.xlu0 %1352 }
 0x334   : > { %11629 = vpow2.f32 %v1480_v26  ;;  %v1425_v23 = vsub.f32 %v12806_v10, %v1353_v28  ;;  %v1350_v44 = vpop.xlane.xlu1 %1349 }
 0x335   : > { %11631 = vpow2.f32 %v1478_v11  ;;  %v1424_v12 = vsub.f32 %v12810_v51, %v1350_v44 }
 0x336   : > { %11633 = vpow2.f32 %v1462_v19  ;;  %v1468_v2 = vmul.f32 1.442695, %v1425_v23 }
 0x337   : > { %v1377_v32 = vpop.xlane.xlu0 %1376  ;;  %v1466_v38 = vmul.f32 1.442695, %v1424_v12 }
 0x338   : > { %v1433_v43 = vsub.f32 %v12814_v17, %v1377_v32  ;;  %v1374_v33 = vpop.xlane.xlu1 %1373  ;;  %11635 = vpow2.f32 %v1468_v2 }
 0x339   : > { %v1432_v41 = vsub.f32 %v12818_v42, %v1374_v33 }
 0x33a   : > { %v12973_v34 = vpop.eup %11627  ;;  %v1484_v36 = vmul.f32 1.442695, %v1433_v43 }
 0x33b   : > { %v1359_v9 = vpop.xlane.xlu0 %1358  ;;  %v1537_v10 = vsel %vm1317_vm3, %v12973_v34, 0.0  ;;  %v1482_v17 = vmul.f32 1.442695, %v1432_v41 }
 0x33c   : > { %11637 = vpow2.f32 %v1484_v36  ;;  %v1427_v39 = vsub.f32 %v12822_v61, %v1359_v9  ;;  %v1356_v4 = vpop.xlane.xlu1 %1355  ;;  %1538 = vadd.xlane.f32.xlu0 %v1537_v10 }
 0x33d   : > { %11639 = vpow2.f32 %v1466_v38  ;;  %v1426_v2 = vsub.f32 %v12826_v48, %v1356_v4 }
 0x33e   : > { %v12979_v51 = vpop.eup %11629  ;;  %v1472_v54 = vmul.f32 1.442695, %v1427_v39 }
 0x33f   : > { %v12981_v19 = vpop.eup %11631  ;;  %v1383_v26 = vpop.xlane.xlu0 %1382  ;;  %v1561_v42 = vsel %vm1317_vm3, %v12979_v51, 0.0 }
 0x340   : > { %v12985_v11 = vpop.eup %11633  ;;  %11641 = vpow2.f32 %v1472_v54  ;;  %v1435_v28 = vsub.f32 %v12830_v24, %v1383_v26  ;;  %v1380_v23 = vpop.xlane.xlu1 %1379  ;;  %1562 = vadd.xlane.f32.xlu1 %v1561_v42  ;;  %v1558_v61 = vsel %vm1317_vm3, %v12981_v19, 0.0 }
 0x341   : > { %v1434_v44 = vsub.f32 %v12834_v58, %v1380_v23  ;;  %1559 = vadd.xlane.f32.xlu0 %v1558_v61  ;;  %11643 = vpow2.f32 %v1482_v17  ;;  %v1534_v33 = vsel %vm1317_vm3, %v12985_v11, 0.0  ;;  %v1470_v58 = vmul.f32 1.442695, %v1426_v2 }
 0x342   : > { %v1488_v12 = vmul.f32 1.442695, %v1435_v28  ;;  %v12994_v38 = vpop.eup %11635 }
 0x343   : > { %v1486_v32 = vmul.f32 1.442695, %v1434_v44  ;;  %v1365_v43 = vpop.xlane.xlu0 %1364  ;;  %v1543_v48 = vsel %vm1317_vm3, %v12994_v38, 0.0 }
 0x344   : > { %v1429_v24 = vsub.f32 %v12838_v20, %v1365_v43  ;;  %v1362_v36 = vpop.xlane.xlu1 %1361  ;;  %1535 = vadd.xlane.f32.xlu1 %v1534_v33 }
 0x345   : > { %11645 = vpow2.f32 %v1486_v32  ;;  %v1428_v42 = vsub.f32 %v12842_v59, %v1362_v36 }
 0x346   : > { %v12997_v41 = vpop.eup %11637  ;;  %11647 = vpow2.f32 %v1488_v12  ;;  %v1476_v9 = vmul.f32 1.442695, %v1429_v24 }
 0x347   : > { %v1389_v10 = vpop.xlane.xlu0 %1388  ;;  %v1567_v39 = vsel %vm1317_vm3, %v12997_v41, 0.0  ;;  %v13003_v4 = vpop.eup %11639  ;;  %v1474_v32 = vmul.f32 1.442695, %v1428_v42 }
 0x348   : > { %11649 = vpow2.f32 %v1476_v9  ;;  %v1437_v20 = vsub.f32 %v12846_v15, %v1389_v10  ;;  %v1386_v17 = vpop.xlane.xlu1 %1385  ;;  %1544 = vadd.xlane.f32.xlu1 %v1543_v48  ;;  %1568 = vadd.xlane.f32.xlu0 %v1567_v39  ;;  %v1540_v61 = vsel %vm1317_vm3, %v13003_v4, 0.0 }
 0x349   : > { %v1436_v54 = vsub.f32 %v12850_v30, %v1386_v17  ;;  %11651 = vpow2.f32 %v1470_v58 }
 0x34a   : > { %v13007_v26 = vpop.eup %11641  ;;  %v1492_v28 = vmul.f32 1.442695, %v1437_v20 }
 0x34b   : > { %v1490_v23 = vmul.f32 1.442695, %v1436_v54  ;;  %v1549_v44 = vsel %vm1317_vm3, %v13007_v26, 0.0  ;;  %v13014_v2 = vpop.eup %11643 }
 0x34c   : > { %v1395_v15 = vpop.xlane.xlu0 %1394  ;;  %1541 = vadd.xlane.f32.xlu0 %v1540_v61  ;;  %1550 = vadd.xlane.f32.xlu1 %v1549_v44  ;;  %v1564_v24 = vsel %vm1317_vm3, %v13014_v2, 0.0 }
 0x34d   : > { %11653 = vpow2.f32 %v1490_v23  ;;  %v1439_v30 = vsub.f32 %v12858_v29, %v1395_v15  ;;  %v1392_v12 = vpop.xlane.xlu1 %1391 }
 0x34e   : > { %11655 = vpow2.f32 %v1492_v28  ;;  %v1438_v59 = vsub.f32 %v12860_v49, %v1392_v12 }
 0x34f   : > { %v13018_v43 = vpop.eup %11645  ;;  %v1496_v33 = vmul.f32 1.442695, %v1439_v30 }
 0x350   : > { %v13022_v36 = vpop.eup %11647  ;;  %1565 = vadd.xlane.f32.xlu0 %v1564_v24  ;;  %v1570_v58 = vsel %vm1317_vm3, %v13018_v43, 0.0  ;;  %v1494_v9 = vmul.f32 1.442695, %v1438_v59  ;;  %v1401_v12 = vpop.xlane.xlu0 %1400 }
 0x351   : > { %11657 = vpow2.f32 %v1496_v33  ;;  %1571 = vadd.xlane.f32.xlu1 %v1570_v58  ;;  %v1573_v49 = vsel %vm1317_vm3, %v13022_v36, 0.0  ;;  %v1441_v59 = vsub.f32 %v12866_v46, %v1401_v12  ;;  %v1398_v58 = vpop.xlane.xlu1 %1397 }
 0x352   : > { %v13026_v29 = vpop.eup %11649  ;;  %11659 = vpow2.f32 %v1474_v32 }
 0x353   : > { %v1555_v10 = vsel %vm1317_vm3, %v13026_v29, 0.0  ;;  %v13032_v48 = vpop.eup %11651  ;;  %11661 = vpow2.f32 %v1494_v9  ;;  %v1500_v24 = vmul.f32 1.442695, %v1441_v59 }
 0x354   : > { %1574 = vadd.xlane.f32.xlu0 %v1573_v49  ;;  %v1546_v20 = vsel %vm1317_vm3, %v13032_v48, 0.0  ;;  %v1407_v32 = vpop.xlane.xlu0 %1406  ;;  %v1440_v49 = vsub.f32 %v12868_v7, %v1398_v58 }
 0x355   : > { %1556 = vadd.xlane.f32.xlu1 %v1555_v10  ;;  %11663 = vpow2.f32 %v1500_v24 }
 0x357   : > { %v13034_v39 = vpop.eup %11653 }
 0x358   : > { %v13038_v17 = vpop.eup %11655  ;;  %1547 = vadd.xlane.f32.xlu0 %v1546_v20  ;;  %v1576_v54 = vsel %vm1317_vm3, %v13034_v39, 0.0  ;;  %v1413_v33 = vpop.xlane.xlu0 %1412 }
 0x359   : > { %1577 = vadd.xlane.f32.xlu1 %v1576_v54  ;;  %v1579_v28 = vsel %vm1317_vm3, %v13038_v17, 0.0  ;;  %v1445_v9 = vsub.f32 %v12884_v1, %v1413_v33  ;;  %v1404_v20 = vpop.xlane.xlu1 %1403  ;;  %v1498_v54 = vmul.f32 1.442695, %v1440_v49 }
 0x35b   : > { %v13042_v42 = vpop.eup %11657  ;;  %v1508_v10 = vmul.f32 1.442695, %v1445_v9 }
 0x35c   : > { %v13046_v23 = vpop.eup %11659  ;;  %1580 = vadd.xlane.f32.xlu0 %v1579_v28  ;;  %v1585_v61 = vsel %vm1317_vm3, %v13042_v42, 0.0  ;;  %v1443_v28 = vsub.f32 %v12874_v63, %v1407_v32 }
 0x35d   : > { %1586 = vadd.xlane.f32.xlu1 %v1585_v61  ;;  %v1552_v44 = vsel %vm1317_vm3, %v13046_v23, 0.0  ;;  %v13052_v15 = vpop.eup %11661  ;;  %11665 = vpow2.f32 %v1508_v10 }
 0x35e   : > { %v1582_v30 = vsel %vm1317_vm3, %v13052_v15, 0.0  ;;  %11667 = vpow2.f32 %v1498_v54  ;;  %v1504_v61 = vmul.f32 1.442695, %v1443_v28 }
 0x35f   : > { %v13065_v46 = vpop.eup %11663 }
 0x360   : > { %1553 = vadd.xlane.f32.xlu0 %v1552_v44  ;;  %v1442_v44 = vsub.f32 %v12878_v0, %v1404_v20  ;;  %11669 = vpow2.f32 %v1504_v61  ;;  %v1591_v7 = vsel %vm1317_vm3, %v13065_v46, 0.0 }
 0x362   : > { %v1502_v12 = vmul.f32 1.442695, %v1442_v44 }
 0x364   : > { %1583 = vadd.xlane.f32.xlu0 %v1582_v30  ;;  %v1410_v30 = vpop.xlane.xlu1 %1409  ;;  %11671 = vpow2.f32 %v1502_v12  ;;  %v11085_v12 = vunpack.i.h.bf16 %v12726_v25 }
 0x365   : > { %v1444_v1 = vsub.f32 %v12886_v22, %v1410_v30 }
 0x367   : > { %v13070_v59 = vpop.eup %11665  ;;  %v1506_v63 = vmul.f32 1.442695, %v1444_v1  ;;  %v11084_v1 = vunpack.i.l.bf16 %v12726_v25 }
 0x368   : > { %v13072_v32 = vpop.eup %11667  ;;  %v1603_v0 = vsel %vm1317_vm3, %v13070_v59, 0.0 }
 0x369   : > { %11673 = vpow2.f32 %v1506_v63  ;;  %v1588_v33 = vsel %vm1317_vm3, %v13072_v32, 0.0  ;;  %v10400_v25 = vpack.c.bf16 %v11085_v12, %v11084_v1 }
 0x36a   : > { %v13078_v24 = vpop.eup %11669 }
 0x36b   : > { %v1597_v22 = vsel %vm1317_vm3, %v13078_v24, 0.0 }
 0x36e   : > { %2321 = vrot.lane.b32.xlu1 %v12369_v45, %s12169_s11  ;;  %v13082_v58 = vpop.eup %11671 }
 0x36f   : > { %v1594_v9 = vsel %vm1317_vm3, %v13082_v58, 0.0 }
 0x373   : > { %v13086_v49 = vpop.eup %11673 }
 0x374   : > { %v1600_v10 = vsel %vm1317_vm3, %v13086_v49, 0.0 }
 0x37a   : > { %2319 = vrot.lane.b32.xlu0 %v12372_v47, %s12169_s11 }
 0x392   : > { %1592 = vadd.xlane.f32.xlu1 %v1591_v7 }
 0x396   : > { %1604 = vadd.xlane.f32.xlu1 %v1603_v0 }
 0x399   : > { %1589 = vadd.xlane.f32.xlu0 %v1588_v33 }
 0x39d   : > { %1598 = vadd.xlane.f32.xlu0 %v1597_v22  ;;  %v11095_v22 = vunpack.i.h.bf16 %v12735_v53 }
 0x3a1   : > { %1595 = vadd.xlane.f32.xlu0 %v1594_v9  ;;  %v11094_v9 = vunpack.i.l.bf16 %v12735_v53  ;;  %v11104_v53 = vunpack.i.l.bf16 %v12737_v62 }
 0x3a5   : > { %1601 = vadd.xlane.f32.xlu0 %v1600_v10  ;;  %v10404_v10 = vpack.c.bf16 %v11095_v22, %v11094_v9 }
 0x3a7   : > { %11197 = vrot.lane.b32.xlu1 %v12524_v56, %s12168_s10 }
 0x3a9   : > { %v1515_v20 = vpop.xlane.xlu0 %1514 }
 0x3aa   : > { %11675 = vrcp.f32 %v1515_v20  ;;  %v1512_v54 = vpop.xlane.xlu1 %1511 }
 0x3ab   : > { %11677 = vrcp.f32 %v1512_v54  ;;  %2325 = vrot.lane.b32.xlu1 %v12381_v50, %s12169_s11  ;;  %v11105_v54 = vunpack.i.h.bf16 %v12737_v62  ;;  %v11115_v62 = vunpack.i.h.bf16 %v12741_v27 }
 0x3ad   : > { %v10408_v12 = vpack.c.bf16 %v11105_v54, %v11104_v53  ;;  %v16044_v54 = vld [vmem:[#allocation35_spill] sm:$0xff]  ;;  %v16045_v53 = vld [vmem:[#allocation24_spill] sm:$0xff] }
 0x3ae   : > { %v1521_v28 = vpop.xlane.xlu0 %1520 }
 0x3af   : > { %2329 = vrot.lane.b32.xlu1 %v12393_v55, %s12169_s11  ;;  %11679 = vrcp.f32 %v1521_v28 }
 0x3b2   : > { %v1518_v61 = vpop.xlane.xlu1 %1517 }
 0x3b3   : > { %2653 = vrot.lane.b32.xlu1 %v12456_v18, %s12169_s11  ;;  %11681 = vrcp.f32 %v1518_v61 }
 0x3b4   : > { %v11676_v44 = vpop.eup %11675 }
 0x3b5   : > { %v11678_v30 = vpop.eup %11677  ;;  %v1639_v63 = vmul.f32 %v11676_v44, %v12932_v31 }
 0x3b6   : > { %v1638_v7 = vmul.f32 %v11678_v30, %v12934_v16  ;;  %v1524_v0 = vpop.xlane.xlu1 %1523  ;;  %v1527_v33 = vpop.xlane.xlu0 %1526  ;;  %v11114_v30 = vunpack.i.l.bf16 %v12741_v27 }
 0x3b7   : > { %2488 = vrot.lane.b32.xlu1 %v12420_v3, %s12169_s11  ;;  %11683 = vrcp.f32 %v1524_v0 }
 0x3b8   : > { %9452 = vmatprep.mubr.msk.f32.mxu0 %vm1317_vm3, %v1638_v7  ;;  %11685 = vrcp.f32 %v1527_v33  ;;  %v13133_v27 = vpack.c.bf16 %v11115_v62, %v11114_v30  ;;  %v16048_v62 = vld [vmem:[#allocation44_spill] sm:$0xff] }
 0x3b9   : > { %9453 = vmatmul.mubr.msk.f32.vlgmr.msra.gmra.mrb[40].mxu0 %vm1317_vm3, %v1639_v63  ;;  %v11680_v16 = vpop.eup %11679  ;;  %v16039_v63 = vld [vmem:[#allocation49_spill] sm:$0xff] }
 0x3ba   : > { %10399 = vmatpush3.bf16.msra.mxu0 %v12728_v37  ;;  %v1533_v31 = vpop.xlane.xlu0 %1532  ;;  %v1641_v61 = vmul.f32 %v11680_v16, %v12942_v5  ;;  %v16038_v5 = vld [vmem:[#allocation26_spill] sm:$0xff] }
 0x3bb   : > { %10401 = vmatprep.subr.bf16.mxu0 %v10400_v25  ;;  %11192 = vrot.lane.b32.xlu0 %v12500_v35, %s12168_s10  ;;  %11687 = vrcp.f32 %v1533_v31 }
 0x3bc   : > { %11207 = vrot.lane.b32.xlu1 %v12548_v14, %s12168_s10 }
 0x3bd   : > { %v11682_v20 = vpop.eup %11681 }
 0x3be   : > { %10403 = vmatpush3.bf16.msra.mxu0 %v10400_v25  ;;  %v1530_v28 = vpop.xlane.xlu0 %1529  ;;  %v1640_v37 = vmul.f32 %v11682_v20, %v12946_v13  ;;  %v16042_v25 = vld [vmem:[#allocation32_spill] sm:$0xff] }
 0x3bf   : > { %10405 = vmatprep.subr.bf16.mxu0 %v10404_v10  ;;  %2323 = vrot.lane.b32.xlu0 %v12384_v52, %s12169_s11  ;;  %11689 = vrcp.f32 %v1530_v28  ;;  %v16043_v20 = vld [vmem:[#allocation20_spill] sm:$0xff] }
 0x3c0   : > { %2494 = vrot.lane.b32.xlu1 %v12429_v6, %s12169_s11  ;;  %9455 = vmatprep.mubr.msk.f32.mxu0 %vm1317_vm3, %v1640_v37 }
 0x3c1   : > { %v11684_v44 = vpop.eup %11683  ;;  %9456 = vmatmul.mubr.msk.f32.gmra.mrb[42].mxu0 %vm1317_vm3, %v1641_v61  ;;  %v16047_v61 = vld [vmem:[#allocation27_spill] sm:$0xff] }
 0x3c2   : > { %v11686_v1 = vpop.eup %11685  ;;  %10407 = vmatpush3.bf16.msra.mxu0 %v10404_v10  ;;  %v1642_v13 = vmul.f32 %v11684_v44, %v12950_v40  ;;  %v16040_v40 = vld [vmem:[#allocation41_spill] sm:$0xff] }
 0x3c3   : > { %2327 = vrot.lane.b32.xlu0 %v12396_v57, %s12169_s11  ;;  %10409 = vmatprep.subr.bf16.mxu0 %v10408_v12  ;;  %v1643_v7 = vmul.f32 %v11686_v1, %v12952_v60  ;;  %v16041_v60 = vld [vmem:[#allocation29_spill] sm:$0xff] }
 0x3c4   : > { %2498 = vrot.lane.b32.xlu1 %v16038_v5, %s12169_s11  ;;  %9458 = vmatprep.mubr.msk.f32.mxu0 %vm1317_vm3, %v1642_v13 }
 0x3c5   : > { %9459 = vmatmul.mubr.msk.f32.gmra.mrb[44].mxu0 %vm1317_vm3, %v1643_v7  ;;  %v11688_v0 = vpop.eup %11687 }
 0x3c6   : > { %10411 = vmatpush3.bf16.msra.mxu0 %v10408_v12  ;;  %v1645_v31 = vmul.f32 %v11688_v0, %v12958_v8  ;;  %v16046_v8 = vld [vmem:[#allocation38_spill] sm:$0xff]  ;;  %v16049_v12 = vld [vmem:[#allocation55_spill] sm:$0xff] }
 0x3c7   : > { %11202 = vrot.lane.b32.xlu0 %v16039_v63, %s12168_s10  ;;  %10429 = vmatprep.subr.bf16.mxu0 %v13133_v27  ;;  %v11135_v1 = vunpack.i.h.bf16 %v16049_v12  ;;  %v11134_v13 = vunpack.i.l.bf16 %v16049_v12 }
 0x3c8   : > { %2824 = vrot.lane.b32.xlu1 %v16040_v40, %s12169_s11  ;;  %v2305_v40 = vld [vmem:[#allocation2 + $0x1b0] sm:$0xff] }
 0x3c9   : > { %v1539_v33 = vpop.xlane.xlu0 %1538  ;;  %v11690_v22 = vpop.eup %11689 }
 0x3ca   : > { %v1644_v9 = vmul.f32 %v11690_v22, %v12963_v21 }
 0x3cb   : > { %2655 = vrot.lane.b32.xlu0 %v16041_v60, %s12169_s11 }
 0x3cc   : > { %2659 = vrot.lane.b32.xlu1 %v16042_v25, %s12169_s11  ;;  %9461 = vmatprep.mubr.msk.f32.mxu0 %vm1317_vm3, %v1644_v9 }
 0x3cd   : > { %v1563_v16 = vpop.xlane.xlu1 %1562  ;;  %9462 = vmatmul.mubr.msk.f32.gmra.mrb[46].mxu0 %vm1317_vm3, %v1645_v31  ;;  %v16050_v31 = vld [vmem:[#allocation42_spill] sm:$0xff] }
 0x3ce   : > { %11691 = vrcp.f32 %v1563_v16  ;;  %v1560_v10 = vpop.xlane.xlu0 %1559 }
 0x3cf   : > { %11693 = vrcp.f32 %v1560_v10  ;;  %2490 = vrot.lane.b32.xlu0 %v16043_v20, %s12169_s11  ;;  %v16051_v10 = vld [vmem:[#allocation62_spill] sm:$0xff] }
 0x3d0   : > { %2663 = vrot.lane.b32.xlu1 %v16044_v54, %s12169_s11  ;;  %11695 = vrcp.f32 %v1539_v33 }
 0x3d1   : > { %v1536_v21 = vpop.xlane.xlu1 %1535 }
 0x3d2   : > { %11697 = vrcp.f32 %v1536_v21  ;;  %v11120_v21 = vunpack.i.h.bf16 %v16051_v10 }
 0x3d3   : > { %2492 = vrot.lane.b32.xlu0 %v16045_v53, %s12169_s11  ;;  %v2311_v53 = vld [vmem:[#allocation2 + $0x1e0] sm:$0xff] }
 0x3d4   : > { %2667 = vrot.lane.b32.xlu1 %v16046_v8, %s12169_s11  ;;  %v16052_v8 = vld [vmem:[#allocation47_spill] sm:$0xff] }
 0x3d5   : > { %v1545_v28 = vpop.xlane.xlu1 %1544  ;;  %v1569_v37 = vpop.xlane.xlu0 %1568 }
 0x3d6   : > { %11699 = vrcp.f32 %v1545_v28  ;;  %v10450_v28 = vpack.c.bf16 %v11135_v1, %v11134_v13  ;;  %v16055_v1 = vld [vmem:[#allocation33_spill] sm:$0xff]  ;;  %v16057_v13 = vld [vmem:[#allocation64_spill] sm:$0xff] }
 0x3d7   : > { %2496 = vrot.lane.b32.xlu0 %v16047_v61, %s12169_s11 }
 0x3d8   : > { %v11692_v44 = vpop.eup %11691  ;;  %2828 = vrot.lane.b32.xlu1 %v16048_v62, %s12169_s11  ;;  %v11119_v62 = vunpack.i.l.bf16 %v16051_v10 }
 0x3d9   : > { %v11694_v30 = vpop.eup %11693  ;;  %v1551_v7 = vpop.xlane.xlu1 %1550  ;;  %v1655_v9 = vmul.f32 %v11692_v44, %v12979_v51  ;;  %v16053_v44 = vld [vmem:[#allocation54_spill] sm:$0xff] }
 0x3da   : > { %v1542_v0 = vpop.xlane.xlu0 %1541  ;;  %v1654_v33 = vmul.f32 %v11694_v30, %v12981_v19  ;;  %v11696_v22 = vpop.eup %11695 }
 0x3db   : > { %11701 = vrcp.f32 %v1542_v0  ;;  %2822 = vrot.lane.b32.xlu0 %v16050_v31, %s12169_s11  ;;  %v1647_v0 = vmul.f32 %v11696_v22, %v12973_v34 }
 0x3dc   : > { %v11698_v16 = vpop.eup %11697  ;;  %2832 = vrot.lane.b32.xlu1 %v16052_v8, %s12169_s11  ;;  %9508 = vmatprep.mubr.msk.f32.mxu1 %vm1317_vm3, %v1654_v33  ;;  %11703 = vrcp.f32 %v1569_v37  ;;  %v16056_v37 = vld [vmem:[#allocation50_spill] sm:$0xff]  ;;  %v11130_v33 = vunpack.i.h.bf16 %v16057_v13 }
 0x3dd   : > { %9509 = vmatmul.mubr.msk.f32.vlgmr.msra.gmra.mrb[24].mxu1 %vm1317_vm3, %v1655_v9  ;;  %v1646_v51 = vmul.f32 %v11698_v16, %v12985_v11  ;;  %v10432_v11 = vpack.c.bf16 %v11120_v21, %v11119_v62  ;;  %v11129_v9 = vunpack.i.l.bf16 %v16057_v13  ;;  %v16058_v16 = vld [vmem:[#allocation66_spill] sm:$0xff] }
 0x3de   : > { %v1566_v19 = vpop.xlane.xlu0 %1565  ;;  %10449 = vmatpush3.bf16.xpose.msk.msra.mxu1 %vm12606_vm2, %v16053_v44  ;;  %v1572_v12 = vpop.xlane.xlu1 %1571  ;;  %v11140_v10 = vunpack.i.h.bf16 %v16058_v16  ;;  %v11139_v34 = vunpack.i.l.bf16 %v16058_v16  ;;  %v16059_v44 = vld [vmem:[#allocation36_spill] sm:$0xff]  ;;  %v16060_v21 = vld [vmem:[#allocation10_spill] sm:$0xff] }
 0x3df   : > { %11705 = vrcp.f32 %v1566_v19  ;;  %10452 = vmatprep.subr.msk.bf16.mxu1 %vm12606_vm2, %v10450_v28  ;;  %2657 = vrot.lane.b32.xlu0 %v16055_v1, %s12169_s11  ;;  %v10436_v13 = vpack.c.bf16 %v11130_v33, %v11129_v9  ;;  %v16062_v33 = vld [vmem:[#allocation39_spill] sm:$0xff]  ;;  %v16063_v9 = vld [vmem:[#allocation16_spill] sm:$0xff] }
 0x3e0   : > { %11707 = vrcp.f32 %v1572_v12  ;;  %2836 = vrot.lane.b32.xlu1 %v16056_v37, %s12169_s11  ;;  %9480 = vmatprep.mubr.msk.f32.mxu0 %vm1317_vm3, %v1646_v51  ;;  %v11700_v62 = vpop.eup %11699  ;;  %v10456_v12 = vpack.c.bf16 %v11140_v10, %v11139_v34  ;;  %v16064_v10 = vld [vmem:[#allocation68_spill] sm:$0xff] }
 0x3e1   : > { %9481 = vmatmul.mubr.msk.f32.vlgmr.msra.gmra.mrb[48].mxu0 %vm1317_vm3, %v1647_v0  ;;  %v16061_v0 = vld [vmem:[#allocation71_spill] sm:$0xff]  ;;  %v11145_v34 = vunpack.i.h.bf16 %v16064_v10  ;;  %v11144_v54 = vunpack.i.l.bf16 %v16064_v10 }
 0x3e2   : > { %v1575_v22 = vpop.xlane.xlu0 %1574  ;;  %10431 = vmatpush3.bf16.msra.mxu0 %v13133_v27  ;;  %v1557_v19 = vpop.xlane.xlu1 %1556  ;;  %v11190_v37 = vunpack.i.h.bf16 %v16061_v0  ;;  %v11189_v27 = vunpack.i.l.bf16 %v16061_v0 }
 0x3e3   : > { %11709 = vrcp.f32 %v1575_v22  ;;  %10433 = vmatprep.subr.bf16.mxu0 %v10432_v11  ;;  %2661 = vrot.lane.b32.xlu0 %v16059_v44, %s12169_s11 }
 0x3e4   : > { %11217 = vrot.lane.b32.xlu1 %v16060_v21, %s12170_s12  ;;  %11711 = vrcp.f32 %v1551_v7 }
 0x3e5   : > { %v11702_v51 = vpop.eup %11701 }
 0x3e6   : > { %v1548_v16 = vpop.xlane.xlu0 %1547  ;;  %10435 = vmatpush3.bf16.msra.mxu0 %v10432_v11  ;;  %10455 = vmatpush3.bf16.xpose.msk.msra.mxu1 %vm12606_vm2, %v10450_v28  ;;  %v1578_v22 = vpop.xlane.xlu1 %1577  ;;  %v1648_v8 = vmul.f32 %v11702_v51, %v13003_v4  ;;  %v1649_v11 = vmul.f32 %v11700_v62, %v12994_v38 }
 0x3e7   : > { %11713 = vrcp.f32 %v1548_v16  ;;  %v11704_v44 = vpop.eup %11703  ;;  %10437 = vmatprep.subr.bf16.mxu0 %v10436_v13  ;;  %10458 = vmatprep.subr.msk.bf16.mxu1 %vm12606_vm2, %v10456_v12  ;;  %v16065_v16 = vld [vmem:[#allocation56_spill] sm:$0xff] }
 0x3e8   : > { %11715 = vrcp.f32 %v1578_v22  ;;  %2665 = vrot.lane.b32.xlu0 %v16062_v33, %s12169_s11  ;;  %11227 = vrot.lane.b32.xlu1 %v16063_v9, %s12170_s12  ;;  %v11150_v4 = vunpack.i.h.bf16 %v16065_v16  ;;  %v11149_v51 = vunpack.i.l.bf16 %v16065_v16  ;;  %v10440_v33 = vpack.c.bf16 %v11190_v37, %v11189_v27 }
 0x3e9   : > { %v11706_v7 = vpop.eup %11705  ;;  %9483 = vmatprep.mubr.msk.f32.mxu0 %vm1317_vm3, %v1648_v8  ;;  %v1657_v62 = vmul.f32 %v11704_v44, %v12997_v41  ;;  %v16066_v8 = vld [vmem:[#allocation45_spill] sm:$0xff] }
 0x3ea   : > { %v11708_v28 = vpop.eup %11707  ;;  %v1581_v0 = vpop.xlane.xlu0 %1580  ;;  %v1656_v22 = vmul.f32 %v11706_v7, %v13014_v2  ;;  %9484 = vmatmul.mubr.msk.f32.gmra.mrb[50].mxu0 %vm1317_vm3, %v1649_v11  ;;  %v10462_v16 = vpack.c.bf16 %v11150_v4, %v11149_v51  ;;  %v16067_v2 = vld [vmem:[#allocation31_spill] sm:$0xff] }
 0x3eb   : > { %11717 = vrcp.f32 %v1581_v0  ;;  %v1658_v38 = vmul.f32 %v11708_v28, %v13018_v43  ;;  %10439 = vmatpush3.bf16.msra.mxu0 %v10436_v13  ;;  %v13222_v13 = vpack.c.bf16 %v11145_v34, %v11144_v54  ;;  %v1587_v27 = vpop.xlane.xlu1 %1586  ;;  %v16071_v4 = vld [vmem:[#allocation51_spill] sm:$0xff]  ;;  %v16072_v0 = vld [vmem:[#allocation37_spill] sm:$0xff] }
 0x3ec   : > { %9511 = vmatprep.mubr.msk.f32.mxu1 %vm1317_vm3, %v1656_v22  ;;  %10441 = vmatprep.subr.bf16.mxu0 %v10440_v33  ;;  %11719 = vrcp.f32 %v1557_v19  ;;  %v16073_v22 = vld [vmem:[#allocation7_spill] sm:$0xff] }
 0x3ed   : > { %v11710_v1 = vpop.eup %11709  ;;  %2826 = vrot.lane.b32.xlu0 %v16066_v8, %s12169_s11  ;;  %11237 = vrot.lane.b32.xlu1 %v16067_v2, %s12170_s12 }
 0x3ee   : > { %9512 = vmatmul.mubr.msk.f32.gmra.mrb[26].mxu1 %vm1317_vm3, %v1657_v62  ;;  %v1554_v37 = vpop.xlane.xlu0 %1553  ;;  %v1659_v43 = vmul.f32 %v11710_v1, %v13022_v36  ;;  %v11712_v41 = vpop.eup %11711  ;;  %v16068_v36 = vld [vmem:[#allocation48_spill] sm:$0xff]  ;;  %v16069_v1 = vld [vmem:[#allocation59_spill] sm:$0xff] }
 0x3ef   : > { %9514 = vmatprep.mubr.msk.f32.mxu1 %vm1317_vm3, %v1658_v38  ;;  %10461 = vmatpush3.bf16.xpose.msk.msra.mxu1 %vm12606_vm2, %v10456_v12  ;;  %11721 = vrcp.f32 %v1554_v37  ;;  %v11165_v44 = vunpack.i.h.bf16 %v16069_v1  ;;  %v11164_v7 = vunpack.i.l.bf16 %v16069_v1  ;;  %v16070_v12 = vld [vmem:[#allocation34_spill] sm:$0xff]  ;;  %v1651_v28 = vmul.f32 %v11712_v41, %v13007_v26  ;;  %v16075_v62 = vld [vmem:[#allocation63_spill] sm:$0xff] }
 0x3f0   : > { %10443 = vmatpush3.bf16.msra.mxu0 %v10440_v33  ;;  %10464 = vmatprep.subr.msk.bf16.mxu1 %vm12606_vm2, %v10462_v16  ;;  %11723 = vrcp.f32 %v1587_v27  ;;  %v16074_v38 = vld [vmem:[#allocation70_spill] sm:$0xff]  ;;  %v11175_v37 = vunpack.i.h.bf16 %v16075_v62 }
 0x3f1   : > { %v11714_v19 = vpop.eup %11713  ;;  %10470 = vmatprep.subr.msk.bf16.mxu0 %vm12606_vm2, %v13222_v13  ;;  %2830 = vrot.lane.b32.xlu0 %v16068_v36, %s12169_s11  ;;  %v10492_v51 = vpack.c.bf16 %v11165_v44, %v11164_v7 }
 0x3f2   : > { %v11716_v54 = vpop.eup %11715  ;;  %11247 = vrot.lane.b32.xlu1 %v16070_v12, %s12170_s12  ;;  %9515 = vmatmul.mubr.msk.f32.gmra.mrb[28].mxu1 %vm1317_vm3, %v1659_v43  ;;  %v1584_v33 = vpop.xlane.xlu0 %1583  ;;  %v1650_v11 = vmul.f32 %v11714_v19, %v13032_v48  ;;  %v16076_v19 = vld [vmem:[#allocation13_spill] sm:$0xff] }
 0x3f3   : > { %11725 = vrcp.f32 %v1584_v33  ;;  %v1660_v10 = vmul.f32 %v11716_v54, %v13034_v39  ;;  %v16077_v54 = vld [vmem:[#allocation57_spill] sm:$0xff] }
 0x3f4   : > { %9486 = vmatprep.mubr.msk.f32.mxu0 %vm1317_vm3, %v1650_v11  ;;  %v11155_v1 = vunpack.i.h.bf16 %v16077_v54  ;;  %v11154_v44 = vunpack.i.l.bf16 %v16077_v54 }
 0x3f5   : > { %v11718_v34 = vpop.eup %11717  ;;  %2834 = vrot.lane.b32.xlu0 %v16071_v4, %s12169_s11  ;;  %9487 = vmatmul.mubr.msk.f32.gmra.mrb[52].mxu0 %vm1317_vm3, %v1651_v28  ;;  %v2322_v28 = vpop.permute.xlu1 %2321 }
 0x3f6   : > { %11257 = vrot.lane.b32.xlu1 %v16072_v0, %s12170_s12  ;;  %9517 = vmatprep.mubr.msk.f32.mxu1 %vm1317_vm3, %v1660_v10  ;;  %v1661_v48 = vmul.f32 %v11718_v34, %v13038_v17  ;;  %v11720_v26 = vpop.eup %11719  ;;  %v11174_v17 = vunpack.i.l.bf16 %v16075_v62  ;;  %v2320_v33 = vpop.permute.xlu0 %2319  ;;  %v16079_v10 = vld [vmem:[#allocation19_spill] sm:$0xff]  ;;  %v10474_v34 = vpack.c.bf16 %v11155_v1, %v11154_v44  ;;  %v16087_v1 = vld [vmem:[#allocation5_spill] sm:$0xff] }
 0x3f7   : > { %10467 = vmatpush3.bf16.xpose.msk.msra.mxu1 %vm12606_vm2, %v10462_v16  ;;  %v1653_v43 = vmul.f32 %v11720_v26, %v13026_v29  ;;  %v16082_v26 = vld [vmem:[#allocation58_spill] sm:$0xff]  ;;  %v16088_v44 = vld [vmem:[#allocation67_spill] sm:$0xff] }
 0x3f8   : > { %10494 = vmatprep.subr.msk.bf16.mxu1 %vm12606_vm2, %v10492_v51  ;;  %9518 = vmatmul.mubr.msk.f32.gmra.mrb[30].mxu1 %vm1317_vm3, %v1661_v48  ;;  %v10498_v7 = vpack.c.bf16 %v11175_v37, %v11174_v17  ;;  %v16084_v17 = vld [vmem:[#allocation28_spill] sm:$0xff] }
 0x3f9   : > { %v11722_v39 = vpop.eup %11721  ;;  %11212 = vrot.lane.b32.xlu0 %v16073_v22, %s12170_s12  ;;  %9564 = vmatprep.mubr.msk.f32.mxu1 %vm696_vm1, %v16074_v38  ;;  %v11159_v38 = vunpack.i.l.bf16 %v16082_v26 }
 0x3fa   : > { %11267 = vrot.lane.b32.xlu1 %v12500_v35, %s12170_s12  ;;  %v1652_v16 = vmul.f32 %v11722_v39, %v13046_v23  ;;  %v11724_v27 = vpop.eup %11723  ;;  %v16078_v23 = vld [vmem:[#allocation60_spill] sm:$0xff]  ;;  %v11160_v39 = vunpack.i.h.bf16 %v16082_v26  ;;  %v16090_v26 = vld [vmem:[#allocation6_spill] sm:$0xff] }
 0x3fb   : > { %v1663_v11 = vmul.f32 %v11724_v27, %v13042_v42 }
 0x3fc   : > { %9489 = vmatprep.mubr.msk.f32.mxu0 %vm1317_vm3, %v1652_v16  ;;  %v10480_v37 = vpack.c.bf16 %v11160_v39, %v11159_v38  ;;  %v16085_v16 = vld [vmem:[#allocation61_spill] sm:$0xff] }
 0x3fd   : > { %v11726_v41 = vpop.eup %11725  ;;  %11222 = vrot.lane.b32.xlu0 %v16076_v19, %s12170_s12  ;;  %9490 = vmatmul.mubr.msk.f32.gmra.mrb[54].mxu0 %vm1317_vm3, %v1653_v43  ;;  %v11170_v43 = vunpack.i.h.bf16 %v16085_v16  ;;  %v11169_v27 = vunpack.i.l.bf16 %v16085_v16 }
 0x3fe   : > { %11277 = vrot.lane.b32.xlu1 %v12524_v56, %s12170_s12  ;;  %9565 = vmatmul.mubr.msk.f32.vlgmr.msra.gmra.mrb[32].mxu1 %vm696_vm1, %v16078_v23  ;;  %v1662_v29 = vmul.f32 %v11726_v41, %v13052_v15  ;;  %v16080_v15 = vld [vmem:[#allocation65_spill] sm:$0xff]  ;;  %v16086_v41 = vld [vmem:[#allocation43_spill] sm:$0xff] }
 0x3ff   : > { %9567 = vmatprep.mubr.msk.f32.mxu1 %vm696_vm1, %v2320_v33  ;;  %10497 = vmatpush3.bf16.xpose.msk.msra.mxu1 %vm12606_vm2, %v10492_v51  ;;  %v11180_v48 = vunpack.i.h.bf16 %v16080_v15  ;;  %v11179_v42 = vunpack.i.l.bf16 %v16080_v15  ;;  %v16081_v51 = vld [vmem:[#allocation22_spill] sm:$0xff]  ;;  %v10486_v54 = vpack.c.bf16 %v11170_v43, %v11169_v27  ;;  %v11184_v33 = vunpack.i.l.bf16 %v16088_v44 }
 0x400   : > { %10500 = vmatprep.subr.msk.bf16.mxu1 %vm12606_vm2, %v10498_v7  ;;  %9536 = vmatprep.mubr.msk.f32.mxu0 %vm1317_vm3, %v1662_v29  ;;  %v16089_v29 = vld [vmem:[#allocation17_spill] sm:$0xff] }
 0x401   : > { %11232 = vrot.lane.b32.xlu0 %v16079_v10, %s12170_s12  ;;  %9537 = vmatmul.mubr.msk.f32.vlgmr.msra.gmra.mrb[56].mxu0 %vm1317_vm3, %v1663_v11  ;;  %v10504_v62 = vpack.c.bf16 %v11180_v48, %v11179_v42 }
 0x402   : > { %11282 = vrot.lane.b32.xlu1 %v16073_v22, %s12171_s13  ;;  %9568 = vmatmul.mubr.msk.f32.gmra.mrb[34].mxu1 %vm696_vm1, %v2322_v28 }
 0x403   : > { %10473 = vmatpush3.bf16.xpose.msk.msra.mxu0 %vm12606_vm2, %v13222_v13  ;;  %v16083_v13 = vld [vmem:[#allocation25_spill] sm:$0xff] }
 0x404   : > { %10476 = vmatprep.subr.msk.bf16.mxu0 %vm12606_vm2, %v10474_v34 }
 0x405   : > { %11242 = vrot.lane.b32.xlu0 %v16081_v51, %s12170_s12 }
 0x406   : > { %11297 = vrot.lane.b32.xlu1 %v16060_v21, %s12171_s13  ;;  %v2304_v21 = vld [vmem:[#allocation2 + $0x1a8] sm:$0xff] }
 0x407   : > { %10503 = vmatpush3.bf16.xpose.msk.msra.mxu1 %vm12606_vm2, %v10498_v7  ;;  %v11185_v7 = vunpack.i.h.bf16 %v16088_v44 }
 0x408   : > { %10506 = vmatprep.subr.msk.bf16.mxu1 %vm12606_vm2, %v10504_v62 }
 0x409   : > { %11252 = vrot.lane.b32.xlu0 %v16083_v13, %s12170_s12  ;;  %v13338_v23 = vpack.c.bf16 %v11185_v7, %v11184_v33 }
 0x40a   : > { %11307 = vrot.lane.b32.xlu1 %v16079_v10, %s12171_s13 }
 0x40b   : > { %10479 = vmatpush3.bf16.xpose.msk.msra.mxu0 %vm12606_vm2, %v10474_v34 }
 0x40c   : > { %10482 = vmatprep.subr.msk.bf16.mxu0 %vm12606_vm2, %v10480_v37 }
 0x40d   : > { %11262 = vrot.lane.b32.xlu0 %v16084_v17, %s12170_s12 }
 0x40e   : > { %11317 = vrot.lane.b32.xlu1 %v16081_v51, %s12171_s13 }
 0x40f   : > { %10509 = vmatpush3.bf16.xpose.msk.msra.mxu1 %vm12606_vm2, %v10504_v62 }
 0x411   : > { %11272 = vrot.lane.b32.xlu0 %v16086_v41, %s12170_s12 }
 0x412   : > { %3990 = vrot.lane.b32.xlu1 %v16087_v1, %s12172_s14 }
 0x413   : > { %10485 = vmatpush3.bf16.xpose.msk.msra.mxu0 %vm12606_vm2, %v10480_v37 }
 0x414   : > { %10488 = vmatprep.subr.msk.bf16.mxu0 %vm12606_vm2, %v10486_v54 }
 0x415   : > { %11287 = vrot.lane.b32.xlu0 %v16039_v63, %s12170_s12 }
 0x416   : > { %11337 = vrot.lane.b32.xlu1 %v16070_v12, %s12171_s13  ;;  %v2295_v12 = vld [vmem:[#allocation2 + $0x160] sm:$0xff] }
 0x419   : > { %11292 = vrot.lane.b32.xlu0 %v12548_v14, %s12170_s12 }
 0x41a   : > { %11347 = vrot.lane.b32.xlu1 %v16086_v41, %s12171_s13 }
 0x41b   : > { %10491 = vmatpush3.bf16.xpose.msk.msra.mxu0 %vm12606_vm2, %v10486_v54 }
 0x41c   : > { %10518 = vmatprep.subr.msk.bf16.mxu0 %vm12606_vm2, %v13338_v23 }
 0x41d   : > { %11302 = vrot.lane.b32.xlu0 %v16076_v19, %s12171_s13 }
 0x41e   : > { %4159 = vrot.lane.b32.xlu1 %v16089_v29, %s12172_s14  ;;  %v2299_v29 = vld [vmem:[#allocation2 + $0x180] sm:$0xff] }
 0x41f   : > { %v1593_v11 = vpop.xlane.xlu1 %1592 }
 0x420   : > { %11727 = vrcp.f32 %v1593_v11 }
 0x421   : > { %11312 = vrot.lane.b32.xlu0 %v16063_v9, %s12171_s13 }
 0x423   : > { %v1605_v28 = vpop.xlane.xlu1 %1604 }
 0x425   : > { %11322 = vrot.lane.b32.xlu0 %v16083_v13, %s12171_s13 }
 0x426   : > { %v1590_v34 = vpop.xlane.xlu0 %1589 }
 0x427   : > { %11729 = vrcp.f32 %v1590_v34  ;;  %v11198_v15 = vpop.permute.xlu1 %11197 }
 0x429   : > { %11327 = vrot.lane.b32.xlu0 %v16067_v2, %s12171_s13 }
 0x42a   : > { %v1599_v48 = vpop.xlane.xlu0 %1598  ;;  %v11728_v62 = vpop.eup %11727 }
 0x42b   : > { %v2326_v42 = vpop.permute.xlu1 %2325  ;;  %11731 = vrcp.f32 %v1599_v48  ;;  %v1665_v54 = vmul.f32 %v11728_v62, %v13065_v46 }
 0x42d   : > { %3988 = vrot.lane.b32.xlu0 %v16090_v26, %s12172_s14 }
 0x42e   : > { %v1596_v39 = vpop.xlane.xlu0 %1595 }
 0x42f   : > { %11733 = vrcp.f32 %v1596_v39  ;;  %v2330_v38 = vpop.permute.xlu1 %2329 }
 0x430   : > { %11735 = vrcp.f32 %v1605_v28  ;;  %v16091_v28 = vld [vmem:[#allocation18_spill] sm:$0xff] }
 0x431   : > { %11332 = vrot.lane.b32.xlu0 %v16084_v17, %s12171_s13  ;;  %v11730_v37 = vpop.eup %11729 }
 0x432   : > { %v1602_v16 = vpop.xlane.xlu0 %1601  ;;  %v1664_v43 = vmul.f32 %v11730_v37, %v13072_v32 }
 0x433   : > { %11737 = vrcp.f32 %v1602_v16  ;;  %v2654_v27 = vpop.permute.xlu1 %2653 }
 0x434   : > { %9539 = vmatprep.mubr.msk.f32.mxu0 %vm1317_vm3, %v1664_v43 }
 0x435   : > { %11342 = vrot.lane.b32.xlu0 %v16072_v0, %s12171_s13  ;;  %9540 = vmatmul.mubr.msk.f32.gmra.mrb[58].mxu0 %vm1317_vm3, %v1665_v54  ;;  %v11732_v34 = vpop.eup %11731  ;;  %v2296_v0 = vld [vmem:[#allocation2 + $0x168] sm:$0xff] }
 0x436   : > { %v11193_v44 = vpop.permute.xlu0 %11192  ;;  %v1667_v37 = vmul.f32 %v11732_v34, %v13078_v24  ;;  %v11200_v24 = vunpack.i.h.bf16 %v11198_v15 }
 0x437   : > { %v11195_v7 = vunpack.i.h.bf16 %v11193_v44  ;;  %v11194_v33 = vunpack.i.l.bf16 %v11193_v44  ;;  %v2489_v11 = vpop.permute.xlu1 %2488 }
 0x439   : > { %4157 = vrot.lane.b32.xlu0 %v16091_v28, %s12172_s14  ;;  %v11734_v32 = vpop.eup %11733  ;;  %v10510_v48 = vpack.c.bf16 %v11195_v7, %v11194_v33  ;;  %v16092_v33 = vld [vmem:[#allocation72_spill] sm:$0xff] }
 0x43a   : > { %v2324_v39 = vpop.permute.xlu0 %2323  ;;  %v1666_v46 = vmul.f32 %v11734_v32, %v13082_v58  ;;  %v11736_v16 = vpop.eup %11735 }
 0x43b   : > { %v11208_v62 = vpop.permute.xlu1 %11207  ;;  %9570 = vmatprep.mubr.msk.f32.mxu1 %vm696_vm1, %v2324_v39  ;;  %10512 = vmatprep.subr.msk.bf16.mxu1 %vm12606_vm2, %v10510_v48  ;;  %v1669_v7 = vmul.f32 %v11736_v16, %v13070_v59 }
 0x43c   : > { %9542 = vmatprep.mubr.msk.f32.mxu0 %vm1317_vm3, %v1666_v46  ;;  %9571 = vmatmul.mubr.msk.f32.gmra.mrb[36].mxu1 %vm696_vm1, %v2326_v42  ;;  %v11199_v42 = vunpack.i.l.bf16 %v11198_v15  ;;  %v11209_v16 = vunpack.i.l.bf16 %v11208_v62 }
 0x43d   : > { %v11738_v43 = vpop.eup %11737  ;;  %10515 = vmatpush3.bf16.xpose.msk.msra.mxu1 %vm12606_vm2, %v10510_v48  ;;  %9543 = vmatmul.mubr.msk.f32.gmra.mrb[60].mxu0 %vm1317_vm3, %v1667_v37  ;;  %v16093_v48 = vld [vmem:[#allocation69_spill] sm:$0xff] }
 0x43e   : > { %v2328_v58 = vpop.permute.xlu0 %2327  ;;  %v1668_v54 = vmul.f32 %v11738_v43, %v13086_v49  ;;  %v10522_v32 = vpack.c.bf16 %v11200_v24, %v11199_v42 }
 0x43f   : > { %v2495_v44 = vpop.permute.xlu1 %2494  ;;  %9573 = vmatprep.mubr.msk.f32.mxu1 %vm696_vm1, %v2328_v58 }
 0x440   : > { %9545 = vmatprep.mubr.msk.f32.mxu0 %vm1317_vm3, %v1668_v54  ;;  %9574 = vmatmul.mubr.msk.f32.gmra.mrb[38].mxu1 %vm696_vm1, %v2330_v38 }
 0x441   : > { %9546 = vmatmul.mubr.msk.f32.gmra.mrb[62].mxu0 %vm1317_vm3, %v1669_v7  ;;  %9620 = vmatprep.mubr.msk.f32.mxu1 %vm696_vm1, %v2654_v27 }
 0x442   : > { %9592 = vmatprep.mubr.msk.f32.mxu0 %vm696_vm1, %v16092_v33  ;;  %v11203_v34 = vpop.permute.xlu0 %11202 }
 0x443   : > { %v2499_v49 = vpop.permute.xlu1 %2498  ;;  %v11205_v38 = vunpack.i.h.bf16 %v11203_v34  ;;  %v11204_v27 = vunpack.i.l.bf16 %v11203_v34 }
 0x445   : > { %9593 = vmatmul.mubr.msk.f32.vlgmr.msra.gmra.mrb[64].mxu0 %vm696_vm1, %v16093_v48  ;;  %v10528_v37 = vpack.c.bf16 %v11205_v38, %v11204_v27 }
 0x446   : > { %10521 = vmatpush3.bf16.xpose.msk.msra.mxu0 %vm12606_vm2, %v13338_v23  ;;  %9595 = vmatprep.mubr.msk.f32.mxu0 %vm696_vm1, %v2489_v11  ;;  %v2656_v59 = vpop.permute.xlu0 %2655  ;;  %v11210_v11 = vunpack.i.h.bf16 %v11208_v62 }
 0x447   : > { %10524 = vmatprep.subr.msk.bf16.mxu0 %vm12606_vm2, %v10522_v32  ;;  %v2825_v15 = vpop.permute.xlu1 %2824  ;;  %9621 = vmatmul.mubr.msk.f32.vlgmr.msra.gmra.mrb[40].mxu1 %vm696_vm1, %v2656_v59 }
 0x448   : > { %v10534_v54 = vpack.c.bf16 %v11210_v11, %v11209_v16 }
 0x44a   : > { %v2491_v39 = vpop.permute.xlu0 %2490 }
 0x44b   : > { %9596 = vmatmul.mubr.msk.f32.gmra.mrb[66].mxu0 %vm696_vm1, %v2491_v39  ;;  %v2660_v46 = vpop.permute.xlu1 %2659 }
 0x44e   : > { %10527 = vmatpush3.bf16.xpose.msk.msra.mxu0 %vm12606_vm2, %v10522_v32  ;;  %v2493_v23 = vpop.permute.xlu0 %2492 }
 0x44f   : > { %10530 = vmatprep.subr.msk.bf16.mxu0 %vm12606_vm2, %v10528_v37  ;;  %9598 = vmatprep.mubr.msk.f32.mxu0 %vm696_vm1, %v2493_v23  ;;  %v2664_v43 = vpop.permute.xlu1 %2663 }
 0x450   : > { %9599 = vmatmul.mubr.msk.f32.gmra.mrb[68].mxu0 %vm696_vm1, %v2495_v44 }
 0x452   : > { %v2497_v58 = vpop.permute.xlu0 %2496 }
 0x453   : > { %9601 = vmatprep.mubr.msk.f32.mxu0 %vm696_vm1, %v2497_v58  ;;  %v2668_v24 = vpop.permute.xlu1 %2667 }
 0x454   : > { %9602 = vmatmul.mubr.msk.f32.gmra.mrb[70].mxu0 %vm696_vm1, %v2499_v49 }
 0x456   : > { %10533 = vmatpush3.bf16.xpose.msk.msra.mxu0 %vm12606_vm2, %v10528_v37  ;;  %v2823_v7 = vpop.permute.xlu0 %2822 }
 0x457   : > { %10536 = vmatprep.subr.msk.bf16.mxu0 %vm12606_vm2, %v10534_v54  ;;  %9648 = vmatprep.mubr.msk.f32.mxu0 %vm696_vm1, %v2823_v7  ;;  %v2829_v62 = vpop.permute.xlu1 %2828 }
 0x45a   : > { %v2658_v44 = vpop.permute.xlu0 %2657 }
 0x45b   : > { %9623 = vmatprep.mubr.msk.f32.mxu1 %vm696_vm1, %v2658_v44  ;;  %v2833_v34 = vpop.permute.xlu1 %2832 }
 0x45c   : > { %9624 = vmatmul.mubr.msk.f32.gmra.mrb[42].mxu1 %vm696_vm1, %v2660_v46 }
 0x45e   : > { %10539 = vmatpush3.bf16.xpose.msk.msra.mxu0 %vm12606_vm2, %v10534_v54  ;;  %v2662_v42 = vpop.permute.xlu0 %2661 }
 0x45f   : > { %9626 = vmatprep.mubr.msk.f32.mxu1 %vm696_vm1, %v2662_v42  ;;  %v2837_v32 = vpop.permute.xlu1 %2836 }
 0x460   : > { %9627 = vmatmul.mubr.msk.f32.gmra.mrb[44].mxu1 %vm696_vm1, %v2664_v43 }
 0x462   : > { %v2666_v33 = vpop.permute.xlu0 %2665 }
 0x463   : > { %9629 = vmatprep.mubr.msk.f32.mxu1 %vm696_vm1, %v2666_v33  ;;  %v11218_v38 = vpop.permute.xlu1 %11217 }
 0x464   : > { %9630 = vmatmul.mubr.msk.f32.gmra.mrb[46].mxu1 %vm696_vm1, %v2668_v24  ;;  %v11220_v39 = vunpack.i.h.bf16 %v11218_v38 }
 0x465   : > { %9649 = vmatmul.mubr.msk.f32.vlgmr.msra.gmra.mrb[72].mxu0 %vm696_vm1, %v2825_v15  ;;  %v11219_v15 = vunpack.i.l.bf16 %v11218_v38 }
 0x466   : > { %v2827_v49 = vpop.permute.xlu0 %2826 }
 0x467   : > { %9651 = vmatprep.mubr.msk.f32.mxu0 %vm696_vm1, %v2827_v49  ;;  %v11228_v11 = vpop.permute.xlu1 %11227  ;;  %v10544_v54 = vpack.c.bf16 %v11220_v39, %v11219_v15 }
 0x468   : > { %v11230_v7 = vunpack.i.h.bf16 %v11228_v11  ;;  %v11229_v24 = vunpack.i.l.bf16 %v11228_v11 }
 0x469   : > { %9652 = vmatmul.mubr.msk.f32.gmra.mrb[74].mxu0 %vm696_vm1, %v2829_v62 }
 0x46a   : > { %v2831_v48 = vpop.permute.xlu0 %2830 }
 0x46b   : > { %9654 = vmatprep.mubr.msk.f32.mxu0 %vm696_vm1, %v2831_v48  ;;  %v10552_v48 = vpack.c.bf16 %v11230_v7, %v11229_v24 }
 0x46d   : > { %9655 = vmatmul.mubr.msk.f32.gmra.mrb[76].mxu0 %vm696_vm1, %v2833_v34  ;;  %v11238_v34 = vpop.permute.xlu1 %11237 }
 0x46e   : > { %v2835_v59 = vpop.permute.xlu0 %2834  ;;  %v11239_v38 = vunpack.i.l.bf16 %v11238_v34 }
 0x46f   : > { %9657 = vmatprep.mubr.msk.f32.mxu0 %vm696_vm1, %v2835_v59  ;;  %v11240_v59 = vunpack.i.h.bf16 %v11238_v34 }
 0x471   : > { %9658 = vmatmul.mubr.msk.f32.gmra.mrb[78].mxu0 %vm696_vm1, %v2837_v32  ;;  %v13426_v11 = vpack.c.bf16 %v11240_v59, %v11239_v38 }
 0x472   : > { %v11213_v27 = vpop.permute.xlu0 %11212 }
 0x473   : > { %v11215_v46 = vunpack.i.h.bf16 %v11213_v27  ;;  %v11214_v37 = vunpack.i.l.bf16 %v11213_v27 }
 0x475   : > { %v10540_v23 = vpack.c.bf16 %v11215_v46, %v11214_v37 }
 0x476   : > { %v11223_v16 = vpop.permute.xlu0 %11222 }
 0x477   : > { %v11225_v43 = vunpack.i.h.bf16 %v11223_v16  ;;  %v11224_v58 = vunpack.i.l.bf16 %v11223_v16  ;;  %10541 = vmatprep.subr.bf16.mxu1 %v10540_v23 }
 0x478   : > { %10543 = vmatpush3.bf16.msra.mxu1 %v10540_v23 }
 0x479   : > { %10545 = vmatprep.subr.bf16.mxu1 %v10544_v54  ;;  %v10548_v33 = vpack.c.bf16 %v11225_v43, %v11224_v58 }
 0x47a   : > { %v11233_v44 = vpop.permute.xlu0 %11232 }
 0x47b   : > { %v11235_v62 = vunpack.i.h.bf16 %v11233_v44  ;;  %v11234_v42 = vunpack.i.l.bf16 %v11233_v44 }
 0x47c   : > { %10547 = vmatpush3.bf16.msra.mxu1 %v10544_v54 }
 0x47d   : > { %10549 = vmatprep.subr.bf16.mxu1 %v10548_v33  ;;  %v10556_v49 = vpack.c.bf16 %v11235_v62, %v11234_v42 }
 0x47e   : > { %v11243_v32 = vpop.permute.xlu0 %11242 }
 0x47f   : > { %v11245_v27 = vunpack.i.h.bf16 %v11243_v32  ;;  %v11244_v46 = vunpack.i.l.bf16 %v11243_v32  ;;  %10557 = vmatprep.subr.bf16.mxu0 %v10556_v49 }
 0x480   : > { %10551 = vmatpush3.bf16.msra.mxu1 %v10548_v33  ;;  %10559 = vmatpush3.bf16.msra.mxu0 %v10556_v49 }
 0x481   : > { %10553 = vmatprep.subr.bf16.mxu1 %v10552_v48  ;;  %v10560_v39 = vpack.c.bf16 %v11245_v27, %v11244_v46 }
 0x482   : > { %v11253_v15 = vpop.permute.xlu0 %11252 }
 0x483   : > { %v11255_v37 = vunpack.i.h.bf16 %v11253_v15  ;;  %v11254_v23 = vunpack.i.l.bf16 %v11253_v15  ;;  %10561 = vmatprep.subr.bf16.mxu0 %v10560_v39 }
 0x484   : > { %10555 = vmatpush3.bf16.msra.mxu1 %v10552_v48  ;;  %10563 = vmatpush3.bf16.msra.mxu0 %v10560_v39 }
 0x485   : > { %10573 = vmatprep.subr.bf16.mxu1 %v13426_v11  ;;  %v10564_v16 = vpack.c.bf16 %v11255_v37, %v11254_v23 }
 0x486   : > { %v11263_v43 = vpop.permute.xlu0 %11262 }
 0x487   : > { %v11265_v58 = vunpack.i.h.bf16 %v11263_v43  ;;  %v11264_v54 = vunpack.i.l.bf16 %v11263_v43  ;;  %10565 = vmatprep.subr.bf16.mxu0 %v10564_v16 }
 0x488   : > { %10567 = vmatpush3.bf16.msra.mxu0 %v10564_v16 }
 0x489   : > { %v10568_v7 = vpack.c.bf16 %v11265_v58, %v11264_v54 }
 0x48a   : > { %v11273_v24 = vpop.permute.xlu0 %11272 }
 0x48b   : > { %v11275_v44 = vunpack.i.h.bf16 %v11273_v24  ;;  %v11274_v62 = vunpack.i.l.bf16 %v11273_v24  ;;  %10569 = vmatprep.subr.bf16.mxu0 %v10568_v7 }
 0x48c   : > { %v13429_v42 = vpop.f32.mrb[40].mxu0  ;;  %10571 = vmatpush3.bf16.msra.mxu0 %v10568_v7 }
 0x48d   : > { %16094 = vst [vmem:[#allocation55_spill] sm:$0xff] %v13429_v42  ;;  %v13431_v33 = vpop.f32.mrb[41].mxu0  ;;  %v13433_v34 = vpack.c.bf16 %v11275_v44, %v11274_v62 }
 0x48e   : > { %16095 = vst [vmem:[#allocation62_spill] sm:$0xff] %v13431_v33 }
 0x48f   : > { %16096 = vst [vmem:[#allocation54_spill] sm:$0xff] %v13433_v34  ;;  %10589 = vmatprep.subr.bf16.mxu0 %v13433_v34 }
 0x494   : > { %v13436_v49 = vpop.f32.mrb[42].mxu0 }
 0x495   : > { %16097 = vst [vmem:[#allocation53_spill] sm:$0xff] %v13436_v49  ;;  %v13438_v32 = vpop.f32.mrb[43].mxu0 }
 0x496   : > { %16098 = vst [vmem:[#allocation64_spill] sm:$0xff] %v13438_v32 }
 0x498   : > { %v13440_v48 = vpop.f32.mrb[44].mxu0 }
 0x499   : > { %16099 = vst [vmem:[#allocation66_spill] sm:$0xff] %v13440_v48  ;;  %v13442_v59 = vpop.f32.mrb[45].mxu0 }
 0x49a   : > { %16100 = vst [vmem:[#allocation71_spill] sm:$0xff] %v13442_v59 }
 0x4a0   : > { %v13444_v38 = vpop.f32.mrb[46].mxu0 }
 0x4a1   : > { %16101 = vst [vmem:[#allocation68_spill] sm:$0xff] %v13444_v38  ;;  %v13446_v27 = vpop.f32.mrb[47].mxu0 }
 0x4a2   : > { %16102 = vst [vmem:[#allocation56_spill] sm:$0xff] %v13446_v27 }
 0x4b0   : > { %v13448_v46 = vpop.f32.mrb[24].mxu1 }
 0x4b1   : > { %16103 = vst [vmem:[#allocation59_spill] sm:$0xff] %v13448_v46  ;;  %v13450_v39 = vpop.f32.mrb[25].mxu1 }
 0x4b2   : > { %16104 = vst [vmem:[#allocation70_spill] sm:$0xff] %v13450_v39 }
 0x4b4   : > { %v13452_v15 = vpop.f32.mrb[48].mxu0 }
 0x4b5   : > { %16105 = vst [vmem:[#allocation63_spill] sm:$0xff] %v13452_v15  ;;  %v13454_v37 = vpop.f32.mrb[49].mxu0 }
 0x4b6   : > { %16106 = vst [vmem:[#allocation57_spill] sm:$0xff] %v13454_v37  ;;  %v2284_v37 = vld [vmem:[#allocation2 + $0x108] sm:$0xff] }
 0x4bd   : > { %v13456_v23 = vpop.f32.mrb[50].mxu0 }
 0x4be   : > { %16107 = vst [vmem:[#allocation60_spill] sm:$0xff] %v13456_v23  ;;  %v13458_v16 = vpop.f32.mrb[51].mxu0 }
 0x4bf   : > { %16108 = vst [vmem:[#allocation65_spill] sm:$0xff] %v13458_v16  ;;  %v2283_v16 = vld [vmem:[#allocation2 + $0x100] sm:$0xff] }
 0x4c1   : > { %v13460_v43 = vpop.f32.mrb[26].mxu1 }
 0x4c2   : > { %16109 = vst [vmem:[#allocation58_spill] sm:$0xff] %v13460_v43  ;;  %v13462_v58 = vpop.f32.mrb[27].mxu1 }
 0x4c3   : > { %16110 = vst [vmem:[#allocation61_spill] sm:$0xff] %v13462_v58 }
 0x4c5   : > { %v13464_v54 = vpop.f32.mrb[28].mxu1 }
 0x4c6   : > { %16111 = vst [vmem:[#allocation67_spill] sm:$0xff] %v13464_v54  ;;  %v13466_v7 = vpop.f32.mrb[29].mxu1 }
 0x4c7   : > { %16112 = vst [vmem:[#allocation72_spill] sm:$0xff] %v13466_v7  ;;  %v2286_v7 = vld [vmem:[#allocation2 + $0x118] sm:$0xff] }
 0x4c8   : > { %v13468_v24 = vpop.f32.mrb[52].mxu0 }
 0x4c9   : > { %16113 = vst [vmem:[#allocation69_spill] sm:$0xff] %v13468_v24  ;;  %v13470_v44 = vpop.f32.mrb[53].mxu0 }
 0x4ca   : > { %16114 = vst [vmem:[#allocation73_spill] sm:$0xff] %v13470_v44 }
 0x4cb   : > { %v13472_v62 = vpop.f32.mrb[30].mxu1 }
 0x4cc   : > { %16115 = vst [vmem:[#allocation74_spill] sm:$0xff] %v13472_v62  ;;  %v13474_v15 = vpop.f32.mrb[31].mxu1 }
 0x4cd   : > { %16116 = vst [vmem:[#allocation75_spill] sm:$0xff] %v13474_v15 }
 0x4d0   : > { %v13476_v23 = vpop.f32.mrb[54].mxu0 }
 0x4d1   : > { %16117 = vst [vmem:[#allocation76_spill] sm:$0xff] %v13476_v23  ;;  %v9566_v27 = vpop.f32.mrb[32].mxu1  ;;  %v13478_v38 = vpop.f32.mrb[55].mxu0  ;;  %v2300_v23 = vld [vmem:[#allocation2 + $0x188] sm:$0xff] }
 0x4d2   : > { %16118 = vst [vmem:[#allocation77_spill] sm:$0xff] %v13478_v38  ;;  %v13480_v59 = vadd.f32 %v9566_v27, %v2284_v37  ;;  %v2445_v48 = vpop.f32.mrb[33].mxu1  ;;  %v2285_v37 = vld [vmem:[#allocation2 + $0x110] sm:$0xff]  ;;  %v2291_v38 = vld [vmem:[#allocation2 + $0x140] sm:$0xff] }
 0x4d3   : > { %v13482_v54 = vadd.f32 %v2445_v48, %v2283_v16 }
 0x4d4   : > { %v2994_v24 = vsel %vm1317_vm3, %v13480_v59, -inf  ;;  %v13486_v44 = vpop.f32.mrb[56].mxu0 }
 0x4d5   : > { %16119 = vst [vmem:[#allocation78_spill] sm:$0xff] %v13486_v44  ;;  %2995 = vmax.xlane.f32.xlu1 %v2994_v24  ;;  %v9569_v15 = vpop.f32.mrb[34].mxu1  ;;  %v2991_v62 = vsel %vm1317_vm3, %v13482_v54, -inf  ;;  %v13490_v32 = vpop.f32.mrb[57].mxu0 }
 0x4d6   : > { %16120 = vst [vmem:[#allocation79_spill] sm:$0xff] %v13490_v32  ;;  %v13492_v49 = vadd.f32 %v9569_v15, %v2286_v7  ;;  %2992 = vmax.xlane.f32.xlu0 %v2991_v62  ;;  %v2455_v27 = vpop.f32.mrb[35].mxu1  ;;  %v2288_v32 = vld [vmem:[#allocation2 + $0x128] sm:$0xff]  ;;  %v2287_v15 = vld [vmem:[#allocation2 + $0x120] sm:$0xff] }
 0x4d7   : > { %v13496_v16 = vadd.f32 %v2455_v27, %v2285_v37  ;;  %v2290_v37 = vld [vmem:[#allocation2 + $0x138] sm:$0xff] }
 0x4d8   : > { %v3000_v48 = vsel %vm1317_vm3, %v13492_v49, -inf }
 0x4d9   : > { %v2997_v24 = vsel %vm1317_vm3, %v13496_v16, -inf }
 0x4da   : > { %3001 = vmax.xlane.f32.xlu0 %v3000_v48 }
 0x4de   : > { %2998 = vmax.xlane.f32.xlu0 %v2997_v24 }
 0x508   : > { %v13500_v44 = vpop.f32.mrb[58].mxu0 }
 0x509   : > { %16121 = vst [vmem:[#allocation80_spill] sm:$0xff] %v13500_v44  ;;  %v13502_v58 = vpop.f32.mrb[59].mxu0  ;;  %v2289_v44 = vld [vmem:[#allocation2 + $0x130] sm:$0xff] }
 0x50a   : > { %16122 = vst [vmem:[#allocation81_spill] sm:$0xff] %v13502_v58 }
 0x50f   : > { %v9572_v7 = vpop.f32.mrb[36].mxu1 }
 0x510   : > { %v13504_v62 = vadd.f32 %v9572_v7, %v2288_v32  ;;  %v13506_v43 = vpop.f32.mrb[60].mxu0  ;;  %v2465_v33 = vpop.f32.mrb[37].mxu1 }
 0x511   : > { %16123 = vst [vmem:[#allocation82_spill] sm:$0xff] %v13506_v43  ;;  %v13508_v46 = vadd.f32 %v2465_v33, %v2287_v15  ;;  %v13510_v27 = vpop.f32.mrb[61].mxu0  ;;  %v2292_v43 = vld [vmem:[#allocation2 + $0x148] sm:$0xff] }
 0x512   : > { %16124 = vst [vmem:[#allocation83_spill] sm:$0xff] %v13510_v27  ;;  %v3006_v48 = vsel %vm1317_vm3, %v13504_v62, -inf }
 0x513   : > { %3007 = vmax.xlane.f32.xlu0 %v3006_v48  ;;  %v9575_v24 = vpop.f32.mrb[38].mxu1  ;;  %v3003_v58 = vsel %vm1317_vm3, %v13508_v46, -inf }
 0x514   : > { %v13516_v42 = vadd.f32 %v9575_v24, %v2290_v37  ;;  %v13518_v32 = vpop.f32.mrb[62].mxu0  ;;  %3004 = vmax.xlane.f32.xlu1 %v3003_v58  ;;  %v2475_v7 = vpop.f32.mrb[39].mxu1 }
 0x515   : > { %16125 = vst [vmem:[#allocation84_spill] sm:$0xff] %v13518_v32  ;;  %v13520_v33 = vpop.f32.mrb[63].mxu0  ;;  %v13522_v15 = vadd.f32 %v2475_v7, %v2289_v44  ;;  %v13530_v32 = vpop.permute.xlu1 %11247 }
 0x516   : > { %16126 = vst [vmem:[#allocation85_spill] sm:$0xff] %v13520_v33  ;;  %v3012_v27 = vsel %vm1317_vm3, %v13516_v42, -inf }
 0x517   : > { %3013 = vmax.xlane.f32.xlu0 %v3012_v27  ;;  %v3009_v58 = vsel %vm1317_vm3, %v13522_v15, -inf }
 0x518   : > { %v9594_v48 = vpop.f32.mrb[64].mxu0 }
 0x519   : > { %v13526_v39 = vadd.f32 %v9594_v48, %v2292_v43  ;;  %v2614_v37 = vpop.f32.mrb[65].mxu0  ;;  %v2294_v43 = vld [vmem:[#allocation2 + $0x158] sm:$0xff] }
 0x51a   : > { %v9622_v24 = vpop.f32.mrb[40].mxu1  ;;  %v13532_v33 = vadd.f32 %v2614_v37, %v2291_v38  ;;  %v2293_v37 = vld [vmem:[#allocation2 + $0x150] sm:$0xff] }
 0x51b   : > { %v13534_v44 = vadd.f32 %v9622_v24, %v2300_v23  ;;  %3010 = vmax.xlane.f32.xlu0 %v3009_v58  ;;  %v2783_v7 = vpop.f32.mrb[41].mxu1  ;;  %v3018_v27 = vsel %vm1317_vm3, %v13526_v39, -inf  ;;  %v13546_v24 = vpop.permute.xlu1 %11257 }
 0x51c   : > { %3019 = vmax.xlane.f32.xlu1 %v3018_v27  ;;  %v13540_v28 = vadd.f32 %v2783_v7, %v2299_v29  ;;  %v3015_v23 = vsel %vm1317_vm3, %v13532_v33, -inf }
 0x51d   : > { %v3042_v48 = vsel %vm1317_vm3, %v13534_v44, -inf }
 0x51e   : > { %v9597_v1 = vpop.f32.mrb[66].mxu0 }
 0x51f   : > { %v13542_v26 = vadd.f32 %v9597_v1, %v2294_v43  ;;  %v2624_v38 = vpop.f32.mrb[67].mxu0  ;;  %3043 = vmax.xlane.f32.xlu0 %v3042_v48  ;;  %v3039_v1 = vsel %vm1317_vm3, %v13540_v28, -inf  ;;  %v13554_v7 = vpop.permute.xlu1 %11267 }
 0x520   : > { %3016 = vmax.xlane.f32.xlu1 %v3015_v23  ;;  %v13550_v27 = vadd.f32 %v2624_v38, %v2293_v37  ;;  %v13558_v23 = vpop.permute.xlu0 %11287  ;;  %v2302_v38 = vld [vmem:[#allocation2 + $0x198] sm:$0xff] }
 0x521   : > { %v3024_v58 = vsel %vm1317_vm3, %v13542_v26, -inf  ;;  %16127 = vst [vmem:[#allocation86_spill] sm:$0xff] %v13558_v23 }
 0x522   : > { %v3021_v48 = vsel %vm1317_vm3, %v13550_v27, -inf }
 0x523   : > { %v9600_v41 = vpop.f32.mrb[68].mxu0  ;;  %3025 = vmax.xlane.f32.xlu0 %v3024_v58  ;;  %v13560_v13 = vpop.permute.xlu1 %11277  ;;  %v2301_v58 = vld [vmem:[#allocation2 + $0x190] sm:$0xff] }
 0x524   : > { %v2634_v29 = vpop.f32.mrb[69].mxu0  ;;  %3040 = vmax.xlane.f32.xlu1 %v3039_v1  ;;  %16128 = vst [vmem:[#allocation87_spill] sm:$0xff] %v13560_v13  ;;  %v13562_v37 = vpop.permute.xlu0 %11292  ;;  %v13568_v19 = vadd.f32 %v9600_v41, %v2296_v0 }
 0x525   : > { %16129 = vst [vmem:[#allocation88_spill] sm:$0xff] %v13562_v37  ;;  %v13574_v22 = vadd.f32 %v2634_v29, %v2295_v12  ;;  %v2297_v29 = vld [vmem:[#allocation2 + $0x170] sm:$0xff] }
 0x526   : > { %v3030_v41 = vsel %vm1317_vm3, %v13568_v19, -inf }
 0x527   : > { %v9603_v43 = vpop.f32.mrb[70].mxu0  ;;  %v3027_v12 = vsel %vm1317_vm3, %v13574_v22, -inf }
 0x528   : > { %v2644_v17 = vpop.f32.mrb[71].mxu0  ;;  %3022 = vmax.xlane.f32.xlu1 %v3021_v48  ;;  %v13572_v48 = vpop.permute.xlu1 %11282 }
 0x52f   : > { %v9625_v51 = vpop.f32.mrb[42].mxu1 }
 0x530   : > { %v13564_v1 = vadd.f32 %v9625_v51, %v2302_v38  ;;  %v2793_v10 = vpop.f32.mrb[43].mxu1  ;;  %v13578_v51 = vpop.permute.xlu0 %11302 }
 0x531   : > { %v13566_v2 = vadd.f32 %v2793_v10, %v2301_v58  ;;  %16130 = vst [vmem:[#allocation89_spill] sm:$0xff] %v13578_v51  ;;  %v2303_v10 = vld [vmem:[#allocation2 + $0x1a0] sm:$0xff]  ;;  %v2298_v58 = vld [vmem:[#allocation2 + $0x178] sm:$0xff]  ;;  %v13588_v51 = vpop.permute.xlu1 %11297 }
 0x532   : > { %v3048_v9 = vsel %vm1317_vm3, %v13564_v1, -inf  ;;  %16131 = vst [vmem:[#allocation90_spill] sm:$0xff] %v13588_v51 }
 0x533   : > { %3049 = vmax.xlane.f32.xlu0 %v3048_v9  ;;  %v9628_v4 = vpop.f32.mrb[44].mxu1  ;;  %v3045_v36 = vsel %vm1317_vm3, %v13566_v2, -inf }
 0x534   : > { %v2803_v38 = vpop.f32.mrb[45].mxu1  ;;  %3046 = vmax.xlane.f32.xlu1 %v3045_v36  ;;  %v13580_v0 = vadd.f32 %v9628_v4, %v2304_v21  ;;  %v13590_v21 = vpop.permute.xlu0 %11312  ;;  %v13592_v4 = vadd.f32 %v9603_v43, %v2298_v58 }
 0x535   : > { %v13584_v8 = vadd.f32 %v2803_v38, %v2303_v10  ;;  %16132 = vst [vmem:[#allocation91_spill] sm:$0xff] %v13590_v21  ;;  %v13596_v10 = vadd.f32 %v2644_v17, %v2297_v29  ;;  %v13604_v58 = vpop.permute.xlu1 %11307  ;;  %v2308_v21 = vld [vmem:[#allocation2 + $0x1c8] sm:$0xff] }
 0x536   : > { %v3054_v38 = vsel %vm1317_vm3, %v13580_v0, -inf  ;;  %v3036_v43 = vsel %vm1317_vm3, %v13592_v4, -inf  ;;  %16133 = vst [vmem:[#allocation92_spill] sm:$0xff] %v13604_v58  ;;  %v2310_v58 = vld [vmem:[#allocation2 + $0x1d8] sm:$0xff] }
 0x537   : > { %3031 = vmax.xlane.f32.xlu0 %v3030_v41  ;;  %v9631_v9 = vpop.f32.mrb[46].mxu1  ;;  %v2306_v41 = vld [vmem:[#allocation2 + $0x1b8] sm:$0xff]  ;;  %v3051_v31 = vsel %vm1317_vm3, %v13584_v8, -inf  ;;  %v3033_v17 = vsel %vm1317_vm3, %v13596_v10, -inf }
 0x538   : > { %v9650_v25 = vpop.f32.mrb[72].mxu0  ;;  %v2813_v37 = vpop.f32.mrb[47].mxu1  ;;  %3028 = vmax.xlane.f32.xlu1 %v3027_v12  ;;  %v13600_v51 = vadd.f32 %v9631_v9, %v2306_v41 }
 0x539   : > { %v2952_v36 = vpop.f32.mrb[73].mxu0  ;;  %v13606_v23 = vadd.f32 %v2813_v37, %v2305_v40  ;;  %v13610_v29 = vpop.permute.xlu0 %11322  ;;  %v13612_v9 = vadd.f32 %v9650_v25, %v2308_v21  ;;  %v2309_v37 = vld [vmem:[#allocation2 + $0x1d0] sm:$0xff] }
 0x53a   : > { %16134 = vst [vmem:[#allocation93_spill] sm:$0xff] %v13610_v29  ;;  %v3060_v41 = vsel %vm1317_vm3, %v13600_v51, -inf  ;;  %v13620_v29 = vpop.permute.xlu1 %11317 }
 0x53b   : > { %3055 = vmax.xlane.f32.xlu0 %v3054_v38  ;;  %v2307_v38 = vld [vmem:[#allocation2 + $0x1c0] sm:$0xff]  ;;  %v3057_v40 = vsel %vm1317_vm3, %v13606_v23, -inf  ;;  %16135 = vst [vmem:[#allocation94_spill] sm:$0xff] %v13620_v29  ;;  %v3066_v21 = vsel %vm1317_vm3, %v13612_v9, -inf }
 0x53c   : > { %v9653_v34 = vpop.f32.mrb[74].mxu0  ;;  %3052 = vmax.xlane.f32.xlu1 %v3051_v31  ;;  %v13616_v5 = vadd.f32 %v2952_v36, %v2307_v38  ;;  %v2312_v38 = vld [vmem:[#allocation2 + $0x1e8] sm:$0xff] }
 0x53d   : > { %v2962_v12 = vpop.f32.mrb[75].mxu0  ;;  %v13624_v25 = vadd.f32 %v9653_v34, %v2310_v58  ;;  %v2314_v58 = vld [vmem:[#allocation2 + $0x1f8] sm:$0xff] }
 0x53e   : > { %v13628_v36 = vadd.f32 %v2962_v12, %v2309_v37 }
 0x53f   : > { %3037 = vmax.xlane.f32.xlu0 %v3036_v43  ;;  %v3072_v29 = vsel %vm1317_vm3, %v13624_v25, -inf }
 0x540   : > { %v9656_v61 = vpop.f32.mrb[76].mxu0  ;;  %3034 = vmax.xlane.f32.xlu1 %v3033_v17  ;;  %v13622_v17 = vpop.permute.xlu0 %11327  ;;  %v3069_v12 = vsel %vm1317_vm3, %v13628_v36, -inf }
 0x541   : > { %v2972_v31 = vpop.f32.mrb[77].mxu0  ;;  %16136 = vst [vmem:[#allocation95_spill] sm:$0xff] %v13622_v17  ;;  %v13636_v17 = vpop.permute.xlu1 %3990 }
 0x542   : > { %16137 = vst [vmem:[#allocation96_spill] sm:$0xff] %v13636_v17  ;;  %v13638_v34 = vadd.f32 %v2972_v31, %v2311_v53 }
 0x543   : > { %3061 = vmax.xlane.f32.xlu0 %v3060_v41  ;;  %v3063_v41 = vsel %vm1317_vm3, %v13616_v5, -inf }
 0x544   : > { %v9659_v43 = vpop.f32.mrb[78].mxu0  ;;  %3058 = vmax.xlane.f32.xlu1 %v3057_v40  ;;  %v13632_v40 = vadd.f32 %v9656_v61, %v2312_v38  ;;  %v13642_v37 = vpop.permute.xlu0 %3988  ;;  %v3075_v53 = vsel %vm1317_vm3, %v13638_v34, -inf }
 0x545   : > { %v2982_v13 = vpop.f32.mrb[79].mxu0  ;;  %16138 = vst [vmem:[#allocation97_spill] sm:$0xff] %v13642_v37  ;;  %v13644_v6 = vadd.f32 %v9659_v43, %v2314_v58 }
 0x546   : > { %v3078_v61 = vsel %vm1317_vm3, %v13632_v40, -inf }
 0x547   : > { %3067 = vmax.xlane.f32.xlu0 %v3066_v21  ;;  %v2313_v21 = vld [vmem:[#allocation2 + $0x1f0] sm:$0xff] }
 0x548   : > { %3064 = vmax.xlane.f32.xlu1 %v3063_v41  ;;  %v13648_v38 = vadd.f32 %v2982_v13, %v2313_v21  ;;  %v13654_v31 = vpop.permute.xlu0 %11332  ;;  %v3084_v41 = vsel %vm1317_vm3, %v13644_v6, -inf }
 0x549   : > { %16140 = vst [vmem:[#allocation99_spill] sm:$0xff] %v13654_v31 }
 0x54a   : > { %v3081_v43 = vsel %vm1317_vm3, %v13648_v38, -inf }
 0x54b   : > { %3073 = vmax.xlane.f32.xlu0 %v3072_v29  ;;  %v13652_v29 = vpop.permute.xlu1 %11337 }
 0x54c   : > { %3070 = vmax.xlane.f32.xlu1 %v3069_v12  ;;  %16139 = vst [vmem:[#allocation98_spill] sm:$0xff] %v13652_v29  ;;  %v13662_v13 = vpop.permute.xlu0 %11342 }
 0x54d   : > { %16142 = vst [vmem:[#allocation101_spill] sm:$0xff] %v13662_v13 }
 0x54f   : > { %3079 = vmax.xlane.f32.xlu0 %v3078_v61  ;;  %v13660_v58 = vpop.permute.xlu1 %11347 }
 0x550   : > { %3076 = vmax.xlane.f32.xlu1 %v3075_v53  ;;  %16141 = vst [vmem:[#allocation100_spill] sm:$0xff] %v13660_v58  ;;  %v13666_v21 = vpop.permute.xlu0 %4157 }
 0x551   : > { %16144 = vst [vmem:[#allocation103_spill] sm:$0xff] %v13666_v21 }
 0x553   : > { %3085 = vmax.xlane.f32.xlu0 %v3084_v41  ;;  %v13664_v12 = vpop.permute.xlu1 %4159 }
 0x554   : > { %3082 = vmax.xlane.f32.xlu1 %v3081_v43  ;;  %16143 = vst [vmem:[#allocation102_spill] sm:$0xff] %v13664_v12 }
 0x562   : > { %v2996_v61 = vpop.xlane.xlu1 %2995 }
 0x563   : > { %v3088_v53 = vsub.f32 %v13480_v59, %v2996_v61  ;;  %v2993_v31 = vpop.xlane.xlu0 %2992 }
 0x564   : > { %v3087_v17 = vsub.f32 %v13482_v54, %v2993_v31 }
 0x565   : > { %v3121_v37 = vmul.f32 1.442695, %v3088_v53 }
 0x566   : > { %v3119_v41 = vmul.f32 1.442695, %v3087_v17 }
 0x567   : > { %11739 = vpow2.f32 %v3121_v37  ;;  %v3002_v29 = vpop.xlane.xlu0 %3001 }
 0x568   : > { %11741 = vpow2.f32 %v3119_v41  ;;  %v3090_v43 = vsub.f32 %v13492_v49, %v3002_v29 }
 0x56a   : > { %v3125_v58 = vmul.f32 1.442695, %v3090_v43 }
 0x56b   : > { %v2999_v20 = vpop.xlane.xlu0 %2998 }
 0x56c   : > { %11743 = vpow2.f32 %v3125_v58  ;;  %v3089_v12 = vsub.f32 %v13496_v16, %v2999_v20 }
 0x56e   : > { %v3123_v13 = vmul.f32 1.442695, %v3089_v12 }
 0x570   : > { %11745 = vpow2.f32 %v3123_v13 }
 0x571   : > { %v13672_v21 = vpop.eup %11739 }
 0x572   : > { %v13674_v59 = vpop.eup %11741  ;;  %v3186_v54 = vsel %vm1317_vm3, %v13672_v21, 0.0 }
 0x573   : > { %3187 = vadd.xlane.f32.xlu0 %v3186_v54  ;;  %v3183_v17 = vsel %vm1317_vm3, %v13674_v59, 0.0 }
 0x574   : > { %3184 = vadd.xlane.f32.xlu1 %v3183_v17 }
 0x576   : > { %v13680_v49 = vpop.eup %11743 }
 0x577   : > { %v3192_v37 = vsel %vm1317_vm3, %v13680_v49, 0.0 }
 0x578   : > { %3193 = vadd.xlane.f32.xlu1 %v3192_v37 }
 0x57a   : > { %v13684_v20 = vpop.eup %11745 }
 0x57b   : > { %v3189_v16 = vsel %vm1317_vm3, %v13684_v20, 0.0 }
 0x57c   : > { %3190 = vadd.xlane.f32.xlu1 %v3189_v16 }
 0x5a0   : > { %v3008_v29 = vpop.xlane.xlu0 %3007 }
 0x5a1   : > { %v3092_v31 = vsub.f32 %v13504_v62, %v3008_v29  ;;  %v3005_v58 = vpop.xlane.xlu1 %3004 }
 0x5a2   : > { %v3091_v13 = vsub.f32 %v13508_v46, %v3005_v58 }
 0x5a3   : > { %v3129_v12 = vmul.f32 1.442695, %v3092_v31 }
 0x5a4   : > { %v3127_v61 = vmul.f32 1.442695, %v3091_v13  ;;  %v3014_v53 = vpop.xlane.xlu0 %3013 }
 0x5a5   : > { %11747 = vpow2.f32 %v3129_v12  ;;  %v3094_v41 = vsub.f32 %v13516_v42, %v3014_v53 }
 0x5a6   : > { %11749 = vpow2.f32 %v3127_v61 }
 0x5a7   : > { %v3133_v43 = vmul.f32 1.442695, %v3094_v41 }
 0x5a8   : > { %v3011_v54 = vpop.xlane.xlu0 %3010 }
 0x5a9   : > { %11751 = vpow2.f32 %v3133_v43  ;;  %v3093_v17 = vsub.f32 %v13522_v15, %v3011_v54  ;;  %v3020_v37 = vpop.xlane.xlu1 %3019 }
 0x5aa   : > { %v3096_v16 = vsub.f32 %v13526_v39, %v3020_v37 }
 0x5ab   : > { %v3131_v14 = vmul.f32 1.442695, %v3093_v17 }
 0x5ac   : > { %v3137_v62 = vmul.f32 1.442695, %v3096_v16  ;;  %v3044_v29 = vpop.xlane.xlu0 %3043 }
 0x5ad   : > { %11753 = vpow2.f32 %v3131_v14  ;;  %v3104_v46 = vsub.f32 %v13534_v44, %v3044_v29  ;;  %v3017_v31 = vpop.xlane.xlu1 %3016 }
 0x5ae   : > { %v3095_v58 = vsub.f32 %v13532_v33, %v3017_v31  ;;  %11755 = vpow2.f32 %v3137_v62 }
 0x5af   : > { %v13695_v13 = vpop.eup %11747  ;;  %v3153_v42 = vmul.f32 1.442695, %v3104_v46 }
 0x5b0   : > { %v13697_v12 = vpop.eup %11749  ;;  %v3135_v61 = vmul.f32 1.442695, %v3095_v58  ;;  %v3026_v15 = vpop.xlane.xlu0 %3025  ;;  %v3198_v39 = vsel %vm1317_vm3, %v13695_v13, 0.0 }
 0x5b1   : > { %v3098_v53 = vsub.f32 %v13542_v26, %v3026_v15  ;;  %3199 = vadd.xlane.f32.xlu0 %v3198_v39  ;;  %v3041_v14 = vpop.xlane.xlu1 %3040  ;;  %v3195_v44 = vsel %vm1317_vm3, %v13697_v12, 0.0 }
 0x5b2   : > { %11757 = vpow2.f32 %v3135_v61  ;;  %v3103_v33 = vsub.f32 %v13540_v28, %v3041_v14  ;;  %3196 = vadd.xlane.f32.xlu1 %v3195_v44 }
 0x5b3   : > { %v13705_v41 = vpop.eup %11751  ;;  %11759 = vpow2.f32 %v3153_v42  ;;  %v3141_v43 = vmul.f32 1.442695, %v3098_v53 }
 0x5b4   : > { %v3151_v54 = vmul.f32 1.442695, %v3103_v33  ;;  %v3204_v17 = vsel %vm1317_vm3, %v13705_v41, 0.0 }
 0x5b5   : > { %v3023_v62 = vpop.xlane.xlu1 %3022 }
 0x5b6   : > { %11761 = vpow2.f32 %v3151_v54  ;;  %3205 = vadd.xlane.f32.xlu1 %v3204_v17  ;;  %v3097_v58 = vsub.f32 %v13550_v27, %v3023_v62 }
 0x5b7   : > { %v13709_v26 = vpop.eup %11753  ;;  %11763 = vpow2.f32 %v3141_v43 }
 0x5b8   : > { %v3201_v37 = vsel %vm1317_vm3, %v13709_v26, 0.0  ;;  %v13713_v16 = vpop.eup %11755  ;;  %v3139_v33 = vmul.f32 1.442695, %v3097_v58 }
 0x5b9   : > { %3202 = vadd.xlane.f32.xlu0 %v3201_v37  ;;  %v3210_v29 = vsel %vm1317_vm3, %v13713_v16, 0.0 }
 0x5bc   : > { %v13715_v28 = vpop.eup %11757 }
 0x5bd   : > { %v13719_v46 = vpop.eup %11759  ;;  %3211 = vadd.xlane.f32.xlu0 %v3210_v29  ;;  %v3207_v31 = vsel %vm1317_vm3, %v13715_v28, 0.0 }
 0x5be   : > { %3208 = vadd.xlane.f32.xlu1 %v3207_v31  ;;  %v3234_v15 = vsel %vm1317_vm3, %v13719_v46, 0.0 }
 0x5c0   : > { %v13724_v42 = vpop.eup %11761  ;;  %v3050_v61 = vpop.xlane.xlu0 %3049 }
 0x5c1   : > { %v13728_v39 = vpop.eup %11763  ;;  %v3106_v53 = vsub.f32 %v13564_v1, %v3050_v61  ;;  %3235 = vadd.xlane.f32.xlu0 %v3234_v15  ;;  %v3047_v14 = vpop.xlane.xlu1 %3046  ;;  %v3231_v44 = vsel %vm1317_vm3, %v13724_v42, 0.0 }
 0x5c2   : > { %3232 = vadd.xlane.f32.xlu1 %v3231_v44  ;;  %v3105_v27 = vsub.f32 %v13566_v2, %v3047_v14  ;;  %v3216_v17 = vsel %vm1317_vm3, %v13728_v39, 0.0 }
 0x5c3   : > { %v3157_v43 = vmul.f32 1.442695, %v3106_v53 }
 0x5c4   : > { %v3032_v54 = vpop.xlane.xlu0 %3031  ;;  %v3155_v1 = vmul.f32 1.442695, %v3105_v27 }
 0x5c5   : > { %11765 = vpow2.f32 %v3157_v43  ;;  %v3100_v37 = vsub.f32 %v13568_v19, %v3032_v54  ;;  %3217 = vadd.xlane.f32.xlu0 %v3216_v17  ;;  %v3029_v62 = vpop.xlane.xlu1 %3028 }
 0x5c6   : > { %11767 = vpow2.f32 %v3139_v33  ;;  %v3099_v31 = vsub.f32 %v13574_v22, %v3029_v62 }
 0x5c7   : > { %v3145_v29 = vmul.f32 1.442695, %v3100_v37 }
 0x5c8   : > { %v3056_v61 = vpop.xlane.xlu0 %3055  ;;  %v3143_v2 = vmul.f32 1.442695, %v3099_v31 }
 0x5c9   : > { %11769 = vpow2.f32 %v3145_v29  ;;  %v3108_v58 = vsub.f32 %v13580_v0, %v3056_v61  ;;  %v3053_v15 = vpop.xlane.xlu1 %3052 }
 0x5ca   : > { %11771 = vpow2.f32 %v3155_v1  ;;  %v3107_v14 = vsub.f32 %v13584_v8, %v3053_v15 }
 0x5cb   : > { %v3161_v53 = vmul.f32 1.442695, %v3108_v58 }
 0x5cc   : > { %v3038_v44 = vpop.xlane.xlu0 %3037  ;;  %v3159_v27 = vmul.f32 1.442695, %v3107_v14 }
 0x5cd   : > { %11773 = vpow2.f32 %v3161_v53  ;;  %v3102_v19 = vsub.f32 %v13592_v4, %v3038_v44  ;;  %v3035_v43 = vpop.xlane.xlu1 %3034 }
 0x5ce   : > { %11775 = vpow2.f32 %v3143_v2  ;;  %v3101_v4 = vsub.f32 %v13596_v10, %v3035_v43 }
 0x5cf   : > { %v13741_v33 = vpop.eup %11765  ;;  %v3149_v22 = vmul.f32 1.442695, %v3102_v19 }
 0x5d0   : > { %v3062_v54 = vpop.xlane.xlu0 %3061  ;;  %v3240_v0 = vsel %vm1317_vm3, %v13741_v33, 0.0  ;;  %v13745_v17 = vpop.eup %11767  ;;  %v3147_v2 = vmul.f32 1.442695, %v3101_v4 }
 0x5d1   : > { %11777 = vpow2.f32 %v3149_v22  ;;  %v3110_v37 = vsub.f32 %v13600_v51, %v3062_v54  ;;  %3241 = vadd.xlane.f32.xlu1 %v3240_v0  ;;  %v3059_v8 = vpop.xlane.xlu1 %3058  ;;  %v3213_v61 = vsel %vm1317_vm3, %v13745_v17, 0.0 }
 0x5d2   : > { %11779 = vpow2.f32 %v3159_v27  ;;  %v3109_v10 = vsub.f32 %v13606_v23, %v3059_v8 }
 0x5d3   : > { %v13748_v62 = vpop.eup %11769  ;;  %v3165_v1 = vmul.f32 1.442695, %v3110_v37 }
 0x5d4   : > { %v3068_v29 = vpop.xlane.xlu0 %3067  ;;  %v3222_v31 = vsel %vm1317_vm3, %v13748_v62, 0.0  ;;  %v13755_v58 = vpop.eup %11771  ;;  %v3163_v27 = vmul.f32 1.442695, %v3109_v10 }
 0x5d5   : > { %v3112_v15 = vsub.f32 %v13612_v9, %v3068_v29  ;;  %3223 = vadd.xlane.f32.xlu0 %v3222_v31  ;;  %3214 = vadd.xlane.f32.xlu1 %v3213_v61  ;;  %11781 = vpow2.f32 %v3165_v1  ;;  %v3065_v14 = vpop.xlane.xlu1 %3064  ;;  %v3237_v19 = vsel %vm1317_vm3, %v13755_v58, 0.0 }
 0x5d6   : > { %v3111_v22 = vsub.f32 %v13616_v5, %v3065_v14 }
 0x5d7   : > { %v13758_v51 = vpop.eup %11773  ;;  %v3169_v53 = vmul.f32 1.442695, %v3112_v15 }
 0x5d8   : > { %v3246_v44 = vsel %vm1317_vm3, %v13758_v51, 0.0  ;;  %v13765_v43 = vpop.eup %11775  ;;  %v3167_v37 = vmul.f32 1.442695, %v3111_v22 }
 0x5d9   : > { %11783 = vpow2.f32 %v3169_v53  ;;  %3247 = vadd.xlane.f32.xlu0 %v3246_v44  ;;  %3238 = vadd.xlane.f32.xlu1 %v3237_v19  ;;  %v3219_v54 = vsel %vm1317_vm3, %v13765_v43, 0.0  ;;  %v3074_v53 = vpop.xlane.xlu0 %3073  ;;  %v3071_v14 = vpop.xlane.xlu1 %3070 }
 0x5da   : > { %11785 = vpow2.f32 %v3147_v2 }
 0x5db   : > { %v13767_v9 = vpop.eup %11777  ;;  %11787 = vpow2.f32 %v3163_v27 }
 0x5dc   : > { %v3228_v23 = vsel %vm1317_vm3, %v13767_v9, 0.0  ;;  %v13774_v0 = vpop.eup %11779  ;;  %11789 = vpow2.f32 %v3167_v37 }
 0x5dd   : > { %3229 = vadd.xlane.f32.xlu0 %v3228_v23  ;;  %3220 = vadd.xlane.f32.xlu1 %v3219_v54  ;;  %v3243_v8 = vsel %vm1317_vm3, %v13774_v0, 0.0  ;;  %v3080_v19 = vpop.xlane.xlu0 %3079  ;;  %v3077_v27 = vpop.xlane.xlu1 %3076 }
 0x5df   : > { %v13778_v4 = vpop.eup %11781 }
 0x5e0   : > { %v3252_v29 = vsel %vm1317_vm3, %v13778_v4, 0.0 }
 0x5e1   : > { %3244 = vadd.xlane.f32.xlu1 %v3243_v8  ;;  %v3086_v22 = vpop.xlane.xlu0 %3085  ;;  %v3083_v23 = vpop.xlane.xlu1 %3082  ;;  %v3113_v8 = vsub.f32 %v13628_v36, %v3071_v14  ;;  %v11259_v14 = vunpack.i.l.bf16 %v13546_v24 }
 0x5e3   : > { %v13780_v1 = vpop.eup %11783 }
 0x5e4   : > { %16145 = vst [vmem:[#allocation104_spill] sm:$0xff] %v13780_v1  ;;  %v3258_v5 = vsel %vm1317_vm3, %v13780_v1, 0.0  ;;  %v13786_v31 = vpop.eup %11785 }
 0x5e5   : > { %3259 = vadd.xlane.f32.xlu0 %v3258_v5  ;;  %3253 = vadd.xlane.f32.xlu1 %v3252_v29  ;;  %v3225_v61 = vsel %vm1317_vm3, %v13786_v31, 0.0  ;;  %v13790_v15 = vpop.eup %11787  ;;  %v3171_v29 = vmul.f32 1.442695, %v3113_v8 }
 0x5e6   : > { %v3249_v2 = vsel %vm1317_vm3, %v13790_v15, 0.0  ;;  %v13794_v10 = vpop.eup %11789 }
 0x5e7   : > { %16146 = vst [vmem:[#allocation105_spill] sm:$0xff] %v13794_v10  ;;  %v3255_v44 = vsel %vm1317_vm3, %v13794_v10, 0.0  ;;  %v3115_v10 = vsub.f32 %v13638_v34, %v3077_v27 }
 0x5e9   : > { %3226 = vadd.xlane.f32.xlu1 %v3225_v61  ;;  %v3116_v61 = vsub.f32 %v13632_v40, %v3080_v19  ;;  %v11260_v40 = vunpack.i.h.bf16 %v13546_v24  ;;  %v3114_v19 = vsub.f32 %v13624_v25, %v3074_v53  ;;  %v3118_v25 = vsub.f32 %v13644_v6, %v3086_v22 }
 0x5eb   : > { %v10580_v24 = vpack.c.bf16 %v11260_v40, %v11259_v14  ;;  %v3181_v6 = vmul.f32 1.442695, %v3118_v25 }
 0x5ed   : > { %3250 = vadd.xlane.f32.xlu1 %v3249_v2 }
 0x5f1   : > { %3256 = vadd.xlane.f32.xlu1 %v3255_v44 }
 0x5fb   : > { %3992 = vrot.lane.b32.xlu0 %v12372_v47, %s12172_s14  ;;  %v11250_v47 = vunpack.i.h.bf16 %v13530_v32 }
 0x600   : > { %v3188_v54 = vpop.xlane.xlu0 %3187 }
 0x601   : > { %11791 = vrcp.f32 %v3188_v54  ;;  %v3185_v37 = vpop.xlane.xlu1 %3184  ;;  %v11249_v54 = vunpack.i.l.bf16 %v13530_v32  ;;  %v3175_v32 = vmul.f32 1.442695, %v3115_v10  ;;  %v11285_v10 = vunpack.i.h.bf16 %v13572_v48 }
 0x602   : > { %11793 = vrcp.f32 %v3185_v37  ;;  %3994 = vrot.lane.b32.xlu1 %v12369_v45, %s12172_s14  ;;  %v3177_v37 = vmul.f32 1.442695, %v3116_v61 }
 0x603   : > { %v10576_v8 = vpack.c.bf16 %v11250_v47, %v11249_v54 }
 0x605   : > { %v3194_v5 = vpop.xlane.xlu1 %3193 }
 0x606   : > { %11795 = vrcp.f32 %v3194_v5  ;;  %v3117_v5 = vsub.f32 %v13648_v38, %v3083_v23 }
 0x608   : > { %v3179_v53 = vmul.f32 1.442695, %v3117_v5 }
 0x609   : > { %v3191_v2 = vpop.xlane.xlu1 %3190 }
 0x60a   : > { %11797 = vrcp.f32 %v3191_v2 }
 0x60b   : > { %v11792_v44 = vpop.eup %11791  ;;  %11799 = vpow2.f32 %v3171_v29 }
 0x60c   : > { %v11794_v1 = vpop.eup %11793  ;;  %v3312_v36 = vmul.f32 %v11792_v44, %v13672_v21  ;;  %11801 = vpow2.f32 %v3177_v37 }
 0x60d   : > { %v3311_v45 = vmul.f32 %v11794_v1, %v13674_v59  ;;  %v11269_v59 = vunpack.i.l.bf16 %v13554_v7  ;;  %v3173_v1 = vmul.f32 1.442695, %v3114_v19  ;;  %11803 = vpow2.f32 %v3175_v32 }
 0x60f   : > { %9676 = vmatprep.mubr.msk.f32.mxu1 %vm1317_vm3, %v3311_v45  ;;  %v11270_v45 = vunpack.i.h.bf16 %v13554_v7  ;;  %v11284_v7 = vunpack.i.l.bf16 %v13572_v48  ;;  %11805 = vpow2.f32 %v3173_v1 }
 0x610   : > { %9677 = vmatmul.mubr.msk.f32.vlgmr.msra.gmra.mrb[48].mxu1 %vm1317_vm3, %v3312_v36  ;;  %v11796_v34 = vpop.eup %11795  ;;  %11807 = vpow2.f32 %v3179_v53 }
 0x611   : > { %10575 = vmatpush3.bf16.msra.mxu1 %v13426_v11  ;;  %v3314_v38 = vmul.f32 %v11796_v34, %v13680_v49  ;;  %v10584_v27 = vpack.c.bf16 %v11270_v45, %v11269_v59  ;;  %v13831_v22 = vpack.c.bf16 %v11285_v10, %v11284_v7  ;;  %11809 = vpow2.f32 %v3181_v6  ;;  %v16150_v7 = vld [vmem:[#allocation24_spill] sm:$0xff] }
 0x612   : > { %10577 = vmatprep.subr.bf16.mxu1 %v10576_v8 }
 0x614   : > { %v11798_v21 = vpop.eup %11797 }
 0x615   : > { %10579 = vmatpush3.bf16.msra.mxu1 %v10576_v8  ;;  %v3313_v47 = vmul.f32 %v11798_v21, %v13684_v20  ;;  %v13821_v11 = vpop.eup %11799 }
 0x616   : > { %10581 = vmatprep.subr.bf16.mxu1 %v10580_v24  ;;  %v3261_v20 = vsel %vm1317_vm3, %v13821_v11, 0.0  ;;  %v13829_v49 = vpop.eup %11801 }
 0x617   : > { %9679 = vmatprep.mubr.msk.f32.mxu1 %vm1317_vm3, %v3313_v47  ;;  %v3270_v48 = vsel %vm1317_vm3, %v13829_v49, 0.0  ;;  %v13838_v23 = vpop.eup %11803 }
 0x618   : > { %9680 = vmatmul.mubr.msk.f32.gmra.mrb[50].mxu1 %vm1317_vm3, %v3314_v38  ;;  %v3267_v61 = vsel %vm1317_vm3, %v13838_v23, 0.0 }
 0x619   : > { %10583 = vmatpush3.bf16.msra.mxu1 %v10580_v24  ;;  %v13840_v29 = vpop.eup %11805  ;;  %v16147_v24 = vld [vmem:[#allocation52_spill] sm:$0xff] }
 0x61a   : > { %10585 = vmatprep.subr.bf16.mxu1 %v10584_v27  ;;  %3262 = vadd.xlane.f32.xlu0 %v3261_v20  ;;  %v13844_v2 = vpop.eup %11807  ;;  %v3264_v44 = vsel %vm1317_vm3, %v13840_v29, 0.0  ;;  %v16151_v20 = vld [vmem:[#allocation87_spill] sm:$0xff] }
 0x61b   : > { %v3273_v54 = vsel %vm1317_vm3, %v13844_v2, 0.0  ;;  %v13850_v37 = vpop.eup %11809 }
 0x61c   : > { %v3276_v36 = vsel %vm1317_vm3, %v13850_v37, 0.0 }
 0x61d   : > { %10587 = vmatpush3.bf16.msra.mxu1 %v10584_v27 }
 0x61e   : > { %10606 = vmatprep.subr.msk.bf16.mxu1 %vm12606_vm2, %v13831_v22  ;;  %3271 = vadd.xlane.f32.xlu0 %v3270_v48  ;;  %v11280_v48 = vunpack.i.h.bf16 %v16151_v20 }
 0x622   : > { %3268 = vadd.xlane.f32.xlu0 %v3267_v61  ;;  %v11279_v61 = vunpack.i.l.bf16 %v16151_v20  ;;  %v16162_v20 = vld [vmem:[#allocation89_spill] sm:$0xff] }
 0x626   : > { %3265 = vadd.xlane.f32.xlu1 %v3264_v44  ;;  %3274 = vadd.xlane.f32.xlu0 %v3273_v54  ;;  %v16153_v54 = vld [vmem:[#allocation27_spill] sm:$0xff] }
 0x62a   : > { %3277 = vadd.xlane.f32.xlu1 %v3276_v36 }
 0x63b   : > { %11357 = vrot.lane.b32.xlu1 %v12524_v56, %s12171_s13 }
 0x63c   : > { %11352 = vrot.lane.b32.xlu0 %v12500_v35, %s12171_s13 }
 0x63e   : > { %v3200_v40 = vpop.xlane.xlu0 %3199 }
 0x63f   : > { %11811 = vrcp.f32 %v3200_v40  ;;  %3998 = vrot.lane.b32.xlu1 %v12381_v50, %s12172_s14  ;;  %v3197_v14 = vpop.xlane.xlu1 %3196 }
 0x640   : > { %11813 = vrcp.f32 %v3197_v14  ;;  %3996 = vrot.lane.b32.xlu0 %v12384_v52, %s12172_s14  ;;  %v16154_v14 = vld [vmem:[#allocation86_spill] sm:$0xff] }
 0x641   : > { %v3985_v52 = vld [vmem:[#allocation2 + $0x2e8] sm:$0xff] }
 0x643   : > { %4002 = vrot.lane.b32.xlu1 %v12393_v55, %s12172_s14  ;;  %v3206_v19 = vpop.xlane.xlu1 %3205  ;;  %v3983_v55 = vld [vmem:[#allocation2 + $0x2d8] sm:$0xff] }
 0x644   : > { %4000 = vrot.lane.b32.xlu0 %v12396_v57, %s12172_s14  ;;  %11815 = vrcp.f32 %v3206_v19  ;;  %v11290_v19 = vunpack.i.h.bf16 %v16154_v14 }
 0x646   : > { %v3203_v8 = vpop.xlane.xlu0 %3202 }
 0x647   : > { %11817 = vrcp.f32 %v3203_v8  ;;  %4326 = vrot.lane.b32.xlu1 %v12456_v18, %s12172_s14  ;;  %v11289_v8 = vunpack.i.l.bf16 %v16154_v14  ;;  %v16164_v14 = vld [vmem:[#allocation35_spill] sm:$0xff] }
 0x648   : > { %11362 = vrot.lane.b32.xlu0 %v16039_v63, %s12171_s13 }
 0x649   : > { %v11812_v32 = vpop.eup %11811 }
 0x64a   : > { %v11814_v5 = vpop.eup %11813  ;;  %v3212_v34 = vpop.xlane.xlu0 %3211  ;;  %v3316_v59 = vmul.f32 %v11812_v32, %v13695_v13  ;;  %v16149_v13 = vld [vmem:[#allocation23_spill] sm:$0xff]  ;;  %v10592_v32 = vpack.c.bf16 %v11280_v48, %v11279_v61  ;;  %v11305_v48 = vunpack.i.h.bf16 %v16162_v20  ;;  %v11304_v61 = vunpack.i.l.bf16 %v16162_v20 }
 0x64b   : > { %11819 = vrcp.f32 %v3212_v34  ;;  %4161 = vrot.lane.b32.xlu1 %v12420_v3, %s12172_s14  ;;  %v3209_v21 = vpop.xlane.xlu1 %3208  ;;  %v3315_v45 = vmul.f32 %v11814_v5, %v13697_v12  ;;  %v16148_v12 = vld [vmem:[#allocation20_spill] sm:$0xff]  ;;  %v16155_v5 = vld [vmem:[#allocation90_spill] sm:$0xff] }
 0x64c   : > { %11821 = vrcp.f32 %v3209_v21  ;;  %4328 = vrot.lane.b32.xlu0 %v16041_v60, %s12172_s14  ;;  %v11300_v34 = vunpack.i.h.bf16 %v16155_v5  ;;  %v16156_v21 = vld [vmem:[#allocation54_spill] sm:$0xff] }
 0x64d   : > { %9682 = vmatprep.mubr.msk.f32.mxu1 %vm1317_vm3, %v3315_v45 }
 0x64e   : > { %v3236_v1 = vpop.xlane.xlu0 %3235  ;;  %9683 = vmatmul.mubr.msk.f32.gmra.mrb[52].mxu1 %vm1317_vm3, %v3316_v59  ;;  %v11816_v53 = vpop.eup %11815 }
 0x64f   : > { %11823 = vrcp.f32 %v3236_v1  ;;  %11367 = vrot.lane.b32.xlu1 %v16147_v24, %s12171_s13  ;;  %v3233_v25 = vpop.xlane.xlu1 %3232  ;;  %v3318_v10 = vmul.f32 %v11816_v53, %v13705_v41  ;;  %v16158_v1 = vld [vmem:[#allocation42_spill] sm:$0xff]  ;;  %s15707_s13 = scalar_lea.vmem %s15814_s6, %s8682_s17 }
 0x650   : > { %11825 = vrcp.f32 %v3233_v25  ;;  %4163 = vrot.lane.b32.xlu0 %v16148_v12, %s12172_s14  ;;  %v16159_v25 = vld [vmem:[#allocation88_spill] sm:$0xff] }
 0x651   : > { %v11818_v47 = vpop.eup %11817  ;;  %v11295_v53 = vunpack.i.h.bf16 %v16159_v25 }
 0x652   : > { %v3317_v38 = vmul.f32 %v11818_v47, %v13709_v26  ;;  %v16152_v26 = vld [vmem:[#allocation26_spill] sm:$0xff]  ;;  %v11294_v47 = vunpack.i.l.bf16 %v16159_v25 }
 0x653   : > { %4167 = vrot.lane.b32.xlu1 %v16149_v13, %s12172_s14 }
 0x654   : > { %4165 = vrot.lane.b32.xlu0 %v16150_v7, %s12172_s14  ;;  %9685 = vmatprep.mubr.msk.f32.mxu1 %vm1317_vm3, %v3317_v38  ;;  %v3986_v7 = vld [vmem:[#allocation2 + $0x2f0] sm:$0xff] }
 0x655   : > { %v11820_v27 = vpop.eup %11819  ;;  %9686 = vmatmul.mubr.msk.f32.gmra.mrb[54].mxu1 %vm1317_vm3, %v3318_v10  ;;  %v10596_v10 = vpack.c.bf16 %v11290_v19, %v11289_v8  ;;  %v16165_v8 = vld [vmem:[#allocation36_spill] sm:$0xff] }
 0x656   : > { %v11822_v6 = vpop.eup %11821  ;;  %v3320_v41 = vmul.f32 %v11820_v27, %v13713_v16  ;;  %v16157_v16 = vld [vmem:[#allocation41_spill] sm:$0xff] }
 0x657   : > { %4171 = vrot.lane.b32.xlu1 %v16152_v26, %s12172_s14  ;;  %v3319_v44 = vmul.f32 %v11822_v6, %v13715_v28  ;;  %v11299_v28 = vunpack.i.l.bf16 %v16155_v5  ;;  %v16161_v6 = vld [vmem:[#allocation33_spill] sm:$0xff] }
 0x658   : > { %4169 = vrot.lane.b32.xlu0 %v16153_v54, %s12172_s14 }
 0x659   : > { %v11824_v36 = vpop.eup %11823  ;;  %9704 = vmatprep.mubr.msk.f32.mxu0 %vm1317_vm3, %v3319_v44  ;;  %v10610_v27 = vpack.c.bf16 %v11300_v34, %v11299_v28  ;;  %v16166_v28 = vld [vmem:[#allocation38_spill] sm:$0xff] }
 0x65a   : > { %v11826_v40 = vpop.eup %11825  ;;  %9705 = vmatmul.mubr.msk.f32.vlgmr.msra.gmra.mrb[80].mxu0 %vm1317_vm3, %v3320_v41  ;;  %v3328_v59 = vmul.f32 %v11824_v36, %v13719_v46  ;;  %v3218_v46 = vpop.xlane.xlu0 %3217  ;;  %v10600_v41 = vpack.c.bf16 %v11295_v53, %v11294_v47  ;;  %v16163_v36 = vld [vmem:[#allocation92_spill] sm:$0xff] }
 0x65b   : > { %10591 = vmatpush3.bf16.msra.mxu0 %v16156_v21  ;;  %4497 = vrot.lane.b32.xlu1 %v16157_v16, %s12172_s14  ;;  %v3327_v45 = vmul.f32 %v11826_v40, %v13724_v42  ;;  %v16160_v42 = vld [vmem:[#allocation32_spill] sm:$0xff]  ;;  %v11310_v40 = vunpack.i.h.bf16 %v16163_v36  ;;  %11827 = vrcp.f32 %v3218_v46  ;;  %v16167_v21 = vld [vmem:[#allocation39_spill] sm:$0xff] }
 0x65c   : > { %10593 = vmatprep.subr.bf16.mxu0 %v10592_v32  ;;  %4495 = vrot.lane.b32.xlu0 %v16158_v1, %s12172_s14 }
 0x65d   : > { %9732 = vmatprep.mubr.msk.f32.mxu1 %vm1317_vm3, %v3327_v45  ;;  %v16168_v45 = vld [vmem:[#allocation91_spill] sm:$0xff] }
 0x65e   : > { %9733 = vmatmul.mubr.msk.f32.vlgmr.msra.gmra.mrb[56].mxu1 %vm1317_vm3, %v3328_v59  ;;  %v3242_v38 = vpop.xlane.xlu1 %3241  ;;  %v11315_v59 = vunpack.i.h.bf16 %v16168_v45  ;;  %v11314_v25 = vunpack.i.l.bf16 %v16168_v45 }
 0x65f   : > { %10595 = vmatpush3.bf16.msra.mxu0 %v10592_v32  ;;  %10609 = vmatpush3.bf16.xpose.msk.msra.mxu1 %vm12606_vm2, %v13831_v22  ;;  %v11309_v22 = vunpack.i.l.bf16 %v16163_v36  ;;  %v10616_v32 = vpack.c.bf16 %v11305_v48, %v11304_v61 }
 0x660   : > { %4332 = vrot.lane.b32.xlu1 %v16160_v42, %s12172_s14  ;;  %10597 = vmatprep.subr.bf16.mxu0 %v10596_v10  ;;  %v10622_v20 = vpack.c.bf16 %v11315_v59, %v11314_v25  ;;  %v16174_v25 = vld [vmem:[#allocation50_spill] sm:$0xff] }
 0x661   : > { %10612 = vmatprep.subr.msk.bf16.mxu1 %vm12606_vm2, %v10610_v27  ;;  %4330 = vrot.lane.b32.xlu0 %v16161_v6, %s12172_s14  ;;  %v13932_v34 = vpack.c.bf16 %v11310_v40, %v11309_v22  ;;  %v16172_v40 = vld [vmem:[#allocation48_spill] sm:$0xff] }
 0x662   : > { %v3215_v44 = vpop.xlane.xlu1 %3214  ;;  %v3224_v19 = vpop.xlane.xlu0 %3223 }
 0x663   : > { %10599 = vmatpush3.bf16.msra.mxu0 %v10596_v10  ;;  %11829 = vrcp.f32 %v3215_v44  ;;  %v16171_v44 = vld [vmem:[#allocation47_spill] sm:$0xff] }
 0x664   : > { %4336 = vrot.lane.b32.xlu1 %v16164_v14, %s12172_s14  ;;  %10601 = vmatprep.subr.bf16.mxu0 %v10600_v41  ;;  %11831 = vrcp.f32 %v3242_v38  ;;  %v16169_v38 = vld [vmem:[#allocation44_spill] sm:$0xff]  ;;  %v3969_v14 = vld [vmem:[#allocation2 + $0x268] sm:$0xff] }
 0x665   : > { %4334 = vrot.lane.b32.xlu0 %v16165_v8, %s12172_s14  ;;  %v11828_v10 = vpop.eup %11827 }
 0x666   : > { %v3239_v5 = vpop.xlane.xlu1 %3238  ;;  %v3248_v47 = vpop.xlane.xlu0 %3247 }
 0x667   : > { %10603 = vmatpush3.bf16.msra.mxu0 %v10600_v41  ;;  %10615 = vmatpush3.bf16.xpose.msk.msra.mxu1 %vm12606_vm2, %v10610_v27  ;;  %11833 = vrcp.f32 %v3239_v5  ;;  %v16170_v27 = vld [vmem:[#allocation45_spill] sm:$0xff]  ;;  %v3322_v41 = vmul.f32 %v11828_v10, %v13728_v39 }
 0x668   : > { %4340 = vrot.lane.b32.xlu1 %v16166_v28, %s12172_s14  ;;  %10618 = vmatprep.subr.msk.bf16.mxu1 %vm12606_vm2, %v10616_v32  ;;  %11835 = vrcp.f32 %v3224_v19  ;;  %v16173_v19 = vld [vmem:[#allocation95_spill] sm:$0xff] }
 0x669   : > { %10630 = vmatprep.subr.msk.bf16.mxu0 %vm12606_vm2, %v13932_v34  ;;  %4338 = vrot.lane.b32.xlu0 %v16167_v21, %s12172_s14  ;;  %v11329_v5 = vunpack.i.l.bf16 %v16173_v19  ;;  %v3974_v28 = vld [vmem:[#allocation2 + $0x290] sm:$0xff] }
 0x66a   : > { %v3221_v53 = vpop.xlane.xlu1 %3220  ;;  %v3230_v45 = vpop.xlane.xlu0 %3229 }
 0x66b   : > { %11837 = vrcp.f32 %v3221_v53 }
 0x66c   : > { %4501 = vrot.lane.b32.xlu1 %v16169_v38, %s12172_s14  ;;  %11839 = vrcp.f32 %v3248_v47  ;;  %v16175_v47 = vld [vmem:[#allocation51_spill] sm:$0xff] }
 0x66d   : > { %4499 = vrot.lane.b32.xlu0 %v16170_v27, %s12172_s14  ;;  %v11830_v46 = vpop.eup %11829  ;;  %v3976_v27 = vld [vmem:[#allocation2 + $0x2a0] sm:$0xff] }
 0x66e   : > { %v3245_v48 = vpop.xlane.xlu1 %3244  ;;  %v3321_v61 = vmul.f32 %v11830_v46, %v13745_v17  ;;  %v11832_v36 = vpop.eup %11831 }
 0x66f   : > { %10621 = vmatpush3.bf16.xpose.msk.msra.mxu1 %vm12606_vm2, %v10616_v32  ;;  %11841 = vrcp.f32 %v3245_v48  ;;  %v11330_v32 = vunpack.i.h.bf16 %v16173_v19  ;;  %v3330_v39 = vmul.f32 %v11832_v36, %v13741_v33 }
 0x670   : > { %4505 = vrot.lane.b32.xlu1 %v16171_v44, %s12172_s14  ;;  %10624 = vmatprep.subr.msk.bf16.mxu1 %vm12606_vm2, %v10622_v20  ;;  %11843 = vrcp.f32 %v3230_v45 }
 0x671   : > { %4503 = vrot.lane.b32.xlu0 %v16172_v40, %s12172_s14  ;;  %9707 = vmatprep.mubr.msk.f32.mxu0 %vm1317_vm3, %v3321_v61  ;;  %v11834_v22 = vpop.eup %11833  ;;  %v13972_v46 = vpack.c.bf16 %v11330_v32, %v11329_v5  ;;  %v16176_v61 = vld [vmem:[#allocation10_spill] sm:$0xff]  ;;  %v16178_v5 = vld [vmem:[#allocation16_spill] sm:$0xff] }
 0x672   : > { %9708 = vmatmul.mubr.msk.f32.gmra.mrb[82].mxu0 %vm1317_vm3, %v3322_v41  ;;  %v3254_v17 = vpop.xlane.xlu1 %3253  ;;  %v3329_v59 = vmul.f32 %v11834_v22, %v13755_v58  ;;  %v11836_v53 = vpop.eup %11835  ;;  %v16177_v22 = vld [vmem:[#allocation7_spill] sm:$0xff]  ;;  %v3977_v40 = vld [vmem:[#allocation2 + $0x2a8] sm:$0xff] }
 0x673   : > { %v3324_v41 = vmul.f32 %v11836_v53, %v13748_v62  ;;  %v3260_v19 = vpop.xlane.xlu0 %3259  ;;  %v16179_v62 = vld [vmem:[#allocation13_spill] sm:$0xff] }
 0x674   : > { %4509 = vrot.lane.b32.xlu1 %v16174_v25, %s12172_s14  ;;  %9735 = vmatprep.mubr.msk.f32.mxu1 %vm1317_vm3, %v3329_v59  ;;  %v16192_v25 = vld [vmem:[#allocation96_spill] sm:$0xff] }
 0x675   : > { %4507 = vrot.lane.b32.xlu0 %v16175_v47, %s12172_s14  ;;  %v11838_v10 = vpop.eup %11837  ;;  %9736 = vmatmul.mubr.msk.f32.gmra.mrb[58].mxu1 %vm1317_vm3, %v3330_v39 }
 0x676   : > { %v3227_v48 = vpop.xlane.xlu1 %3226  ;;  %v3323_v58 = vmul.f32 %v11838_v10, %v13765_v43  ;;  %v11840_v33 = vpop.eup %11839 }
 0x677   : > { %10627 = vmatpush3.bf16.xpose.msk.msra.mxu1 %vm12606_vm2, %v10622_v20  ;;  %11845 = vrcp.f32 %v3227_v48  ;;  %v3332_v32 = vmul.f32 %v11840_v33, %v13758_v51  ;;  %v16181_v51 = vld [vmem:[#allocation19_spill] sm:$0xff]  ;;  %v16182_v48 = vld [vmem:[#allocation34_spill] sm:$0xff] }
 0x678   : > { %11377 = vrot.lane.b32.xlu1 %v16176_v61, %s12173_s15  ;;  %10654 = vmatprep.subr.msk.bf16.mxu1 %vm12606_vm2, %v13972_v46  ;;  %11847 = vrcp.f32 %v3254_v17  ;;  %v16183_v33 = vld [vmem:[#allocation22_spill] sm:$0xff] }
 0x679   : > { %v11842_v36 = vpop.eup %11841  ;;  %11372 = vrot.lane.b32.xlu0 %v16177_v22, %s12173_s15  ;;  %9710 = vmatprep.mubr.msk.f32.mxu0 %vm1317_vm3, %v3323_v58 }
 0x67a   : > { %9711 = vmatmul.mubr.msk.f32.gmra.mrb[84].mxu0 %vm1317_vm3, %v3324_v41  ;;  %v3251_v43 = vpop.xlane.xlu1 %3250  ;;  %v3331_v20 = vmul.f32 %v11842_v36, %v13774_v0  ;;  %v11844_v45 = vpop.eup %11843  ;;  %v16180_v0 = vld [vmem:[#allocation31_spill] sm:$0xff] }
 0x67b   : > { %11849 = vrcp.f32 %v3251_v43  ;;  %v3326_v53 = vmul.f32 %v11844_v45, %v13767_v9  ;;  %v16187_v45 = vld [vmem:[#allocation98_spill] sm:$0xff] }
 0x67c   : > { %11387 = vrot.lane.b32.xlu1 %v16178_v5, %s12173_s15  ;;  %9738 = vmatprep.mubr.msk.f32.mxu1 %vm1317_vm3, %v3331_v20  ;;  %11851 = vrcp.f32 %v3260_v19  ;;  %v16185_v20 = vld [vmem:[#allocation94_spill] sm:$0xff] }
 0x67d   : > { %11382 = vrot.lane.b32.xlu0 %v16179_v62, %s12173_s15  ;;  %9739 = vmatmul.mubr.msk.f32.gmra.mrb[60].mxu1 %vm1317_vm3, %v3332_v32  ;;  %v11320_v19 = vunpack.i.h.bf16 %v16185_v20  ;;  %v16186_v32 = vld [vmem:[#allocation25_spill] sm:$0xff] }
 0x67e   : > { %v3257_v17 = vpop.xlane.xlu1 %3256 }
 0x67f   : > { %11853 = vrcp.f32 %v3257_v17  ;;  %v11319_v17 = vunpack.i.l.bf16 %v16185_v20 }
 0x680   : > { %11397 = vrot.lane.b32.xlu1 %v16180_v0, %s12173_s15 }
 0x681   : > { %v11846_v59 = vpop.eup %11845  ;;  %11392 = vrot.lane.b32.xlu0 %v16181_v51, %s12173_s15 }
 0x682   : > { %v3325_v39 = vmul.f32 %v11846_v59, %v13786_v31  ;;  %v11848_v10 = vpop.eup %11847  ;;  %v16184_v31 = vld [vmem:[#allocation37_spill] sm:$0xff] }
 0x683   : > { %v3334_v36 = vmul.f32 %v11848_v10, %v13778_v4  ;;  %v11339_v4 = vunpack.i.l.bf16 %v16187_v45  ;;  %v16188_v59 = vld [vmem:[#allocation97_spill] sm:$0xff]  ;;  %v16190_v10 = vld [vmem:[#allocation104_spill] sm:$0xff] }
 0x684   : > { %11407 = vrot.lane.b32.xlu1 %v16182_v48, %s12173_s15  ;;  %9713 = vmatprep.mubr.msk.f32.mxu0 %vm1317_vm3, %v3325_v39  ;;  %v16189_v39 = vld [vmem:[#allocation105_spill] sm:$0xff] }
 0x685   : > { %v11850_v58 = vpop.eup %11849  ;;  %11402 = vrot.lane.b32.xlu0 %v16183_v33, %s12173_s15  ;;  %9714 = vmatmul.mubr.msk.f32.gmra.mrb[86].mxu0 %vm1317_vm3, %v3326_v53 }
 0x686   : > { %v3333_v41 = vmul.f32 %v11850_v58, %v13790_v15  ;;  %v11852_v43 = vpop.eup %11851  ;;  %v11340_v15 = vunpack.i.h.bf16 %v16187_v45  ;;  %v3993_v45 = vpop.permute.xlu0 %3992 }
 0x687   : > { %v3336_v58 = vmul.f32 %v11852_v43, %v16190_v10  ;;  %v16193_v43 = vld [vmem:[#allocation93_spill] sm:$0xff] }
 0x688   : > { %11417 = vrot.lane.b32.xlu1 %v16184_v31, %s12173_s15  ;;  %9741 = vmatprep.mubr.msk.f32.mxu1 %vm1317_vm3, %v3333_v41  ;;  %v16191_v41 = vld [vmem:[#allocation28_spill] sm:$0xff]  ;;  %v10658_v20 = vpack.c.bf16 %v11340_v15, %v11339_v4 }
 0x689   : > { %v11854_v9 = vpop.eup %11853  ;;  %11412 = vrot.lane.b32.xlu0 %v16186_v32, %s12173_s15  ;;  %9742 = vmatmul.mubr.msk.f32.gmra.mrb[62].mxu1 %vm1317_vm3, %v3334_v36  ;;  %v10634_v36 = vpack.c.bf16 %v11320_v19, %v11319_v17  ;;  %v3995_v19 = vpop.permute.xlu1 %3994 }
 0x68a   : > { %9788 = vmatprep.mubr.msk.f32.mxu1 %vm696_vm1, %v16188_v59  ;;  %v3335_v53 = vmul.f32 %v11854_v9, %v16189_v39  ;;  %v11325_v9 = vunpack.i.h.bf16 %v16193_v43  ;;  %v16196_v39 = vld [vmem:[#allocation99_spill] sm:$0xff] }
 0x68b   : > { %v11334_v10 = vunpack.i.l.bf16 %v16196_v39 }
 0x68c   : > { %11427 = vrot.lane.b32.xlu1 %v12500_v35, %s12173_s15  ;;  %9760 = vmatprep.mubr.msk.f32.mxu0 %vm1317_vm3, %v3335_v53  ;;  %v11335_v53 = vunpack.i.h.bf16 %v16196_v39 }
 0x68d   : > { %11422 = vrot.lane.b32.xlu0 %v16191_v41, %s12173_s15  ;;  %9761 = vmatmul.mubr.msk.f32.vlgmr.msra.gmra.mrb[88].mxu0 %vm1317_vm3, %v3336_v58 }
 0x68e   : > { %9789 = vmatmul.mubr.msk.f32.vlgmr.msra.gmra.mrb[64].mxu1 %vm696_vm1, %v16192_v25  ;;  %10633 = vmatpush3.bf16.xpose.msk.msra.mxu0 %vm12606_vm2, %v13932_v34  ;;  %v11324_v25 = vunpack.i.l.bf16 %v16193_v43  ;;  %v16194_v34 = vld [vmem:[#allocation43_spill] sm:$0xff]  ;;  %v10646_v58 = vpack.c.bf16 %v11335_v53, %v11334_v10 }
 0x68f   : > { %10657 = vmatpush3.bf16.xpose.msk.msra.mxu1 %vm12606_vm2, %v13972_v46  ;;  %9791 = vmatprep.mubr.msk.f32.mxu1 %vm696_vm1, %v3993_v45  ;;  %v16195_v46 = vld [vmem:[#allocation101_spill] sm:$0xff] }
 0x690   : > { %10636 = vmatprep.subr.msk.bf16.mxu0 %vm12606_vm2, %v10634_v36  ;;  %10660 = vmatprep.subr.msk.bf16.mxu1 %vm12606_vm2, %v10658_v20  ;;  %v11345_v17 = vunpack.i.h.bf16 %v16195_v46  ;;  %v11344_v15 = vunpack.i.l.bf16 %v16195_v46  ;;  %v10640_v4 = vpack.c.bf16 %v11325_v9, %v11324_v25 }
 0x691   : > { %11437 = vrot.lane.b32.xlu1 %v12524_v56, %s12173_s15  ;;  %11432 = vrot.lane.b32.xlu0 %v16194_v34, %s12173_s15 }
 0x692   : > { %9792 = vmatmul.mubr.msk.f32.gmra.mrb[66].mxu1 %vm696_vm1, %v3995_v19  ;;  %v10664_v59 = vpack.c.bf16 %v11345_v17, %v11344_v15 }
 0x695   : > { %11442 = vrot.lane.b32.xlu1 %v16177_v22, %s12174_s18  ;;  %11447 = vrot.lane.b32.xlu0 %v16039_v63, %s12173_s15 }
 0x696   : > { %10639 = vmatpush3.bf16.xpose.msk.msra.mxu0 %vm12606_vm2, %v10634_v36  ;;  %v16197_v36 = vld [vmem:[#allocation100_spill] sm:$0xff] }
 0x697   : > { %10663 = vmatpush3.bf16.xpose.msk.msra.mxu1 %vm12606_vm2, %v10658_v20  ;;  %10642 = vmatprep.subr.msk.bf16.mxu0 %vm12606_vm2, %v10640_v4  ;;  %v11350_v20 = vunpack.i.h.bf16 %v16197_v36  ;;  %v11349_v45 = vunpack.i.l.bf16 %v16197_v36 }
 0x698   : > { %10666 = vmatprep.subr.msk.bf16.mxu1 %vm12606_vm2, %v10664_v59 }
 0x699   : > { %11457 = vrot.lane.b32.xlu1 %v16176_v61, %s12174_s18  ;;  %11452 = vrot.lane.b32.xlu0 %v16147_v24, %s12173_s15  ;;  %v10676_v43 = vpack.c.bf16 %v11350_v20, %v11349_v45 }
 0x69e   : > { %10645 = vmatpush3.bf16.xpose.msk.msra.mxu0 %vm12606_vm2, %v10640_v4 }
 0x69f   : > { %10669 = vmatpush3.bf16.xpose.msk.msra.mxu1 %vm12606_vm2, %v10664_v59  ;;  %10648 = vmatprep.subr.msk.bf16.mxu0 %vm12606_vm2, %v10646_v58 }
 0x6a6   : > { %10651 = vmatpush3.bf16.xpose.msk.msra.mxu0 %vm12606_vm2, %v10646_v58 }
 0x6a7   : > { %10678 = vmatprep.subr.msk.bf16.mxu0 %vm12606_vm2, %v10676_v43  ;;  %v3263_v9 = vpop.xlane.xlu0 %3262 }
 0x6a8   : > { %11855 = vrcp.f32 %v3263_v9 }
 0x6ab   : > { %v3272_v25 = vpop.xlane.xlu0 %3271 }
 0x6af   : > { %v3269_v19 = vpop.xlane.xlu0 %3268 }
 0x6b0   : > { %11857 = vrcp.f32 %v3269_v19 }
 0x6b2   : > { %v11856_v46 = vpop.eup %11855 }
 0x6b3   : > { %v3275_v17 = vpop.xlane.xlu0 %3274  ;;  %v3266_v15 = vpop.xlane.xlu1 %3265  ;;  %v3337_v4 = vmul.f32 %v11856_v46, %v13821_v11 }
 0x6b4   : > { %11859 = vrcp.f32 %v3266_v15 }
 0x6b5   : > { %9763 = vmatprep.mubr.msk.f32.mxu0 %vm1317_vm3, %v3337_v4  ;;  %11861 = vrcp.f32 %v3272_v25 }
 0x6b6   : > { %11863 = vrcp.f32 %v3275_v17 }
 0x6b7   : > { %v11353_v59 = vpop.permute.xlu0 %11352  ;;  %v3278_v39 = vpop.xlane.xlu1 %3277 }
 0x6b8   : > { %v11355_v53 = vunpack.i.h.bf16 %v11353_v59  ;;  %v11354_v10 = vunpack.i.l.bf16 %v11353_v59  ;;  %11865 = vrcp.f32 %v3278_v39 }
 0x6ba   : > { %v10670_v58 = vpack.c.bf16 %v11355_v53, %v11354_v10  ;;  %v11858_v11 = vpop.eup %11857 }
 0x6bb   : > { %v3997_v36 = vpop.permute.xlu0 %3996  ;;  %v11358_v20 = vpop.permute.xlu1 %11357  ;;  %v3339_v17 = vmul.f32 %v11858_v11, %v13838_v23 }
 0x6bc   : > { %9794 = vmatprep.mubr.msk.f32.mxu1 %vm696_vm1, %v3997_v36  ;;  %10672 = vmatprep.subr.msk.bf16.mxu1 %vm12606_vm2, %v10670_v58  ;;  %v11360_v36 = vunpack.i.h.bf16 %v11358_v20  ;;  %v11359_v11 = vunpack.i.l.bf16 %v11358_v20 }
 0x6bd   : > { %10675 = vmatpush3.bf16.xpose.msk.msra.mxu1 %vm12606_vm2, %v10670_v58 }
 0x6be   : > { %v11860_v45 = vpop.eup %11859 }
 0x6bf   : > { %v4001_v9 = vpop.permute.xlu0 %4000  ;;  %v3999_v25 = vpop.permute.xlu1 %3998  ;;  %v3338_v19 = vmul.f32 %v11860_v45, %v13840_v29 }
 0x6c0   : > { %9795 = vmatmul.mubr.msk.f32.gmra.mrb[68].mxu1 %vm696_vm1, %v3999_v25  ;;  %v11862_v46 = vpop.eup %11861  ;;  %v16199_v25 = vld [vmem:[#allocation102_spill] sm:$0xff] }
 0x6c1   : > { %9797 = vmatprep.mubr.msk.f32.mxu1 %vm696_vm1, %v4001_v9  ;;  %v11864_v15 = vpop.eup %11863  ;;  %9764 = vmatmul.mubr.msk.f32.gmra.mrb[90].mxu0 %vm1317_vm3, %v3338_v19  ;;  %v3340_v39 = vmul.f32 %v11862_v46, %v13829_v49  ;;  %v16198_v49 = vld [vmem:[#allocation103_spill] sm:$0xff]  ;;  %v10682_v9 = vpack.c.bf16 %v11360_v36, %v11359_v11 }
 0x6c2   : > { %9766 = vmatprep.mubr.msk.f32.mxu0 %vm1317_vm3, %v3339_v17  ;;  %v11866_v53 = vpop.eup %11865  ;;  %v3341_v10 = vmul.f32 %v11864_v15, %v13844_v2 }
 0x6c3   : > { %v11363_v4 = vpop.permute.xlu0 %11362  ;;  %v4003_v59 = vpop.permute.xlu1 %4002  ;;  %v3342_v58 = vmul.f32 %v11866_v53, %v13850_v37 }
 0x6c4   : > { %9798 = vmatmul.mubr.msk.f32.gmra.mrb[70].mxu1 %vm696_vm1, %v4003_v59  ;;  %v11365_v20 = vunpack.i.h.bf16 %v11363_v4  ;;  %v11364_v46 = vunpack.i.l.bf16 %v11363_v4 }
 0x6c5   : > { %9767 = vmatmul.mubr.msk.f32.gmra.mrb[92].mxu0 %vm1317_vm3, %v3340_v39 }
 0x6c6   : > { %9769 = vmatprep.mubr.msk.f32.mxu0 %vm1317_vm3, %v3341_v10  ;;  %v10688_v59 = vpack.c.bf16 %v11365_v20, %v11364_v46 }
 0x6c7   : > { %v4329_v29 = vpop.permute.xlu0 %4328  ;;  %v4327_v23 = vpop.permute.xlu1 %4326 }
 0x6c8   : > { %9844 = vmatprep.mubr.msk.f32.mxu1 %vm696_vm1, %v4327_v23 }
 0x6c9   : > { %9845 = vmatmul.mubr.msk.f32.vlgmr.msra.gmra.mrb[72].mxu1 %vm696_vm1, %v4329_v29  ;;  %9770 = vmatmul.mubr.msk.f32.gmra.mrb[94].mxu0 %vm1317_vm3, %v3342_v58 }
 0x6ca   : > { %9816 = vmatprep.mubr.msk.f32.mxu0 %vm696_vm1, %v16198_v49 }
 0x6cb   : > { %v4164_v2 = vpop.permute.xlu0 %4163  ;;  %v4162_v45 = vpop.permute.xlu1 %4161 }
 0x6cd   : > { %9817 = vmatmul.mubr.msk.f32.vlgmr.msra.gmra.mrb[96].mxu0 %vm696_vm1, %v16199_v25 }
 0x6ce   : > { %10681 = vmatpush3.bf16.xpose.msk.msra.mxu0 %vm12606_vm2, %v10676_v43  ;;  %9819 = vmatprep.mubr.msk.f32.mxu0 %vm696_vm1, %v4162_v45 }
 0x6cf   : > { %v4166_v37 = vpop.permute.xlu0 %4165  ;;  %v11368_v19 = vpop.permute.xlu1 %11367  ;;  %10684 = vmatprep.subr.msk.bf16.mxu0 %vm12606_vm2, %v10682_v9 }
 0x6d0   : > { %v11370_v4 = vunpack.i.h.bf16 %v11368_v19  ;;  %v11369_v53 = vunpack.i.l.bf16 %v11368_v19 }
 0x6d1   : > { %9820 = vmatmul.mubr.msk.f32.gmra.mrb[98].mxu0 %vm696_vm1, %v4164_v2 }
 0x6d2   : > { %9822 = vmatprep.mubr.msk.f32.mxu0 %vm696_vm1, %v4166_v37  ;;  %v10694_v23 = vpack.c.bf16 %v11370_v4, %v11369_v53 }
 0x6d3   : > { %v4170_v17 = vpop.permute.xlu0 %4169  ;;  %v4168_v15 = vpop.permute.xlu1 %4167 }
 0x6d5   : > { %9823 = vmatmul.mubr.msk.f32.gmra.mrb[100].mxu0 %vm696_vm1, %v4168_v15 }
 0x6d6   : > { %10687 = vmatpush3.bf16.xpose.msk.msra.mxu0 %vm12606_vm2, %v10682_v9  ;;  %9825 = vmatprep.mubr.msk.f32.mxu0 %vm696_vm1, %v4170_v17 }
 0x6d7   : > { %v4496_v43 = vpop.permute.xlu0 %4495  ;;  %v4172_v39 = vpop.permute.xlu1 %4171  ;;  %10690 = vmatprep.subr.msk.bf16.mxu0 %vm12606_vm2, %v10688_v59 }
 0x6d9   : > { %9826 = vmatmul.mubr.msk.f32.gmra.mrb[102].mxu0 %vm696_vm1, %v4172_v39 }
 0x6da   : > { %9872 = vmatprep.mubr.msk.f32.mxu0 %vm696_vm1, %v4496_v43 }
 0x6db   : > { %v4331_v10 = vpop.permute.xlu0 %4330  ;;  %v4498_v29 = vpop.permute.xlu1 %4497 }
 0x6dc   : > { %9847 = vmatprep.mubr.msk.f32.mxu1 %vm696_vm1, %v4331_v10 }
 0x6de   : > { %10693 = vmatpush3.bf16.xpose.msk.msra.mxu0 %vm12606_vm2, %v10688_v59 }
 0x6df   : > { %v4335_v58 = vpop.permute.xlu0 %4334  ;;  %v4333_v36 = vpop.permute.xlu1 %4332  ;;  %10696 = vmatprep.subr.msk.bf16.mxu0 %vm12606_vm2, %v10694_v23 }
 0x6e0   : > { %9848 = vmatmul.mubr.msk.f32.gmra.mrb[74].mxu1 %vm696_vm1, %v4333_v36 }
 0x6e1   : > { %9850 = vmatprep.mubr.msk.f32.mxu1 %vm696_vm1, %v4335_v58 }
 0x6e3   : > { %v14130_v11 = vpop.f32.mrb[48].mxu1  ;;  %v4339_v2 = vpop.permute.xlu0 %4338 }
 0x6e4   : > { %16200 = vst [vmem:[#allocation87_spill] sm:$0xff] %v14130_v11  ;;  %v14132_v49 = vpop.f32.mrb[49].mxu1  ;;  %v4337_v45 = vpop.permute.xlu1 %4336 }
 0x6e5   : > { %16201 = vst [vmem:[#allocation86_spill] sm:$0xff] %v14132_v49  ;;  %9851 = vmatmul.mubr.msk.f32.gmra.mrb[76].mxu1 %vm696_vm1, %v4337_v45  ;;  %v3963_v49 = vld [vmem:[#allocation2 + $0x238] sm:$0xff] }
 0x6e6   : > { %9853 = vmatprep.mubr.msk.f32.mxu1 %vm696_vm1, %v4339_v2  ;;  %10699 = vmatpush3.bf16.xpose.msk.msra.mxu0 %vm12606_vm2, %v10694_v23 }
 0x6e7   : > { %v4500_v9 = vpop.permute.xlu0 %4499 }
 0x6e8   : > { %v4341_v25 = vpop.permute.xlu1 %4340 }
 0x6e9   : > { %9854 = vmatmul.mubr.msk.f32.gmra.mrb[78].mxu1 %vm696_vm1, %v4341_v25 }
 0x6eb   : > { %v14139_v37 = vpop.f32.mrb[50].mxu1  ;;  %v4504_v20 = vpop.permute.xlu0 %4503 }
 0x6ec   : > { %16202 = vst [vmem:[#allocation90_spill] sm:$0xff] %v14139_v37  ;;  %v14141_v19 = vpop.f32.mrb[51].mxu1  ;;  %v4502_v46 = vpop.permute.xlu1 %4501 }
 0x6ed   : > { %16203 = vst [vmem:[#allocation54_spill] sm:$0xff] %v14141_v19  ;;  %9873 = vmatmul.mubr.msk.f32.vlgmr.msra.gmra.mrb[104].mxu0 %vm696_vm1, %v4498_v29 }
 0x6ee   : > { %9875 = vmatprep.mubr.msk.f32.mxu0 %vm696_vm1, %v4500_v9 }
 0x6ef   : > { %v4508_v17 = vpop.permute.xlu0 %4507 }
 0x6f0   : > { %v4506_v15 = vpop.permute.xlu1 %4505 }
 0x6f1   : > { %9876 = vmatmul.mubr.msk.f32.gmra.mrb[106].mxu0 %vm696_vm1, %v4502_v46 }
 0x6f2   : > { %9878 = vmatprep.mubr.msk.f32.mxu0 %vm696_vm1, %v4504_v20 }
 0x6f3   : > { %v11373_v59 = vpop.permute.xlu0 %11372 }
 0x6f4   : > { %v11375_v43 = vunpack.i.h.bf16 %v11373_v59  ;;  %v11374_v39 = vunpack.i.l.bf16 %v11373_v59  ;;  %v4510_v4 = vpop.permute.xlu1 %4509 }
 0x6f5   : > { %9879 = vmatmul.mubr.msk.f32.gmra.mrb[108].mxu0 %vm696_vm1, %v4506_v15 }
 0x6f6   : > { %v10700_v53 = vpack.c.bf16 %v11375_v43, %v11374_v39  ;;  %9881 = vmatprep.mubr.msk.f32.mxu0 %vm696_vm1, %v4508_v17 }
 0x6f7   : > { %v11383_v10 = vpop.permute.xlu0 %11382 }
 0x6f8   : > { %v11378_v23 = vpop.permute.xlu1 %11377  ;;  %10701 = vmatprep.subr.bf16.mxu1 %v10700_v53  ;;  %v11385_v29 = vunpack.i.h.bf16 %v11383_v10  ;;  %v11384_v58 = vunpack.i.l.bf16 %v11383_v10 }
 0x6f9   : > { %v11380_v36 = vunpack.i.h.bf16 %v11378_v23  ;;  %v11379_v2 = vunpack.i.l.bf16 %v11378_v23  ;;  %10703 = vmatpush3.bf16.msra.mxu1 %v10700_v53  ;;  %9882 = vmatmul.mubr.msk.f32.gmra.mrb[110].mxu0 %vm696_vm1, %v4510_v4 }
 0x6fa   : > { %v10708_v43 = vpack.c.bf16 %v11385_v29, %v11384_v58 }
 0x6fb   : > { %v11393_v45 = vpop.permute.xlu0 %11392  ;;  %v10704_v9 = vpack.c.bf16 %v11380_v36, %v11379_v2 }
 0x6fc   : > { %v11395_v25 = vunpack.i.h.bf16 %v11393_v45  ;;  %v11394_v20 = vunpack.i.l.bf16 %v11393_v45  ;;  %v11388_v46 = vpop.permute.xlu1 %11387 }
 0x6fd   : > { %v11390_v59 = vunpack.i.h.bf16 %v11388_v46  ;;  %v11389_v15 = vunpack.i.l.bf16 %v11388_v46  ;;  %10705 = vmatprep.subr.bf16.mxu1 %v10704_v9 }
 0x6fe   : > { %10707 = vmatpush3.bf16.msra.mxu1 %v10704_v9  ;;  %v10716_v17 = vpack.c.bf16 %v11395_v25, %v11394_v20 }
 0x6ff   : > { %10709 = vmatprep.subr.bf16.mxu1 %v10708_v43  ;;  %v11403_v39 = vpop.permute.xlu0 %11402  ;;  %v10712_v4 = vpack.c.bf16 %v11390_v59, %v11389_v15 }
 0x700   : > { %v11405_v37 = vunpack.i.h.bf16 %v11403_v39  ;;  %v11404_v10 = vunpack.i.l.bf16 %v11403_v39  ;;  %v11398_v19 = vpop.permute.xlu1 %11397  ;;  %10717 = vmatprep.subr.bf16.mxu0 %v10716_v17 }
 0x701   : > { %v11400_v53 = vunpack.i.h.bf16 %v11398_v19  ;;  %v11399_v23 = vunpack.i.l.bf16 %v11398_v19  ;;  %10719 = vmatpush3.bf16.msra.mxu0 %v10716_v17 }
 0x702   : > { %10711 = vmatpush3.bf16.msra.mxu1 %v10708_v43  ;;  %v10720_v36 = vpack.c.bf16 %v11405_v37, %v11404_v10 }
 0x703   : > { %10713 = vmatprep.subr.bf16.mxu1 %v10712_v4  ;;  %v11413_v2 = vpop.permute.xlu0 %11412  ;;  %v14150_v29 = vpack.c.bf16 %v11400_v53, %v11399_v23 }
 0x704   : > { %v11415_v45 = vunpack.i.h.bf16 %v11413_v2  ;;  %v11414_v46 = vunpack.i.l.bf16 %v11413_v2  ;;  %10721 = vmatprep.subr.bf16.mxu0 %v10720_v36  ;;  %v14322_v42 = vpop.permute.xlu1 %11407 }
 0x705   : > { %10723 = vmatpush3.bf16.msra.mxu0 %v10720_v36 }
 0x706   : > { %10715 = vmatpush3.bf16.msra.mxu1 %v10712_v4  ;;  %v10724_v58 = vpack.c.bf16 %v11415_v45, %v11414_v46 }
 0x707   : > { %10733 = vmatprep.subr.bf16.mxu1 %v14150_v29  ;;  %v11423_v9 = vpop.permute.xlu0 %11422 }
 0x708   : > { %v11425_v25 = vunpack.i.h.bf16 %v11423_v9  ;;  %v11424_v20 = vunpack.i.l.bf16 %v11423_v9  ;;  %10725 = vmatprep.subr.bf16.mxu0 %v10724_v58 }
 0x709   : > { %10727 = vmatpush3.bf16.msra.mxu0 %v10724_v58 }
 0x70a   : > { %v10728_v19 = vpack.c.bf16 %v11425_v25, %v11424_v20 }
 0x70b   : > { %v11433_v59 = vpop.permute.xlu0 %11432 }
 0x70c   : > { %v11435_v37 = vunpack.i.h.bf16 %v11433_v59  ;;  %v11434_v15 = vunpack.i.l.bf16 %v11433_v59  ;;  %10729 = vmatprep.subr.bf16.mxu0 %v10728_v19 }
 0x70d   : > { %10731 = vmatpush3.bf16.msra.mxu0 %v10728_v19 }
 0x70e   : > { %v14153_v43 = vpack.c.bf16 %v11435_v37, %v11434_v15 }
 0x710   : > { %10749 = vmatprep.subr.bf16.mxu0 %v14153_v43 }
 0x721   : > { %v14156_v17 = vpop.f32.mrb[52].mxu1 }
 0x722   : > { %16204 = vst [vmem:[#allocation88_spill] sm:$0xff] %v14156_v17  ;;  %v14158_v39 = vpop.f32.mrb[53].mxu1 }
 0x723   : > { %16205 = vst [vmem:[#allocation89_spill] sm:$0xff] %v14158_v39 }
 0x728   : > { %v14160_v10 = vpop.f32.mrb[54].mxu1 }
 0x729   : > { %16206 = vst [vmem:[#allocation92_spill] sm:$0xff] %v14160_v10  ;;  %v14162_v53 = vpop.f32.mrb[55].mxu1  ;;  %v3956_v10 = vld [vmem:[#allocation2 + $0x200] sm:$0xff] }
 0x72a   : > { %16207 = vst [vmem:[#allocation91_spill] sm:$0xff] %v14162_v53 }
 0x72d   : > { %v14164_v23 = vpop.f32.mrb[80].mxu0 }
 0x72e   : > { %16208 = vst [vmem:[#allocation95_spill] sm:$0xff] %v14164_v23  ;;  %v14166_v4 = vpop.f32.mrb[81].mxu0 }
 0x72f   : > { %16209 = vst [vmem:[#allocation16_spill] sm:$0xff] %v14166_v4 }
 0x731   : > { %v14168_v36 = vpop.f32.mrb[56].mxu1 }
 0x732   : > { %16210 = vst [vmem:[#allocation31_spill] sm:$0xff] %v14168_v36  ;;  %v14170_v2 = vpop.f32.mrb[57].mxu1 }
 0x733   : > { %16211 = vst [vmem:[#allocation19_spill] sm:$0xff] %v14170_v2 }
 0x745   : > { %v14172_v45 = vpop.f32.mrb[82].mxu0 }
 0x746   : > { %16212 = vst [vmem:[#allocation22_spill] sm:$0xff] %v14172_v45  ;;  %v14174_v46 = vpop.f32.mrb[83].mxu0 }
 0x747   : > { %16213 = vst [vmem:[#allocation37_spill] sm:$0xff] %v14174_v46  ;;  %v3957_v46 = vld [vmem:[#allocation2 + $0x208] sm:$0xff] }
 0x748   : > { %v14176_v58 = vpop.f32.mrb[58].mxu1 }
 0x749   : > { %16214 = vst [vmem:[#allocation94_spill] sm:$0xff] %v14176_v58  ;;  %v14178_v9 = vpop.f32.mrb[59].mxu1 }
 0x74a   : > { %16215 = vst [vmem:[#allocation25_spill] sm:$0xff] %v14178_v9  ;;  %v3958_v9 = vld [vmem:[#allocation2 + $0x210] sm:$0xff] }
 0x74d   : > { %v14180_v25 = vpop.f32.mrb[84].mxu0 }
 0x74e   : > { %16216 = vst [vmem:[#allocation98_spill] sm:$0xff] %v14180_v25  ;;  %v14182_v20 = vpop.f32.mrb[85].mxu0 }
 0x74f   : > { %16217 = vst [vmem:[#allocation97_spill] sm:$0xff] %v14182_v20 }
 0x750   : > { %v14184_v19 = vpop.f32.mrb[60].mxu1 }
 0x751   : > { %16218 = vst [vmem:[#allocation105_spill] sm:$0xff] %v14184_v19  ;;  %v14186_v59 = vpop.f32.mrb[61].mxu1  ;;  %v3959_v19 = vld [vmem:[#allocation2 + $0x218] sm:$0xff] }
 0x752   : > { %16219 = vst [vmem:[#allocation104_spill] sm:$0xff] %v14186_v59 }
 0x758   : > { %v14188_v37 = vpop.f32.mrb[86].mxu0 }
 0x759   : > { %16220 = vst [vmem:[#allocation28_spill] sm:$0xff] %v14188_v37  ;;  %v14190_v15 = vpop.f32.mrb[87].mxu0 }
 0x75a   : > { %16221 = vst [vmem:[#allocation96_spill] sm:$0xff] %v14190_v15 }
 0x75c   : > { %v14192_v23 = vpop.f32.mrb[62].mxu1 }
 0x75d   : > { %16222 = vst [vmem:[#allocation93_spill] sm:$0xff] %v14192_v23  ;;  %v14194_v45 = vpop.f32.mrb[63].mxu1 }
 0x75e   : > { %16223 = vst [vmem:[#allocation101_spill] sm:$0xff] %v14194_v45 }
 0x760   : > { %v14196_v4 = vpop.f32.mrb[88].mxu0 }
 0x761   : > { %16224 = vst [vmem:[#allocation99_spill] sm:$0xff] %v14196_v4  ;;  %v9790_v53 = vpop.f32.mrb[64].mxu1  ;;  %v14198_v25 = vpop.f32.mrb[89].mxu0 }
 0x762   : > { %16225 = vst [vmem:[#allocation100_spill] sm:$0xff] %v14198_v25  ;;  %v14200_v20 = vadd.f32 %v9790_v53, %v3957_v46  ;;  %v4118_v17 = vpop.f32.mrb[65].mxu1 }
 0x763   : > { %v14202_v39 = vadd.f32 %v4118_v17, %v3956_v10  ;;  %v3961_v10 = vld [vmem:[#allocation2 + $0x228] sm:$0xff] }
 0x764   : > { %v4667_v59 = vsel %vm1317_vm3, %v14200_v20, -inf }
 0x765   : > { %4668 = vmax.xlane.f32.xlu1 %v4667_v59  ;;  %v9793_v23 = vpop.f32.mrb[66].mxu1  ;;  %v4664_v45 = vsel %vm1317_vm3, %v14202_v39, -inf  ;;  %v3960_v59 = vld [vmem:[#allocation2 + $0x220] sm:$0xff] }
 0x766   : > { %v14208_v58 = vadd.f32 %v9793_v23, %v3959_v19  ;;  %4665 = vmax.xlane.f32.xlu0 %v4664_v45  ;;  %v4128_v4 = vpop.f32.mrb[67].mxu1 }
 0x767   : > { %v14212_v46 = vadd.f32 %v4128_v4, %v3958_v9 }
 0x768   : > { %v4673_v53 = vsel %vm1317_vm3, %v14208_v58, -inf }
 0x769   : > { %v4670_v17 = vsel %vm1317_vm3, %v14212_v46, -inf }
 0x76a   : > { %4674 = vmax.xlane.f32.xlu0 %v4673_v53 }
 0x76e   : > { %4671 = vmax.xlane.f32.xlu0 %v4670_v17  ;;  %v3962_v17 = vld [vmem:[#allocation2 + $0x230] sm:$0xff] }
 0x793   : > { %v9796_v25 = vpop.f32.mrb[68].mxu1 }
 0x794   : > { %v14216_v11 = vadd.f32 %v9796_v25, %v3961_v10  ;;  %v4138_v23 = vpop.f32.mrb[69].mxu1  ;;  %v14218_v19 = vpop.f32.mrb[90].mxu0 }
 0x795   : > { %16226 = vst [vmem:[#allocation103_spill] sm:$0xff] %v14218_v19  ;;  %v14220_v45 = vadd.f32 %v4138_v23, %v3960_v59  ;;  %v14222_v36 = vpop.f32.mrb[91].mxu0 }
 0x796   : > { %16227 = vst [vmem:[#allocation102_spill] sm:$0xff] %v14222_v36  ;;  %v4679_v4 = vsel %vm1317_vm3, %v14216_v11, -inf }
 0x797   : > { %4680 = vmax.xlane.f32.xlu0 %v4679_v4  ;;  %v9799_v9 = vpop.f32.mrb[70].mxu1  ;;  %v4676_v53 = vsel %vm1317_vm3, %v14220_v45, -inf  ;;  %v3973_v4 = vld [vmem:[#allocation2 + $0x288] sm:$0xff] }
 0x798   : > { %v14228_v2 = vadd.f32 %v9799_v9, %v3963_v49  ;;  %4677 = vmax.xlane.f32.xlu1 %v4676_v53  ;;  %v4148_v25 = vpop.f32.mrb[71].mxu1  ;;  %v14230_v10 = vpop.f32.mrb[92].mxu0  ;;  %v3965_v53 = vld [vmem:[#allocation2 + $0x248] sm:$0xff] }
 0x799   : > { %16228 = vst [vmem:[#allocation106_spill] sm:$0xff] %v14230_v10  ;;  %v14232_v59 = vadd.f32 %v4148_v25, %v3962_v17  ;;  %v14234_v23 = vpop.f32.mrb[93].mxu0  ;;  %v3964_v25 = vld [vmem:[#allocation2 + $0x240] sm:$0xff] }
 0x79a   : > { %16229 = vst [vmem:[#allocation107_spill] sm:$0xff] %v14234_v23  ;;  %v4685_v19 = vsel %vm1317_vm3, %v14228_v2, -inf }
 0x79b   : > { %4686 = vmax.xlane.f32.xlu0 %v4685_v19  ;;  %v4682_v9 = vsel %vm1317_vm3, %v14232_v59, -inf }
 0x79c   : > { %v9846_v36 = vpop.f32.mrb[72].mxu1  ;;  %v14238_v37 = vpop.f32.mrb[94].mxu0 }
 0x79d   : > { %16230 = vst [vmem:[#allocation108_spill] sm:$0xff] %v14238_v37  ;;  %v4456_v15 = vpop.f32.mrb[73].mxu1  ;;  %v14240_v61 = vadd.f32 %v9846_v36, %v3973_v4  ;;  %v14242_v49 = vpop.f32.mrb[95].mxu0  ;;  %v3967_v37 = vld [vmem:[#allocation2 + $0x258] sm:$0xff]  ;;  %v3972_v4 = vld [vmem:[#allocation2 + $0x280] sm:$0xff] }
 0x79e   : > { %16231 = vst [vmem:[#allocation109_spill] sm:$0xff] %v14242_v49  ;;  %v14256_v38 = vadd.f32 %v4456_v15, %v3972_v4  ;;  %v3975_v4 = vld [vmem:[#allocation2 + $0x298] sm:$0xff] }
 0x79f   : > { %4683 = vmax.xlane.f32.xlu0 %v4682_v9  ;;  %v4715_v19 = vsel %vm1317_vm3, %v14240_v61, -inf }
 0x7a0   : > { %v9818_v17 = vpop.f32.mrb[96].mxu0 }
 0x7a1   : > { %v14246_v10 = vadd.f32 %v9818_v17, %v3965_v53  ;;  %v4287_v23 = vpop.f32.mrb[97].mxu0 }
 0x7a2   : > { %v14250_v22 = vadd.f32 %v4287_v23, %v3964_v25 }
 0x7a3   : > { %4716 = vmax.xlane.f32.xlu0 %v4715_v19  ;;  %v4691_v36 = vsel %vm1317_vm3, %v14246_v10, -inf  ;;  %v3966_v19 = vld [vmem:[#allocation2 + $0x250] sm:$0xff] }
 0x7a4   : > { %4692 = vmax.xlane.f32.xlu1 %v4691_v36  ;;  %v9821_v49 = vpop.f32.mrb[98].mxu0  ;;  %v4688_v53 = vsel %vm1317_vm3, %v14250_v22, -inf }
 0x7a5   : > { %v14254_v9 = vadd.f32 %v9821_v49, %v3967_v37  ;;  %v4297_v44 = vpop.f32.mrb[99].mxu0  ;;  %v4712_v37 = vsel %vm1317_vm3, %v14256_v38, -inf }
 0x7a6   : > { %v14262_v16 = vadd.f32 %v4297_v44, %v3966_v19 }
 0x7a7   : > { %v4697_v17 = vsel %vm1317_vm3, %v14254_v9, -inf }
 0x7a8   : > { %4689 = vmax.xlane.f32.xlu1 %v4688_v53  ;;  %4698 = vmax.xlane.f32.xlu0 %v4697_v17  ;;  %v9824_v23 = vpop.f32.mrb[100].mxu0  ;;  %v4694_v36 = vsel %vm1317_vm3, %v14262_v16, -inf  ;;  %v3968_v53 = vld [vmem:[#allocation2 + $0x260] sm:$0xff] }
 0x7a9   : > { %v4307_v25 = vpop.f32.mrb[101].mxu0  ;;  %v14272_v19 = vadd.f32 %v9824_v23, %v3969_v14 }
 0x7aa   : > { %v14276_v6 = vadd.f32 %v4307_v25, %v3968_v53  ;;  %v3970_v25 = vld [vmem:[#allocation2 + $0x270] sm:$0xff] }
 0x7ab   : > { %v4703_v14 = vsel %vm1317_vm3, %v14272_v19, -inf }
 0x7ac   : > { %4713 = vmax.xlane.f32.xlu1 %v4712_v37  ;;  %v9827_v49 = vpop.f32.mrb[102].mxu0  ;;  %v4700_v23 = vsel %vm1317_vm3, %v14276_v6, -inf }
 0x7ad   : > { %v4317_v15 = vpop.f32.mrb[103].mxu0 }
 0x7b0   : > { %4695 = vmax.xlane.f32.xlu1 %v4694_v36 }
 0x7b3   : > { %v9849_v24 = vpop.f32.mrb[74].mxu1 }
 0x7b4   : > { %v14268_v17 = vadd.f32 %v9849_v24, %v3975_v4  ;;  %v4466_v47 = vpop.f32.mrb[75].mxu1 }
 0x7b5   : > { %v14270_v44 = vadd.f32 %v4466_v47, %v3974_v28  ;;  %v3971_v28 = vld [vmem:[#allocation2 + $0x278] sm:$0xff] }
 0x7b6   : > { %v4721_v37 = vsel %vm1317_vm3, %v14268_v17, -inf  ;;  %v14288_v26 = vadd.f32 %v9827_v49, %v3971_v28 }
 0x7b7   : > { %4722 = vmax.xlane.f32.xlu0 %v4721_v37  ;;  %v4718_v36 = vsel %vm1317_vm3, %v14270_v44, -inf }
 0x7b8   : > { %v9852_v18 = vpop.f32.mrb[76].mxu1  ;;  %4719 = vmax.xlane.f32.xlu1 %v4718_v36  ;;  %v3979_v36 = vld [vmem:[#allocation2 + $0x2b8] sm:$0xff]  ;;  %v4709_v49 = vsel %vm1317_vm3, %v14288_v26, -inf }
 0x7b9   : > { %v4476_v24 = vpop.f32.mrb[77].mxu1  ;;  %v14280_v4 = vadd.f32 %v9852_v18, %v3977_v40  ;;  %v14292_v40 = vadd.f32 %v4317_v15, %v3970_v25  ;;  %v3980_v25 = vld [vmem:[#allocation2 + $0x2c0] sm:$0xff] }
 0x7ba   : > { %v14284_v47 = vadd.f32 %v4476_v24, %v3976_v27  ;;  %v3978_v24 = vld [vmem:[#allocation2 + $0x2b0] sm:$0xff] }
 0x7bb   : > { %4704 = vmax.xlane.f32.xlu0 %v4703_v14  ;;  %v4727_v18 = vsel %vm1317_vm3, %v14280_v4, -inf  ;;  %v4706_v15 = vsel %vm1317_vm3, %v14292_v40, -inf }
 0x7bc   : > { %v9855_v53 = vpop.f32.mrb[78].mxu1  ;;  %4701 = vmax.xlane.f32.xlu1 %v4700_v23  ;;  %v4724_v27 = vsel %vm1317_vm3, %v14284_v47, -inf  ;;  %v3981_v23 = vld [vmem:[#allocation2 + $0x2c8] sm:$0xff] }
 0x7bd   : > { %v4486_v37 = vpop.f32.mrb[79].mxu1  ;;  %v14296_v1 = vadd.f32 %v9855_v53, %v3979_v36 }
 0x7be   : > { %v14300_v28 = vadd.f32 %v4486_v37, %v3978_v24  ;;  %v3982_v24 = vld [vmem:[#allocation2 + $0x2d0] sm:$0xff] }
 0x7bf   : > { %4728 = vmax.xlane.f32.xlu0 %v4727_v18  ;;  %v4733_v53 = vsel %vm1317_vm3, %v14296_v1, -inf }
 0x7c0   : > { %4725 = vmax.xlane.f32.xlu1 %v4724_v27  ;;  %v9874_v14 = vpop.f32.mrb[104].mxu0  ;;  %v4730_v37 = vsel %vm1317_vm3, %v14300_v28, -inf }
 0x7c1   : > { %v4625_v54 = vpop.f32.mrb[105].mxu0  ;;  %v14304_v21 = vadd.f32 %v9874_v14, %v3981_v23  ;;  %v3984_v23 = vld [vmem:[#allocation2 + $0x2e0] sm:$0xff] }
 0x7c2   : > { %v14308_v36 = vadd.f32 %v4625_v54, %v3980_v25 }
 0x7c3   : > { %4710 = vmax.xlane.f32.xlu0 %v4709_v49 }
 0x7c4   : > { %4707 = vmax.xlane.f32.xlu1 %v4706_v15  ;;  %v9877_v18 = vpop.f32.mrb[106].mxu0  ;;  %v4739_v15 = vsel %vm1317_vm3, %v14304_v21, -inf  ;;  %v4736_v14 = vsel %vm1317_vm3, %v14308_v36, -inf }
 0x7c5   : > { %v4635_v27 = vpop.f32.mrb[107].mxu0  ;;  %v14349_v50 = vadd.f32 %v9877_v18, %v3983_v55 }
 0x7c6   : > { %v14314_v8 = vadd.f32 %v4635_v27, %v3982_v24  ;;  %v14328_v24 = vpop.permute.xlu1 %11417 }
 0x7c7   : > { %4734 = vmax.xlane.f32.xlu0 %v4733_v53 }
 0x7c8   : > { %4731 = vmax.xlane.f32.xlu1 %v4730_v37  ;;  %v9880_v49 = vpop.f32.mrb[108].mxu0  ;;  %v4742_v37 = vsel %vm1317_vm3, %v14314_v8, -inf }
 0x7c9   : > { %v4645_v13 = vpop.f32.mrb[109].mxu0 }
 0x7ca   : > { %v14318_v53 = vadd.f32 %v4645_v13, %v3984_v23  ;;  %v14332_v13 = vpop.permute.xlu1 %11427  ;;  %v14338_v23 = vpop.permute.xlu0 %11447 }
 0x7cb   : > { %4740 = vmax.xlane.f32.xlu0 %v4739_v15 }
 0x7cc   : > { %4737 = vmax.xlane.f32.xlu1 %v4736_v14  ;;  %v9883_v54 = vpop.f32.mrb[110].mxu0  ;;  %v4748_v27 = vsel %vm1317_vm3, %v14318_v53, -inf }
 0x7cd   : > { %v4655_v25 = vpop.f32.mrb[111].mxu0 }
 0x7ce   : > { %v14324_v56 = vadd.f32 %v4655_v25, %v3986_v7  ;;  %v14336_v14 = vpop.permute.xlu1 %11437  ;;  %v14342_v25 = vpop.permute.xlu0 %11452 }
 0x7cf   : > { %16232 = vst [vmem:[#allocation110_spill] sm:$0xff] %v14342_v25 }
 0x7d0   : > { %4743 = vmax.xlane.f32.xlu1 %v4742_v37  ;;  %v4754_v15 = vsel %vm1317_vm3, %v14324_v56, -inf }
 0x7d2   : > { %v14340_v7 = vpop.permute.xlu1 %11442 }
 0x7d4   : > { %4749 = vmax.xlane.f32.xlu1 %v4748_v27 }
 0x7d6   : > { %v14344_v37 = vpop.permute.xlu1 %11457 }
 0x7d8   : > { %4755 = vmax.xlane.f32.xlu1 %v4754_v15 }
 0x7e1   : > { %11462 = vrot.lane.b32.xlu0 %v16179_v62, %s12174_s18 }
 0x7f2   : > { %v4669_v27 = vpop.xlane.xlu1 %4668 }
 0x7f3   : > { %v4666_v60 = vpop.xlane.xlu0 %4665  ;;  %v4761_v15 = vsub.f32 %v14200_v20, %v4669_v27 }
 0x7f4   : > { %v4760_v12 = vsub.f32 %v14202_v39, %v4666_v60  ;;  %v14352_v60 = vadd.f32 %v9880_v49, %v3985_v52  ;;  %v3987_v39 = vld [vmem:[#allocation2 + $0x2f8] sm:$0xff] }
 0x7f5   : > { %v4794_v57 = vmul.f32 1.442695, %v4761_v15 }
 0x7f6   : > { %v4792_v63 = vmul.f32 1.442695, %v4760_v12  ;;  %v4745_v12 = vsel %vm1317_vm3, %v14349_v50, -inf }
 0x7f7   : > { %v4675_v3 = vpop.xlane.xlu0 %4674 }
 0x7f8   : > { %11867 = vpow2.f32 %v4792_v63  ;;  %v4763_v62 = vsub.f32 %v14208_v58, %v4675_v3  ;;  %v14358_v63 = vadd.f32 %v9883_v54, %v3987_v39 }
 0x7fa   : > { %v4798_v34 = vmul.f32 1.442695, %v4763_v62  ;;  %v4751_v62 = vsel %vm1317_vm3, %v14352_v60, -inf }
 0x7fb   : > { %v4672_v48 = vpop.xlane.xlu0 %4671 }
 0x7fc   : > { %11869 = vpow2.f32 %v4798_v34  ;;  %v4762_v25 = vsub.f32 %v14212_v46, %v4672_v48 }
 0x7fd   : > { %11871 = vpow2.f32 %v4794_v57 }
 0x7fe   : > { %v4796_v35 = vmul.f32 1.442695, %v4762_v25 }
 0x800   : > { %11873 = vpow2.f32 %v4796_v35  ;;  %4746 = vmax.xlane.f32.xlu0 %v4745_v12  ;;  %v4757_v35 = vsel %vm1317_vm3, %v14358_v63, -inf }
 0x802   : > { %v14356_v3 = vpop.eup %11867 }
 0x803   : > { %v4856_v55 = vsel %vm1317_vm3, %v14356_v3, 0.0 }
 0x804   : > { %4857 = vadd.xlane.f32.xlu1 %v4856_v55  ;;  %4752 = vmax.xlane.f32.xlu0 %v4751_v62 }
 0x806   : > { %v14364_v52 = vpop.eup %11869 }
 0x807   : > { %v4865_v57 = vsel %vm1317_vm3, %v14364_v52, 0.0  ;;  %v14370_v48 = vpop.eup %11871 }
 0x808   : > { %4866 = vadd.xlane.f32.xlu1 %v4865_v57  ;;  %4758 = vmax.xlane.f32.xlu0 %v4757_v35  ;;  %v4859_v20 = vsel %vm1317_vm3, %v14370_v48, 0.0 }
 0x80a   : > { %v14372_v34 = vpop.eup %11873 }
 0x80b   : > { %v4862_v58 = vsel %vm1317_vm3, %v14372_v34, 0.0 }
 0x80c   : > { %4863 = vadd.xlane.f32.xlu1 %v4862_v58  ;;  %4860 = vadd.xlane.f32.xlu0 %v4859_v20 }
 0x824   : > { %v4681_v46 = vpop.xlane.xlu0 %4680 }
 0x825   : > { %v4765_v18 = vsub.f32 %v14216_v11, %v4681_v46  ;;  %v4678_v49 = vpop.xlane.xlu1 %4677 }
 0x826   : > { %v4764_v54 = vsub.f32 %v14220_v45, %v4678_v49 }
 0x827   : > { %v4802_v25 = vmul.f32 1.442695, %v4765_v18 }
 0x828   : > { %v4800_v27 = vmul.f32 1.442695, %v4764_v54  ;;  %v4687_v15 = vpop.xlane.xlu0 %4686 }
 0x829   : > { %11875 = vpow2.f32 %v4802_v25  ;;  %v4767_v12 = vsub.f32 %v14228_v2, %v4687_v15 }
 0x82a   : > { %11877 = vpow2.f32 %v4800_v27 }
 0x82b   : > { %v4806_v39 = vmul.f32 1.442695, %v4767_v12 }
 0x82c   : > { %v4684_v55 = vpop.xlane.xlu0 %4683 }
 0x82d   : > { %11879 = vpow2.f32 %v4806_v39  ;;  %v4766_v62 = vsub.f32 %v14232_v59, %v4684_v55 }
 0x82f   : > { %v4804_v57 = vmul.f32 1.442695, %v4766_v62 }
 0x830   : > { %v4717_v35 = vpop.xlane.xlu0 %4716 }
 0x831   : > { %11881 = vpow2.f32 %v4804_v57  ;;  %v4777_v11 = vsub.f32 %v14240_v61, %v4717_v35  ;;  %v4693_v58 = vpop.xlane.xlu1 %4692 }
 0x832   : > { %v4769_v45 = vsub.f32 %v14246_v10, %v4693_v58 }
 0x833   : > { %v14383_v20 = vpop.eup %11875  ;;  %v4826_v18 = vmul.f32 1.442695, %v4777_v11 }
 0x834   : > { %v14386_v46 = vpop.eup %11877  ;;  %v4871_v2 = vsel %vm1317_vm3, %v14383_v20, 0.0  ;;  %v4810_v49 = vmul.f32 1.442695, %v4769_v45 }
 0x835   : > { %4872 = vadd.xlane.f32.xlu0 %v4871_v2  ;;  %v4868_v59 = vsel %vm1317_vm3, %v14386_v46, 0.0  ;;  %v4699_v54 = vpop.xlane.xlu0 %4698  ;;  %v4690_v25 = vpop.xlane.xlu1 %4689 }
 0x836   : > { %4869 = vadd.xlane.f32.xlu1 %v4868_v59  ;;  %11883 = vpow2.f32 %v4810_v49  ;;  %v4771_v27 = vsub.f32 %v14254_v9, %v4699_v54  ;;  %v4768_v10 = vsub.f32 %v14250_v22, %v4690_v25 }
 0x837   : > { %v14392_v61 = vpop.eup %11879  ;;  %11885 = vpow2.f32 %v4826_v18 }
 0x838   : > { %v4877_v15 = vsel %vm1317_vm3, %v14392_v61, 0.0  ;;  %v4814_v12 = vmul.f32 1.442695, %v4771_v27  ;;  %v4808_v39 = vmul.f32 1.442695, %v4768_v10 }
 0x839   : > { %v4714_v55 = vpop.xlane.xlu1 %4713 }
 0x83a   : > { %4878 = vadd.xlane.f32.xlu1 %v4877_v15  ;;  %v4776_v57 = vsub.f32 %v14256_v38, %v4714_v55  ;;  %11887 = vpow2.f32 %v4808_v39 }
 0x83b   : > { %v14398_v62 = vpop.eup %11881  ;;  %11889 = vpow2.f32 %v4814_v12 }
 0x83c   : > { %v4874_v35 = vsel %vm1317_vm3, %v14398_v62, 0.0  ;;  %v4824_v9 = vmul.f32 1.442695, %v4776_v57 }
 0x83d   : > { %4875 = vadd.xlane.f32.xlu0 %v4874_v35  ;;  %v4696_v22 = vpop.xlane.xlu1 %4695 }
 0x83e   : > { %11891 = vpow2.f32 %v4824_v9  ;;  %v4770_v2 = vsub.f32 %v14262_v16, %v4696_v22 }
 0x840   : > { %v14403_v11 = vpop.eup %11883  ;;  %v4812_v27 = vmul.f32 1.442695, %v4770_v2 }
 0x841   : > { %v4883_v58 = vsel %vm1317_vm3, %v14403_v11, 0.0  ;;  %v14407_v45 = vpop.eup %11885 }
 0x842   : > { %4884 = vadd.xlane.f32.xlu0 %v4883_v58  ;;  %v4907_v54 = vsel %vm1317_vm3, %v14407_v45, 0.0 }
 0x844   : > { %v4723_v38 = vpop.xlane.xlu0 %4722  ;;  %v14411_v59 = vpop.eup %11887 }
 0x845   : > { %v4779_v18 = vsub.f32 %v14268_v17, %v4723_v38  ;;  %v4720_v49 = vpop.xlane.xlu1 %4719  ;;  %v14415_v25 = vpop.eup %11889  ;;  %v4880_v16 = vsel %vm1317_vm3, %v14411_v59, 0.0 }
 0x846   : > { %v4778_v15 = vsub.f32 %v14270_v44, %v4720_v49  ;;  %4908 = vadd.xlane.f32.xlu0 %v4907_v54  ;;  %4881 = vadd.xlane.f32.xlu1 %v4880_v16  ;;  %v4889_v57 = vsel %vm1317_vm3, %v14415_v25, 0.0 }
 0x847   : > { %v4830_v10 = vmul.f32 1.442695, %v4779_v18 }
 0x848   : > { %v4705_v12 = vpop.xlane.xlu0 %4704  ;;  %v14420_v39 = vpop.eup %11891  ;;  %v4828_v44 = vmul.f32 1.442695, %v4778_v15 }
 0x849   : > { %11893 = vpow2.f32 %v4830_v10  ;;  %v4773_v17 = vsub.f32 %v14272_v19, %v4705_v12  ;;  %v4702_v55 = vpop.xlane.xlu1 %4701  ;;  %v4904_v35 = vsel %vm1317_vm3, %v14420_v39, 0.0 }
 0x84a   : > { %11895 = vpow2.f32 %v4812_v27  ;;  %v4772_v22 = vsub.f32 %v14276_v6, %v4702_v55  ;;  %4890 = vadd.xlane.f32.xlu0 %v4889_v57  ;;  %4905 = vadd.xlane.f32.xlu1 %v4904_v35 }
 0x84b   : > { %v4818_v9 = vmul.f32 1.442695, %v4773_v17 }
 0x84c   : > { %v4729_v58 = vpop.xlane.xlu0 %4728  ;;  %v4816_v19 = vmul.f32 1.442695, %v4772_v22 }
 0x84d   : > { %11897 = vpow2.f32 %v4818_v9  ;;  %v4781_v2 = vsub.f32 %v14280_v4, %v4729_v58  ;;  %v4726_v38 = vpop.xlane.xlu1 %4725 }
 0x84e   : > { %11899 = vpow2.f32 %v4828_v44  ;;  %v4780_v49 = vsub.f32 %v14284_v47, %v4726_v38 }
 0x84f   : > { %v4834_v18 = vmul.f32 1.442695, %v4781_v2 }
 0x850   : > { %v4711_v54 = vpop.xlane.xlu0 %4710  ;;  %v4832_v6 = vmul.f32 1.442695, %v4780_v49 }
 0x851   : > { %11901 = vpow2.f32 %v4834_v18  ;;  %v4775_v27 = vsub.f32 %v14288_v26, %v4711_v54  ;;  %v4708_v10 = vpop.xlane.xlu1 %4707 }
 0x852   : > { %11903 = vpow2.f32 %v4816_v19  ;;  %v4774_v26 = vsub.f32 %v14292_v40, %v4708_v10 }
 0x853   : > { %v14431_v15 = vpop.eup %11893  ;;  %v4822_v16 = vmul.f32 1.442695, %v4775_v27 }
 0x854   : > { %v4735_v12 = vpop.xlane.xlu0 %4734  ;;  %v4913_v4 = vsel %vm1317_vm3, %v14431_v15, 0.0  ;;  %v14435_v17 = vpop.eup %11895  ;;  %v4820_v19 = vmul.f32 1.442695, %v4774_v26 }
 0x855   : > { %11905 = vpow2.f32 %v4822_v16  ;;  %v4783_v55 = vsub.f32 %v14296_v1, %v4735_v12  ;;  %v4732_v47 = vpop.xlane.xlu1 %4731  ;;  %4914 = vadd.xlane.f32.xlu1 %v4913_v4  ;;  %v4886_v22 = vsel %vm1317_vm3, %v14435_v17, 0.0 }
 0x856   : > { %11907 = vpow2.f32 %v4832_v6  ;;  %v4782_v40 = vsub.f32 %v14300_v28, %v4732_v47 }
 0x857   : > { %v14438_v57 = vpop.eup %11897  ;;  %v4838_v35 = vmul.f32 1.442695, %v4783_v55 }
 0x858   : > { %v4741_v44 = vpop.xlane.xlu0 %4740  ;;  %v4895_v9 = vsel %vm1317_vm3, %v14438_v57, 0.0  ;;  %v14445_v58 = vpop.eup %11899  ;;  %v4836_v16 = vmul.f32 1.442695, %v4782_v40 }
 0x859   : > { %v4785_v2 = vsub.f32 %v14304_v21, %v4741_v44  ;;  %4896 = vadd.xlane.f32.xlu0 %v4895_v9  ;;  %4887 = vadd.xlane.f32.xlu1 %v4886_v22  ;;  %v4738_v1 = vpop.xlane.xlu1 %4737  ;;  %11909 = vpow2.f32 %v4838_v35  ;;  %v4910_v54 = vsel %vm1317_vm3, %v14445_v58, 0.0 }
 0x85a   : > { %v4784_v28 = vsub.f32 %v14308_v36, %v4738_v1 }
 0x85b   : > { %v14448_v38 = vpop.eup %11901  ;;  %v4842_v18 = vmul.f32 1.442695, %v4785_v2 }
 0x85c   : > { %v4919_v49 = vsel %vm1317_vm3, %v14448_v38, 0.0  ;;  %v14455_v27 = vpop.eup %11903 }
 0x85d   : > { %11911 = vpow2.f32 %v4842_v18  ;;  %4920 = vadd.xlane.f32.xlu0 %v4919_v49  ;;  %4911 = vadd.xlane.f32.xlu1 %v4910_v54  ;;  %v4744_v21 = vpop.xlane.xlu1 %4743  ;;  %v4892_v55 = vsel %vm1317_vm3, %v14455_v27, 0.0 }
 0x85e   : > { %v4786_v10 = vsub.f32 %v14314_v8, %v4744_v21  ;;  %11913 = vpow2.f32 %v4820_v19  ;;  %v4840_v8 = vmul.f32 1.442695, %v4784_v28 }
 0x85f   : > { %v14458_v6 = vpop.eup %11905 }
 0x860   : > { %v4844_v12 = vmul.f32 1.442695, %v4786_v10  ;;  %v4901_v4 = vsel %vm1317_vm3, %v14458_v6, 0.0  ;;  %v14465_v47 = vpop.eup %11907  ;;  %v14493_v10 = vpop.permute.xlu0 %11462 }
 0x861   : > { %4902 = vadd.xlane.f32.xlu0 %v4901_v4  ;;  %4893 = vadd.xlane.f32.xlu1 %v4892_v55  ;;  %v4916_v26 = vsel %vm1317_vm3, %v14465_v47, 0.0  ;;  %v4750_v21 = vpop.xlane.xlu1 %4749 }
 0x862   : > { %11915 = vpow2.f32 %v4844_v12  ;;  %v4788_v4 = vsub.f32 %v14318_v53, %v4750_v21 }
 0x863   : > { %11917 = vpow2.f32 %v4836_v16  ;;  %v14469_v35 = vpop.eup %11909 }
 0x864   : > { %11919 = vpow2.f32 %v4840_v8  ;;  %v4925_v9 = vsel %vm1317_vm3, %v14469_v35, 0.0 }
 0x865   : > { %4917 = vadd.xlane.f32.xlu1 %v4916_v26  ;;  %v4756_v16 = vpop.xlane.xlu1 %4755 }
 0x867   : > { %v14471_v36 = vpop.eup %11911 }
 0x868   : > { %16233 = vst [vmem:[#allocation111_spill] sm:$0xff] %v14471_v36  ;;  %v4931_v44 = vsel %vm1317_vm3, %v14471_v36, 0.0  ;;  %v14477_v22 = vpop.eup %11913 }
 0x869   : > { %4932 = vadd.xlane.f32.xlu0 %v4931_v44  ;;  %4926 = vadd.xlane.f32.xlu1 %v4925_v9  ;;  %v4898_v1 = vsel %vm1317_vm3, %v14477_v22, 0.0  ;;  %v4848_v9 = vmul.f32 1.442695, %v4788_v4  ;;  %v11409_v4 = vunpack.i.l.bf16 %v14322_v42 }
 0x86c   : > { %v14479_v2 = vpop.eup %11915 }
 0x86d   : > { %16234 = vst [vmem:[#allocation112_spill] sm:$0xff] %v14479_v2  ;;  %v14483_v19 = vpop.eup %11917  ;;  %4899 = vadd.xlane.f32.xlu1 %v4898_v1  ;;  %v4934_v40 = vsel %vm1317_vm3, %v14479_v2, 0.0 }
 0x86e   : > { %4935 = vadd.xlane.f32.xlu0 %v4934_v40  ;;  %v4922_v18 = vsel %vm1317_vm3, %v14483_v19, 0.0  ;;  %v14489_v49 = vpop.eup %11919  ;;  %v4790_v40 = vsub.f32 %v14324_v56, %v4756_v16 }
 0x86f   : > { %v4928_v54 = vsel %vm1317_vm3, %v14489_v49, 0.0 }
 0x870   : > { %v4852_v2 = vmul.f32 1.442695, %v4790_v40  ;;  %v11419_v40 = vunpack.i.l.bf16 %v14328_v24 }
 0x871   : > { %4923 = vadd.xlane.f32.xlu1 %v4922_v18 }
 0x875   : > { %4929 = vadd.xlane.f32.xlu1 %v4928_v54 }
 0x88d   : > { %v4747_v28 = vpop.xlane.xlu0 %4746 }
 0x88e   : > { %v4787_v12 = vsub.f32 %v14349_v50, %v4747_v28 }
 0x890   : > { %v4846_v55 = vmul.f32 1.442695, %v4787_v12 }
 0x891   : > { %v4858_v8 = vpop.xlane.xlu1 %4857  ;;  %v4753_v26 = vpop.xlane.xlu0 %4752 }
 0x892   : > { %11921 = vpow2.f32 %v4846_v55  ;;  %v4789_v44 = vsub.f32 %v14352_v60, %v4753_v26 }
 0x893   : > { %11923 = vrcp.f32 %v4858_v8 }
 0x894   : > { %v4850_v1 = vmul.f32 1.442695, %v4789_v44 }
 0x895   : > { %v4867_v18 = vpop.xlane.xlu1 %4866  ;;  %v4759_v54 = vpop.xlane.xlu0 %4758 }
 0x896   : > { %11925 = vpow2.f32 %v4850_v1  ;;  %v11420_v1 = vunpack.i.h.bf16 %v14328_v24 }
 0x897   : > { %11927 = vpow2.f32 %v4848_v9 }
 0x898   : > { %v10740_v24 = vpack.c.bf16 %v11420_v1, %v11419_v40 }
 0x899   : > { %v4864_v36 = vpop.xlane.xlu1 %4863  ;;  %v4861_v50 = vpop.xlane.xlu0 %4860 }
 0x89a   : > { %11929 = vrcp.f32 %v4864_v36 }
 0x89b   : > { %11931 = vrcp.f32 %v4861_v50  ;;  %v11429_v50 = vunpack.i.l.bf16 %v14332_v13 }
 0x89c   : > { %v14499_v53 = vpop.eup %11921  ;;  %11933 = vpow2.f32 %v4852_v2  ;;  %v11410_v2 = vunpack.i.h.bf16 %v14322_v42 }
 0x89d   : > { %v11924_v21 = vpop.eup %11923  ;;  %v4937_v60 = vsel %vm1317_vm3, %v14499_v53, 0.0  ;;  %11935 = vrcp.f32 %v4867_v18 }
 0x89e   : > { %4938 = vadd.xlane.f32.xlu1 %v4937_v60  ;;  %v4984_v56 = vmul.f32 %v11924_v21, %v14356_v3  ;;  %v10736_v18 = vpack.c.bf16 %v11410_v2, %v11409_v4  ;;  %v11444_v21 = vunpack.i.l.bf16 %v14340_v7 }
 0x8a0   : > { %v14504_v16 = vpop.eup %11925  ;;  %9900 = vmatprep.mubr.msk.f32.mxu1 %vm1317_vm3, %v4984_v56 }
 0x8a1   : > { %v4943_v28 = vsel %vm1317_vm3, %v14504_v16, 0.0  ;;  %v14509_v36 = vpop.eup %11927 }
 0x8a2   : > { %4944 = vadd.xlane.f32.xlu0 %v4943_v28  ;;  %v4940_v55 = vsel %vm1317_vm3, %v14509_v36, 0.0 }
 0x8a4   : > { %v11930_v12 = vpop.eup %11929 }
 0x8a5   : > { %v11932_v8 = vpop.eup %11931  ;;  %v4986_v9 = vmul.f32 %v11930_v12, %v14372_v34  ;;  %v11430_v34 = vunpack.i.h.bf16 %v14332_v13  ;;  %v4791_v13 = vsub.f32 %v14358_v63, %v4759_v54  ;;  %v16235_v54 = vld [vmem:[#allocation6_spill] sm:$0xff] }
 0x8a6   : > { %4941 = vadd.xlane.f32.xlu0 %v4940_v55  ;;  %v14515_v3 = vpop.eup %11933  ;;  %v4985_v26 = vmul.f32 %v11932_v8, %v14370_v48 }
 0x8a7   : > { %v11936_v44 = vpop.eup %11935  ;;  %v4946_v42 = vsel %vm1317_vm3, %v14515_v3, 0.0  ;;  %v10744_v60 = vpack.c.bf16 %v11430_v34, %v11429_v50  ;;  %v4854_v56 = vmul.f32 1.442695, %v4791_v13  ;;  %v16236_v34 = vld [vmem:[#allocation18_spill] sm:$0xff]  ;;  %v16237_v50 = vld [vmem:[#allocation9_spill] sm:$0xff] }
 0x8a8   : > { %9901 = vmatmul.mubr.msk.f32.vlgmr.msra.gmra.mrb[80].mxu1 %vm1317_vm3, %v4985_v26  ;;  %v4987_v48 = vmul.f32 %v11936_v44, %v14364_v52 }
 0x8a9   : > { %10735 = vmatpush3.bf16.msra.mxu1 %v14150_v29  ;;  %9903 = vmatprep.mubr.msk.f32.mxu1 %vm1317_vm3, %v4986_v9  ;;  %v11445_v29 = vunpack.i.h.bf16 %v14340_v7 }
 0x8aa   : > { %10737 = vmatprep.subr.bf16.mxu1 %v10736_v18  ;;  %4947 = vadd.xlane.f32.xlu0 %v4946_v42 }
 0x8ab   : > { %v14534_v52 = vpack.c.bf16 %v11445_v29, %v11444_v21  ;;  %v11440_v21 = vunpack.i.h.bf16 %v14336_v14 }
 0x8ac   : > { %9904 = vmatmul.mubr.msk.f32.gmra.mrb[82].mxu1 %vm1317_vm3, %v4987_v48 }
 0x8ad   : > { %10739 = vmatpush3.bf16.msra.mxu1 %v10736_v18 }
 0x8ae   : > { %10741 = vmatprep.subr.bf16.mxu1 %v10740_v24 }
 0x8af   : > { %11467 = vrot.lane.b32.xlu1 %v16181_v51, %s12174_s18 }
 0x8b1   : > { %10743 = vmatpush3.bf16.msra.mxu1 %v10740_v24 }
 0x8b2   : > { %10745 = vmatprep.subr.bf16.mxu1 %v10744_v60 }
 0x8b5   : > { %10747 = vmatpush3.bf16.msra.mxu1 %v10744_v60 }
 0x8b6   : > { %10766 = vmatprep.subr.msk.bf16.mxu1 %vm12606_vm2, %v14534_v52 }
 0x8c0   : > { %11472 = vrot.lane.b32.xlu0 %v16178_v5, %s12174_s18 }
 0x8c2   : > { %v4873_v28 = vpop.xlane.xlu0 %4872 }
 0x8c3   : > { %11937 = vrcp.f32 %v4873_v28  ;;  %v4870_v12 = vpop.xlane.xlu1 %4869 }
 0x8c4   : > { %11939 = vrcp.f32 %v4870_v12  ;;  %11482 = vrot.lane.b32.xlu0 %v16186_v32, %s12174_s18  ;;  %v11450_v12 = vunpack.i.h.bf16 %v14338_v23 }
 0x8c5   : > { %11941 = vpow2.f32 %v4854_v56 }
 0x8c7   : > { %v4879_v7 = vpop.xlane.xlu1 %4878 }
 0x8c8   : > { %11487 = vrot.lane.b32.xlu0 %v16180_v0, %s12174_s18  ;;  %11943 = vrcp.f32 %v4879_v7  ;;  %v11449_v7 = vunpack.i.l.bf16 %v14338_v23 }
 0x8ca   : > { %v4876_v2 = vpop.xlane.xlu0 %4875 }
 0x8cb   : > { %11945 = vrcp.f32 %v4876_v2 }
 0x8cc   : > { %5661 = vrot.lane.b32.xlu0 %v16235_v54, %s12175_s19 }
 0x8cd   : > { %v11938_v63 = vpop.eup %11937 }
 0x8ce   : > { %v11940_v4 = vpop.eup %11939  ;;  %v4989_v44 = vmul.f32 %v11938_v63, %v14383_v20  ;;  %v11460_v63 = vunpack.i.h.bf16 %v14344_v37 }
 0x8cf   : > { %v14548_v55 = vpop.eup %11941  ;;  %v4988_v8 = vmul.f32 %v11940_v4, %v14386_v46  ;;  %v4885_v26 = vpop.xlane.xlu0 %4884 }
 0x8d0   : > { %11492 = vrot.lane.b32.xlu0 %v16191_v41, %s12174_s18  ;;  %v4949_v9 = vsel %vm1317_vm3, %v14548_v55, 0.0  ;;  %11947 = vrcp.f32 %v4885_v26  ;;  %v16240_v26 = vld [vmem:[#allocation110_spill] sm:$0xff] }
 0x8d1   : > { %9906 = vmatprep.mubr.msk.f32.mxu1 %vm1317_vm3, %v4988_v8 }
 0x8d2   : > { %9907 = vmatmul.mubr.msk.f32.gmra.mrb[84].mxu1 %vm1317_vm3, %v4989_v44  ;;  %v11944_v1 = vpop.eup %11943  ;;  %v11455_v44 = vunpack.i.h.bf16 %v16240_v26 }
 0x8d3   : > { %4950 = vadd.xlane.f32.xlu1 %v4949_v9  ;;  %v4882_v18 = vpop.xlane.xlu1 %4881  ;;  %v4909_v46 = vpop.xlane.xlu0 %4908  ;;  %v4991_v42 = vmul.f32 %v11944_v1, %v14392_v61  ;;  %v16238_v61 = vld [vmem:[#allocation8_spill] sm:$0xff]  ;;  %v11454_v9 = vunpack.i.l.bf16 %v16240_v26 }
 0x8d4   : > { %11502 = vrot.lane.b32.xlu0 %v16184_v31, %s12174_s18  ;;  %11949 = vrcp.f32 %v4882_v18  ;;  %v11465_v18 = vunpack.i.h.bf16 %v14493_v10 }
 0x8d5   : > { %v11946_v40 = vpop.eup %11945  ;;  %11951 = vrcp.f32 %v4909_v46  ;;  %v11464_v46 = vunpack.i.l.bf16 %v14493_v10 }
 0x8d6   : > { %v4990_v20 = vmul.f32 %v11946_v40, %v14398_v62  ;;  %v11439_v62 = vunpack.i.l.bf16 %v14336_v14  ;;  %v11459_v14 = vunpack.i.l.bf16 %v14344_v37  ;;  %v10756_v37 = vpack.c.bf16 %v11450_v12, %v11449_v7  ;;  %v16242_v40 = vld [vmem:[#allocation12_spill] sm:$0xff] }
 0x8d7   : > { %v4906_v48 = vpop.xlane.xlu1 %4905  ;;  %v4891_v54 = vpop.xlane.xlu0 %4890 }
 0x8d8   : > { %9909 = vmatprep.mubr.msk.f32.mxu1 %vm1317_vm3, %v4990_v20  ;;  %5830 = vrot.lane.b32.xlu0 %v16236_v34, %s12175_s19  ;;  %11953 = vrcp.f32 %v4906_v48  ;;  %v10752_v4 = vpack.c.bf16 %v11440_v21, %v11439_v62  ;;  %v10770_v1 = vpack.c.bf16 %v11460_v63, %v11459_v14  ;;  %v10760_v20 = vpack.c.bf16 %v11455_v44, %v11454_v9  ;;  %v16244_v34 = vld [vmem:[#allocation11_spill] sm:$0xff] }
 0x8d9   : > { %9910 = vmatmul.mubr.msk.f32.gmra.mrb[86].mxu1 %vm1317_vm3, %v4991_v42  ;;  %11955 = vrcp.f32 %v4891_v54  ;;  %v16243_v42 = vld [vmem:[#allocation34_spill] sm:$0xff]  ;;  %v16246_v62 = vld [vmem:[#allocation15_spill] sm:$0xff] }
 0x8da   : > { %v11948_v24 = vpop.eup %11947 }
 0x8db   : > { %v4993_v13 = vmul.f32 %v11948_v24, %v14403_v11  ;;  %v16239_v11 = vld [vmem:[#allocation40_spill] sm:$0xff]  ;;  %v16245_v24 = vld [vmem:[#allocation43_spill] sm:$0xff] }
 0x8dc   : > { %5665 = vrot.lane.b32.xlu0 %v16237_v50, %s12175_s19  ;;  %v10776_v50 = vpack.c.bf16 %v11465_v18, %v11464_v46  ;;  %v16256_v46 = vld [vmem:[#allocation36_spill] sm:$0xff] }
 0x8de   : > { %v11950_v29 = vpop.eup %11949 }
 0x8df   : > { %v4992_v60 = vmul.f32 %v11950_v29, %v14411_v59  ;;  %v11952_v28 = vpop.eup %11951 }
 0x8e0   : > { %5667 = vrot.lane.b32.xlu0 %v16238_v61, %s12175_s19  ;;  %v5001_v59 = vmul.f32 %v11952_v28, %v14407_v45 }
 0x8e1   : > { %9928 = vmatprep.mubr.msk.f32.mxu0 %vm1317_vm3, %v4992_v60  ;;  %v16247_v60 = vld [vmem:[#allocation17_spill] sm:$0xff] }
 0x8e2   : > { %v4915_v56 = vpop.xlane.xlu1 %4914  ;;  %v11954_v2 = vpop.eup %11953  ;;  %9929 = vmatmul.mubr.msk.f32.vlgmr.msra.gmra.mrb[112].mxu0 %vm1317_vm3, %v4993_v13 }
 0x8e3   : > { %10751 = vmatpush3.bf16.msra.mxu0 %v14153_v43  ;;  %v5000_v23 = vmul.f32 %v11954_v2, %v14420_v39  ;;  %v16241_v43 = vld [vmem:[#allocation5_spill] sm:$0xff]  ;;  %v11956_v29 = vpop.eup %11955  ;;  %v16248_v2 = vld [vmem:[#allocation14_spill] sm:$0xff] }
 0x8e4   : > { %11477 = vrot.lane.b32.xlu1 %v16183_v33, %s12174_s18  ;;  %11512 = vrot.lane.b32.xlu0 %v16239_v11, %s12174_s18  ;;  %v4995_v13 = vmul.f32 %v11956_v29, %v14415_v25 }
 0x8e5   : > { %10753 = vmatprep.subr.bf16.mxu0 %v10752_v4  ;;  %9956 = vmatprep.mubr.msk.f32.mxu1 %vm1317_vm3, %v5000_v23 }
 0x8e6   : > { %v4888_v8 = vpop.xlane.xlu1 %4887  ;;  %9957 = vmatmul.mubr.msk.f32.vlgmr.msra.gmra.mrb[88].mxu1 %vm1317_vm3, %v5001_v59  ;;  %v4897_v39 = vpop.xlane.xlu0 %4896  ;;  %v16250_v59 = vld [vmem:[#allocation49_spill] sm:$0xff] }
 0x8e7   : > { %11957 = vrcp.f32 %v4888_v8  ;;  %10755 = vmatpush3.bf16.msra.mxu0 %v10752_v4  ;;  %10769 = vmatpush3.bf16.xpose.msk.msra.mxu1 %vm12606_vm2, %v14534_v52 }
 0x8e8   : > { %5663 = vrot.lane.b32.xlu1 %v16241_v43, %s12175_s19  ;;  %10757 = vmatprep.subr.bf16.mxu0 %v10756_v37  ;;  %11959 = vrcp.f32 %v4915_v56  ;;  %v16252_v43 = vld [vmem:[#allocation29_spill] sm:$0xff] }
 0x8e9   : > { %10772 = vmatprep.subr.msk.bf16.mxu1 %vm12606_vm2, %v10770_v1  ;;  %5669 = vrot.lane.b32.xlu0 %v16242_v40, %s12175_s19  ;;  %v16255_v40 = vld [vmem:[#allocation24_spill] sm:$0xff] }
 0x8ea   : > { %v4912_v45 = vpop.xlane.xlu1 %4911  ;;  %v4921_v48 = vpop.xlane.xlu0 %4920 }
 0x8eb   : > { %11961 = vrcp.f32 %v4912_v45  ;;  %10759 = vmatpush3.bf16.msra.mxu0 %v10756_v37  ;;  %v16254_v45 = vld [vmem:[#allocation32_spill] sm:$0xff] }
 0x8ec   : > { %11497 = vrot.lane.b32.xlu1 %v16243_v42, %s12174_s18  ;;  %10761 = vmatprep.subr.bf16.mxu0 %v10760_v20  ;;  %11963 = vrcp.f32 %v4897_v39  ;;  %v16253_v39 = vld [vmem:[#allocation46_spill] sm:$0xff] }
 0x8ed   : > { %5671 = vrot.lane.b32.xlu0 %v16244_v34, %s12175_s19 }
 0x8ee   : > { %v4894_v52 = vpop.xlane.xlu1 %4893  ;;  %v4903_v28 = vpop.xlane.xlu0 %4902 }
 0x8ef   : > { %11965 = vrcp.f32 %v4894_v52  ;;  %10763 = vmatpush3.bf16.msra.mxu0 %v10760_v20  ;;  %10775 = vmatpush3.bf16.xpose.msk.msra.mxu1 %vm12606_vm2, %v10770_v1 }
 0x8f0   : > { %11507 = vrot.lane.b32.xlu1 %v16245_v24, %s12174_s18  ;;  %11967 = vrcp.f32 %v4921_v48  ;;  %10778 = vmatprep.subr.msk.bf16.mxu1 %vm12606_vm2, %v10776_v50  ;;  %v16257_v48 = vld [vmem:[#allocation23_spill] sm:$0xff] }
 0x8f1   : > { %v11958_v10 = vpop.eup %11957  ;;  %5673 = vrot.lane.b32.xlu0 %v16246_v62, %s12175_s19 }
 0x8f2   : > { %v4918_v21 = vpop.xlane.xlu1 %4917  ;;  %v4994_v61 = vmul.f32 %v11958_v10, %v14435_v17  ;;  %v11960_v56 = vpop.eup %11959  ;;  %v16249_v17 = vld [vmem:[#allocation21_spill] sm:$0xff]  ;;  %v16258_v10 = vld [vmem:[#allocation39_spill] sm:$0xff] }
 0x8f3   : > { %11969 = vrcp.f32 %v4918_v21  ;;  %v5003_v14 = vmul.f32 %v11960_v56, %v14431_v15  ;;  %v16251_v15 = vld [vmem:[#allocation20_spill] sm:$0xff]  ;;  %v16262_v56 = vld [vmem:[#allocation26_spill] sm:$0xff] }
 0x8f4   : > { %5832 = vrot.lane.b32.xlu1 %v16247_v60, %s12175_s19  ;;  %9931 = vmatprep.mubr.msk.f32.mxu0 %vm1317_vm3, %v4994_v61  ;;  %11971 = vrcp.f32 %v4903_v28  ;;  %v16260_v60 = vld [vmem:[#allocation111_spill] sm:$0xff] }
 0x8f5   : > { %v11962_v12 = vpop.eup %11961  ;;  %9932 = vmatmul.mubr.msk.f32.gmra.mrb[114].mxu0 %vm1317_vm3, %v4995_v13  ;;  %5675 = vrot.lane.b32.xlu0 %v16248_v2, %s12175_s19  ;;  %v16267_v2 = vld [vmem:[#allocation33_spill] sm:$0xff] }
 0x8f6   : > { %v4927_v7 = vpop.xlane.xlu1 %4926  ;;  %v5002_v63 = vmul.f32 %v11962_v12, %v14445_v58  ;;  %v11964_v54 = vpop.eup %11963  ;;  %v16264_v12 = vld [vmem:[#allocation45_spill] sm:$0xff] }
 0x8f7   : > { %v4933_v25 = vpop.xlane.xlu0 %4932  ;;  %10781 = vmatpush3.bf16.xpose.msk.msra.mxu1 %vm12606_vm2, %v10776_v50  ;;  %v4997_v37 = vmul.f32 %v11964_v54, %v14438_v57  ;;  %v16271_v54 = vld [vmem:[#allocation38_spill] sm:$0xff] }
 0x8f8   : > { %5834 = vrot.lane.b32.xlu1 %v16249_v17, %s12175_s19  ;;  %9959 = vmatprep.mubr.msk.f32.mxu1 %vm1317_vm3, %v5002_v63  ;;  %v16268_v63 = vld [vmem:[#allocation51_spill] sm:$0xff]  ;;  %v16269_v17 = vld [vmem:[#allocation52_spill] sm:$0xff] }
 0x8f9   : > { %v11966_v4 = vpop.eup %11965  ;;  %9960 = vmatmul.mubr.msk.f32.gmra.mrb[90].mxu1 %vm1317_vm3, %v5003_v14  ;;  %11522 = vrot.lane.b32.xlu0 %v16250_v59, %s12174_s18  ;;  %v16270_v14 = vld [vmem:[#allocation35_spill] sm:$0xff] }
 0x8fa   : > { %v4900_v23 = vpop.xlane.xlu1 %4899  ;;  %v4996_v58 = vmul.f32 %v11966_v4, %v14455_v27  ;;  %v11968_v8 = vpop.eup %11967 }
 0x8fb   : > { %11973 = vrcp.f32 %v4900_v23  ;;  %v4936_v1 = vpop.xlane.xlu0 %4935  ;;  %v5005_v27 = vmul.f32 %v11968_v8, %v14448_v38 }
 0x8fc   : > { %5836 = vrot.lane.b32.xlu1 %v16251_v15, %s12175_s19  ;;  %9934 = vmatprep.mubr.msk.f32.mxu0 %vm1317_vm3, %v4996_v58  ;;  %11975 = vrcp.f32 %v4927_v7  ;;  %v16266_v7 = vld [vmem:[#allocation48_spill] sm:$0xff] }
 0x8fd   : > { %v11970_v26 = vpop.eup %11969  ;;  %9935 = vmatmul.mubr.msk.f32.gmra.mrb[116].mxu0 %vm1317_vm3, %v4997_v37  ;;  %6001 = vrot.lane.b32.xlu0 %v16252_v43, %s12175_s19  ;;  %v16277_v43 = vld [vmem:[#allocation10_spill] sm:$0xff] }
 0x8fe   : > { %v4924_v44 = vpop.xlane.xlu1 %4923  ;;  %v5004_v9 = vmul.f32 %v11970_v26, %v14465_v47  ;;  %v11972_v47 = vpop.eup %11971 }
 0x8ff   : > { %11977 = vrcp.f32 %v4924_v44  ;;  %v4999_v20 = vmul.f32 %v11972_v47, %v14458_v6  ;;  %v16259_v6 = vld [vmem:[#allocation27_spill] sm:$0xff] }
 0x900   : > { %11517 = vrot.lane.b32.xlu1 %v16253_v39, %s12174_s18  ;;  %9962 = vmatprep.mubr.msk.f32.mxu1 %vm1317_vm3, %v5004_v9  ;;  %11979 = vrcp.f32 %v4933_v25  ;;  %v16272_v25 = vld [vmem:[#allocation41_spill] sm:$0xff]  ;;  %v16276_v9 = vld [vmem:[#allocation7_spill] sm:$0xff] }
 0x901   : > { %9963 = vmatmul.mubr.msk.f32.gmra.mrb[92].mxu1 %vm1317_vm3, %v5005_v27  ;;  %11981 = vrcp.f32 %v4936_v1  ;;  %6005 = vrot.lane.b32.xlu0 %v16254_v45, %s12175_s19 }
 0x902   : > { %v4930_v57 = vpop.xlane.xlu1 %4929 }
 0x903   : > { %11983 = vrcp.f32 %v4930_v57 }
 0x904   : > { %5838 = vrot.lane.b32.xlu1 %v16255_v40, %s12175_s19 }
 0x905   : > { %v11974_v18 = vpop.eup %11973  ;;  %6007 = vrot.lane.b32.xlu0 %v16256_v46, %s12175_s19 }
 0x906   : > { %v4998_v38 = vmul.f32 %v11974_v18, %v14477_v22  ;;  %v11976_v52 = vpop.eup %11975 }
 0x907   : > { %v5007_v22 = vmul.f32 %v11976_v52, %v14469_v35  ;;  %v16263_v35 = vld [vmem:[#allocation112_spill] sm:$0xff] }
 0x908   : > { %5840 = vrot.lane.b32.xlu1 %v16257_v48, %s12175_s19  ;;  %9937 = vmatprep.mubr.msk.f32.mxu0 %vm1317_vm3, %v4998_v38 }
 0x909   : > { %v11978_v34 = vpop.eup %11977  ;;  %9938 = vmatmul.mubr.msk.f32.gmra.mrb[118].mxu0 %vm1317_vm3, %v4999_v20  ;;  %6011 = vrot.lane.b32.xlu0 %v16258_v10, %s12175_s19 }
 0x90a   : > { %v5006_v50 = vmul.f32 %v11978_v34, %v14483_v19  ;;  %v11980_v29 = vpop.eup %11979  ;;  %v16261_v19 = vld [vmem:[#allocation42_spill] sm:$0xff] }
 0x90b   : > { %v11982_v21 = vpop.eup %11981  ;;  %v5009_v13 = vmul.f32 %v11980_v29, %v16260_v60 }
 0x90c   : > { %5842 = vrot.lane.b32.xlu1 %v16259_v6, %s12175_s19  ;;  %9965 = vmatprep.mubr.msk.f32.mxu1 %vm1317_vm3, %v5006_v50  ;;  %v5010_v28 = vmul.f32 %v11982_v21, %v16263_v35 }
 0x90d   : > { %v11984_v62 = vpop.eup %11983  ;;  %9966 = vmatmul.mubr.msk.f32.gmra.mrb[94].mxu1 %vm1317_vm3, %v5007_v22  ;;  %6168 = vrot.lane.b32.xlu0 %v16261_v19, %s12175_s19 }
 0x90e   : > { %v5008_v61 = vmul.f32 %v11984_v62, %v14489_v49  ;;  %v16265_v49 = vld [vmem:[#allocation30_spill] sm:$0xff] }
 0x910   : > { %5844 = vrot.lane.b32.xlu1 %v16262_v56, %s12175_s19  ;;  %9984 = vmatprep.mubr.msk.f32.mxu0 %vm1317_vm3, %v5008_v61 }
 0x911   : > { %9985 = vmatmul.mubr.msk.f32.vlgmr.msra.gmra.mrb[120].mxu0 %vm1317_vm3, %v5009_v13  ;;  %6172 = vrot.lane.b32.xlu0 %v16264_v12, %s12175_s19 }
 0x912   : > { %9987 = vmatprep.mubr.msk.f32.mxu0 %vm1317_vm3, %v5010_v28 }
 0x914   : > { %5999 = vrot.lane.b32.xlu1 %v16265_v49, %s12175_s19 }
 0x915   : > { %6176 = vrot.lane.b32.xlu0 %v16266_v7, %s12175_s19 }
 0x918   : > { %6003 = vrot.lane.b32.xlu1 %v16267_v2, %s12175_s19 }
 0x919   : > { %6180 = vrot.lane.b32.xlu0 %v16268_v63, %s12175_s19 }
 0x91c   : > { %11527 = vrot.lane.b32.xlu1 %v16269_v17, %s12174_s18 }
 0x91d   : > { %11537 = vrot.lane.b32.xlu0 %v16181_v51, %s12176_s20  ;;  %v16273_v51 = vld [vmem:[#allocation44_spill] sm:$0xff] }
 0x920   : > { %6009 = vrot.lane.b32.xlu1 %v16270_v14, %s12175_s19 }
 0x921   : > { %11547 = vrot.lane.b32.xlu0 %v16183_v33, %s12176_s20 }
 0x924   : > { %6013 = vrot.lane.b32.xlu1 %v16271_v54, %s12175_s19 }
 0x925   : > { %11557 = vrot.lane.b32.xlu0 %v16186_v32, %s12176_s20  ;;  %v16274_v32 = vld [vmem:[#allocation47_spill] sm:$0xff] }
 0x928   : > { %6170 = vrot.lane.b32.xlu1 %v16272_v25, %s12175_s19 }
 0x929   : > { %11567 = vrot.lane.b32.xlu0 %v16191_v41, %s12176_s20  ;;  %v16275_v41 = vld [vmem:[#allocation50_spill] sm:$0xff] }
 0x92b   : > { %v4939_v4 = vpop.xlane.xlu1 %4938 }
 0x92c   : > { %11985 = vrcp.f32 %v4939_v4  ;;  %6174 = vrot.lane.b32.xlu1 %v16273_v51, %s12175_s19 }
 0x92d   : > { %11577 = vrot.lane.b32.xlu0 %v16243_v42, %s12176_s20 }
 0x92f   : > { %v4945_v33 = vpop.xlane.xlu0 %4944  ;;  %v11468_v23 = vpop.permute.xlu1 %11467 }
 0x930   : > { %v11470_v58 = vunpack.i.h.bf16 %v11468_v23  ;;  %v11469_v8 = vunpack.i.l.bf16 %v11468_v23  ;;  %6178 = vrot.lane.b32.xlu1 %v16274_v32, %s12175_s19  ;;  %11987 = vrcp.f32 %v4945_v33 }
 0x932   : > { %v10788_v15 = vpack.c.bf16 %v11470_v58, %v11469_v8 }
 0x933   : > { %v4942_v37 = vpop.xlane.xlu0 %4941 }
 0x934   : > { %11989 = vrcp.f32 %v4942_v37  ;;  %6182 = vrot.lane.b32.xlu1 %v16275_v41, %s12175_s19  ;;  %10790 = vmatprep.subr.msk.bf16.mxu0 %vm12606_vm2, %v10788_v15 }
 0x935   : > { %10793 = vmatpush3.bf16.xpose.msk.msra.mxu0 %vm12606_vm2, %v10788_v15 }
 0x936   : > { %v11986_v42 = vpop.eup %11985 }
 0x937   : > { %v5011_v26 = vmul.f32 %v11986_v42, %v14499_v53  ;;  %v4948_v44 = vpop.xlane.xlu0 %4947  ;;  %v16278_v53 = vld [vmem:[#allocation13_spill] sm:$0xff] }
 0x938   : > { %11532 = vrot.lane.b32.xlu1 %v16276_v9, %s12176_s20  ;;  %11991 = vrcp.f32 %v4948_v44 }
 0x939   : > { %9988 = vmatmul.mubr.msk.f32.gmra.mrb[122].mxu0 %vm1317_vm3, %v5011_v26 }
 0x93a   : > { %v11988_v27 = vpop.eup %11987 }
 0x93b   : > { %v11473_v1 = vpop.permute.xlu0 %11472  ;;  %v5013_v46 = vmul.f32 %v11988_v27, %v14504_v16 }
 0x93c   : > { %11542 = vrot.lane.b32.xlu1 %v16277_v43, %s12176_s20  ;;  %v11475_v57 = vunpack.i.h.bf16 %v11473_v1  ;;  %v11474_v45 = vunpack.i.l.bf16 %v11473_v1 }
 0x93e   : > { %v11990_v47 = vpop.eup %11989  ;;  %v10782_v40 = vpack.c.bf16 %v11475_v57, %v11474_v45 }
 0x93f   : > { %v5012_v18 = vmul.f32 %v11990_v47, %v14509_v36  ;;  %v11483_v38 = vpop.permute.xlu0 %11482 }
 0x940   : > { %11552 = vrot.lane.b32.xlu1 %v16278_v53, %s12176_s20  ;;  %10784 = vmatprep.subr.msk.bf16.mxu1 %vm12606_vm2, %v10782_v40  ;;  %v11485_v13 = vunpack.i.h.bf16 %v11483_v38  ;;  %v11484_v19 = vunpack.i.l.bf16 %v11483_v38 }
 0x941   : > { %9990 = vmatprep.mubr.msk.f32.mxu0 %vm1317_vm3, %v5012_v18  ;;  %10787 = vmatpush3.bf16.xpose.msk.msra.mxu1 %vm12606_vm2, %v10782_v40 }
 0x942   : > { %9991 = vmatmul.mubr.msk.f32.gmra.mrb[124].mxu0 %vm1317_vm3, %v5013_v46  ;;  %v11992_v20 = vpop.eup %11991 }
 0x943   : > { %v11488_v52 = vpop.permute.xlu0 %11487  ;;  %v5014_v36 = vmul.f32 %v11992_v20, %v14515_v3 }
 0x944   : > { %11562 = vrot.lane.b32.xlu1 %v16178_v5, %s12176_s20  ;;  %v11490_v48 = vunpack.i.h.bf16 %v11488_v52  ;;  %v11489_v34 = vunpack.i.l.bf16 %v11488_v52 }
 0x945   : > { %9993 = vmatprep.mubr.msk.f32.mxu0 %vm1317_vm3, %v5014_v36 }
 0x946   : > { %v10812_v16 = vpack.c.bf16 %v11490_v48, %v11489_v34 }
 0x947   : > { %v5662_v50 = vpop.permute.xlu0 %5661 }
 0x948   : > { %11572 = vrot.lane.b32.xlu1 %v16180_v0, %s12176_s20  ;;  %10012 = vmatprep.mubr.msk.f32.mxu1 %vm696_vm1, %v5662_v50 }
 0x949   : > { %10814 = vmatprep.subr.msk.bf16.mxu1 %vm12606_vm2, %v10812_v16 }
 0x94b   : > { %v11493_v29 = vpop.permute.xlu0 %11492 }
 0x94c   : > { %11582 = vrot.lane.b32.xlu1 %v16184_v31, %s12176_s20  ;;  %v10800_v31 = vpack.c.bf16 %v11485_v13, %v11484_v19  ;;  %v11495_v25 = vunpack.i.h.bf16 %v11493_v29  ;;  %v11494_v4 = vunpack.i.l.bf16 %v11493_v29 }
 0x94f   : > { %v11503_v5 = vpop.permute.xlu0 %11502 }
 0x950   : > { %11587 = vrot.lane.b32.xlu1 %v16239_v11, %s12176_s20  ;;  %v11505_v2 = vunpack.i.h.bf16 %v11503_v5  ;;  %v11504_v63 = vunpack.i.l.bf16 %v11503_v5 }
 0x952   : > { %v10824_v58 = vpack.c.bf16 %v11505_v2, %v11504_v63 }
 0x953   : > { %v5831_v3 = vpop.permute.xlu0 %5830 }
 0x957   : > { %v5666_v10 = vpop.permute.xlu0 %5665 }
 0x95b   : > { %v5668_v22 = vpop.permute.xlu0 %5667 }
 0x95f   : > { %v11513_v21 = vpop.permute.xlu0 %11512 }
 0x960   : > { %v4951_v6 = vpop.xlane.xlu1 %4950  ;;  %v11515_v15 = vunpack.i.h.bf16 %v11513_v21  ;;  %v11514_v37 = vunpack.i.l.bf16 %v11513_v21 }
 0x961   : > { %11993 = vrcp.f32 %v4951_v6 }
 0x962   : > { %v10830_v9 = vpack.c.bf16 %v11515_v15, %v11514_v37 }
 0x963   : > { %v5670_v0 = vpop.permute.xlu0 %5669 }
 0x964   : > { %v11478_v62 = vpop.permute.xlu1 %11477 }
 0x965   : > { %v11480_v61 = vunpack.i.h.bf16 %v11478_v62  ;;  %v11479_v60 = vunpack.i.l.bf16 %v11478_v62 }
 0x967   : > { %v10794_v56 = vpack.c.bf16 %v11480_v61, %v11479_v60  ;;  %v5672_v35 = vpop.permute.xlu0 %5671 }
 0x968   : > { %v5664_v28 = vpop.permute.xlu1 %5663 }
 0x969   : > { %10013 = vmatmul.mubr.msk.f32.vlgmr.msra.gmra.mrb[96].mxu1 %vm696_vm1, %v5664_v28  ;;  %10796 = vmatprep.subr.msk.bf16.mxu0 %vm12606_vm2, %v10794_v56 }
 0x96a   : > { %10817 = vmatpush3.bf16.xpose.msk.msra.mxu1 %vm12606_vm2, %v10812_v16  ;;  %10015 = vmatprep.mubr.msk.f32.mxu1 %vm696_vm1, %v5666_v10 }
 0x96b   : > { %v11994_v11 = vpop.eup %11993  ;;  %10799 = vmatpush3.bf16.xpose.msk.msra.mxu0 %vm12606_vm2, %v10794_v56  ;;  %v5674_v12 = vpop.permute.xlu0 %5673 }
 0x96c   : > { %10802 = vmatprep.subr.msk.bf16.mxu0 %vm12606_vm2, %v10800_v31  ;;  %v11498_v49 = vpop.permute.xlu1 %11497  ;;  %v5015_v7 = vmul.f32 %v11994_v11, %v14548_v55  ;;  %v10806_v55 = vpack.c.bf16 %v11495_v25, %v11494_v4 }
 0x96d   : > { %v11500_v14 = vunpack.i.h.bf16 %v11498_v49  ;;  %v11499_v54 = vunpack.i.l.bf16 %v11498_v49  ;;  %10016 = vmatmul.mubr.msk.f32.gmra.mrb[98].mxu1 %vm696_vm1, %v5668_v22 }
 0x96e   : > { %9994 = vmatmul.mubr.msk.f32.gmra.mrb[126].mxu0 %vm1317_vm3, %v5015_v7  ;;  %10018 = vmatprep.mubr.msk.f32.mxu1 %vm696_vm1, %v5670_v0 }
 0x96f   : > { %v10818_v51 = vpack.c.bf16 %v11500_v14, %v11499_v54  ;;  %10040 = vmatprep.mubr.msk.f32.mxu0 %vm696_vm1, %v5831_v3  ;;  %v5676_v33 = vpop.permute.xlu0 %5675 }
 0x970   : > { %v11508_v23 = vpop.permute.xlu1 %11507 }
 0x971   : > { %10019 = vmatmul.mubr.msk.f32.gmra.mrb[100].mxu1 %vm696_vm1, %v5672_v35  ;;  %10820 = vmatprep.subr.msk.bf16.mxu1 %vm12606_vm2, %v10818_v51  ;;  %v11510_v41 = vunpack.i.h.bf16 %v11508_v23  ;;  %v11509_v42 = vunpack.i.l.bf16 %v11508_v23 }
 0x972   : > { %10021 = vmatprep.mubr.msk.f32.mxu1 %vm696_vm1, %v5674_v12  ;;  %10823 = vmatpush3.bf16.xpose.msk.msra.mxu1 %vm12606_vm2, %v10818_v51 }
 0x973   : > { %10805 = vmatpush3.bf16.xpose.msk.msra.mxu0 %vm12606_vm2, %v10800_v31  ;;  %10826 = vmatprep.subr.msk.bf16.mxu1 %vm12606_vm2, %v10824_v58  ;;  %v11523_v8 = vpop.permute.xlu0 %11522  ;;  %v10836_v1 = vpack.c.bf16 %v11510_v41, %v11509_v42 }
 0x974   : > { %10808 = vmatprep.subr.msk.bf16.mxu0 %vm12606_vm2, %v10806_v55  ;;  %v5833_v32 = vpop.permute.xlu1 %5832  ;;  %v11525_v48 = vunpack.i.h.bf16 %v11523_v8  ;;  %v11524_v34 = vunpack.i.l.bf16 %v11523_v8 }
 0x975   : > { %10022 = vmatmul.mubr.msk.f32.gmra.mrb[102].mxu1 %vm696_vm1, %v5676_v33 }
 0x976   : > { %v10848_v29 = vpack.c.bf16 %v11525_v48, %v11524_v34 }
 0x977   : > { %v6002_v26 = vpop.permute.xlu0 %6001 }
 0x978   : > { %v5835_v44 = vpop.permute.xlu1 %5834 }
 0x97a   : > { %10829 = vmatpush3.bf16.xpose.msk.msra.mxu1 %vm12606_vm2, %v10824_v58 }
 0x97b   : > { %10811 = vmatpush3.bf16.xpose.msk.msra.mxu0 %vm12606_vm2, %v10806_v55  ;;  %10832 = vmatprep.subr.msk.bf16.mxu1 %vm12606_vm2, %v10830_v9  ;;  %v14777_v43 = vpop.f32.mrb[80].mxu1  ;;  %v6006_v27 = vpop.permute.xlu0 %6005 }
 0x97c   : > { %10838 = vmatprep.subr.msk.bf16.mxu0 %vm12606_vm2, %v10836_v1  ;;  %v14781_v57 = vpop.f32.mrb[81].mxu1  ;;  %v5837_v45 = vpop.permute.xlu1 %5836 }
 0x97f   : > { %v14783_v47 = vpop.f32.mrb[82].mxu1  ;;  %v6008_v40 = vpop.permute.xlu0 %6007 }
 0x980   : > { %v14785_v18 = vpop.f32.mrb[83].mxu1  ;;  %v11518_v38 = vpop.permute.xlu1 %11517 }
 0x981   : > { %v11520_v53 = vunpack.i.h.bf16 %v11518_v38  ;;  %v11519_v46 = vunpack.i.l.bf16 %v11518_v38 }
 0x982   : > { %10041 = vmatmul.mubr.msk.f32.vlgmr.msra.gmra.mrb[128].mxu0 %vm696_vm1, %v5833_v32  ;;  %10835 = vmatpush3.bf16.xpose.msk.msra.mxu1 %vm12606_vm2, %v10830_v9 }
 0x983   : > { %10043 = vmatprep.mubr.msk.f32.mxu0 %vm696_vm1, %v5835_v44  ;;  %10841 = vmatpush3.bf16.xpose.msk.msra.mxu0 %vm12606_vm2, %v10836_v1  ;;  %v10842_v20 = vpack.c.bf16 %v11520_v53, %v11519_v46  ;;  %v6012_v52 = vpop.permute.xlu0 %6011 }
 0x984   : > { %v5839_v36 = vpop.permute.xlu1 %5838 }
 0x985   : > { %10844 = vmatprep.subr.msk.bf16.mxu0 %vm12606_vm2, %v10842_v20 }
 0x986   : > { %10044 = vmatmul.mubr.msk.f32.gmra.mrb[130].mxu0 %vm696_vm1, %v5837_v45 }
 0x987   : > { %10046 = vmatprep.mubr.msk.f32.mxu0 %vm696_vm1, %v5839_v36  ;;  %v6169_v16 = vpop.permute.xlu0 %6168 }
 0x988   : > { %v5841_v50 = vpop.permute.xlu1 %5840 }
 0x98a   : > { %10047 = vmatmul.mubr.msk.f32.gmra.mrb[132].mxu0 %vm696_vm1, %v5841_v50 }
 0x98b   : > { %10847 = vmatpush3.bf16.xpose.msk.msra.mxu0 %vm12606_vm2, %v10842_v20  ;;  %v6173_v5 = vpop.permute.xlu0 %6172 }
 0x98c   : > { %10850 = vmatprep.subr.msk.bf16.mxu0 %vm12606_vm2, %v10848_v29  ;;  %v5843_v3 = vpop.permute.xlu1 %5842 }
 0x98d   : > { %10049 = vmatprep.mubr.msk.f32.mxu0 %vm696_vm1, %v5843_v3 }
 0x98f   : > { %v6177_v10 = vpop.permute.xlu0 %6176 }
 0x990   : > { %v5845_v22 = vpop.permute.xlu1 %5844 }
 0x991   : > { %10050 = vmatmul.mubr.msk.f32.gmra.mrb[134].mxu0 %vm696_vm1, %v5845_v22 }
 0x992   : > { %10096 = vmatprep.mubr.msk.f32.mxu0 %vm696_vm1, %v6169_v16 }
 0x993   : > { %10853 = vmatpush3.bf16.xpose.msk.msra.mxu0 %vm12606_vm2, %v10848_v29  ;;  %v6181_v21 = vpop.permute.xlu0 %6180 }
 0x994   : > { %v6000_v6 = vpop.permute.xlu1 %5999 }
 0x995   : > { %10068 = vmatprep.mubr.msk.f32.mxu1 %vm696_vm1, %v6000_v6 }
 0x996   : > { %10069 = vmatmul.mubr.msk.f32.vlgmr.msra.gmra.mrb[104].mxu1 %vm696_vm1, %v6002_v26 }
 0x997   : > { %v11538_v0 = vpop.permute.xlu0 %11537 }
 0x998   : > { %v6004_v62 = vpop.permute.xlu1 %6003  ;;  %v11540_v60 = vunpack.i.h.bf16 %v11538_v0  ;;  %v11539_v13 = vunpack.i.l.bf16 %v11538_v0 }
 0x999   : > { %10071 = vmatprep.mubr.msk.f32.mxu1 %vm696_vm1, %v6004_v62 }
 0x99a   : > { %10072 = vmatmul.mubr.msk.f32.gmra.mrb[106].mxu1 %vm696_vm1, %v6006_v27  ;;  %v10876_v11 = vpack.c.bf16 %v11540_v60, %v11539_v13 }
 0x99b   : > { %10074 = vmatprep.mubr.msk.f32.mxu1 %vm696_vm1, %v6008_v40  ;;  %v11548_v19 = vpop.permute.xlu0 %11547 }
 0x99c   : > { %v11528_v61 = vpop.permute.xlu1 %11527  ;;  %v11550_v2 = vunpack.i.h.bf16 %v11548_v19  ;;  %v11549_v63 = vunpack.i.l.bf16 %v11548_v19 }
 0x99d   : > { %v11530_v56 = vunpack.i.h.bf16 %v11528_v61  ;;  %v11529_v35 = vunpack.i.l.bf16 %v11528_v61 }
 0x99e   : > { %v10880_v51 = vpack.c.bf16 %v11550_v2, %v11549_v63 }
 0x99f   : > { %v10854_v28 = vpack.c.bf16 %v11530_v56, %v11529_v35  ;;  %v11558_v12 = vpop.permute.xlu0 %11557 }
 0x9a0   : > { %v6010_v31 = vpop.permute.xlu1 %6009  ;;  %v11560_v25 = vunpack.i.h.bf16 %v11558_v12  ;;  %v11559_v4 = vunpack.i.l.bf16 %v11558_v12 }
 0x9a1   : > { %10075 = vmatmul.mubr.msk.f32.gmra.mrb[108].mxu1 %vm696_vm1, %v6010_v31  ;;  %10856 = vmatprep.subr.msk.bf16.mxu0 %vm12606_vm2, %v10854_v28 }
 0x9a2   : > { %10077 = vmatprep.mubr.msk.f32.mxu1 %vm696_vm1, %v6012_v52  ;;  %10859 = vmatpush3.bf16.xpose.msk.msra.mxu0 %vm12606_vm2, %v10854_v28  ;;  %v10884_v32 = vpack.c.bf16 %v11560_v25, %v11559_v4  ;;  %v5630_v4 = vld [vmem:[#allocation2 + $0x308] sm:$0xff] }
 0x9a3   : > { %10877 = vmatprep.subr.bf16.mxu0 %v10876_v11  ;;  %v11568_v33 = vpop.permute.xlu0 %11567 }
 0x9a4   : > { %v6014_v49 = vpop.permute.xlu1 %6013  ;;  %v11570_v55 = vunpack.i.h.bf16 %v11568_v33  ;;  %v11569_v8 = vunpack.i.l.bf16 %v11568_v33  ;;  %v5629_v33 = vld [vmem:[#allocation2 + $0x300] sm:$0xff] }
 0x9a5   : > { %v14818_v7 = vpop.f32.mrb[84].mxu1  ;;  %10078 = vmatmul.mubr.msk.f32.gmra.mrb[110].mxu1 %vm696_vm1, %v6014_v49 }
 0x9a6   : > { %16279 = vst [vmem:[#allocation6_spill] sm:$0xff] %v14818_v7  ;;  %v14821_v14 = vpop.f32.mrb[85].mxu1  ;;  %v10888_v37 = vpack.c.bf16 %v11570_v55, %v11569_v8  ;;  %v5632_v8 = vld [vmem:[#allocation2 + $0x318] sm:$0xff] }
 0x9a7   : > { %16280 = vst [vmem:[#allocation18_spill] sm:$0xff] %v14821_v14 }
 0x9a8   : > { %v6171_v54 = vpop.permute.xlu1 %6170 }
 0x9a9   : > { %10097 = vmatmul.mubr.msk.f32.vlgmr.msra.gmra.mrb[136].mxu0 %vm696_vm1, %v6171_v54 }
 0x9aa   : > { %10099 = vmatprep.mubr.msk.f32.mxu0 %vm696_vm1, %v6173_v5  ;;  %10879 = vmatpush3.bf16.msra.mxu0 %v10876_v11 }
 0x9ab   : > { %10881 = vmatprep.subr.bf16.mxu0 %v10880_v51 }
 0x9ac   : > { %v14825_v30 = vpop.f32.mrb[86].mxu1  ;;  %v6175_v23 = vpop.permute.xlu1 %6174 }
 0x9ad   : > { %16281 = vst [vmem:[#allocation9_spill] sm:$0xff] %v14825_v30  ;;  %v14827_v58 = vpop.f32.mrb[87].mxu1  ;;  %10100 = vmatmul.mubr.msk.f32.gmra.mrb[138].mxu0 %vm696_vm1, %v6175_v23 }
 0x9ae   : > { %16282 = vst [vmem:[#allocation8_spill] sm:$0xff] %v14827_v58  ;;  %10102 = vmatprep.mubr.msk.f32.mxu0 %vm696_vm1, %v6177_v10  ;;  %10883 = vmatpush3.bf16.msra.mxu0 %v10880_v51 }
 0x9af   : > { %10885 = vmatprep.subr.bf16.mxu0 %v10884_v32 }
 0x9b0   : > { %v6179_v15 = vpop.permute.xlu1 %6178 }
 0x9b1   : > { %10103 = vmatmul.mubr.msk.f32.gmra.mrb[140].mxu0 %vm696_vm1, %v6179_v15 }
 0x9b2   : > { %10105 = vmatprep.mubr.msk.f32.mxu0 %vm696_vm1, %v6181_v21  ;;  %10887 = vmatpush3.bf16.msra.mxu0 %v10884_v32 }
 0x9b3   : > { %10889 = vmatprep.subr.bf16.mxu0 %v10888_v37 }
 0x9b4   : > { %v6183_v41 = vpop.permute.xlu1 %6182 }
 0x9b5   : > { %10106 = vmatmul.mubr.msk.f32.gmra.mrb[142].mxu0 %vm696_vm1, %v6183_v41  ;;  %v14834_v42 = vpop.f32.mrb[112].mxu0  ;;  %v5631_v41 = vld [vmem:[#allocation2 + $0x310] sm:$0xff] }
 0x9b6   : > { %16283 = vst [vmem:[#allocation40_spill] sm:$0xff] %v14834_v42  ;;  %10891 = vmatpush3.bf16.msra.mxu0 %v10888_v37  ;;  %v14836_v26 = vpop.f32.mrb[113].mxu0 }
 0x9b7   : > { %16284 = vst [vmem:[#allocation110_spill] sm:$0xff] %v14836_v26 }
 0x9b8   : > { %v11533_v44 = vpop.permute.xlu1 %11532 }
 0x9b9   : > { %v11535_v9 = vunpack.i.h.bf16 %v11533_v44  ;;  %v11534_v1 = vunpack.i.l.bf16 %v11533_v44  ;;  %v14838_v27 = vpop.f32.mrb[88].mxu1 }
 0x9ba   : > { %v14840_v45 = vpop.f32.mrb[89].mxu1 }
 0x9bb   : > { %v10860_v40 = vpack.c.bf16 %v11535_v9, %v11534_v1 }
 0x9bc   : > { %v11543_v38 = vpop.permute.xlu1 %11542 }
 0x9bd   : > { %v11545_v53 = vunpack.i.h.bf16 %v11543_v38  ;;  %v11544_v46 = vunpack.i.l.bf16 %v11543_v38  ;;  %10861 = vmatprep.subr.bf16.mxu1 %v10860_v40 }
 0x9be   : > { %10863 = vmatpush3.bf16.msra.mxu1 %v10860_v40 }
 0x9bf   : > { %v10864_v20 = vpack.c.bf16 %v11545_v53, %v11544_v46 }
 0x9c0   : > { %v11553_v52 = vpop.permute.xlu1 %11552 }
 0x9c1   : > { %v11555_v36 = vunpack.i.h.bf16 %v11553_v52  ;;  %v11554_v48 = vunpack.i.l.bf16 %v11553_v52  ;;  %10865 = vmatprep.subr.bf16.mxu1 %v10864_v20 }
 0x9c2   : > { %10867 = vmatpush3.bf16.msra.mxu1 %v10864_v20  ;;  %v5634_v20 = vld [vmem:[#allocation2 + $0x328] sm:$0xff] }
 0x9c3   : > { %v10868_v34 = vpack.c.bf16 %v11555_v36, %v11554_v48 }
 0x9c4   : > { %v11563_v16 = vpop.permute.xlu1 %11562 }
 0x9c5   : > { %v11565_v50 = vunpack.i.h.bf16 %v11563_v16  ;;  %v11564_v29 = vunpack.i.l.bf16 %v11563_v16  ;;  %10869 = vmatprep.subr.bf16.mxu1 %v10868_v34  ;;  %v5633_v16 = vld [vmem:[#allocation2 + $0x320] sm:$0xff] }
 0x9c6   : > { %10871 = vmatpush3.bf16.msra.mxu1 %v10868_v34 }
 0x9c7   : > { %v10872_v5 = vpack.c.bf16 %v11565_v50, %v11564_v29 }
 0x9c8   : > { %v14842_v3 = vpop.f32.mrb[114].mxu0  ;;  %v11573_v10 = vpop.permute.xlu1 %11572 }
 0x9c9   : > { %16285 = vst [vmem:[#allocation5_spill] sm:$0xff] %v14842_v3  ;;  %v11575_v22 = vunpack.i.h.bf16 %v11573_v10  ;;  %v11574_v21 = vunpack.i.l.bf16 %v11573_v10  ;;  %v14844_v6 = vpop.f32.mrb[115].mxu0  ;;  %10873 = vmatprep.subr.bf16.mxu1 %v10872_v5 }
 0x9ca   : > { %16286 = vst [vmem:[#allocation12_spill] sm:$0xff] %v14844_v6  ;;  %10875 = vmatpush3.bf16.msra.mxu1 %v10872_v5  ;;  %v5653_v6 = vld [vmem:[#allocation2 + $0x3c0] sm:$0xff] }
 0x9cb   : > { %v14846_v0 = vpack.c.bf16 %v11575_v22, %v11574_v21  ;;  %v5636_v22 = vld [vmem:[#allocation2 + $0x338] sm:$0xff] }
 0x9cc   : > { %v14848_v62 = vpop.f32.mrb[90].mxu1 }
 0x9cd   : > { %v14850_v61 = vpop.f32.mrb[91].mxu1  ;;  %10893 = vmatprep.subr.bf16.mxu1 %v14846_v0 }
 0x9d0   : > { %v14853_v60 = vpop.f32.mrb[116].mxu0 }
 0x9d1   : > { %16287 = vst [vmem:[#allocation34_spill] sm:$0xff] %v14853_v60  ;;  %v14855_v13 = vpop.f32.mrb[117].mxu0 }
 0x9d2   : > { %16288 = vst [vmem:[#allocation11_spill] sm:$0xff] %v14855_v13 }
 0x9d4   : > { %v14857_v19 = vpop.f32.mrb[92].mxu1 }
 0x9d5   : > { %v14859_v56 = vpop.f32.mrb[93].mxu1 }
 0x9dc   : > { %v14861_v35 = vpop.f32.mrb[118].mxu0 }
 0x9dd   : > { %v14863_v28 = vpop.f32.mrb[119].mxu0 }
 0x9e0   : > { %v14865_v31 = vpop.f32.mrb[94].mxu1 }
 0x9e1   : > { %16289 = vst [vmem:[#allocation43_spill] sm:$0xff] %v14865_v31  ;;  %v14867_v11 = vpop.f32.mrb[95].mxu1 }
 0x9e2   : > { %16290 = vst [vmem:[#allocation15_spill] sm:$0xff] %v14867_v11 }
 0x9e4   : > { %v14869_v12 = vpop.f32.mrb[120].mxu0 }
 0x9e5   : > { %16291 = vst [vmem:[#allocation17_spill] sm:$0xff] %v14869_v12  ;;  %v14871_v49 = vpop.f32.mrb[121].mxu0 }
 0x9e6   : > { %16292 = vst [vmem:[#allocation14_spill] sm:$0xff] %v14871_v49 }
 0xa0c   : > { %v14873_v2 = vpop.f32.mrb[122].mxu0 }
 0xa0d   : > { %16293 = vst [vmem:[#allocation21_spill] sm:$0xff] %v14873_v2  ;;  %v14875_v63 = vpop.f32.mrb[123].mxu0 }
 0xa0e   : > { %16294 = vst [vmem:[#allocation49_spill] sm:$0xff] %v14875_v63 }
 0xa15   : > { %v14877_v54 = vpop.f32.mrb[124].mxu0 }
 0xa16   : > { %16295 = vst [vmem:[#allocation20_spill] sm:$0xff] %v14877_v54  ;;  %v14879_v25 = vpop.f32.mrb[125].mxu0 }
 0xa17   : > { %16296 = vst [vmem:[#allocation29_spill] sm:$0xff] %v14879_v25 }
 0xa3c   : > { %v10014_v51 = vpop.f32.mrb[96].mxu1 }
 0xa3d   : > { %v14881_v23 = vadd.f32 %v10014_v51, %v5630_v4  ;;  %v5791_v55 = vpop.f32.mrb[97].mxu1  ;;  %v5635_v51 = vld [vmem:[#allocation2 + $0x330] sm:$0xff] }
 0xa3e   : > { %v14883_v32 = vadd.f32 %v5791_v55, %v5629_v33 }
 0xa3f   : > { %v6340_v15 = vsel %vm1317_vm3, %v14881_v23, -inf }
 0xa40   : > { %6341 = vmax.xlane.f32.xlu0 %v6340_v15  ;;  %v10017_v37 = vpop.f32.mrb[98].mxu1  ;;  %v6337_v46 = vsel %vm1317_vm3, %v14883_v32, -inf  ;;  %v5637_v15 = vld [vmem:[#allocation2 + $0x340] sm:$0xff] }
 0xa41   : > { %v14887_v44 = vadd.f32 %v10017_v37, %v5632_v8  ;;  %v14889_v9 = vpop.f32.mrb[126].mxu0  ;;  %v5801_v1 = vpop.f32.mrb[99].mxu1  ;;  %v5638_v8 = vld [vmem:[#allocation2 + $0x348] sm:$0xff] }
 0xa42   : > { %16297 = vst [vmem:[#allocation46_spill] sm:$0xff] %v14889_v9  ;;  %v14891_v40 = vpop.f32.mrb[127].mxu0  ;;  %v14893_v38 = vadd.f32 %v5801_v1, %v5631_v41 }
 0xa43   : > { %16298 = vst [vmem:[#allocation32_spill] sm:$0xff] %v14891_v40  ;;  %v6346_v53 = vsel %vm1317_vm3, %v14887_v44, -inf }
 0xa44   : > { %6347 = vmax.xlane.f32.xlu1 %v6346_v53  ;;  %v10020_v52 = vpop.f32.mrb[100].mxu1  ;;  %6338 = vmax.xlane.f32.xlu0 %v6337_v46  ;;  %v6343_v34 = vsel %vm1317_vm3, %v14893_v38, -inf }
 0xa45   : > { %v5811_v36 = vpop.f32.mrb[101].mxu1  ;;  %v14899_v48 = vadd.f32 %v10020_v52, %v5634_v20 }
 0xa46   : > { %v14903_v5 = vadd.f32 %v5811_v36, %v5633_v16 }
 0xa47   : > { %v6352_v10 = vsel %vm1317_vm3, %v14899_v48, -inf }
 0xa48   : > { %v10023_v50 = vpop.f32.mrb[102].mxu1  ;;  %6344 = vmax.xlane.f32.xlu1 %v6343_v34  ;;  %v6349_v4 = vsel %vm1317_vm3, %v14903_v5, -inf }
 0xa49   : > { %v5821_v29 = vpop.f32.mrb[103].mxu1  ;;  %v14907_v21 = vadd.f32 %v10023_v50, %v5636_v22  ;;  %v5646_v22 = vld [vmem:[#allocation2 + $0x388] sm:$0xff] }
 0xa4a   : > { %v14911_v33 = vadd.f32 %v5821_v29, %v5635_v51  ;;  %v5640_v51 = vld [vmem:[#allocation2 + $0x358] sm:$0xff] }
 0xa4b   : > { %v6358_v55 = vsel %vm1317_vm3, %v14907_v21, -inf }
 0xa4c   : > { %6353 = vmax.xlane.f32.xlu1 %v6352_v10  ;;  %v6355_v46 = vsel %vm1317_vm3, %v14911_v33, -inf }
 0xa50   : > { %6350 = vmax.xlane.f32.xlu1 %v6349_v4  ;;  %v5645_v4 = vld [vmem:[#allocation2 + $0x380] sm:$0xff] }
 0xa54   : > { %6359 = vmax.xlane.f32.xlu1 %v6358_v55 }
 0xa55   : > { %v10042_v37 = vpop.f32.mrb[128].mxu0 }
 0xa56   : > { %v14915_v41 = vadd.f32 %v10042_v37, %v5638_v8  ;;  %v5960_v1 = vpop.f32.mrb[129].mxu0 }
 0xa57   : > { %v14917_v53 = vadd.f32 %v5960_v1, %v5637_v15 }
 0xa58   : > { %6356 = vmax.xlane.f32.xlu1 %v6355_v46  ;;  %v6364_v20 = vsel %vm1317_vm3, %v14915_v41, -inf }
 0xa59   : > { %6365 = vmax.xlane.f32.xlu0 %v6364_v20  ;;  %v10045_v52 = vpop.f32.mrb[130].mxu0  ;;  %v6361_v34 = vsel %vm1317_vm3, %v14917_v53, -inf  ;;  %v5647_v20 = vld [vmem:[#allocation2 + $0x390] sm:$0xff] }
 0xa5a   : > { %v5970_v36 = vpop.f32.mrb[131].mxu0  ;;  %v14933_v1 = vadd.f32 %v10045_v52, %v5640_v51 }
 0xa5c   : > { %6362 = vmax.xlane.f32.xlu1 %v6361_v34  ;;  %v5648_v34 = vld [vmem:[#allocation2 + $0x398] sm:$0xff]  ;;  %v6370_v52 = vsel %vm1317_vm3, %v14933_v1, -inf }
 0xa5d   : > { %v10048_v16 = vpop.f32.mrb[132].mxu0 }
 0xa5e   : > { %v5980_v50 = vpop.f32.mrb[133].mxu0 }
 0xa64   : > { %v14925_v29 = vpop.f32.mrb[134].mxu0 }
 0xa65   : > { %v14927_v10 = vpop.f32.mrb[135].mxu0 }
 0xa69   : > { %v10070_v55 = vpop.f32.mrb[104].mxu1 }
 0xa6a   : > { %v14929_v8 = vadd.f32 %v10070_v55, %v5646_v22  ;;  %v6129_v15 = vpop.f32.mrb[105].mxu1  ;;  %v5649_v55 = vld [vmem:[#allocation2 + $0x3a0] sm:$0xff] }
 0xa6b   : > { %v14931_v37 = vadd.f32 %v6129_v15, %v5645_v4  ;;  %v5639_v4 = vld [vmem:[#allocation2 + $0x350] sm:$0xff] }
 0xa6c   : > { %v6388_v46 = vsel %vm1317_vm3, %v14929_v8, -inf  ;;  %v14947_v15 = vadd.f32 %v5970_v36, %v5639_v4  ;;  %v5650_v4 = vld [vmem:[#allocation2 + $0x3a8] sm:$0xff] }
 0xa6d   : > { %v10073_v9 = vpop.f32.mrb[106].mxu1  ;;  %6389 = vmax.xlane.f32.xlu0 %v6388_v46  ;;  %v6385_v60 = vsel %vm1317_vm3, %v14931_v37, -inf }
 0xa6e   : > { %v6139_v40 = vpop.f32.mrb[107].mxu1  ;;  %6386 = vmax.xlane.f32.xlu1 %v6385_v60  ;;  %v14941_v22 = vadd.f32 %v10073_v9, %v5648_v34  ;;  %v5651_v34 = vld [vmem:[#allocation2 + $0x3b0] sm:$0xff]  ;;  %v6367_v25 = vsel %vm1317_vm3, %v14947_v15, -inf }
 0xa6f   : > { %v14939_v13 = vadd.f32 %v6139_v40, %v5647_v20  ;;  %v5642_v40 = vld [vmem:[#allocation2 + $0x368] sm:$0xff] }
 0xa70   : > { %v6394_v60 = vsel %vm1317_vm3, %v14941_v22, -inf  ;;  %v14953_v54 = vadd.f32 %v10048_v16, %v5642_v40 }
 0xa71   : > { %6371 = vmax.xlane.f32.xlu0 %v6370_v52  ;;  %v6391_v51 = vsel %vm1317_vm3, %v14939_v13, -inf }
 0xa72   : > { %6392 = vmax.xlane.f32.xlu1 %v6391_v51  ;;  %v6376_v16 = vsel %vm1317_vm3, %v14953_v54, -inf }
 0xa74   : > { %v10076_v46 = vpop.f32.mrb[108].mxu1 }
 0xa75   : > { %v6149_v20 = vpop.f32.mrb[109].mxu1  ;;  %6395 = vmax.xlane.f32.xlu0 %v6394_v60  ;;  %v14961_v60 = vadd.f32 %v10076_v46, %v5650_v4 }
 0xa76   : > { %v14951_v9 = vadd.f32 %v6149_v20, %v5649_v55  ;;  %v5641_v20 = vld [vmem:[#allocation2 + $0x360] sm:$0xff] }
 0xa77   : > { %v6400_v46 = vsel %vm1317_vm3, %v14961_v60, -inf }
 0xa78   : > { %v10079_v52 = vpop.f32.mrb[110].mxu1  ;;  %v6397_v36 = vsel %vm1317_vm3, %v14951_v9, -inf }
 0xa79   : > { %v6159_v51 = vpop.f32.mrb[111].mxu1  ;;  %6368 = vmax.xlane.f32.xlu0 %v6367_v25  ;;  %6398 = vmax.xlane.f32.xlu1 %v6397_v36  ;;  %v5655_v25 = vld [vmem:[#allocation2 + $0x3d0] sm:$0xff]  ;;  %v14969_v36 = vadd.f32 %v5980_v50, %v5641_v20  ;;  %v5652_v20 = vld [vmem:[#allocation2 + $0x3b8] sm:$0xff] }
 0xa7a   : > { %v14959_v3 = vadd.f32 %v6159_v51, %v5651_v34  ;;  %v5644_v51 = vld [vmem:[#allocation2 + $0x378] sm:$0xff] }
 0xa7b   : > { %v6373_v50 = vsel %vm1317_vm3, %v14969_v36, -inf }
 0xa7c   : > { %v10098_v55 = vpop.f32.mrb[136].mxu0  ;;  %v6403_v40 = vsel %vm1317_vm3, %v14959_v3, -inf }
 0xa7d   : > { %v6298_v2 = vpop.f32.mrb[137].mxu0  ;;  %6377 = vmax.xlane.f32.xlu0 %v6376_v16  ;;  %6404 = vmax.xlane.f32.xlu1 %v6403_v40  ;;  %v5657_v16 = vld [vmem:[#allocation2 + $0x3e0] sm:$0xff] }
 0xa7e   : > { %v14967_v63 = vadd.f32 %v6298_v2, %v5653_v6  ;;  %v14978_v6 = vadd.f32 %v14925_v29, %v5644_v51  ;;  %v5643_v51 = vld [vmem:[#allocation2 + $0x370] sm:$0xff] }
 0xa80   : > { %v10101_v34 = vpop.f32.mrb[138].mxu0  ;;  %v6409_v4 = vsel %vm1317_vm3, %v14967_v63, -inf  ;;  %v6382_v29 = vsel %vm1317_vm3, %v14978_v6, -inf }
 0xa81   : > { %v6308_v42 = vpop.f32.mrb[139].mxu0  ;;  %6401 = vmax.xlane.f32.xlu0 %v6400_v46  ;;  %6410 = vmax.xlane.f32.xlu1 %v6409_v4  ;;  %v5659_v46 = vld [vmem:[#allocation2 + $0x3f0] sm:$0xff] }
 0xa82   : > { %v14975_v26 = vadd.f32 %v6308_v42, %v5655_v25  ;;  %v14986_v42 = vadd.f32 %v10079_v52, %v5652_v20 }
 0xa84   : > { %v10104_v2 = vpop.f32.mrb[140].mxu0  ;;  %v6415_v40 = vsel %vm1317_vm3, %v14975_v26, -inf }
 0xa85   : > { %v6318_v12 = vpop.f32.mrb[141].mxu0  ;;  %6374 = vmax.xlane.f32.xlu0 %v6373_v50  ;;  %6416 = vmax.xlane.f32.xlu1 %v6415_v40  ;;  %v14995_v50 = vadd.f32 %v14927_v10, %v5643_v51  ;;  %v5656_v40 = vld [vmem:[#allocation2 + $0x3d8] sm:$0xff]  ;;  %v15015_v51 = vpop.permute.xlu0 %11577 }
 0xa86   : > { %v14984_v49 = vadd.f32 %v6318_v12, %v5657_v16  ;;  %v6406_v12 = vsel %vm1317_vm3, %v14986_v42, -inf  ;;  %v15009_v20 = vadd.f32 %v10101_v34, %v5656_v40 }
 0xa87   : > { %v6379_v16 = vsel %vm1317_vm3, %v14995_v50, -inf }
 0xa88   : > { %v10107_v25 = vpop.f32.mrb[142].mxu0  ;;  %v6421_v4 = vsel %vm1317_vm3, %v14984_v49, -inf }
 0xa89   : > { %v6328_v30 = vpop.f32.mrb[143].mxu0  ;;  %6383 = vmax.xlane.f32.xlu0 %v6382_v29  ;;  %6422 = vmax.xlane.f32.xlu1 %v6421_v4  ;;  %v15013_v29 = vpop.permute.xlu1 %11582  ;;  %v5658_v4 = vld [vmem:[#allocation2 + $0x3e8] sm:$0xff] }
 0xa8a   : > { %v14992_v58 = vadd.f32 %v6328_v30, %v5659_v46  ;;  %v5654_v30 = vld [vmem:[#allocation2 + $0x3c8] sm:$0xff] }
 0xa8b   : > { %v15007_v10 = vadd.f32 %v10098_v55, %v5654_v30 }
 0xa8c   : > { %v6427_v52 = vsel %vm1317_vm3, %v14992_v58, -inf }
 0xa8d   : > { %6407 = vmax.xlane.f32.xlu0 %v6406_v12  ;;  %6428 = vmax.xlane.f32.xlu1 %v6427_v52  ;;  %v6412_v46 = vsel %vm1317_vm3, %v15007_v10, -inf  ;;  %v15017_v12 = vadd.f32 %v10104_v2, %v5658_v4  ;;  %v15021_v55 = vpop.permute.xlu1 %11587 }
 0xa8f   : > { %v6424_v30 = vsel %vm1317_vm3, %v15017_v12, -inf }
 0xa91   : > { %6380 = vmax.xlane.f32.xlu0 %v6379_v16 }
 0xa9e   : > { %11597 = vrot.lane.b32.xlu1 %v16253_v39, %s12176_s20  ;;  %v5660_v39 = vld [vmem:[#allocation2 + $0x3f8] sm:$0xff] }
 0xa9f   : > { %v15023_v52 = vadd.f32 %v10107_v25, %v5660_v39 }
 0xaa7   : > { %11592 = vrot.lane.b32.xlu0 %v16245_v24, %s12176_s20  ;;  %v6418_v24 = vsel %vm1317_vm3, %v15009_v20, -inf }
 0xac6   : > { %6413 = vmax.xlane.f32.xlu0 %v6412_v46 }
 0xaca   : > { %6419 = vmax.xlane.f32.xlu0 %v6418_v24  ;;  %v6430_v24 = vsel %vm1317_vm3, %v15023_v52, -inf }
 0xacd   : > { %v6342_v34 = vpop.xlane.xlu0 %6341 }
 0xace   : > { %v6434_v16 = vsub.f32 %v14881_v23, %v6342_v34  ;;  %6425 = vmax.xlane.f32.xlu0 %v6424_v30 }
 0xad0   : > { %v6467_v40 = vmul.f32 1.442695, %v6434_v16 }
 0xad1   : > { %v6339_v46 = vpop.xlane.xlu0 %6338  ;;  %v6348_v2 = vpop.xlane.xlu1 %6347 }
 0xad2   : > { %11995 = vpow2.f32 %v6467_v40  ;;  %v6433_v4 = vsub.f32 %v14883_v32, %v6339_v46  ;;  %v6436_v31 = vsub.f32 %v14887_v44, %v6348_v2  ;;  %6431 = vmax.xlane.f32.xlu0 %v6430_v24 }
 0xad4   : > { %v6465_v25 = vmul.f32 1.442695, %v6433_v4  ;;  %v6471_v39 = vmul.f32 1.442695, %v6436_v31 }
 0xad5   : > { %v6345_v11 = vpop.xlane.xlu1 %6344 }
 0xad6   : > { %11997 = vpow2.f32 %v6465_v25  ;;  %v6435_v23 = vsub.f32 %v14893_v38, %v6345_v11 }
 0xad7   : > { %11999 = vpow2.f32 %v6471_v39 }
 0xad8   : > { %v6469_v34 = vmul.f32 1.442695, %v6435_v23 }
 0xad9   : > { %v6354_v16 = vpop.xlane.xlu1 %6353 }
 0xada   : > { %v6438_v30 = vsub.f32 %v14899_v48, %v6354_v16  ;;  %12001 = vpow2.f32 %v6469_v34 }
 0xadc   : > { %v15034_v40 = vpop.eup %11995  ;;  %v6475_v32 = vmul.f32 1.442695, %v6438_v30 }
 0xadd   : > { %v6351_v44 = vpop.xlane.xlu1 %6350  ;;  %v6532_v46 = vsel %vm1317_vm3, %v15034_v40, 0.0 }
 0xade   : > { %v6437_v2 = vsub.f32 %v14903_v5, %v6351_v44  ;;  %6533 = vadd.xlane.f32.xlu1 %v6532_v46  ;;  %12003 = vpow2.f32 %v6475_v32 }
 0xae0   : > { %v15039_v31 = vpop.eup %11997  ;;  %v6473_v11 = vmul.f32 1.442695, %v6437_v2 }
 0xae1   : > { %v6360_v38 = vpop.xlane.xlu1 %6359  ;;  %v6529_v4 = vsel %vm1317_vm3, %v15039_v31, 0.0  ;;  %v15043_v48 = vpop.eup %11999 }
 0xae2   : > { %v6440_v24 = vsub.f32 %v14907_v21, %v6360_v38  ;;  %6530 = vadd.xlane.f32.xlu1 %v6529_v4  ;;  %12005 = vpow2.f32 %v6473_v11  ;;  %v6538_v5 = vsel %vm1317_vm3, %v15043_v48, 0.0 }
 0xae4   : > { %v6479_v25 = vmul.f32 1.442695, %v6440_v24  ;;  %v15048_v23 = vpop.eup %12001 }
 0xae5   : > { %v6357_v39 = vpop.xlane.xlu1 %6356  ;;  %v6535_v21 = vsel %vm1317_vm3, %v15048_v23, 0.0 }
 0xae6   : > { %v6439_v34 = vsub.f32 %v14911_v33, %v6357_v39  ;;  %v6366_v16 = vpop.xlane.xlu0 %6365  ;;  %6539 = vadd.xlane.f32.xlu1 %v6538_v5  ;;  %12007 = vpow2.f32 %v6479_v25 }
 0xae7   : > { %v6442_v30 = vsub.f32 %v14915_v41, %v6366_v16 }
 0xae8   : > { %v6477_v32 = vmul.f32 1.442695, %v6439_v34  ;;  %v15054_v46 = vpop.eup %12003 }
 0xae9   : > { %v6483_v44 = vmul.f32 1.442695, %v6442_v30  ;;  %v6544_v2 = vsel %vm1317_vm3, %v15054_v46, 0.0  ;;  %v6363_v39 = vpop.xlane.xlu1 %6362 }
 0xaea   : > { %6536 = vadd.xlane.f32.xlu1 %v6535_v21  ;;  %v6441_v34 = vsub.f32 %v14917_v53, %v6363_v39 }
 0xaeb   : > { %12009 = vpow2.f32 %v6483_v44 }
 0xaec   : > { %12011 = vpow2.f32 %v6477_v32  ;;  %v15058_v11 = vpop.eup %12005  ;;  %v6481_v21 = vmul.f32 1.442695, %v6441_v34 }
 0xaed   : > { %v6541_v33 = vsel %vm1317_vm3, %v15058_v11, 0.0 }
 0xaee   : > { %6545 = vadd.xlane.f32.xlu1 %v6544_v2 }
 0xaf0   : > { %v15062_v41 = vpop.eup %12007 }
 0xaf1   : > { %v6550_v4 = vsel %vm1317_vm3, %v15062_v41, 0.0 }
 0xaf2   : > { %6542 = vadd.xlane.f32.xlu1 %v6541_v33 }
 0xaf5   : > { %v15064_v38 = vpop.eup %12009 }
 0xaf6   : > { %v15068_v24 = vpop.eup %12011  ;;  %v6556_v25 = vsel %vm1317_vm3, %v15064_v38, 0.0  ;;  %6551 = vadd.xlane.f32.xlu1 %v6550_v4 }
 0xaf7   : > { %6557 = vadd.xlane.f32.xlu0 %v6556_v25  ;;  %v6547_v5 = vsel %vm1317_vm3, %v15068_v24, 0.0 }
 0xafa   : > { %6548 = vadd.xlane.f32.xlu1 %v6547_v5  ;;  %v6390_v16 = vpop.xlane.xlu0 %6389 }
 0xafb   : > { %v6450_v30 = vsub.f32 %v14929_v8, %v6390_v16  ;;  %v6387_v32 = vpop.xlane.xlu1 %6386 }
 0xafc   : > { %v6449_v44 = vsub.f32 %v14931_v37, %v6387_v32 }
 0xafd   : > { %v6499_v2 = vmul.f32 1.442695, %v6450_v30 }
 0xafe   : > { %v6497_v33 = vmul.f32 1.442695, %v6449_v44  ;;  %v6372_v7 = vpop.xlane.xlu0 %6371 }
 0xaff   : > { %12013 = vpow2.f32 %v6499_v2  ;;  %v6444_v4 = vsub.f32 %v14933_v1, %v6372_v7  ;;  %v6393_v25 = vpop.xlane.xlu1 %6392 }
 0xb00   : > { %12015 = vpow2.f32 %v6497_v33  ;;  %v6451_v14 = vsub.f32 %v14939_v13, %v6393_v25 }
 0xb01   : > { %12017 = vpow2.f32 %v6481_v21  ;;  %v6487_v53 = vmul.f32 1.442695, %v6444_v4 }
 0xb02   : > { %v6501_v39 = vmul.f32 1.442695, %v6451_v14  ;;  %v6396_v5 = vpop.xlane.xlu0 %6395 }
 0xb03   : > { %v6452_v8 = vsub.f32 %v14941_v22, %v6396_v5 }
 0xb04   : > { %12019 = vpow2.f32 %v6501_v39 }
 0xb05   : > { %12021 = vpow2.f32 %v6487_v53  ;;  %v6503_v37 = vmul.f32 1.442695, %v6452_v8 }
 0xb06   : > { %v6369_v34 = vpop.xlane.xlu0 %6368  ;;  %v6399_v16 = vpop.xlane.xlu1 %6398 }
 0xb07   : > { %v6443_v30 = vsub.f32 %v14947_v15, %v6369_v34  ;;  %v6453_v32 = vsub.f32 %v14951_v9, %v6399_v16  ;;  %12023 = vpow2.f32 %v6503_v37 }
 0xb09   : > { %v15082_v7 = vpop.eup %12013  ;;  %v6485_v1 = vmul.f32 1.442695, %v6443_v30  ;;  %v6505_v13 = vmul.f32 1.442695, %v6453_v32 }
 0xb0a   : > { %v15084_v44 = vpop.eup %12015  ;;  %v6378_v14 = vpop.xlane.xlu0 %6377  ;;  %v6580_v22 = vsel %vm1317_vm3, %v15082_v7, 0.0 }
 0xb0b   : > { %v15086_v21 = vpop.xlane.xlu1 %6404  ;;  %v15090_v2 = vpop.eup %12017  ;;  %v6446_v33 = vsub.f32 %v14953_v54, %v6378_v14  ;;  %6581 = vadd.xlane.f32.xlu0 %v6580_v22  ;;  %v6577_v15 = vsel %vm1317_vm3, %v15084_v44, 0.0  ;;  %12025 = vpow2.f32 %v6505_v13 }
 0xb0c   : > { %6578 = vadd.xlane.f32.xlu1 %v6577_v15  ;;  %12027 = vpow2.f32 %v6485_v1  ;;  %v6553_v39 = vsel %vm1317_vm3, %v15090_v2, 0.0 }
 0xb0d   : > { %v6491_v9 = vmul.f32 1.442695, %v6446_v33 }
 0xb0e   : > { %v15095_v4 = vpop.eup %12019  ;;  %v6402_v25 = vpop.xlane.xlu0 %6401 }
 0xb0f   : > { %v6411_v53 = vpop.xlane.xlu1 %6410  ;;  %v15099_v5 = vpop.eup %12021  ;;  %v6454_v8 = vsub.f32 %v14961_v60, %v6402_v25  ;;  %6554 = vadd.xlane.f32.xlu0 %v6553_v39  ;;  %v6583_v37 = vsel %vm1317_vm3, %v15095_v4, 0.0  ;;  %12029 = vpow2.f32 %v6491_v9 }
 0xb10   : > { %v6457_v54 = vsub.f32 %v14967_v63, %v6411_v53  ;;  %6584 = vadd.xlane.f32.xlu1 %v6583_v37  ;;  %v6562_v32 = vsel %vm1317_vm3, %v15099_v5, 0.0 }
 0xb11   : > { %v6507_v34 = vmul.f32 1.442695, %v6454_v8  ;;  %v15107_v1 = vpop.eup %12023 }
 0xb12   : > { %v6513_v16 = vmul.f32 1.442695, %v6457_v54  ;;  %v6375_v30 = vpop.xlane.xlu0 %6374  ;;  %v6586_v22 = vsel %vm1317_vm3, %v15107_v1, 0.0 }
 0xb13   : > { %v6445_v13 = vsub.f32 %v14969_v36, %v6375_v30  ;;  %6563 = vadd.xlane.f32.xlu0 %v6562_v32 }
 0xb14   : > { %12031 = vpow2.f32 %v6513_v16 }
 0xb15   : > { %12033 = vpow2.f32 %v6507_v34  ;;  %v6489_v63 = vmul.f32 1.442695, %v6445_v13  ;;  %v15110_v60 = vpop.eup %12025 }
 0xb16   : > { %v6384_v14 = vpop.xlane.xlu0 %6383  ;;  %v15114_v33 = vpop.eup %12027  ;;  %v6589_v9 = vsel %vm1317_vm3, %v15110_v60, 0.0 }
 0xb17   : > { %v6448_v15 = vsub.f32 %v14978_v6, %v6384_v14  ;;  %6587 = vadd.xlane.f32.xlu0 %v6586_v22  ;;  %6590 = vadd.xlane.f32.xlu1 %v6589_v9  ;;  %12035 = vpow2.f32 %v6489_v63  ;;  %v6559_v53 = vsel %vm1317_vm3, %v15114_v33, 0.0 }
 0xb19   : > { %v6495_v36 = vmul.f32 1.442695, %v6448_v15  ;;  %v15121_v39 = vpop.eup %12029 }
 0xb1a   : > { %v6408_v25 = vpop.xlane.xlu0 %6407  ;;  %v6568_v34 = vsel %vm1317_vm3, %v15121_v39, 0.0 }
 0xb1b   : > { %v6456_v8 = vsub.f32 %v14986_v42, %v6408_v25  ;;  %6560 = vadd.xlane.f32.xlu0 %v6559_v53  ;;  %12037 = vpow2.f32 %v6495_v36  ;;  %v6455_v42 = vsub.f32 %v14959_v3, %v15086_v21 }
 0xb1d   : > { %v6511_v54 = vmul.f32 1.442695, %v6456_v8 }
 0xb1e   : > { %v15124_v37 = vpop.eup %12031  ;;  %v6381_v6 = vpop.xlane.xlu0 %6380 }
 0xb1f   : > { %v15128_v16 = vpop.eup %12033  ;;  %v6447_v30 = vsub.f32 %v14995_v50, %v6381_v6  ;;  %6569 = vadd.xlane.f32.xlu0 %v6568_v34  ;;  %v6601_v32 = vsel %vm1317_vm3, %v15124_v37, 0.0  ;;  %12039 = vpow2.f32 %v6511_v54  ;;  %v6509_v50 = vmul.f32 1.442695, %v6455_v42 }
 0xb20   : > { %6602 = vadd.xlane.f32.xlu1 %v6601_v32  ;;  %v6592_v14 = vsel %vm1317_vm3, %v15128_v16, 0.0  ;;  %v6417_v32 = vpop.xlane.xlu1 %6416 }
 0xb21   : > { %v6493_v13 = vmul.f32 1.442695, %v6447_v30  ;;  %v15137_v22 = vpop.eup %12035 }
 0xb22   : > { %v11593_v63 = vpop.permute.xlu0 %11592  ;;  %v6565_v25 = vsel %vm1317_vm3, %v15137_v22, 0.0 }
 0xb23   : > { %v11595_v15 = vunpack.i.h.bf16 %v11593_v63  ;;  %v11594_v9 = vunpack.i.l.bf16 %v11593_v63  ;;  %6593 = vadd.xlane.f32.xlu0 %v6592_v14  ;;  %12041 = vpow2.f32 %v6493_v13  ;;  %v6459_v14 = vsub.f32 %v14975_v26, %v6417_v32 }
 0xb24   : > { %12043 = vpow2.f32 %v6509_v50  ;;  %v6423_v63 = vpop.xlane.xlu1 %6422 }
 0xb25   : > { %v15139_v36 = vpack.c.bf16 %v11595_v15, %v11594_v9  ;;  %v15143_v3 = vpop.eup %12037 }
 0xb26   : > { %v6574_v21 = vsel %vm1317_vm3, %v15143_v3, 0.0 }
 0xb27   : > { %10909 = vmatprep.subr.bf16.mxu0 %v15139_v36  ;;  %6566 = vadd.xlane.f32.xlu0 %v6565_v25  ;;  %v6517_v25 = vmul.f32 1.442695, %v6459_v14 }
 0xb29   : > { %v15148_v53 = vpop.eup %12039 }
 0xb2a   : > { %16299 = vst [vmem:[#allocation24_spill] sm:$0xff] %v15148_v53  ;;  %v6598_v8 = vsel %vm1317_vm3, %v15148_v53, 0.0 }
 0xb2b   : > { %6575 = vadd.xlane.f32.xlu0 %v6574_v21  ;;  %v6461_v21 = vsub.f32 %v14984_v49, %v6423_v63 }
 0xb2d   : > { %v15152_v54 = vpop.eup %12041 }
 0xb2e   : > { %v6571_v6 = vsel %vm1317_vm3, %v15152_v54, 0.0  ;;  %v15156_v34 = vpop.eup %12043 }
 0xb2f   : > { %6599 = vadd.xlane.f32.xlu0 %v6598_v8  ;;  %16300 = vst [vmem:[#allocation36_spill] sm:$0xff] %v15156_v34  ;;  %v6595_v30 = vsel %vm1317_vm3, %v15156_v34, 0.0  ;;  %v6521_v34 = vmul.f32 1.442695, %v6461_v21 }
 0xb33   : > { %6572 = vadd.xlane.f32.xlu0 %v6571_v6  ;;  %v6429_v6 = vpop.xlane.xlu1 %6428 }
 0xb37   : > { %6596 = vadd.xlane.f32.xlu0 %v6595_v30 }
 0xb53   : > { %v6414_v42 = vpop.xlane.xlu0 %6413 }
 0xb54   : > { %v6458_v13 = vsub.f32 %v15007_v10, %v6414_v42  ;;  %v6463_v10 = vsub.f32 %v14992_v58, %v6429_v6 }
 0xb56   : > { %v6515_v15 = vmul.f32 1.442695, %v6458_v13 }
 0xb57   : > { %v6420_v9 = vpop.xlane.xlu0 %6419 }
 0xb58   : > { %12045 = vpow2.f32 %v6515_v15  ;;  %v6460_v50 = vsub.f32 %v15009_v20, %v6420_v9  ;;  %v6525_v20 = vmul.f32 1.442695, %v6463_v10 }
 0xb5a   : > { %v6519_v8 = vmul.f32 1.442695, %v6460_v50 }
 0xb5b   : > { %v6426_v53 = vpop.xlane.xlu0 %6425 }
 0xb5c   : > { %12047 = vpow2.f32 %v6519_v8  ;;  %v6462_v30 = vsub.f32 %v15017_v12, %v6426_v53  ;;  %v15173_v53 = vpop.permute.xlu1 %11597 }
 0xb5d   : > { %12049 = vpow2.f32 %v6517_v25 }
 0xb5e   : > { %v6523_v42 = vmul.f32 1.442695, %v6462_v30 }
 0xb5f   : > { %v6432_v26 = vpop.xlane.xlu0 %6431 }
 0xb60   : > { %12051 = vpow2.f32 %v6523_v42  ;;  %v6464_v32 = vsub.f32 %v15023_v52, %v6432_v26 }
 0xb61   : > { %12053 = vpow2.f32 %v6521_v34 }
 0xb62   : > { %v15167_v13 = vpop.eup %12045  ;;  %v6527_v49 = vmul.f32 1.442695, %v6464_v32 }
 0xb63   : > { %v6604_v63 = vsel %vm1317_vm3, %v15167_v13, 0.0 }
 0xb64   : > { %12055 = vpow2.f32 %v6527_v49  ;;  %6605 = vadd.xlane.f32.xlu0 %v6604_v63  ;;  %v11580_v49 = vunpack.i.h.bf16 %v15015_v51  ;;  %v11579_v63 = vunpack.i.l.bf16 %v15015_v51 }
 0xb65   : > { %12057 = vpow2.f32 %v6525_v20 }
 0xb66   : > { %v15171_v12 = vpop.eup %12047 }
 0xb67   : > { %v6610_v58 = vsel %vm1317_vm3, %v15171_v12, 0.0  ;;  %v15177_v14 = vpop.eup %12049 }
 0xb68   : > { %6611 = vadd.xlane.f32.xlu0 %v6610_v58  ;;  %v6607_v9 = vsel %vm1317_vm3, %v15177_v14, 0.0 }
 0xb6a   : > { %v15179_v52 = vpop.eup %12051 }
 0xb6b   : > { %v6534_v34 = vpop.xlane.xlu1 %6533  ;;  %v6616_v15 = vsel %vm1317_vm3, %v15179_v52, 0.0  ;;  %v15185_v50 = vpop.eup %12053 }
 0xb6c   : > { %6617 = vadd.xlane.f32.xlu1 %v6616_v15  ;;  %6608 = vadd.xlane.f32.xlu0 %v6607_v9  ;;  %12059 = vrcp.f32 %v6534_v34  ;;  %v6613_v6 = vsel %vm1317_vm3, %v15185_v50, 0.0  ;;  %v11585_v9 = vunpack.i.h.bf16 %v15013_v29 }
 0xb6e   : > { %v15187_v25 = vpop.eup %12055 }
 0xb6f   : > { %v6531_v21 = vpop.xlane.xlu1 %6530  ;;  %v6622_v8 = vsel %vm1317_vm3, %v15187_v25, 0.0  ;;  %v15193_v30 = vpop.eup %12057 }
 0xb70   : > { %12061 = vrcp.f32 %v6531_v21  ;;  %6623 = vadd.xlane.f32.xlu1 %v6622_v8  ;;  %6614 = vadd.xlane.f32.xlu0 %v6613_v6  ;;  %v6619_v42 = vsel %vm1317_vm3, %v15193_v30, 0.0  ;;  %v11584_v21 = vunpack.i.l.bf16 %v15013_v29  ;;  %v10896_v8 = vpack.c.bf16 %v11580_v49, %v11579_v63 }
 0xb73   : > { %v6540_v10 = vpop.xlane.xlu1 %6539 }
 0xb74   : > { %6620 = vadd.xlane.f32.xlu0 %v6619_v42  ;;  %12063 = vrcp.f32 %v6540_v10  ;;  %v10900_v42 = vpack.c.bf16 %v11585_v9, %v11584_v21 }
 0xb76   : > { %v12060_v32 = vpop.eup %12059 }
 0xb77   : > { %v6537_v26 = vpop.xlane.xlu1 %6536  ;;  %v6658_v15 = vmul.f32 %v12060_v32, %v15034_v40  ;;  %v11589_v40 = vunpack.i.l.bf16 %v15021_v55  ;;  %v16301_v32 = vld [vmem:[#allocation96_spill] sm:$0xff] }
 0xb78   : > { %12065 = vrcp.f32 %v6537_v26 }
 0xb7a   : > { %v12062_v20 = vpop.eup %12061 }
 0xb7b   : > { %v6546_v58 = vpop.xlane.xlu1 %6545  ;;  %v6657_v34 = vmul.f32 %v12062_v20, %v15039_v31  ;;  %v11590_v31 = vunpack.i.h.bf16 %v15021_v55 }
 0xb7c   : > { %12067 = vrcp.f32 %v6546_v58  ;;  %v16303_v58 = vld [vmem:[#allocation19_spill] sm:$0xff] }
 0xb7d   : > { %10124 = vmatprep.mubr.msk.f32.mxu1 %vm1317_vm3, %v6657_v34  ;;  %v10904_v55 = vpack.c.bf16 %v11590_v31, %v11589_v40 }
 0xb7e   : > { %10125 = vmatmul.mubr.msk.f32.vlgmr.msra.gmra.mrb[112].mxu1 %vm1317_vm3, %v6658_v15  ;;  %v12064_v51 = vpop.eup %12063 }
 0xb7f   : > { %10895 = vmatpush3.bf16.msra.mxu1 %v14846_v0  ;;  %v6543_v6 = vpop.xlane.xlu1 %6542  ;;  %v6660_v0 = vmul.f32 %v12064_v51, %v15043_v48 }
 0xb80   : > { %10897 = vmatprep.subr.bf16.mxu1 %v10896_v8  ;;  %12069 = vrcp.f32 %v6543_v6  ;;  %v16308_v6 = vld [vmem:[#allocation94_spill] sm:$0xff] }
 0xb81   : > { %11607 = vrot.lane.b32.xlu1 %v16269_v17, %s12176_s20 }
 0xb82   : > { %v12066_v10 = vpop.eup %12065 }
 0xb83   : > { %10899 = vmatpush3.bf16.msra.mxu1 %v10896_v8  ;;  %v6552_v29 = vpop.xlane.xlu1 %6551  ;;  %v6659_v26 = vmul.f32 %v12066_v10, %v15048_v23  ;;  %v16302_v23 = vld [vmem:[#allocation28_spill] sm:$0xff]  ;;  %v16307_v8 = vld [vmem:[#allocation25_spill] sm:$0xff] }
 0xb84   : > { %10901 = vmatprep.subr.bf16.mxu1 %v10900_v42  ;;  %12071 = vrcp.f32 %v6552_v29 }
 0xb85   : > { %10127 = vmatprep.mubr.msk.f32.mxu1 %vm1317_vm3, %v6659_v26  ;;  %7361 = vrot.lane.b32.xlu1 %v16301_v32, %s12177_s23  ;;  %v11600_v26 = vunpack.i.h.bf16 %v15173_v53 }
 0xb86   : > { %10128 = vmatmul.mubr.msk.f32.gmra.mrb[114].mxu1 %vm1317_vm3, %v6660_v0  ;;  %v12068_v20 = vpop.eup %12067  ;;  %v11599_v0 = vunpack.i.l.bf16 %v15173_v53  ;;  %v16310_v53 = vld [vmem:[#allocation90_spill] sm:$0xff] }
 0xb87   : > { %10903 = vmatpush3.bf16.msra.mxu1 %v10900_v42  ;;  %v6549_v17 = vpop.xlane.xlu1 %6548  ;;  %v6662_v63 = vmul.f32 %v12068_v20, %v15054_v46 }
 0xb88   : > { %10905 = vmatprep.subr.bf16.mxu1 %v10904_v55  ;;  %12073 = vrcp.f32 %v6549_v17  ;;  %v10912_v17 = vpack.c.bf16 %v11600_v26, %v11599_v0  ;;  %v16325_v26 = vld [vmem:[#allocation36_spill] sm:$0xff] }
 0xb89   : > { %7363 = vrot.lane.b32.xlu1 %v16302_v23, %s12177_s23  ;;  %v16311_v23 = vld [vmem:[#allocation104_spill] sm:$0xff] }
 0xb8a   : > { %v12070_v49 = vpop.eup %12069  ;;  %11602 = vrot.lane.b32.xlu0 %v16250_v59, %s12176_s20  ;;  %v16326_v0 = vld [vmem:[#allocation100_spill] sm:$0xff] }
 0xb8b   : > { %10907 = vmatpush3.bf16.msra.mxu1 %v10904_v55  ;;  %v6661_v48 = vmul.f32 %v12070_v49, %v15058_v11  ;;  %v6558_v11 = vpop.xlane.xlu0 %6557 }
 0xb8d   : > { %10130 = vmatprep.mubr.msk.f32.mxu1 %vm1317_vm3, %v6661_v48  ;;  %7489 = vrot.lane.b32.xlu1 %v14863_v28, %s12178_s24  ;;  %v16304_v28 = vld [vmem:[#allocation31_spill] sm:$0xff] }
 0xb8e   : > { %10131 = vmatmul.mubr.msk.f32.gmra.mrb[116].mxu1 %vm1317_vm3, %v6662_v63  ;;  %7365 = vrot.lane.b32.xlu0 %v16303_v58, %s12177_s23  ;;  %v12072_v34 = vpop.eup %12071  ;;  %v16312_v63 = vld [vmem:[#allocation105_spill] sm:$0xff] }
 0xb8f   : > { %v6664_v46 = vmul.f32 %v12072_v34, %v15062_v41  ;;  %v16306_v41 = vld [vmem:[#allocation87_spill] sm:$0xff]  ;;  %v16313_v34 = vld [vmem:[#allocation89_spill] sm:$0xff] }
 0xb91   : > { %7491 = vrot.lane.b32.xlu1 %v14861_v35, %s12178_s24  ;;  %v16305_v35 = vld [vmem:[#allocation86_spill] sm:$0xff] }
 0xb92   : > { %v12074_v15 = vpop.eup %12073  ;;  %7493 = vrot.lane.b32.xlu0 %v14840_v45, %s12178_s24 }
 0xb93   : > { %v6663_v59 = vmul.f32 %v12074_v15, %v15068_v24  ;;  %v16314_v15 = vld [vmem:[#allocation88_spill] sm:$0xff] }
 0xb95   : > { %10133 = vmatprep.mubr.msk.f32.mxu1 %vm1317_vm3, %v6663_v59  ;;  %7367 = vrot.lane.b32.xlu1 %v16304_v28, %s12177_s23 }
 0xb96   : > { %10134 = vmatmul.mubr.msk.f32.gmra.mrb[118].mxu1 %vm1317_vm3, %v6664_v46  ;;  %7495 = vrot.lane.b32.xlu0 %v14838_v27, %s12178_s24 }
 0xb98   : > { %v6582_v9 = vpop.xlane.xlu0 %6581 }
 0xb99   : > { %12075 = vrcp.f32 %v6582_v9  ;;  %7333 = vrot.lane.b32.xlu1 %v16305_v35, %s12177_s23  ;;  %v6579_v45 = vpop.xlane.xlu1 %6578 }
 0xb9a   : > { %12077 = vrcp.f32 %v6579_v45  ;;  %7335 = vrot.lane.b32.xlu0 %v16306_v41, %s12177_s23  ;;  %v16317_v45 = vld [vmem:[#allocation101_spill] sm:$0xff] }
 0xb9b   : > { %12079 = vrcp.f32 %v6558_v11  ;;  %v16318_v41 = vld [vmem:[#allocation93_spill] sm:$0xff] }
 0xb9c   : > { %v6555_v24 = vpop.xlane.xlu0 %6554 }
 0xb9d   : > { %12081 = vrcp.f32 %v6555_v24  ;;  %7461 = vrot.lane.b32.xlu1 %v14781_v57, %s12178_s24  ;;  %v6585_v21 = vpop.xlane.xlu1 %6584 }
 0xb9e   : > { %12083 = vrcp.f32 %v6585_v21  ;;  %7463 = vrot.lane.b32.xlu0 %v14777_v43, %s12178_s24  ;;  %v16319_v21 = vld [vmem:[#allocation15_spill] sm:$0xff] }
 0xba0   : > { %v6564_v27 = vpop.xlane.xlu0 %6563 }
 0xba1   : > { %7369 = vrot.lane.b32.xlu1 %v16307_v8, %s12177_s23  ;;  %v16321_v8 = vld [vmem:[#allocation91_spill] sm:$0xff] }
 0xba2   : > { %7371 = vrot.lane.b32.xlu0 %v16308_v6, %s12177_s23  ;;  %v16322_v6 = vld [vmem:[#allocation92_spill] sm:$0xff] }
 0xba3   : > { %v12076_v51 = vpop.eup %12075 }
 0xba4   : > { %v12078_v10 = vpop.eup %12077  ;;  %v6588_v31 = vpop.xlane.xlu0 %6587  ;;  %v6674_v43 = vmul.f32 %v12076_v51, %v15082_v7 }
 0xba5   : > { %12085 = vrcp.f32 %v6588_v31  ;;  %v6591_v40 = vpop.xlane.xlu1 %6590  ;;  %7497 = vrot.lane.b32.xlu1 %v14850_v61, %s12178_s24  ;;  %v6673_v57 = vmul.f32 %v12078_v10, %v15084_v44  ;;  %v12080_v42 = vpop.eup %12079  ;;  %v16309_v44 = vld [vmem:[#allocation54_spill] sm:$0xff]  ;;  %v16323_v31 = vld [vmem:[#allocation8_spill] sm:$0xff] }
 0xba6   : > { %12087 = vrcp.f32 %v6591_v40  ;;  %7499 = vrot.lane.b32.xlu0 %v14848_v62, %s12178_s24  ;;  %v6666_v7 = vmul.f32 %v12080_v42, %v15064_v38  ;;  %v16324_v42 = vld [vmem:[#allocation9_spill] sm:$0xff] }
 0xba7   : > { %v12082_v29 = vpop.eup %12081  ;;  %10180 = vmatprep.mubr.msk.f32.mxu1 %vm1317_vm3, %v6673_v57  ;;  %12089 = vrcp.f32 %v6564_v27 }
 0xba8   : > { %v12084_v32 = vpop.eup %12083  ;;  %v6561_v55 = vpop.xlane.xlu0 %6560  ;;  %10181 = vmatmul.mubr.msk.f32.vlgmr.msra.gmra.mrb[120].mxu1 %vm1317_vm3, %v6674_v43  ;;  %v6665_v61 = vmul.f32 %v12082_v29, %v15090_v2 }
 0xba9   : > { %12091 = vrcp.f32 %v6561_v55  ;;  %7337 = vrot.lane.b32.xlu1 %v16309_v44, %s12177_s23  ;;  %v6675_v62 = vmul.f32 %v12084_v32, %v15095_v4  ;;  %v16327_v32 = vld [vmem:[#allocation24_spill] sm:$0xff]  ;;  %v16328_v55 = vld [vmem:[#allocation99_spill] sm:$0xff] }
 0xbaa   : > { %10152 = vmatprep.mubr.msk.f32.mxu0 %vm1317_vm3, %v6665_v61  ;;  %7339 = vrot.lane.b32.xlu0 %v16310_v53, %s12177_s23  ;;  %v16330_v61 = vld [vmem:[#allocation17_spill] sm:$0xff]  ;;  %v16332_v44 = vld [vmem:[#allocation95_spill] sm:$0xff]  ;;  %v16334_v53 = vld [vmem:[#allocation40_spill] sm:$0xff] }
 0xbab   : > { %10153 = vmatmul.mubr.msk.f32.vlgmr.msra.gmra.mrb[144].mxu0 %vm1317_vm3, %v6666_v7  ;;  %10183 = vmatprep.mubr.msk.f32.mxu1 %vm1317_vm3, %v6675_v62  ;;  %v16331_v7 = vld [vmem:[#allocation16_spill] sm:$0xff]  ;;  %v16333_v62 = vld [vmem:[#allocation110_spill] sm:$0xff] }
 0xbac   : > { %10911 = vmatpush3.bf16.msra.mxu0 %v15139_v36  ;;  %v6570_v2 = vpop.xlane.xlu0 %6569 }
 0xbad   : > { %10913 = vmatprep.subr.bf16.mxu0 %v10912_v17  ;;  %7465 = vrot.lane.b32.xlu1 %v14785_v18, %s12178_s24  ;;  %v6603_v59 = vpop.xlane.xlu1 %6602 }
 0xbae   : > { %7467 = vrot.lane.b32.xlu0 %v14783_v47, %s12178_s24 }
 0xbaf   : > { %v12086_v38 = vpop.eup %12085 }
 0xbb0   : > { %v12088_v4 = vpop.eup %12087  ;;  %10915 = vmatpush3.bf16.msra.mxu0 %v10912_v17  ;;  %v6594_v20 = vpop.xlane.xlu0 %6593  ;;  %v6676_v49 = vmul.f32 %v12086_v38, %v15107_v1  ;;  %v16335_v17 = vld [vmem:[#allocation102_spill] sm:$0xff]  ;;  %v16337_v38 = vld [vmem:[#allocation49_spill] sm:$0xff] }
 0xbb1   : > { %12093 = vrcp.f32 %v6594_v20  ;;  %7373 = vrot.lane.b32.xlu1 %v16311_v23, %s12177_s23  ;;  %v6677_v36 = vmul.f32 %v12088_v4, %v15110_v60  ;;  %v12090_v48 = vpop.eup %12089  ;;  %v16338_v4 = vld [vmem:[#allocation21_spill] sm:$0xff]  ;;  %v16341_v23 = vld [vmem:[#allocation12_spill] sm:$0xff] }
 0xbb2   : > { %7375 = vrot.lane.b32.xlu0 %v16312_v63, %s12177_s23  ;;  %10184 = vmatmul.mubr.msk.f32.gmra.mrb[122].mxu1 %vm1317_vm3, %v6676_v49  ;;  %12095 = vrcp.f32 %v6570_v2  ;;  %v6668_v1 = vmul.f32 %v12090_v48, %v15099_v5  ;;  %v16315_v5 = vld [vmem:[#allocation18_spill] sm:$0xff]  ;;  %v16336_v2 = vld [vmem:[#allocation103_spill] sm:$0xff]  ;;  %v16339_v20 = vld [vmem:[#allocation37_spill] sm:$0xff] }
 0xbb3   : > { %v12092_v18 = vpop.eup %12091  ;;  %10186 = vmatprep.mubr.msk.f32.mxu1 %vm1317_vm3, %v6677_v36  ;;  %v16340_v49 = vld [vmem:[#allocation22_spill] sm:$0xff]  ;;  %v16342_v36 = vld [vmem:[#allocation5_spill] sm:$0xff]  ;;  %v16343_v63 = vld [vmem:[#allocation107_spill] sm:$0xff] }
 0xbb4   : > { %v6567_v47 = vpop.xlane.xlu0 %6566  ;;  %v6667_v58 = vmul.f32 %v12092_v18, %v15114_v33  ;;  %v16344_v18 = vld [vmem:[#allocation106_spill] sm:$0xff] }
 0xbb5   : > { %12097 = vrcp.f32 %v6567_v47  ;;  %7501 = vrot.lane.b32.xlu1 %v14859_v56, %s12178_s24 }
 0xbb6   : > { %10155 = vmatprep.mubr.msk.f32.mxu0 %vm1317_vm3, %v6667_v58  ;;  %7503 = vrot.lane.b32.xlu0 %v14857_v19, %s12178_s24  ;;  %v16316_v19 = vld [vmem:[#allocation6_spill] sm:$0xff]  ;;  %12099 = vrcp.f32 %v6603_v59  ;;  %v16345_v58 = vld [vmem:[#allocation29_spill] sm:$0xff] }
 0xbb7   : > { %10156 = vmatmul.mubr.msk.f32.gmra.mrb[146].mxu0 %vm1317_vm3, %v6668_v1  ;;  %v16346_v1 = vld [vmem:[#allocation20_spill] sm:$0xff] }
 0xbb8   : > { %v6576_v60 = vpop.xlane.xlu0 %6575 }
 0xbb9   : > { %7341 = vrot.lane.b32.xlu1 %v16313_v34, %s12177_s23  ;;  %12101 = vrcp.f32 %v6576_v60  ;;  %v16347_v60 = vld [vmem:[#allocation97_spill] sm:$0xff] }
 0xbba   : > { %7343 = vrot.lane.b32.xlu0 %v16314_v15, %s12177_s23 }
 0xbbb   : > { %v12094_v33 = vpop.eup %12093 }
 0xbbc   : > { %v6600_v46 = vpop.xlane.xlu0 %6599  ;;  %v6678_v56 = vmul.f32 %v12094_v33, %v15128_v16  ;;  %v12096_v11 = vpop.eup %12095 }
 0xbbd   : > { %7469 = vrot.lane.b32.xlu1 %v16315_v5, %s12178_s24  ;;  %v6670_v16 = vmul.f32 %v12096_v11, %v15121_v39 }
 0xbbe   : > { %7471 = vrot.lane.b32.xlu0 %v16316_v19, %s12178_s24  ;;  %10187 = vmatmul.mubr.msk.f32.gmra.mrb[124].mxu1 %vm1317_vm3, %v6678_v56 }
 0xbbf   : > { %v12098_v28 = vpop.eup %12097 }
 0xbc0   : > { %v6573_v9 = vpop.xlane.xlu0 %6572  ;;  %v6669_v35 = vmul.f32 %v12098_v28, %v15137_v22  ;;  %v16320_v22 = vld [vmem:[#allocation43_spill] sm:$0xff]  ;;  %v12100_v27 = vpop.eup %12099 }
 0xbc1   : > { %12103 = vrcp.f32 %v6573_v9  ;;  %7377 = vrot.lane.b32.xlu1 %v16317_v45, %s12177_s23  ;;  %v6681_v43 = vmul.f32 %v12100_v27, %v15124_v37  ;;  %v16329_v37 = vld [vmem:[#allocation14_spill] sm:$0xff] }
 0xbc2   : > { %10158 = vmatprep.mubr.msk.f32.mxu0 %vm1317_vm3, %v6669_v35  ;;  %7379 = vrot.lane.b32.xlu0 %v16318_v41, %s12177_s23  ;;  %12105 = vrcp.f32 %v6600_v46 }
 0xbc3   : > { %10159 = vmatmul.mubr.msk.f32.gmra.mrb[148].mxu0 %vm1317_vm3, %v6670_v16  ;;  %v12102_v39 = vpop.eup %12101 }
 0xbc4   : > { %v6597_v24 = vpop.xlane.xlu0 %6596  ;;  %v6672_v40 = vmul.f32 %v12102_v39, %v15143_v3 }
 0xbc5   : > { %12107 = vrcp.f32 %v6597_v24  ;;  %7505 = vrot.lane.b32.xlu1 %v16319_v21, %s12178_s24  ;;  %v16348_v24 = vld [vmem:[#allocation70_spill] sm:$0xff] }
 0xbc6   : > { %7507 = vrot.lane.b32.xlu0 %v16320_v22, %s12178_s24  ;;  %v16349_v22 = vld [vmem:[#allocation76_spill] sm:$0xff] }
 0xbc9   : > { %7345 = vrot.lane.b32.xlu1 %v16321_v8, %s12177_s23 }
 0xbca   : > { %7347 = vrot.lane.b32.xlu0 %v16322_v6, %s12177_s23  ;;  %v16350_v6 = vld [vmem:[#allocation77_spill] sm:$0xff] }
 0xbcb   : > { %v12104_v51 = vpop.eup %12103 }
 0xbcc   : > { %v6671_v10 = vmul.f32 %v12104_v51, %v15152_v54  ;;  %v12106_v57 = vpop.eup %12105 }
 0xbcd   : > { %7473 = vrot.lane.b32.xlu1 %v16323_v31, %s12178_s24  ;;  %v6680_v3 = vmul.f32 %v12106_v57, %v16327_v32 }
 0xbce   : > { %10161 = vmatprep.mubr.msk.f32.mxu0 %vm1317_vm3, %v6671_v10  ;;  %7475 = vrot.lane.b32.xlu0 %v16324_v42, %s12178_s24 }
 0xbcf   : > { %v12108_v29 = vpop.eup %12107  ;;  %10162 = vmatmul.mubr.msk.f32.gmra.mrb[150].mxu0 %vm1317_vm3, %v6672_v40 }
 0xbd0   : > { %10208 = vmatprep.mubr.msk.f32.mxu0 %vm1317_vm3, %v6681_v43  ;;  %v6679_v54 = vmul.f32 %v12108_v29, %v16325_v26 }
 0xbd1   : > { %7381 = vrot.lane.b32.xlu1 %v16326_v0, %s12177_s23 }
 0xbd2   : > { %7383 = vrot.lane.b32.xlu0 %v16328_v55, %s12177_s23  ;;  %10189 = vmatprep.mubr.msk.f32.mxu1 %vm1317_vm3, %v6679_v54 }
 0xbd3   : > { %10190 = vmatmul.mubr.msk.f32.gmra.mrb[126].mxu1 %vm1317_vm3, %v6680_v3 }
 0xbd5   : > { %7509 = vrot.lane.b32.xlu1 %v16329_v37, %s12178_s24 }
 0xbd6   : > { %7511 = vrot.lane.b32.xlu0 %v16330_v61, %s12178_s24 }
 0xbd9   : > { %7349 = vrot.lane.b32.xlu1 %v16331_v7, %s12177_s23 }
 0xbda   : > { %7351 = vrot.lane.b32.xlu0 %v16332_v44, %s12177_s23 }
 0xbdd   : > { %7477 = vrot.lane.b32.xlu1 %v16333_v62, %s12178_s24  ;;  %v16351_v62 = vld [vmem:[#allocation55_spill] sm:$0xff] }
 0xbde   : > { %7479 = vrot.lane.b32.xlu0 %v16334_v53, %s12178_s24 }
 0xbe1   : > { %7385 = vrot.lane.b32.xlu1 %v16335_v17, %s12177_s23 }
 0xbe2   : > { %7387 = vrot.lane.b32.xlu0 %v16336_v2, %s12177_s23 }
 0xbe5   : > { %7513 = vrot.lane.b32.xlu1 %v16337_v38, %s12178_s24 }
 0xbe6   : > { %7515 = vrot.lane.b32.xlu0 %v16338_v4, %s12178_s24 }
 0xbe9   : > { %7353 = vrot.lane.b32.xlu1 %v16339_v20, %s12177_s23 }
 0xbea   : > { %7355 = vrot.lane.b32.xlu0 %v16340_v49, %s12177_s23 }
 0xbed   : > { %7481 = vrot.lane.b32.xlu1 %v16341_v23, %s12178_s24  ;;  %v16353_v23 = vld [vmem:[#allocation62_spill] sm:$0xff] }
 0xbee   : > { %7483 = vrot.lane.b32.xlu0 %v16342_v36, %s12178_s24 }
 0xbf1   : > { %v6606_v48 = vpop.xlane.xlu0 %6605  ;;  %7389 = vrot.lane.b32.xlu1 %v16343_v63, %s12177_s23 }
 0xbf2   : > { %7391 = vrot.lane.b32.xlu0 %v16344_v18, %s12177_s23  ;;  %12109 = vrcp.f32 %v6606_v48 }
 0xbf5   : > { %v6612_v47 = vpop.xlane.xlu0 %6611  ;;  %7517 = vrot.lane.b32.xlu1 %v16345_v58, %s12178_s24 }
 0xbf6   : > { %7519 = vrot.lane.b32.xlu0 %v16346_v1, %s12178_s24 }
 0xbf9   : > { %7357 = vrot.lane.b32.xlu1 %v16347_v60, %s12177_s23  ;;  %v6609_v34 = vpop.xlane.xlu0 %6608  ;;  %v6618_v15 = vpop.xlane.xlu1 %6617 }
 0xbfa   : > { %12111 = vrcp.f32 %v6609_v34  ;;  %v16355_v34 = vld [vmem:[#allocation61_spill] sm:$0xff] }
 0xbfb   : > { %12113 = vrcp.f32 %v6612_v47 }
 0xbfc   : > { %v12110_v39 = vpop.eup %12109 }
 0xbfd   : > { %v6615_v33 = vpop.xlane.xlu0 %6614  ;;  %v6624_v59 = vpop.xlane.xlu1 %6623  ;;  %v6682_v43 = vmul.f32 %v12110_v39, %v15167_v13 }
 0xbfe   : > { %12115 = vrcp.f32 %v6615_v33 }
 0xbff   : > { %12117 = vrcp.f32 %v6618_v15 }
 0xc01   : > { %v6621_v46 = vpop.xlane.xlu0 %6620  ;;  %v11608_v56 = vpop.permute.xlu1 %11607 }
 0xc02   : > { %v11610_v19 = vunpack.i.h.bf16 %v11608_v56  ;;  %v11609_v28 = vunpack.i.l.bf16 %v11608_v56  ;;  %12119 = vrcp.f32 %v6621_v46 }
 0xc03   : > { %12121 = vrcp.f32 %v6624_v59  ;;  %v16356_v59 = vld [vmem:[#allocation53_spill] sm:$0xff] }
 0xc04   : > { %v10920_v8 = vpack.c.bf16 %v11610_v19, %v11609_v28  ;;  %v12112_v40 = vpop.eup %12111  ;;  %v16357_v28 = vld [vmem:[#allocation64_spill] sm:$0xff] }
 0xc05   : > { %v11603_v5 = vpop.permute.xlu0 %11602  ;;  %v7362_v11 = vpop.permute.xlu1 %7361  ;;  %v6683_v0 = vmul.f32 %v12112_v40, %v15177_v14  ;;  %v16352_v14 = vld [vmem:[#allocation59_spill] sm:$0xff] }
 0xc06   : > { %v11605_v9 = vunpack.i.h.bf16 %v11603_v5  ;;  %v11604_v35 = vunpack.i.l.bf16 %v11603_v5  ;;  %v7699_v51 = vsel %vm696_vm1, %v16350_v6, %v7362_v11  ;;  %v12114_v29 = vpop.eup %12113 }
 0xc07   : > { %v6684_v55 = vmul.f32 %v12114_v29, %v15171_v12 }
 0xc08   : > { %v10916_v45 = vpack.c.bf16 %v11605_v9, %v11604_v35  ;;  %v12116_v32 = vpop.eup %12115 }
 0xc09   : > { %v7366_v16 = vpop.permute.xlu0 %7365  ;;  %v7364_v41 = vpop.permute.xlu1 %7363  ;;  %v6685_v13 = vmul.f32 %v12116_v32, %v15185_v50  ;;  %v7783_v32 = vld [vmem:[%s15811_s3] sm:$0xff] }
 0xc0a   : > { %v7701_v21 = vsel %vm696_vm1, %v16348_v24, %v7366_v16  ;;  %v7700_v27 = vsel %vm696_vm1, %v16349_v22, %v7364_v41  ;;  %10917 = vmatprep.subr.bf16.mxu0 %v10916_v45  ;;  %v12118_v37 = vpop.eup %12117  ;;  %v16358_v16 = vld [vmem:[#allocation67_spill] sm:$0xff] }
 0xc0b   : > { %10919 = vmatpush3.bf16.msra.mxu0 %v10916_v45  ;;  %v6686_v12 = vmul.f32 %v12118_v37, %v15179_v52  ;;  %v16354_v52 = vld [vmem:[#allocation58_spill] sm:$0xff] }
 0xc0c   : > { %10921 = vmatprep.subr.bf16.mxu0 %v10920_v8  ;;  %v12120_v44 = vpop.eup %12119 }
 0xc0d   : > { %v7494_v10 = vpop.permute.xlu0 %7493  ;;  %v7490_v31 = vpop.permute.xlu1 %7489  ;;  %v6687_v50 = vmul.f32 %v12120_v44, %v15193_v30 }
 0xc0e   : > { %v15382_v57 = vsel %vm7717_vm4, %v7701_v21, %v7494_v10  ;;  %v15385_v42 = vsel %vm7717_vm4, %v7699_v51, %v7490_v31  ;;  %v12122_v38 = vpop.eup %12121  ;;  %v16360_v10 = vld [vmem:[#allocation66_spill] sm:$0xff] }
 0xc0f   : > { %10923 = vmatpush3.bf16.msra.mxu0 %v10920_v8  ;;  %v6688_v48 = vmul.f32 %v12122_v38, %v15187_v25  ;;  %v16359_v8 = vld [vmem:[#allocation72_spill] sm:$0xff] }
 0xc11   : > { %v7496_v26 = vpop.permute.xlu0 %7495  ;;  %v7492_v54 = vpop.permute.xlu1 %7491 }
 0xc12   : > { %v15390_v3 = vsel %vm7717_vm4, %v7700_v27, %v7492_v54  ;;  %10209 = vmatmul.mubr.msk.f32.vlgmr.msra.gmra.mrb[152].mxu0 %vm1317_vm3, %v6682_v43  ;;  %v16361_v54 = vld [vmem:[#allocation71_spill] sm:$0xff] }
 0xc13   : > { %10211 = vmatprep.mubr.msk.f32.mxu0 %vm1317_vm3, %v6683_v0 }
 0xc15   : > { %v7336_v61 = vpop.permute.xlu0 %7335  ;;  %v7368_v7 = vpop.permute.xlu1 %7367 }
 0xc16   : > { %v7686_v53 = vsel %vm696_vm1, %v16351_v62, %v7336_v61  ;;  %v7702_v17 = vsel %vm696_vm1, %v16352_v14, %v7368_v7  ;;  %10212 = vmatmul.mubr.msk.f32.gmra.mrb[154].mxu0 %vm1317_vm3, %v6684_v55  ;;  %v7784_v55 = vld [vmem:[%s15811_s3 + $0x8] sm:$0xff] }
 0xc17   : > { %10214 = vmatprep.mubr.msk.f32.mxu0 %vm1317_vm3, %v6685_v13  ;;  %v15403_v2 = vsel %vm7717_vm4, %v7702_v17, %v7496_v26  ;;  %v10924_v37 = vpack.c.bf16 %v7784_v55, %v7783_v32  ;;  %v16362_v13 = vld [vmem:[#allocation74_spill] sm:$0xff]  ;;  %v16370_v55 = vld [vmem:[#allocation80_spill] sm:$0xff] }
 0xc19   : > { %v7464_v4 = vpop.permute.xlu0 %7463  ;;  %v7334_v20 = vpop.permute.xlu1 %7333  ;;  %10925 = vmatprep.subr.bf16.mxu0 %v10924_v37  ;;  %10932 = vmatprep.subr.bf16.mxu1 %v10924_v37 }
 0xc1a   : > { %v15408_v49 = vsel %vm7717_vm4, %v7686_v53, %v7464_v4  ;;  %v7685_v36 = vsel %vm696_vm1, %v16353_v23, %v7334_v20  ;;  %10215 = vmatmul.mubr.msk.f32.gmra.mrb[156].mxu0 %vm1317_vm3, %v6686_v12  ;;  %10934 = vmatpush3.bf16.msra.mxu1 %v10924_v37  ;;  %v16363_v12 = vld [vmem:[#allocation75_spill] sm:$0xff]  ;;  %v7786_v20 = vld [vmem:[%s15811_s3 + $0x18] sm:$0xff] }
 0xc1b   : > { %10217 = vmatprep.mubr.msk.f32.mxu0 %vm1317_vm3, %v6687_v50  ;;  %10927 = vmatpush3.bf16.msra.mxu0 %v10924_v37  ;;  %v7785_v4 = vld [vmem:[%s15811_s3 + $0x10] sm:$0xff] }
 0xc1c   : > { %v10928_v50 = vpack.c.bf16 %v7786_v20, %v7785_v4 }
 0xc1d   : > { %v7372_v63 = vpop.permute.xlu0 %7371  ;;  %v7462_v18 = vpop.permute.xlu1 %7461 }
 0xc1e   : > { %v7704_v47 = vsel %vm696_vm1, %v16354_v52, %v7372_v63  ;;  %v15418_v58 = vsel %vm7717_vm4, %v7685_v36, %v7462_v18  ;;  %10218 = vmatmul.mubr.msk.f32.gmra.mrb[158].mxu0 %vm1317_vm3, %v6688_v48  ;;  %v16364_v48 = vld [vmem:[#allocation68_spill] sm:$0xff]  ;;  %10929 = vmatprep.subr.bf16.mxu0 %v10928_v50 }
 0xc1f   : > { %10933 = vmatprep.subr.bf16.mxu1 %v10928_v50  ;;  %10931 = vmatpush3.bf16.msra.mxu0 %v10928_v50 }
 0xc20   : > { %10935 = vmatpush3.bf16.msra.mxu1 %v10928_v50  ;;  %v16372_v50 = vld [vmem:[#allocation60_spill] sm:$0xff] }
 0xc21   : > { %v7500_v30 = vpop.permute.xlu0 %7499  ;;  %v7370_v1 = vpop.permute.xlu1 %7369 }
 0xc22   : > { %v15422_v60 = vsel %vm7717_vm4, %v7704_v47, %v7500_v30  ;;  %v7703_v15 = vsel %vm696_vm1, %v16355_v34, %v7370_v1  ;;  %v16365_v1 = vld [vmem:[#allocation56_spill] sm:$0xff] }
 0xc25   : > { %v7340_v33 = vpop.permute.xlu0 %7339  ;;  %v7498_v25 = vpop.permute.xlu1 %7497 }
 0xc26   : > { %v7688_v46 = vsel %vm696_vm1, %v16356_v59, %v7340_v33  ;;  %v15429_v56 = vsel %vm7717_vm4, %v7703_v15, %v7498_v25  ;;  %v16366_v25 = vld [vmem:[#allocation78_spill] sm:$0xff] }
 0xc29   : > { %v7468_v5 = vpop.permute.xlu0 %7467  ;;  %v7338_v11 = vpop.permute.xlu1 %7337 }
 0xc2a   : > { %v15432_v19 = vsel %vm7717_vm4, %v7688_v46, %v7468_v5  ;;  %v7687_v9 = vsel %vm696_vm1, %v16357_v28, %v7338_v11 }
 0xc2d   : > { %v7376_v35 = vpop.permute.xlu0 %7375  ;;  %v7466_v45 = vpop.permute.xlu1 %7465 }
 0xc2e   : > { %v7706_v41 = vsel %vm696_vm1, %v16358_v16, %v7376_v35  ;;  %v15439_v24 = vsel %vm7717_vm4, %v7687_v9, %v7466_v45  ;;  %v16367_v35 = vld [vmem:[#allocation79_spill] sm:$0xff] }
 0xc31   : > { %v7504_v21 = vpop.permute.xlu0 %7503  ;;  %v7374_v22 = vpop.permute.xlu1 %7373 }
 0xc32   : > { %v15442_v27 = vsel %vm7717_vm4, %v7706_v41, %v7504_v21  ;;  %v7705_v39 = vsel %vm696_vm1, %v16359_v8, %v7374_v22  ;;  %v16368_v22 = vld [vmem:[#allocation63_spill] sm:$0xff] }
 0xc35   : > { %v7344_v6 = vpop.permute.xlu0 %7343  ;;  %v7502_v51 = vpop.permute.xlu1 %7501 }
 0xc36   : > { %v7690_v31 = vsel %vm696_vm1, %v16360_v10, %v7344_v6  ;;  %v15449_v40 = vsel %vm7717_vm4, %v7705_v39, %v7502_v51 }
 0xc39   : > { %v7472_v43 = vpop.permute.xlu0 %7471  ;;  %v7342_v29 = vpop.permute.xlu1 %7341 }
 0xc3a   : > { %v15452_v26 = vsel %vm7717_vm4, %v7690_v31, %v7472_v43  ;;  %v7689_v0 = vsel %vm696_vm1, %v16361_v54, %v7342_v29  ;;  %v16369_v43 = vld [vmem:[#allocation57_spill] sm:$0xff] }
 0xc3d   : > { %v7380_v61 = vpop.permute.xlu0 %7379  ;;  %v7470_v7 = vpop.permute.xlu1 %7469 }
 0xc3e   : > { %v7708_v44 = vsel %vm696_vm1, %v16362_v13, %v7380_v61  ;;  %v15465_v62 = vsel %vm7717_vm4, %v7689_v0, %v7470_v7 }
 0xc41   : > { %v7508_v53 = vpop.permute.xlu0 %7507  ;;  %v7378_v14 = vpop.permute.xlu1 %7377 }
 0xc42   : > { %v15468_v17 = vsel %vm7717_vm4, %v7708_v44, %v7508_v53  ;;  %v7707_v38 = vsel %vm696_vm1, %v16363_v12, %v7378_v14  ;;  %v16371_v14 = vld [vmem:[#allocation81_spill] sm:$0xff] }
 0xc45   : > { %v7348_v23 = vpop.permute.xlu0 %7347  ;;  %v7506_v36 = vpop.permute.xlu1 %7505 }
 0xc46   : > { %v7692_v63 = vsel %vm696_vm1, %v16364_v48, %v7348_v23  ;;  %v15481_v18 = vsel %vm7717_vm4, %v7707_v38, %v7506_v36 }
 0xc49   : > { %v7476_v52 = vpop.permute.xlu0 %7475  ;;  %v7346_v47 = vpop.permute.xlu1 %7345 }
 0xc4a   : > { %v15484_v30 = vsel %vm7717_vm4, %v7692_v63, %v7476_v52  ;;  %v7691_v34 = vsel %vm696_vm1, %v16365_v1, %v7346_v47  ;;  %v16373_v1 = vld [vmem:[#allocation65_spill] sm:$0xff] }
 0xc4d   : > { %v7384_v15 = vpop.permute.xlu0 %7383  ;;  %v7474_v33 = vpop.permute.xlu1 %7473 }
 0xc4e   : > { %v7710_v59 = vsel %vm696_vm1, %v16366_v25, %v7384_v15  ;;  %v15491_v46 = vsel %vm7717_vm4, %v7691_v34, %v7474_v33 }
 0xc51   : > { %v10126_v5 = vpop.f32.mrb[112].mxu1  ;;  %v7512_v11 = vpop.permute.xlu0 %7511 }
 0xc52   : > { %v7382_v28 = vpop.permute.xlu1 %7381  ;;  %7591 = vrot.lane.b32.xlu0 %v10126_v5, %s12179_s8  ;;  %v15495_v9 = vsel %vm7717_vm4, %v7710_v59, %v7512_v11  ;;  %v6803_v16 = vpop.f32.mrb[113].mxu1  ;;  %v16374_v59 = vld [vmem:[#allocation82_spill] sm:$0xff] }
 0xc53   : > { %v7709_v45 = vsel %vm696_vm1, %v16367_v35, %v7382_v28  ;;  %7589 = vrot.lane.b32.xlu1 %v6803_v16, %s12179_s8  ;;  %v16375_v35 = vld [vmem:[#allocation83_spill] sm:$0xff] }
 0xc55   : > { %v7352_v41 = vpop.permute.xlu0 %7351 }
 0xc56   : > { %v7510_v21 = vpop.permute.xlu1 %7509  ;;  %v7694_v8 = vsel %vm696_vm1, %v16368_v22, %v7352_v41 }
 0xc57   : > { %v15503_v39 = vsel %vm7717_vm4, %v7709_v45, %v7510_v21 }
 0xc59   : > { %v10129_v6 = vpop.f32.mrb[114].mxu1  ;;  %v7480_v51 = vpop.permute.xlu0 %7479 }
 0xc5a   : > { %v7350_v10 = vpop.permute.xlu1 %7349  ;;  %7595 = vrot.lane.b32.xlu0 %v10129_v6, %s12179_s8  ;;  %v15507_v31 = vsel %vm7717_vm4, %v7694_v8, %v7480_v51  ;;  %v6813_v54 = vpop.f32.mrb[115].mxu1 }
 0xc5b   : > { %v7693_v29 = vsel %vm696_vm1, %v16369_v43, %v7350_v10  ;;  %7593 = vrot.lane.b32.xlu1 %v6813_v54, %s12179_s8 }
 0xc5d   : > { %v7388_v0 = vpop.permute.xlu0 %7387 }
 0xc5e   : > { %v7478_v32 = vpop.permute.xlu1 %7477  ;;  %v7712_v37 = vsel %vm696_vm1, %v16370_v55, %v7388_v0 }
 0xc5f   : > { %v15515_v61 = vsel %vm7717_vm4, %v7693_v29, %v7478_v32 }
 0xc61   : > { %v10132_v7 = vpop.f32.mrb[116].mxu1  ;;  %v7516_v13 = vpop.permute.xlu0 %7515 }
 0xc62   : > { %v7386_v44 = vpop.permute.xlu1 %7385  ;;  %7599 = vrot.lane.b32.xlu0 %v10132_v7, %s12179_s8  ;;  %v15519_v53 = vsel %vm7717_vm4, %v7712_v37, %v7516_v13  ;;  %v6823_v38 = vpop.f32.mrb[117].mxu1 }
 0xc63   : > { %v7711_v12 = vsel %vm696_vm1, %v16371_v14, %v7386_v44  ;;  %7597 = vrot.lane.b32.xlu1 %v6823_v38, %s12179_s8  ;;  %v16376_v44 = vld [vmem:[#allocation11_spill] sm:$0xff]  ;;  %v16378_v38 = vld [vmem:[#allocation98_spill] sm:$0xff] }
 0xc65   : > { %v7356_v4 = vpop.permute.xlu0 %7355 }
 0xc66   : > { %v7514_v20 = vpop.permute.xlu1 %7513  ;;  %v7696_v23 = vsel %vm696_vm1, %v16372_v50, %v7356_v4  ;;  %v16379_v4 = vld [vmem:[#allocation32_spill] sm:$0xff] }
 0xc67   : > { %v15527_v36 = vsel %vm7717_vm4, %v7711_v12, %v7514_v20  ;;  %v16377_v12 = vld [vmem:[#allocation109_spill] sm:$0xff]  ;;  %v16380_v20 = vld [vmem:[#allocation34_spill] sm:$0xff]  ;;  %v16381_v50 = vld [vmem:[#allocation108_spill] sm:$0xff] }
 0xc69   : > { %v10135_v48 = vpop.f32.mrb[118].mxu1  ;;  %v7484_v63 = vpop.permute.xlu0 %7483 }
 0xc6a   : > { %v7354_v52 = vpop.permute.xlu1 %7353  ;;  %7603 = vrot.lane.b32.xlu0 %v10135_v48, %s12179_s8  ;;  %v15531_v47 = vsel %vm7717_vm4, %v7696_v23, %v7484_v63  ;;  %v6833_v15 = vpop.f32.mrb[119].mxu1 }
 0xc6b   : > { %v7695_v34 = vsel %vm696_vm1, %v16373_v1, %v7354_v52  ;;  %7601 = vrot.lane.b32.xlu1 %v6833_v15, %s12179_s8 }
 0xc6d   : > { %v7392_v33 = vpop.permute.xlu0 %7391 }
 0xc6e   : > { %v7482_v25 = vpop.permute.xlu1 %7481  ;;  %v15538_v5 = vsel %vm696_vm1, %v16374_v59, %v7392_v33 }
 0xc6f   : > { %v15541_v11 = vsel %vm7717_vm4, %v7695_v34, %v7482_v25 }
 0xc71   : > { %v15576_v23 = vpop.permute.xlu0 %7519 }
 0xc72   : > { %v7390_v28 = vpop.permute.xlu1 %7389 }
 0xc73   : > { %v7713_v45 = vsel %vm696_vm1, %v16375_v35, %v7390_v28 }
 0xc76   : > { %v7518_v16 = vpop.permute.xlu1 %7517 }
 0xc77   : > { %v15546_v41 = vsel %vm7717_vm4, %v7713_v45, %v7518_v16 }
 0xc7a   : > { %v15578_v48 = vpop.permute.xlu1 %7357 }
 0xc7b   : > { %v10182_v21 = vpop.f32.mrb[120].mxu1 }
 0xc7c   : > { %7623 = vrot.lane.b32.xlu0 %v10182_v21, %s12179_s8  ;;  %v7109_v22 = vpop.f32.mrb[121].mxu1 }
 0xc7d   : > { %7621 = vrot.lane.b32.xlu1 %v7109_v22, %s12179_s8 }
 0xc7e   : > { %v10154_v8 = vpop.f32.mrb[144].mxu0 }
 0xc7f   : > { %v6956_v6 = vpop.f32.mrb[145].mxu0 }
 0xc80   : > { %7607 = vrot.lane.b32.xlu0 %v10154_v8, %s12179_s8 }
 0xc81   : > { %7605 = vrot.lane.b32.xlu1 %v6956_v6, %s12179_s8 }
 0xc85   : > { %v10185_v51 = vpop.f32.mrb[122].mxu1 }
 0xc86   : > { %7627 = vrot.lane.b32.xlu0 %v10185_v51, %s12179_s8  ;;  %v7119_v10 = vpop.f32.mrb[123].mxu1 }
 0xc87   : > { %7625 = vrot.lane.b32.xlu1 %v7119_v10, %s12179_s8 }
 0xc8a   : > { %v10157_v43 = vpop.f32.mrb[146].mxu0 }
 0xc8b   : > { %v6966_v29 = vpop.f32.mrb[147].mxu0  ;;  %7611 = vrot.lane.b32.xlu0 %v10157_v43, %s12179_s8 }
 0xc8c   : > { %7609 = vrot.lane.b32.xlu1 %v6966_v29, %s12179_s8 }
 0xc91   : > { %v10188_v54 = vpop.f32.mrb[124].mxu1 }
 0xc92   : > { %7631 = vrot.lane.b32.xlu0 %v10188_v54, %s12179_s8  ;;  %v7129_v0 = vpop.f32.mrb[125].mxu1  ;;  %v16382_v54 = vld [vmem:[#allocation46_spill] sm:$0xff] }
 0xc93   : > { %7629 = vrot.lane.b32.xlu1 %v7129_v0, %s12179_s8 }
 0xc96   : > { %v10160_v32 = vpop.f32.mrb[148].mxu0 }
 0xc97   : > { %v6976_v55 = vpop.f32.mrb[149].mxu0 }
 0xca2   : > { %v10163_v37 = vpop.f32.mrb[150].mxu0 }
 0xca3   : > { %v6986_v7 = vpop.f32.mrb[151].mxu0  ;;  %7619 = vrot.lane.b32.xlu1 %v10163_v37, %s12179_s8 }
 0xca6   : > { %v10191_v13 = vpop.f32.mrb[126].mxu1 }
 0xca7   : > { %7485 = vrot.lane.b32.xlu1 %v16376_v44, %s12178_s24  ;;  %7635 = vrot.lane.b32.xlu0 %v10191_v13, %s12179_s8  ;;  %v7139_v14 = vpop.f32.mrb[127].mxu1 }
 0xcab   : > { %7393 = vrot.lane.b32.xlu1 %v16377_v12, %s12177_s23  ;;  %7617 = vrot.lane.b32.xlu0 %v6986_v7, %s12179_s8 }
 0xcaf   : > { %7613 = vrot.lane.b32.xlu1 %v6976_v55, %s12179_s8  ;;  %7359 = vrot.lane.b32.xlu0 %v16378_v38, %s12177_s23 }
 0xcb3   : > { %7521 = vrot.lane.b32.xlu1 %v16379_v4, %s12178_s24  ;;  %7487 = vrot.lane.b32.xlu0 %v16380_v20, %s12178_s24 }
 0xcb7   : > { %7395 = vrot.lane.b32.xlu0 %v16381_v50, %s12177_s23  ;;  %7633 = vrot.lane.b32.xlu1 %v7139_v14, %s12179_s8 }
 0xcbb   : > { %7615 = vrot.lane.b32.xlu0 %v10160_v32, %s12179_s8 }
 0xcc4   : > { %v7592_v63 = vpop.permute.xlu0 %7591 }
 0xcc5   : > { %v7590_v52 = vpop.permute.xlu1 %7589  ;;  %v7752_v34 = vsel %vm7750_vm5, %v15408_v49, %v7592_v63 }
 0xcc6   : > { %v7751_v1 = vsel %vm7750_vm5, %v15418_v58, %v7590_v52  ;;  %v16383_v52 = vld [vmem:[#allocation85_spill] sm:$0xff] }
 0xcc7   : > { %10228 = vmatprep.mubr.msk.f32.mxu0 %vm318_vm0, %v7751_v1  ;;  %v16384_v1 = vld [vmem:[#allocation73_spill] sm:$0xff] }
 0xcc8   : > { %10229 = vmatmul.mubr.msk.f32.vlgmr.msra.gmra.mrb[160].mxu0 %vm318_vm0, %v7752_v34  ;;  %v7697_v34 = vsel %vm696_vm1, %v16384_v1, %v15578_v48 }
 0xccc   : > { %v7596_v15 = vpop.permute.xlu0 %7595 }
 0xccd   : > { %v7594_v33 = vpop.permute.xlu1 %7593  ;;  %v7754_v59 = vsel %vm7750_vm5, %v15432_v19, %v7596_v15 }
 0xcce   : > { %v7753_v25 = vsel %vm7750_vm5, %v15439_v24, %v7594_v33 }
 0xccf   : > { %10231 = vmatprep.mubr.msk.f32.mxu0 %vm318_vm0, %v7753_v25 }
 0xcd0   : > { %10232 = vmatmul.mubr.msk.f32.gmra.mrb[162].mxu0 %vm318_vm0, %v7754_v59 }
 0xcd4   : > { %v7600_v58 = vpop.permute.xlu0 %7599 }
 0xcd5   : > { %v7598_v28 = vpop.permute.xlu1 %7597  ;;  %v7756_v35 = vsel %vm7750_vm5, %v15452_v26, %v7600_v58 }
 0xcd6   : > { %v7755_v49 = vsel %vm7750_vm5, %v15465_v62, %v7598_v28 }
 0xcd7   : > { %10234 = vmatprep.mubr.msk.f32.mxu0 %vm318_vm0, %v7755_v49 }
 0xcd8   : > { %10235 = vmatmul.mubr.msk.f32.gmra.mrb[164].mxu0 %vm318_vm0, %v7756_v35 }
 0xcdc   : > { %v7604_v24 = vpop.permute.xlu0 %7603 }
 0xcdd   : > { %v7602_v45 = vpop.permute.xlu1 %7601  ;;  %v7758_v16 = vsel %vm7750_vm5, %v15484_v30, %v7604_v24  ;;  %v16385_v24 = vld [vmem:[#allocation69_spill] sm:$0xff] }
 0xcde   : > { %v7757_v19 = vsel %vm7750_vm5, %v15491_v46, %v7602_v45 }
 0xcdf   : > { %10237 = vmatprep.mubr.msk.f32.mxu0 %vm318_vm0, %v7757_v19 }
 0xce0   : > { %10238 = vmatmul.mubr.msk.f32.gmra.mrb[166].mxu0 %vm318_vm0, %v7758_v16 }
 0xce5   : > { %v10210_v62 = vpop.f32.mrb[152].mxu0 }
 0xce6   : > { %7639 = vrot.lane.b32.xlu0 %v10210_v62, %s12179_s8  ;;  %v7262_v26 = vpop.f32.mrb[153].mxu0 }
 0xce7   : > { %7637 = vrot.lane.b32.xlu1 %v7262_v26, %s12179_s8 }
 0xce9   : > { %v10213_v21 = vpop.f32.mrb[154].mxu0 }
 0xcea   : > { %7643 = vrot.lane.b32.xlu0 %v10213_v21, %s12179_s8  ;;  %v7272_v22 = vpop.f32.mrb[155].mxu0 }
 0xceb   : > { %7641 = vrot.lane.b32.xlu1 %v7272_v22, %s12179_s8 }
 0xced   : > { %v10216_v46 = vpop.f32.mrb[156].mxu0 }
 0xcee   : > { %v7624_v8 = vpop.permute.xlu0 %7623  ;;  %7647 = vrot.lane.b32.xlu0 %v10216_v46, %s12179_s8  ;;  %v7282_v30 = vpop.f32.mrb[157].mxu0 }
 0xcef   : > { %v7622_v6 = vpop.permute.xlu1 %7621  ;;  %7645 = vrot.lane.b32.xlu1 %v7282_v30, %s12179_s8 }
 0xcf0   : > { %v7767_v15 = vsel %vm7750_vm5, %v15382_v57, %v7622_v6 }
 0xcf1   : > { %v10219_v51 = vpop.f32.mrb[158].mxu0 }
 0xcf2   : > { %v7608_v10 = vpop.permute.xlu0 %7607  ;;  %v7292_v43 = vpop.f32.mrb[159].mxu0 }
 0xcf3   : > { %v7606_v29 = vpop.permute.xlu1 %7605  ;;  %7523 = vrot.lane.b32.xlu1 %v16382_v54, %s12178_s24  ;;  %7649 = vrot.lane.b32.xlu0 %v7292_v43, %s12179_s8  ;;  %v7760_v32 = vsel %vm7750_vm5, %v15507_v31, %v7608_v10 }
 0xcf4   : > { %v7759_v0 = vsel %vm7750_vm5, %v15515_v61, %v7606_v29  ;;  %v16386_v29 = vld [vmem:[#allocation84_spill] sm:$0xff] }
 0xcf5   : > { %10240 = vmatprep.mubr.msk.f32.mxu0 %vm318_vm0, %v7759_v0  ;;  %v15700_v0 = vld [vmem:[%s15812_s4] ss:$0 sm:$0xff] }
 0xcf6   : > { %10241 = vmatmul.mubr.msk.f32.gmra.mrb[168].mxu0 %vm318_vm0, %v7760_v32 }
 0xcf7   : > { %7651 = vrot.lane.b32.xlu1 %v10219_v51, %s12179_s8 }
 0xcf8   : > { %v7628_v55 = vpop.permute.xlu0 %7627 }
 0xcf9   : > { %v7626_v37 = vpop.permute.xlu1 %7625  ;;  %v7770_v28 = vsel %vm7750_vm5, %v15422_v60, %v7628_v55 }
 0xcfa   : > { %v7769_v48 = vsel %vm7750_vm5, %v15429_v56, %v7626_v37 }
 0xcfd   : > { %v7612_v7 = vpop.permute.xlu0 %7611 }
 0xcfe   : > { %v7610_v13 = vpop.permute.xlu1 %7609  ;;  %v7762_v14 = vsel %vm7750_vm5, %v15531_v47, %v7612_v7 }
 0xcff   : > { %v7761_v44 = vsel %vm7750_vm5, %v15541_v11, %v7610_v13 }
 0xd00   : > { %10243 = vmatprep.mubr.msk.f32.mxu0 %vm318_vm0, %v7761_v44 }
 0xd01   : > { %10244 = vmatmul.mubr.msk.f32.gmra.mrb[170].mxu0 %vm318_vm0, %v7762_v14 }
 0xd04   : > { %v7632_v61 = vpop.permute.xlu0 %7631 }
 0xd05   : > { %v7630_v31 = vpop.permute.xlu1 %7629  ;;  %v7772_v56 = vsel %vm7750_vm5, %v15442_v27, %v7632_v61 }
 0xd06   : > { %v7771_v49 = vsel %vm7750_vm5, %v15449_v40, %v7630_v31 }
 0xd15   : > { %v7620_v12 = vpop.permute.xlu1 %7619 }
 0xd16   : > { %v7766_v47 = vsel %vm7750_vm5, %v15390_v3, %v7620_v12  ;;  %v7768_v3 = vsel %vm7750_vm5, %v15403_v2, %v7624_v8 }
 0xd19   : > { %v7636_v38 = vpop.permute.xlu0 %7635  ;;  %v7486_v4 = vpop.permute.xlu1 %7485 }
 0xd1a   : > { %v7730_v33 = vsel %vm7717_vm4, %v7697_v34, %v7486_v4  ;;  %v7774_v62 = vsel %vm7750_vm5, %v15468_v17, %v7636_v38 }
 0xd1d   : > { %v7618_v20 = vpop.permute.xlu0 %7617  ;;  %v7394_v50 = vpop.permute.xlu1 %7393 }
 0xd1e   : > { %v7765_v63 = vsel %vm7750_vm5, %v15385_v42, %v7618_v20  ;;  %v7715_v11 = vsel %vm696_vm1, %v16383_v52, %v7394_v50 }
 0xd1f   : > { %10249 = vmatprep.mubr.msk.f32.mxu1 %vm318_vm0, %v7765_v63 }
 0xd20   : > { %10250 = vmatmul.mubr.msk.f32.vlgmr.msra.gmra.mrb[128].mxu1 %vm318_vm0, %v7766_v47 }
 0xd21   : > { %v7360_v42 = vpop.permute.xlu0 %7359  ;;  %10252 = vmatprep.mubr.msk.f32.mxu1 %vm318_vm0, %v7767_v15  ;;  %v7614_v25 = vpop.permute.xlu1 %7613 }
 0xd22   : > { %v7763_v59 = vsel %vm7750_vm5, %v7730_v33, %v7614_v25  ;;  %v7698_v45 = vsel %vm696_vm1, %v16385_v24, %v7360_v42 }
 0xd23   : > { %10246 = vmatprep.mubr.msk.f32.mxu0 %vm318_vm0, %v7763_v59 }
 0xd24   : > { %10253 = vmatmul.mubr.msk.f32.gmra.mrb[130].mxu1 %vm318_vm0, %v7768_v3 }
 0xd25   : > { %v7488_v57 = vpop.permute.xlu0 %7487  ;;  %10255 = vmatprep.mubr.msk.f32.mxu1 %vm318_vm0, %v7769_v48  ;;  %v7522_v58 = vpop.permute.xlu1 %7521 }
 0xd26   : > { %v7731_v60 = vsel %vm7717_vm4, %v7698_v45, %v7488_v57 }
 0xd28   : > { %10256 = vmatmul.mubr.msk.f32.gmra.mrb[132].mxu1 %vm318_vm0, %v7770_v28 }
 0xd29   : > { %v7396_v2 = vpop.permute.xlu0 %7395  ;;  %10258 = vmatprep.mubr.msk.f32.mxu1 %vm318_vm0, %v7771_v49  ;;  %v7634_v35 = vpop.permute.xlu1 %7633 }
 0xd2a   : > { %v7773_v19 = vsel %vm7750_vm5, %v15481_v18, %v7634_v35 }
 0xd2c   : > { %10259 = vmatmul.mubr.msk.f32.gmra.mrb[134].mxu1 %vm318_vm0, %v7772_v56 }
 0xd2d   : > { %v7616_v40 = vpop.permute.xlu0 %7615  ;;  %10261 = vmatprep.mubr.msk.f32.mxu1 %vm318_vm0, %v7773_v19 }
 0xd2e   : > { %v7764_v16 = vsel %vm7750_vm5, %v7731_v60, %v7616_v40 }
 0xd2f   : > { %10247 = vmatmul.mubr.msk.f32.gmra.mrb[172].mxu0 %vm318_vm0, %v7764_v16 }
 0xd30   : > { %10262 = vmatmul.mubr.msk.f32.gmra.mrb[136].mxu1 %vm318_vm0, %v7774_v62 }
 0xd58   : > { %v7640_v27 = vpop.permute.xlu0 %7639 }
 0xd59   : > { %v7638_v26 = vpop.permute.xlu1 %7637  ;;  %v7776_v21 = vsel %vm7750_vm5, %v15495_v9, %v7640_v27  ;;  %v7747_v9 = vsel %vm7717_vm4, %v15538_v5, %v15576_v23  ;;  %v7716_v5 = vsel %vm696_vm1, %v16386_v29, %v7396_v2 }
 0xd5a   : > { %v7775_v18 = vsel %vm7750_vm5, %v15503_v39, %v7638_v26 }
 0xd5b   : > { %10264 = vmatprep.mubr.msk.f32.mxu1 %vm318_vm0, %v7775_v18 }
 0xd5c   : > { %10265 = vmatmul.mubr.msk.f32.gmra.mrb[138].mxu1 %vm318_vm0, %v7776_v21  ;;  %v7644_v22 = vpop.permute.xlu0 %7643 }
 0xd5d   : > { %v7642_v46 = vpop.permute.xlu1 %7641  ;;  %v7778_v8 = vsel %vm7750_vm5, %v15519_v53, %v7644_v22  ;;  %v7748_v53 = vsel %vm7717_vm4, %v7715_v11, %v7522_v58 }
 0xd5e   : > { %v7777_v17 = vsel %vm7750_vm5, %v15527_v36, %v7642_v46 }
 0xd5f   : > { %10267 = vmatprep.mubr.msk.f32.mxu1 %vm318_vm0, %v7777_v17 }
 0xd60   : > { %10268 = vmatmul.mubr.msk.f32.gmra.mrb[140].mxu1 %vm318_vm0, %v7778_v8  ;;  %v7648_v39 = vpop.permute.xlu0 %7647 }
 0xd61   : > { %v7646_v30 = vpop.permute.xlu1 %7645  ;;  %v7780_v51 = vsel %vm7750_vm5, %v7747_v9, %v7648_v39 }
 0xd62   : > { %v7779_v6 = vsel %vm7750_vm5, %v15546_v41, %v7646_v30 }
 0xd63   : > { %10270 = vmatprep.mubr.msk.f32.mxu1 %vm318_vm0, %v7779_v6 }
 0xd64   : > { %10271 = vmatmul.mubr.msk.f32.gmra.mrb[142].mxu1 %vm318_vm0, %v7780_v51 }
 0xd65   : > { %v7524_v36 = vpop.permute.xlu1 %7523  ;;  %v7650_v10 = vpop.permute.xlu0 %7649 }
 0xd66   : > { %v7781_v43 = vsel %vm7750_vm5, %v7748_v53, %v7650_v10  ;;  %v7749_v23 = vsel %vm7717_vm4, %v7716_v5, %v7524_v36 }
 0xd67   : > { %10273 = vmatprep.mubr.msk.f32.mxu1 %vm318_vm0, %v7781_v43 }
 0xd69   : > { %v7652_v41 = vpop.permute.xlu1 %7651 }
 0xd6a   : > { %v7782_v54 = vsel %vm7750_vm5, %v7749_v23, %v7652_v41 }
 0xd6b   : > { %10274 = vmatmul.mubr.msk.f32.gmra.mrb[144].mxu1 %vm318_vm0, %v7782_v54 }
 0xd9b   : > { %v10230_v32 = vpop.f32.mrb[160].mxu0 }
 0xd9c   : > { %v7962_v55 = vadd.f32 %v10230_v32, %v15700_v0  ;;  %v7956_v37 = vpop.f32.mrb[161].mxu0 }
 0xd9d   : > { %v7957_v7 = vadd.f32 %v15700_v0, %v7956_v37 }
 0xd9e   : > { %8116 = vst.msk [vmem:[%s15707_s13 + $0x8] sm:$0xff] %vm318_vm0, %v7962_v55 }
 0xd9f   : > { %8115 = vst.msk [vmem:[%s15707_s13] sm:$0xff] %vm318_vm0, %v7957_v7 }
 0xda3   : > { %v10233_v13 = vpop.f32.mrb[162].mxu0 }
 0xda4   : > { %v7972_v44 = vadd.f32 %v10233_v13, %v15700_v0  ;;  %v7966_v14 = vpop.f32.mrb[163].mxu0 }
 0xda5   : > { %v7967_v31 = vadd.f32 %v15700_v0, %v7966_v14 }
 0xda6   : > { %8118 = vst.msk [vmem:[%s15707_s13 + $0x18] sm:$0xff] %vm318_vm0, %v7972_v44 }
 0xda7   : > { %8117 = vst.msk [vmem:[%s15707_s13 + $0x10] sm:$0xff] %vm318_vm0, %v7967_v31 }
 0xdab   : > { %v10236_v61 = vpop.f32.mrb[164].mxu0 }
 0xdac   : > { %v7982_v12 = vadd.f32 %v10236_v61, %v15700_v0  ;;  %v7976_v38 = vpop.f32.mrb[165].mxu0 }
 0xdad   : > { %v7977_v4 = vadd.f32 %v15700_v0, %v7976_v38 }
 0xdae   : > { %8120 = vst.msk [vmem:[%s15707_s13 + $0x28] sm:$0xff] %vm318_vm0, %v7982_v12 }
 0xdaf   : > { %8119 = vst.msk [vmem:[%s15707_s13 + $0x20] sm:$0xff] %vm318_vm0, %v7977_v4 }
 0xdb3   : > { %v10239_v20 = vpop.f32.mrb[166].mxu0 }
 0xdb4   : > { %v7992_v50 = vadd.f32 %v10239_v20, %v15700_v0  ;;  %v7986_v63 = vpop.f32.mrb[167].mxu0 }
 0xdb5   : > { %v7987_v52 = vadd.f32 %v15700_v0, %v7986_v63 }
 0xdb6   : > { %8122 = vst.msk [vmem:[%s15707_s13 + $0x38] sm:$0xff] %vm318_vm0, %v7992_v50 }
 0xdb7   : > { %8121 = vst.msk [vmem:[%s15707_s13 + $0x30] sm:$0xff] %vm318_vm0, %v7987_v52 }
 0xdc9   : > { %v10242_v11 = vpop.f32.mrb[168].mxu0 }
 0xdca   : > { %v8002_v47 = vadd.f32 %v10242_v11, %v15700_v0  ;;  %v7996_v1 = vpop.f32.mrb[169].mxu0 }
 0xdcb   : > { %v7997_v34 = vadd.f32 %v15700_v0, %v7996_v1 }
 0xdcc   : > { %8124 = vst.msk [vmem:[%s15707_s13 + $0x48] sm:$0xff] %vm318_vm0, %v8002_v47 }
 0xdcd   : > { %8123 = vst.msk [vmem:[%s15707_s13 + $0x40] sm:$0xff] %vm318_vm0, %v7997_v34 }
 0xdd4   : > { %v10245_v15 = vpop.f32.mrb[170].mxu0 }
 0xdd5   : > { %v8012_v33 = vadd.f32 %v10245_v15, %v15700_v0  ;;  %v8006_v42 = vpop.f32.mrb[171].mxu0 }
 0xdd6   : > { %v8007_v25 = vadd.f32 %v15700_v0, %v8006_v42 }
 0xdd7   : > { %8126 = vst.msk [vmem:[%s15707_s13 + $0x58] sm:$0xff] %vm318_vm0, %v8012_v33 }
 0xdd8   : > { %8125 = vst.msk [vmem:[%s15707_s13 + $0x50] sm:$0xff] %vm318_vm0, %v8007_v25 }
 0xdf3   : > { %v10251_v59 = vpop.f32.mrb[128].mxu1 }
 0xdf4   : > { %v8032_v3 = vadd.f32 %v10251_v59, %v15700_v0  ;;  %v8026_v48 = vpop.f32.mrb[129].mxu1 }
 0xdf5   : > { %v8027_v57 = vadd.f32 %v15700_v0, %v8026_v48 }
 0xdf6   : > { %8130 = vst.msk [vmem:[%s15707_s13 + $0x78] sm:$0xff] %vm318_vm0, %v8032_v3 }
 0xdf7   : > { %8129 = vst.msk [vmem:[%s15707_s13 + $0x70] sm:$0xff] %vm318_vm0, %v8027_v57  ;;  %v10254_v58 = vpop.f32.mrb[130].mxu1 }
 0xdf8   : > { %v8042_v28 = vadd.f32 %v10254_v58, %v15700_v0  ;;  %v8036_v49 = vpop.f32.mrb[131].mxu1 }
 0xdf9   : > { %v8037_v2 = vadd.f32 %v15700_v0, %v8036_v49 }
 0xdfa   : > { %8132 = vst.msk [vmem:[%s15707_s13 + $0x88] sm:$0xff] %vm318_vm0, %v8042_v28 }
 0xdfb   : > { %8131 = vst.msk [vmem:[%s15707_s13 + $0x80] sm:$0xff] %vm318_vm0, %v8037_v2  ;;  %v10257_v35 = vpop.f32.mrb[132].mxu1 }
 0xdfc   : > { %v8052_v56 = vadd.f32 %v10257_v35, %v15700_v0  ;;  %v8046_v24 = vpop.f32.mrb[133].mxu1 }
 0xdfd   : > { %v8047_v45 = vadd.f32 %v15700_v0, %v8046_v24 }
 0xdfe   : > { %8134 = vst.msk [vmem:[%s15707_s13 + $0x98] sm:$0xff] %vm318_vm0, %v8052_v56 }
 0xdff   : > { %8133 = vst.msk [vmem:[%s15707_s13 + $0x90] sm:$0xff] %vm318_vm0, %v8047_v45  ;;  %v10260_v19 = vpop.f32.mrb[134].mxu1 }
 0xe00   : > { %v8056_v60 = vpop.f32.mrb[135].mxu1  ;;  %v8062_v26 = vadd.f32 %v10260_v19, %v15700_v0 }
 0xe01   : > { %v8057_v46 = vadd.f32 %v15700_v0, %v8056_v60 }
 0xe02   : > { %v10248_v40 = vpop.f32.mrb[172].mxu0  ;;  %8136 = vst.msk [vmem:[%s15707_s13 + $0xa8] sm:$0xff] %vm318_vm0, %v8062_v26 }
 0xe03   : > { %v8022_v16 = vadd.f32 %v10248_v40, %v15700_v0  ;;  %v8016_v62 = vpop.f32.mrb[173].mxu0  ;;  %v10263_v27 = vpop.f32.mrb[136].mxu1  ;;  %8135 = vst.msk [vmem:[%s15707_s13 + $0xa0] sm:$0xff] %vm318_vm0, %v8057_v46 }
 0xe04   : > { %v8017_v18 = vadd.f32 %v15700_v0, %v8016_v62  ;;  %v8072_v21 = vadd.f32 %v10263_v27, %v15700_v0  ;;  %v8066_v22 = vpop.f32.mrb[137].mxu1 }
 0xe05   : > { %8128 = vst.msk [vmem:[%s15707_s13 + $0x68] sm:$0xff] %vm318_vm0, %v8022_v16  ;;  %v8067_v17 = vadd.f32 %v15700_v0, %v8066_v22 }
 0xe06   : > { %8127 = vst.msk [vmem:[%s15707_s13 + $0x60] sm:$0xff] %vm318_vm0, %v8017_v18  ;;  %8138 = vst.msk [vmem:[%s15707_s13 + $0xb8] sm:$0xff] %vm318_vm0, %v8072_v21 }
 0xe07   : > { %8137 = vst.msk [vmem:[%s15707_s13 + $0xb0] sm:$0xff] %vm318_vm0, %v8067_v17 }
 0xe2f   : > { %v10266_v8 = vpop.f32.mrb[138].mxu1 }
 0xe30   : > { %v8082_v39 = vadd.f32 %v10266_v8, %v15700_v0  ;;  %v8076_v30 = vpop.f32.mrb[139].mxu1 }
 0xe31   : > { %v8077_v9 = vadd.f32 %v15700_v0, %v8076_v30 }
 0xe32   : > { %8140 = vst.msk [vmem:[%s15707_s13 + $0xc8] sm:$0xff] %vm318_vm0, %v8082_v39 }
 0xe33   : > { %8139 = vst.msk [vmem:[%s15707_s13 + $0xc0] sm:$0xff] %vm318_vm0, %v8077_v9  ;;  %v10269_v6 = vpop.f32.mrb[140].mxu1 }
 0xe34   : > { %v8092_v51 = vadd.f32 %v10269_v6, %v15700_v0  ;;  %v8086_v53 = vpop.f32.mrb[141].mxu1 }
 0xe35   : > { %v8087_v36 = vadd.f32 %v15700_v0, %v8086_v53 }
 0xe36   : > { %8142 = vst.msk [vmem:[%s15707_s13 + $0xd8] sm:$0xff] %vm318_vm0, %v8092_v51 }
 0xe37   : > { %8141 = vst.msk [vmem:[%s15707_s13 + $0xd0] sm:$0xff] %vm318_vm0, %v8087_v36  ;;  %v10272_v10 = vpop.f32.mrb[142].mxu1 }
 0xe38   : > { %v8102_v43 = vadd.f32 %v10272_v10, %v15700_v0  ;;  %v8096_v29 = vpop.f32.mrb[143].mxu1 }
 0xe39   : > { %v8097_v5 = vadd.f32 %v15700_v0, %v8096_v29 }
 0xe3a   : > { %8144 = vst.msk [vmem:[%s15707_s13 + $0xe8] sm:$0xff] %vm318_vm0, %v8102_v43 }
 0xe3b   : > { %8143 = vst.msk [vmem:[%s15707_s13 + $0xe0] sm:$0xff] %vm318_vm0, %v8097_v5 }
 0xe3e   : > { %v10275_v23 = vpop.f32.mrb[144].mxu1 }
 0xe3f   : > { %v8112_v41 = vadd.f32 %v10275_v23, %v15700_v0  ;;  %v8106_v54 = vpop.f32.mrb[145].mxu1 }
 0xe40   : > { %v8107_v32 = vadd.f32 %v15700_v0, %v8106_v54 }
 0xe41   : > { %8146 = vst.msk [vmem:[%s15707_s13 + $0xf8] sm:$0xff] %vm318_vm0, %v8112_v41 }
 0xe42   : > { %8145 = vst.msk [vmem:[%s15707_s13 + $0xf0] sm:$0xff] %vm318_vm0, %v8107_v32 }
 0xe43 PF: > { %s17_s21 = sadd.s32 1, %s12161_s21  }
 0xe44   : > { %p14_p3 = scmp.ge.s32.totalorder %s17_s21, 4  }
 0xe46   :  { %16 = sbr.rel (!%p14_p3) target bundleno = 1 (0x1), region = 82 }
 0xe4d   :  { %8171 = vsyncpa [#allocation3], 1 }
 0xe4e   :  { %8173 = vsyncpa [#allocation3 + $0x1], 1 }

</bundles_post_ra>
